<compile_context>
chip_gen: v5e
topology: v5e:2x2
jax: 0.10.0
libtpu: 0.0.40
codegen_flags: <defaults>
</compile_context>

<pallas_src>
import math

import jax
import jax.numpy as jnp
from jax import lax
from jax.experimental import pallas as pl
from jax.experimental.pallas import tpu as pltpu

H_DIM = 64
R_DIM = 8
X_DIM = 45
Y_DIM = 1
Z_DIM = 16
BN_EPS = 1e-5
_NEG_HALF_LOG_2PI = -0.5 * math.log(2.0 * math.pi)


def _full_spec(shape):
    nd = len(shape)
    return pl.BlockSpec(shape, lambda i, _nd=nd: (0,) * _nd)


# ---------------------------------------------------------------------------
# Fused encoder kernel: LSTM + h->r + aggregate + both z heads + reparam + KL
# ---------------------------------------------------------------------------
def _encoder_pallas(kp, xy2d, eps, *, batch, n_ctx, n_all):
    """xy2d: (n_all*batch, x+y) time-major flattened.  Returns (z, kl)."""
    H = H_DIM

    def kernel(xy_ref, wih_ref, whh_ref, b_ref, h2rw_ref, h2rb_ref,
               zw1_ref, zb1_ref, zg_ref, zbt_ref, zw2_ref, zb2_ref, eps_ref,
               z_ref, kl_ref):
        xv = xy_ref[...]                                       # (T*B, 46)
        # Hoisted per-gate input projection (out of the serial recurrence).
        xp = [jnp.dot(xv, wih_ref[k], preferred_element_type=jnp.float32)
              + b_ref[k] for k in range(4)]                    # 4 x (T*B, 64)
        whh = [whh_ref[k] for k in range(4)]                   # 4 x (64, 64)

        h = jnp.zeros((batch, H), jnp.float32)
        c = jnp.zeros((batch, H), jnp.float32)
        h_sum = jnp.zeros((batch, H), jnp.float32)
        h_sum_ctx = h_sum

        # Fully unrolled time loop (T static): all slices are static.
        for t in range(n_all):
            r0 = t * batch
            pre = [xp[k][r0:r0 + batch, :]
                   + jnp.dot(h, whh[k], preferred_element_type=jnp.float32)
                   for k in range(4)]
            i_g = jax.nn.sigmoid(pre[0])
            f_g = jax.nn.sigmoid(pre[1])
            g_g = jnp.tanh(pre[2])
            o_g = jax.nn.sigmoid(pre[3])
            c = f_g * c + i_g * g_g
            h = o_g * jnp.tanh(c)
            h_sum = h_sum + h
            if t == n_ctx - 1:            # static: context-prefix snapshot
                h_sum_ctx = h_sum

        # mean_t(h_t @ W + b) == (mean_t h_t) @ W + b  (affine commutes).
        r_ctx = (jnp.dot(h_sum_ctx * (1.0 / n_ctx), h2rw_ref[...],
                         preferred_element_type=jnp.float32) + h2rb_ref[...])
        r_all = (jnp.dot(h_sum * (1.0 / n_all), h2rw_ref[...],
                         preferred_element_type=jnp.float32) + h2rb_ref[...])

        def z_head(rm):
            # Column-fused [z_mu | z_log_var]: Linear -> BN(train) -> ReLU -> Linear.
            h1 = (jnp.dot(rm, zw1_ref[...],
                          preferred_element_type=jnp.float32) + zb1_ref[...])
            mu = jnp.mean(h1, axis=0, keepdims=True)
            var = jnp.mean((h1 - mu) * (h1 - mu), axis=0, keepdims=True)
            h1 = (h1 - mu) * lax.rsqrt(var + BN_EPS) * zg_ref[...] + zbt_ref[...]
            h1 = jnp.maximum(h1, 0.0)
            out = (jnp.dot(h1, zw2_ref[...],
                           preferred_element_type=jnp.float32) + zb2_ref[...])
            return out[:, :Z_DIM], out[:, Z_DIM:]              # z_mu, z_log_var

        zmu_c, zlv_c = z_head(r_ctx)
        zmu_a, zlv_a = z_head(r_all)
        zstd_c = jnp.exp(0.5 * zlv_c)
        zstd_a = jnp.exp(0.5 * zlv_a)

        # Reparametrized latent used by the decoder.
        z_ref[...] = zmu_a + zstd_a * eps_ref[...]

        # KL(N(all) || N(ctx)).mean(batch).sum(z) -> scalar.
        kl_el = (jnp.log(zstd_c) - jnp.log(zstd_a)
                 + (zstd_a * zstd_a + (zmu_a - zmu_c) * (zmu_a - zmu_c))
                 / (2.0 * zstd_c * zstd_c) - 0.5)
        kl_b = jnp.sum(kl_el, axis=1, keepdims=True)           # (B, 1)
        kl_ref[...] = jnp.sum(kl_b, axis=0, keepdims=True) * (1.0 / batch)

    inputs = (xy2d, kp["enc_wih4"], kp["enc_whh4"], kp["enc_b4"],
              kp["h2r_w"], kp["h2r_b"], kp["zw1"], kp["zb1"],
              kp["zgamma"], kp["zbeta"], kp["zw2"], kp["zb2"], eps)
    z, kl = pl.pallas_call(
        kernel,
        out_shape=(jax.ShapeDtypeStruct((batch, Z_DIM), jnp.float32),
                   jax.ShapeDtypeStruct((1, 1), jnp.float32)),
        grid=(1,),
        in_specs=[_full_spec(a.shape) for a in inputs],
        out_specs=(_full_spec((batch, Z_DIM)), _full_spec((1, 1))),
    )(*inputs)
    return z, kl


# ---------------------------------------------------------------------------
# Fused decoder kernel: LSTM + fused y heads + Gaussian NLL (recon scalar)
# ---------------------------------------------------------------------------
def _decoder_pallas(kp, x2d, yt2d, z, *, batch, n_tgt):
    H = H_DIM

    def kernel(x_ref, yt_ref, z_ref, wihx_ref, wihz_ref, b_ref, whh_ref,
               yw_ref, yb_ref, recon_ref, hseq_scr):
        xv = x_ref[...]                                        # (N*B, 45)
        zv = z_ref[...]                                        # (B, 16)
        # The z (+bias) contribution to every step's gate pre-activation is
        # time-invariant -> hoist it along with the x projection.
        xp = [jnp.dot(xv, wihx_ref[k], preferred_element_type=jnp.float32)
              for k in range(4)]                               # 4 x (N*B, 64)
        zp = [jnp.dot(zv, wihz_ref[k], preferred_element_type=jnp.float32)
              + b_ref[k] for k in range(4)]                    # 4 x (B, 64)
        whh = [whh_ref[k] for k in range(4)]

        h = jnp.zeros((batch, H), jnp.float32)
        c = jnp.zeros((batch, H), jnp.float32)
        for t in range(n_tgt):
            r0 = t * batch
            pre = [xp[k][r0:r0 + batch, :] + zp[k]
                   + jnp.dot(h, whh[k], preferred_element_type=jnp.float32)
                   for k in range(4)]
            i_g = jax.nn.sigmoid(pre[0])
            f_g = jax.nn.sigmoid(pre[1])
            g_g = jnp.tanh(pre[2])
            o_g = jax.nn.sigmoid(pre[3])
            c = f_g * c + i_g * g_g
            h = o_g * jnp.tanh(c)
            hseq_scr[r0:r0 + batch, :] = h                     # stays in VMEM

        hs = hseq_scr[...]                                     # (N*B, 64)
        # Fused [y_mu | y_log_var] head over all steps at once.
        yh = (jnp.dot(hs, yw_ref[...],
                      preferred_element_type=jnp.float32) + yb_ref[...])
        y_mu = yh[:, 0:1]
        y_std = jnp.exp(0.5 * yh[:, 1:2])
        yt = yt_ref[...]
        dv = (yt - y_mu) / y_std
        lp = -0.5 * dv * dv - jnp.log(y_std) + _NEG_HALF_LOG_2PI
        lp_b = jnp.sum(lp, axis=1, keepdims=True)              # (N*B, 1)
        recon_ref[...] = (-jnp.sum(lp_b, axis=0, keepdims=True)
                          * (1.0 / (batch * n_tgt)))

    inputs = (x2d, yt2d, z, kp["dec_wihx4"], kp["dec_wihz4"], kp["dec_b4"],
              kp["dec_whh4"], kp["yw"], kp["yb"])
    recon = pl.pallas_call(
        kernel,
        out_shape=jax.ShapeDtypeStruct((1, 1), jnp.float32),
        grid=(1,),
        in_specs=[_full_spec(a.shape) for a in inputs],
        out_specs=_full_spec((1, 1)),
        scratch_shapes=[pltpu.VMEM((n_tgt * batch, H), jnp.float32)],
    )(*inputs)
    return recon


# ---------------------------------------------------------------------------
# Parameters (PyTorch-style uniform init) and kernel-friendly repacking
# ---------------------------------------------------------------------------
def _uniform(key, shape, k):
    return jax.random.uniform(key, shape, dtype=jnp.float32, minval=-k, maxval=k)


def init_params(key):
    ks = iter(jax.random.split(key, 32))
    kl = 1.0 / math.sqrt(H_DIM)
    k = 1.0 / math.sqrt(H_DIM)
    kr = 1.0 / math.sqrt(R_DIM)
    p = {}
    # xy_to_h LSTM (input = x_dim + y_dim = 46); gate order i, f, g, o.
    p["enc_wih"] = _uniform(next(ks), (X_DIM + Y_DIM, 4 * H_DIM), kl)
    p["enc_whh"] = _uniform(next(ks), (H_DIM, 4 * H_DIM), kl)
    p["enc_b"] = (_uniform(next(ks), (1, 4 * H_DIM), kl)
                  + _uniform(next(ks), (1, 4 * H_DIM), kl))     # b_ih + b_hh
    # h_to_r Linear(64 -> 8)
    p["h2r_w"] = _uniform(next(ks), (H_DIM, R_DIM), k)
    p["h2r_b"] = _uniform(next(ks), (1, R_DIM), k)
    # xz_to_h LSTM (input = x_dim + z_dim = 61)
    p["dec_wih"] = _uniform(next(ks), (X_DIM + Z_DIM, 4 * H_DIM), kl)
    p["dec_whh"] = _uniform(next(ks), (H_DIM, 4 * H_DIM), kl)
    p["dec_b"] = (_uniform(next(ks), (1, 4 * H_DIM), kl)
                  + _uniform(next(ks), (1, 4 * H_DIM), kl))
    # h_to_y_mu / h_to_y_log_var Linear(64 -> 1)
    p["ymu_w"] = _uniform(next(ks), (H_DIM, Y_DIM), k)
    p["ymu_b"] = _uniform(next(ks), (1, Y_DIM), k)
    p["ylv_w"] = _uniform(next(ks), (H_DIM, Y_DIM), k)
    p["ylv_b"] = _uniform(next(ks), (1, Y_DIM), k)
    # r_to_z_mu / r_to_z_log_var: Linear(8->64), BN(64), ReLU, Linear(64->16)
    p["zmu_w1"] = _uniform(next(ks), (R_DIM, H_DIM), kr)
    p["zmu_b1"] = _uniform(next(ks), (1, H_DIM), kr)
    p["zmu_gamma"] = jnp.ones((1, H_DIM), jnp.float32)
    p["zmu_beta"] = jnp.zeros((1, H_DIM), jnp.float32)
    p["zmu_w2"] = _uniform(next(ks), (H_DIM, Z_DIM), k)
    p["zmu_b2"] = _uniform(next(ks), (1, Z_DIM), k)
    p["zlv_w1"] = _uniform(next(ks), (R_DIM, H_DIM), kr)
    p["zlv_b1"] = _uniform(next(ks), (1, H_DIM), kr)
    p["zlv_gamma"] = jnp.ones((1, H_DIM), jnp.float32)
    p["zlv_beta"] = jnp.zeros((1, H_DIM), jnp.float32)
    p["zlv_w2"] = _uniform(next(ks), (H_DIM, Z_DIM), k)
    p["zlv_b2"] = _uniform(next(ks), (1, Z_DIM), k)
    # Note: `xy_to_r` Sequential exists in __init__ but is unused in forward().
    return p


def _split_gates(w):
    """(D, 4H) -> (4, D, H); PyTorch gate order i, f, g, o along the 4H axis."""
    d = w.shape[0]
    return jnp.transpose(w.reshape(d, 4, H_DIM), (1, 0, 2))


def prepare_params(p):
    kp = {}
    kp["enc_wih4"] = _split_gates(p["enc_wih"])                  # (4, 46, 64)
    kp["enc_whh4"] = _split_gates(p["enc_whh"])                  # (4, 64, 64)
    kp["enc_b4"] = _split_gates(p["enc_b"])                      # (4,  1, 64)
    kp["h2r_w"] = p["h2r_w"]
    kp["h2r_b"] = p["h2r_b"]
    # Column-fused z heads: [z_mu | z_log_var] (BN stats are per-column -> exact).
    kp["zw1"] = jnp.concatenate([p["zmu_w1"], p["zlv_w1"]], axis=1)      # (8, 128)
    kp["zb1"] = jnp.concatenate([p["zmu_b1"], p["zlv_b1"]], axis=1)      # (1, 128)
    kp["zgamma"] = jnp.concatenate([p["zmu_gamma"], p["zlv_gamma"]], axis=1)
    kp["zbeta"] = jnp.concatenate([p["zmu_beta"], p["zlv_beta"]], axis=1)
    zw2 = jnp.zeros((2 * H_DIM, 2 * Z_DIM), jnp.float32)
    zw2 = zw2.at[:H_DIM, :Z_DIM].set(p["zmu_w2"])
    zw2 = zw2.at[H_DIM:, Z_DIM:].set(p["zlv_w2"])
    kp["zw2"] = zw2                                              # (128, 32) block-diag
    kp["zb2"] = jnp.concatenate([p["zmu_b2"], p["zlv_b2"]], axis=1)      # (1, 32)
    dec_wih4 = _split_gates(p["dec_wih"])                        # (4, 61, 64)
    kp["dec_wihx4"] = dec_wih4[:, :X_DIM, :]                     # (4, 45, 64)
    kp["dec_wihz4"] = dec_wih4[:, X_DIM:, :]                     # (4, 16, 64)
    kp["dec_b4"] = _split_gates(p["dec_b"])                      # (4,  1, 64)
    kp["dec_whh4"] = _split_gates(p["dec_whh"])                  # (4, 64, 64)
    kp["yw"] = jnp.concatenate([p["ymu_w"], p["ylv_w"]], axis=1)         # (64, 2)
    kp["yb"] = jnp.concatenate([p["ymu_b"], p["ylv_b"]], axis=1)         # (1, 2)
    return kp


# ---------------------------------------------------------------------------
# NeuralProcess forward (train mode): two pallas_calls total
# ---------------------------------------------------------------------------
def neural_process_forward_train(kp, x_context, y_context, x_target, y_target,
                                 eps_key):
    B, n_ctx, _ = x_context.shape
    n_tgt = x_target.shape[1]
    n_all = n_ctx + n_tgt

    # Single encoder pass over context+target: the original context-encoder
    # run is an exact prefix (same weights, zero initial LSTM state).
    xy_ctx = jnp.concatenate([x_context, y_context], axis=2)
    xy_tgt = jnp.concatenate([x_target, y_target], axis=2)
    xy_all = jnp.concatenate([xy_ctx, xy_tgt], axis=1)            # (B, n_all, 46)
    xy2d = jnp.transpose(xy_all, (1, 0, 2)).reshape(n_all * B, X_DIM + Y_DIM)

    eps = jax.random.normal(eps_key, (B, Z_DIM), dtype=jnp.float32)
    z, kl = _encoder_pallas(kp, xy2d, eps, batch=B, n_ctx=n_ctx, n_all=n_all)

    x2d = jnp.transpose(x_target, (1, 0, 2)).reshape(n_tgt * B, X_DIM)
    yt2d = jnp.transpose(y_target, (1, 0, 2)).reshape(n_tgt * B, Y_DIM)
    recon = _decoder_pallas(kp, x2d, yt2d, z, batch=B, n_tgt=n_tgt)
    return recon[0, 0], kl[0, 0]


# ---------------------------------------------------------------------------
if __name__ == "__main__":
    B, N_CTX, N_TGT = 2, 8, 8

    key = jax.random.PRNGKey(0)
    k_xc, k_yc, k_xt, k_yt, k_eps = jax.random.split(key, 5)
    x_context = jax.random.normal(k_xc, (B, N_CTX, X_DIM), jnp.float32)
    y_context = jax.random.normal(k_yc, (B, N_CTX, Y_DIM), jnp.float32)
    x_target = jax.random.normal(k_xt, (B, N_TGT, X_DIM), jnp.float32)
    y_target = jax.random.normal(k_yt, (B, N_TGT, Y_DIM), jnp.float32)

    params = init_params(jax.random.PRNGKey(42))
    kparams = prepare_params(params)

    fwd = jax.jit(neural_process_forward_train)
    recon, kl = fwd(kparams, x_context, y_context, x_target, y_target, k_eps)
    recon = jax.block_until_ready(recon)
    kl = jax.block_until_ready(kl)

    assert recon.shape == () and kl.shape == ()
    assert bool(jnp.isfinite(recon)) and bool(jnp.isfinite(kl))
    print("KERNEL_OK")
</pallas_src>

<mosaic_0001>
module attributes {stable_mosaic.version = 11 : i64} {
  func.func @kernel(%arg0: i32, %arg1: memref<32x46xf32, #tpu.memory_space<vmem>>, %arg2: memref<4x46x64xf32, #tpu.memory_space<vmem>>, %arg3: memref<4x64x64xf32, #tpu.memory_space<vmem>>, %arg4: memref<4x1x64xf32, #tpu.memory_space<vmem>>, %arg5: memref<64x8xf32, #tpu.memory_space<vmem>>, %arg6: memref<1x8xf32, #tpu.memory_space<vmem>>, %arg7: memref<8x128xf32, #tpu.memory_space<vmem>>, %arg8: memref<1x128xf32, #tpu.memory_space<vmem>>, %arg9: memref<1x128xf32, #tpu.memory_space<vmem>>, %arg10: memref<1x128xf32, #tpu.memory_space<vmem>>, %arg11: memref<128x32xf32, #tpu.memory_space<vmem>>, %arg12: memref<1x32xf32, #tpu.memory_space<vmem>>, %arg13: memref<2x16xf32, #tpu.memory_space<vmem>>, %arg14: memref<2x16xf32, #tpu.memory_space<vmem>>, %arg15: memref<1x1xf32, #tpu.memory_space<vmem>>) attributes {dimension_semantics = [#tpu.dimension_semantics<arbitrary>], iteration_bounds = array<i64: 1>, scalar_prefetch = 0 : i64, scratch_operands = 0 : i64, tpu.core_type = #tpu.core_type<tc>, window_params = [{pipeline_mode = #tpu.pipeline_mode<synchronous>, transform_indices = @transform_0, window_bounds = array<i64: 32, 46>}, {pipeline_mode = #tpu.pipeline_mode<synchronous>, transform_indices = @transform_1, window_bounds = array<i64: 4, 46, 64>}, {pipeline_mode = #tpu.pipeline_mode<synchronous>, transform_indices = @transform_2, window_bounds = array<i64: 4, 64, 64>}, {pipeline_mode = #tpu.pipeline_mode<synchronous>, transform_indices = @transform_3, window_bounds = array<i64: 4, 1, 64>}, {pipeline_mode = #tpu.pipeline_mode<synchronous>, transform_indices = @transform_4, window_bounds = array<i64: 64, 8>}, {pipeline_mode = #tpu.pipeline_mode<synchronous>, transform_indices = @transform_5, window_bounds = array<i64: 1, 8>}, {pipeline_mode = #tpu.pipeline_mode<synchronous>, transform_indices = @transform_6, window_bounds = array<i64: 8, 128>}, {pipeline_mode = #tpu.pipeline_mode<synchronous>, transform_indices = @transform_7, window_bounds = array<i64: 1, 128>}, {pipeline_mode = #tpu.pipeline_mode<synchronous>, transform_indices = @transform_8, window_bounds = array<i64: 1, 128>}, {pipeline_mode = #tpu.pipeline_mode<synchronous>, transform_indices = @transform_9, window_bounds = array<i64: 1, 128>}, {pipeline_mode = #tpu.pipeline_mode<synchronous>, transform_indices = @transform_10, window_bounds = array<i64: 128, 32>}, {pipeline_mode = #tpu.pipeline_mode<synchronous>, transform_indices = @transform_11, window_bounds = array<i64: 1, 32>}, {pipeline_mode = #tpu.pipeline_mode<synchronous>, transform_indices = @transform_12, window_bounds = array<i64: 2, 16>}, {pipeline_mode = #tpu.pipeline_mode<synchronous>, transform_indices = @transform_13, window_bounds = array<i64: 2, 16>}, {pipeline_mode = #tpu.pipeline_mode<synchronous>, transform_indices = @transform_14, window_bounds = array<i64: 1, 1>}]} {
    %c0 = arith.constant 0 : index
    %c0_0 = arith.constant 0 : index
    %0 = vector.load %arg1[%c0, %c0_0] : memref<32x46xf32, #tpu.memory_space<vmem>>, vector<32x46xf32>
    %c0_1 = arith.constant 0 : index
    %c0_2 = arith.constant 0 : index
    %c0_3 = arith.constant 0 : index
    %1 = vector.load %arg2[%c0_1, %c0_2, %c0_3] : memref<4x46x64xf32, #tpu.memory_space<vmem>>, vector<1x46x64xf32>
    %2 = vector.shape_cast %1 : vector<1x46x64xf32> to vector<46x64xf32>
    %cst = arith.constant dense<0.000000e+00> : vector<32x64xf32>
    %3 = tpu.matmul %0, %2, %cst {dimension_numbers = #tpu.dot_dimension_numbers<[1], [0], [0], [1], [0, 0, 1, 1], [], []>} : vector<32x46xf32>, vector<46x64xf32>, vector<32x64xf32> -> vector<32x64xf32>
    %c0_4 = arith.constant 0 : index
    %c0_5 = arith.constant 0 : index
    %c0_6 = arith.constant 0 : index
    %4 = vector.load %arg4[%c0_4, %c0_5, %c0_6] : memref<4x1x64xf32, #tpu.memory_space<vmem>>, vector<1x1x64xf32>
    %5 = vector.shape_cast %4 : vector<1x1x64xf32> to vector<1x64xf32>
    %6 = vector.broadcast %5 : vector<1x64xf32> to vector<32x64xf32>
    %7 = arith.addf %3, %6 : vector<32x64xf32>
    %c1 = arith.constant 1 : index
    %c0_7 = arith.constant 0 : index
    %c0_8 = arith.constant 0 : index
    %8 = vector.load %arg2[%c1, %c0_7, %c0_8] : memref<4x46x64xf32, #tpu.memory_space<vmem>>, vector<1x46x64xf32>
    %9 = vector.shape_cast %8 : vector<1x46x64xf32> to vector<46x64xf32>
    %cst_9 = arith.constant dense<0.000000e+00> : vector<32x64xf32>
    %10 = tpu.matmul %0, %9, %cst_9 {dimension_numbers = #tpu.dot_dimension_numbers<[1], [0], [0], [1], [0, 0, 1, 1], [], []>} : vector<32x46xf32>, vector<46x64xf32>, vector<32x64xf32> -> vector<32x64xf32>
    %c1_10 = arith.constant 1 : index
    %c0_11 = arith.constant 0 : index
    %c0_12 = arith.constant 0 : index
    %11 = vector.load %arg4[%c1_10, %c0_11, %c0_12] : memref<4x1x64xf32, #tpu.memory_space<vmem>>, vector<1x1x64xf32>
    %12 = vector.shape_cast %11 : vector<1x1x64xf32> to vector<1x64xf32>
    %13 = vector.broadcast %12 : vector<1x64xf32> to vector<32x64xf32>
    %14 = arith.addf %10, %13 : vector<32x64xf32>
    %c2 = arith.constant 2 : index
    %c0_13 = arith.constant 0 : index
    %c0_14 = arith.constant 0 : index
    %15 = vector.load %arg2[%c2, %c0_13, %c0_14] : memref<4x46x64xf32, #tpu.memory_space<vmem>>, vector<1x46x64xf32>
    %16 = vector.shape_cast %15 : vector<1x46x64xf32> to vector<46x64xf32>
    %cst_15 = arith.constant dense<0.000000e+00> : vector<32x64xf32>
    %17 = tpu.matmul %0, %16, %cst_15 {dimension_numbers = #tpu.dot_dimension_numbers<[1], [0], [0], [1], [0, 0, 1, 1], [], []>} : vector<32x46xf32>, vector<46x64xf32>, vector<32x64xf32> -> vector<32x64xf32>
    %c2_16 = arith.constant 2 : index
    %c0_17 = arith.constant 0 : index
    %c0_18 = arith.constant 0 : index
    %18 = vector.load %arg4[%c2_16, %c0_17, %c0_18] : memref<4x1x64xf32, #tpu.memory_space<vmem>>, vector<1x1x64xf32>
    %19 = vector.shape_cast %18 : vector<1x1x64xf32> to vector<1x64xf32>
    %20 = vector.broadcast %19 : vector<1x64xf32> to vector<32x64xf32>
    %21 = arith.addf %17, %20 : vector<32x64xf32>
    %c3 = arith.constant 3 : index
    %c0_19 = arith.constant 0 : index
    %c0_20 = arith.constant 0 : index
    %22 = vector.load %arg2[%c3, %c0_19, %c0_20] : memref<4x46x64xf32, #tpu.memory_space<vmem>>, vector<1x46x64xf32>
    %23 = vector.shape_cast %22 : vector<1x46x64xf32> to vector<46x64xf32>
    %cst_21 = arith.constant dense<0.000000e+00> : vector<32x64xf32>
    %24 = tpu.matmul %0, %23, %cst_21 {dimension_numbers = #tpu.dot_dimension_numbers<[1], [0], [0], [1], [0, 0, 1, 1], [], []>} : vector<32x46xf32>, vector<46x64xf32>, vector<32x64xf32> -> vector<32x64xf32>
    %c3_22 = arith.constant 3 : index
    %c0_23 = arith.constant 0 : index
    %c0_24 = arith.constant 0 : index
    %25 = vector.load %arg4[%c3_22, %c0_23, %c0_24] : memref<4x1x64xf32, #tpu.memory_space<vmem>>, vector<1x1x64xf32>
    %26 = vector.shape_cast %25 : vector<1x1x64xf32> to vector<1x64xf32>
    %27 = vector.broadcast %26 : vector<1x64xf32> to vector<32x64xf32>
    %28 = arith.addf %24, %27 : vector<32x64xf32>
    %c0_25 = arith.constant 0 : index
    %c0_26 = arith.constant 0 : index
    %c0_27 = arith.constant 0 : index
    %29 = vector.load %arg3[%c0_25, %c0_26, %c0_27] : memref<4x64x64xf32, #tpu.memory_space<vmem>>, vector<1x64x64xf32>
    %30 = vector.shape_cast %29 : vector<1x64x64xf32> to vector<64x64xf32>
    %c1_28 = arith.constant 1 : index
    %c0_29 = arith.constant 0 : index
    %c0_30 = arith.constant 0 : index
    %31 = vector.load %arg3[%c1_28, %c0_29, %c0_30] : memref<4x64x64xf32, #tpu.memory_space<vmem>>, vector<1x64x64xf32>
    %32 = vector.shape_cast %31 : vector<1x64x64xf32> to vector<64x64xf32>
    %c2_31 = arith.constant 2 : index
    %c0_32 = arith.constant 0 : index
    %c0_33 = arith.constant 0 : index
    %33 = vector.load %arg3[%c2_31, %c0_32, %c0_33] : memref<4x64x64xf32, #tpu.memory_space<vmem>>, vector<1x64x64xf32>
    %34 = vector.shape_cast %33 : vector<1x64x64xf32> to vector<64x64xf32>
    %c3_34 = arith.constant 3 : index
    %c0_35 = arith.constant 0 : index
    %c0_36 = arith.constant 0 : index
    %35 = vector.load %arg3[%c3_34, %c0_35, %c0_36] : memref<4x64x64xf32, #tpu.memory_space<vmem>>, vector<1x64x64xf32>
    %36 = vector.shape_cast %35 : vector<1x64x64xf32> to vector<64x64xf32>
    %cst_37 = arith.constant 0.000000e+00 : f32
    %37 = vector.broadcast %cst_37 : f32 to vector<2x64xf32>
    %cst_38 = arith.constant 0.000000e+00 : f32
    %38 = vector.broadcast %cst_38 : f32 to vector<2x64xf32>
    %cst_39 = arith.constant 0.000000e+00 : f32
    %39 = vector.broadcast %cst_39 : f32 to vector<2x64xf32>
    %40 = vector.extract_strided_slice %7 {offsets = [0, 0], sizes = [2, 64], strides = [1, 1]} : vector<32x64xf32> to vector<2x64xf32>
    %cst_40 = arith.constant dense<0.000000e+00> : vector<2x64xf32>
    %41 = tpu.matmul %37, %30, %cst_40 {dimension_numbers = #tpu.dot_dimension_numbers<[1], [0], [0], [1], [0, 0, 1, 1], [], []>} : vector<2x64xf32>, vector<64x64xf32>, vector<2x64xf32> -> vector<2x64xf32>
    %42 = arith.addf %40, %41 : vector<2x64xf32>
    %43 = vector.extract_strided_slice %14 {offsets = [0, 0], sizes = [2, 64], strides = [1, 1]} : vector<32x64xf32> to vector<2x64xf32>
    %cst_41 = arith.constant dense<0.000000e+00> : vector<2x64xf32>
    %44 = tpu.matmul %37, %32, %cst_41 {dimension_numbers = #tpu.dot_dimension_numbers<[1], [0], [0], [1], [0, 0, 1, 1], [], []>} : vector<2x64xf32>, vector<64x64xf32>, vector<2x64xf32> -> vector<2x64xf32>
    %45 = arith.addf %43, %44 : vector<2x64xf32>
    %46 = vector.extract_strided_slice %21 {offsets = [0, 0], sizes = [2, 64], strides = [1, 1]} : vector<32x64xf32> to vector<2x64xf32>
    %cst_42 = arith.constant dense<0.000000e+00> : vector<2x64xf32>
    %47 = tpu.matmul %37, %34, %cst_42 {dimension_numbers = #tpu.dot_dimension_numbers<[1], [0], [0], [1], [0, 0, 1, 1], [], []>} : vector<2x64xf32>, vector<64x64xf32>, vector<2x64xf32> -> vector<2x64xf32>
    %48 = arith.addf %46, %47 : vector<2x64xf32>
    %49 = vector.extract_strided_slice %28 {offsets = [0, 0], sizes = [2, 64], strides = [1, 1]} : vector<32x64xf32> to vector<2x64xf32>
    %cst_43 = arith.constant dense<0.000000e+00> : vector<2x64xf32>
    %50 = tpu.matmul %37, %36, %cst_43 {dimension_numbers = #tpu.dot_dimension_numbers<[1], [0], [0], [1], [0, 0, 1, 1], [], []>} : vector<2x64xf32>, vector<64x64xf32>, vector<2x64xf32> -> vector<2x64xf32>
    %51 = arith.addf %49, %50 : vector<2x64xf32>
    %52 = arith.negf %42 : vector<2x64xf32>
    %53 = math.exp %52 : vector<2x64xf32>
    %cst_44 = arith.constant 1.000000e+00 : f32
    %54 = vector.broadcast %cst_44 : f32 to vector<2x64xf32>
    %55 = arith.addf %54, %53 : vector<2x64xf32>
    %56 = arith.divf %54, %55 : vector<2x64xf32>
    %57 = arith.negf %45 : vector<2x64xf32>
    %58 = math.exp %57 : vector<2x64xf32>
    %cst_45 = arith.constant 1.000000e+00 : f32
    %59 = vector.broadcast %cst_45 : f32 to vector<2x64xf32>
    %60 = arith.addf %59, %58 : vector<2x64xf32>
    %61 = arith.divf %59, %60 : vector<2x64xf32>
    %62 = math.tanh %48 : vector<2x64xf32>
    %63 = arith.negf %51 : vector<2x64xf32>
    %64 = math.exp %63 : vector<2x64xf32>
    %cst_46 = arith.constant 1.000000e+00 : f32
    %65 = vector.broadcast %cst_46 : f32 to vector<2x64xf32>
    %66 = arith.addf %65, %64 : vector<2x64xf32>
    %67 = arith.divf %65, %66 : vector<2x64xf32>
    %68 = arith.mulf %61, %38 : vector<2x64xf32>
    %69 = arith.mulf %56, %62 : vector<2x64xf32>
    %70 = arith.addf %68, %69 : vector<2x64xf32>
    %71 = math.tanh %70 : vector<2x64xf32>
    %72 = arith.mulf %67, %71 : vector<2x64xf32>
    %73 = arith.addf %39, %72 : vector<2x64xf32>
    %74 = vector.extract_strided_slice %7 {offsets = [2, 0], sizes = [2, 64], strides = [1, 1]} : vector<32x64xf32> to vector<2x64xf32>
    %cst_47 = arith.constant dense<0.000000e+00> : vector<2x64xf32>
    %75 = tpu.matmul %72, %30, %cst_47 {dimension_numbers = #tpu.dot_dimension_numbers<[1], [0], [0], [1], [0, 0, 1, 1], [], []>} : vector<2x64xf32>, vector<64x64xf32>, vector<2x64xf32> -> vector<2x64xf32>
    %76 = arith.addf %74, %75 : vector<2x64xf32>
    %77 = vector.extract_strided_slice %14 {offsets = [2, 0], sizes = [2, 64], strides = [1, 1]} : vector<32x64xf32> to vector<2x64xf32>
    %cst_48 = arith.constant dense<0.000000e+00> : vector<2x64xf32>
    %78 = tpu.matmul %72, %32, %cst_48 {dimension_numbers = #tpu.dot_dimension_numbers<[1], [0], [0], [1], [0, 0, 1, 1], [], []>} : vector<2x64xf32>, vector<64x64xf32>, vector<2x64xf32> -> vector<2x64xf32>
    %79 = arith.addf %77, %78 : vector<2x64xf32>
    %80 = vector.extract_strided_slice %21 {offsets = [2, 0], sizes = [2, 64], strides = [1, 1]} : vector<32x64xf32> to vector<2x64xf32>
    %cst_49 = arith.constant dense<0.000000e+00> : vector<2x64xf32>
    %81 = tpu.matmul %72, %34, %cst_49 {dimension_numbers = #tpu.dot_dimension_numbers<[1], [0], [0], [1], [0, 0, 1, 1], [], []>} : vector<2x64xf32>, vector<64x64xf32>, vector<2x64xf32> -> vector<2x64xf32>
    %82 = arith.addf %80, %81 : vector<2x64xf32>
    %83 = vector.extract_strided_slice %28 {offsets = [2, 0], sizes = [2, 64], strides = [1, 1]} : vector<32x64xf32> to vector<2x64xf32>
    %cst_50 = arith.constant dense<0.000000e+00> : vector<2x64xf32>
    %84 = tpu.matmul %72, %36, %cst_50 {dimension_numbers = #tpu.dot_dimension_numbers<[1], [0], [0], [1], [0, 0, 1, 1], [], []>} : vector<2x64xf32>, vector<64x64xf32>, vector<2x64xf32> -> vector<2x64xf32>
    %85 = arith.addf %83, %84 : vector<2x64xf32>
    %86 = arith.negf %76 : vector<2x64xf32>
    %87 = math.exp %86 : vector<2x64xf32>
    %cst_51 = arith.constant 1.000000e+00 : f32
    %88 = vector.broadcast %cst_51 : f32 to vector<2x64xf32>
    %89 = arith.addf %88, %87 : vector<2x64xf32>
    %90 = arith.divf %88, %89 : vector<2x64xf32>
    %91 = arith.negf %79 : vector<2x64xf32>
    %92 = math.exp %91 : vector<2x64xf32>
    %cst_52 = arith.constant 1.000000e+00 : f32
    %93 = vector.broadcast %cst_52 : f32 to vector<2x64xf32>
    %94 = arith.addf %93, %92 : vector<2x64xf32>
    %95 = arith.divf %93, %94 : vector<2x64xf32>
    %96 = math.tanh %82 : vector<2x64xf32>
    %97 = arith.negf %85 : vector<2x64xf32>
    %98 = math.exp %97 : vector<2x64xf32>
    %cst_53 = arith.constant 1.000000e+00 : f32
    %99 = vector.broadcast %cst_53 : f32 to vector<2x64xf32>
    %100 = arith.addf %99, %98 : vector<2x64xf32>
    %101 = arith.divf %99, %100 : vector<2x64xf32>
    %102 = arith.mulf %95, %70 : vector<2x64xf32>
    %103 = arith.mulf %90, %96 : vector<2x64xf32>
    %104 = arith.addf %102, %103 : vector<2x64xf32>
    %105 = math.tanh %104 : vector<2x64xf32>
    %106 = arith.mulf %101, %105 : vector<2x64xf32>
    %107 = arith.addf %73, %106 : vector<2x64xf32>
    %108 = vector.extract_strided_slice %7 {offsets = [4, 0], sizes = [2, 64], strides = [1, 1]} : vector<32x64xf32> to vector<2x64xf32>
    %cst_54 = arith.constant dense<0.000000e+00> : vector<2x64xf32>
    %109 = tpu.matmul %106, %30, %cst_54 {dimension_numbers = #tpu.dot_dimension_numbers<[1], [0], [0], [1], [0, 0, 1, 1], [], []>} : vector<2x64xf32>, vector<64x64xf32>, vector<2x64xf32> -> vector<2x64xf32>
    %110 = arith.addf %108, %109 : vector<2x64xf32>
    %111 = vector.extract_strided_slice %14 {offsets = [4, 0], sizes = [2, 64], strides = [1, 1]} : vector<32x64xf32> to vector<2x64xf32>
    %cst_55 = arith.constant dense<0.000000e+00> : vector<2x64xf32>
    %112 = tpu.matmul %106, %32, %cst_55 {dimension_numbers = #tpu.dot_dimension_numbers<[1], [0], [0], [1], [0, 0, 1, 1], [], []>} : vector<2x64xf32>, vector<64x64xf32>, vector<2x64xf32> -> vector<2x64xf32>
    %113 = arith.addf %111, %112 : vector<2x64xf32>
    %114 = vector.extract_strided_slice %21 {offsets = [4, 0], sizes = [2, 64], strides = [1, 1]} : vector<32x64xf32> to vector<2x64xf32>
    %cst_56 = arith.constant dense<0.000000e+00> : vector<2x64xf32>
    %115 = tpu.matmul %106, %34, %cst_56 {dimension_numbers = #tpu.dot_dimension_numbers<[1], [0], [0], [1], [0, 0, 1, 1], [], []>} : vector<2x64xf32>, vector<64x64xf32>, vector<2x64xf32> -> vector<2x64xf32>
    %116 = arith.addf %114, %115 : vector<2x64xf32>
    %117 = vector.extract_strided_slice %28 {offsets = [4, 0], sizes = [2, 64], strides = [1, 1]} : vector<32x64xf32> to vector<2x64xf32>
    %cst_57 = arith.constant dense<0.000000e+00> : vector<2x64xf32>
    %118 = tpu.matmul %106, %36, %cst_57 {dimension_numbers = #tpu.dot_dimension_numbers<[1], [0], [0], [1], [0, 0, 1, 1], [], []>} : vector<2x64xf32>, vector<64x64xf32>, vector<2x64xf32> -> vector<2x64xf32>
    %119 = arith.addf %117, %118 : vector<2x64xf32>
    %120 = arith.negf %110 : vector<2x64xf32>
    %121 = math.exp %120 : vector<2x64xf32>
    %cst_58 = arith.constant 1.000000e+00 : f32
    %122 = vector.broadcast %cst_58 : f32 to vector<2x64xf32>
    %123 = arith.addf %122, %121 : vector<2x64xf32>
    %124 = arith.divf %122, %123 : vector<2x64xf32>
    %125 = arith.negf %113 : vector<2x64xf32>
    %126 = math.exp %125 : vector<2x64xf32>
    %cst_59 = arith.constant 1.000000e+00 : f32
    %127 = vector.broadcast %cst_59 : f32 to vector<2x64xf32>
    %128 = arith.addf %127, %126 : vector<2x64xf32>
    %129 = arith.divf %127, %128 : vector<2x64xf32>
    %130 = math.tanh %116 : vector<2x64xf32>
    %131 = arith.negf %119 : vector<2x64xf32>
    %132 = math.exp %131 : vector<2x64xf32>
    %cst_60 = arith.constant 1.000000e+00 : f32
    %133 = vector.broadcast %cst_60 : f32 to vector<2x64xf32>
    %134 = arith.addf %133, %132 : vector<2x64xf32>
    %135 = arith.divf %133, %134 : vector<2x64xf32>
    %136 = arith.mulf %129, %104 : vector<2x64xf32>
    %137 = arith.mulf %124, %130 : vector<2x64xf32>
    %138 = arith.addf %136, %137 : vector<2x64xf32>
    %139 = math.tanh %138 : vector<2x64xf32>
    %140 = arith.mulf %135, %139 : vector<2x64xf32>
    %141 = arith.addf %107, %140 : vector<2x64xf32>
    %142 = vector.extract_strided_slice %7 {offsets = [6, 0], sizes = [2, 64], strides = [1, 1]} : vector<32x64xf32> to vector<2x64xf32>
    %cst_61 = arith.constant dense<0.000000e+00> : vector<2x64xf32>
    %143 = tpu.matmul %140, %30, %cst_61 {dimension_numbers = #tpu.dot_dimension_numbers<[1], [0], [0], [1], [0, 0, 1, 1], [], []>} : vector<2x64xf32>, vector<64x64xf32>, vector<2x64xf32> -> vector<2x64xf32>
    %144 = arith.addf %142, %143 : vector<2x64xf32>
    %145 = vector.extract_strided_slice %14 {offsets = [6, 0], sizes = [2, 64], strides = [1, 1]} : vector<32x64xf32> to vector<2x64xf32>
    %cst_62 = arith.constant dense<0.000000e+00> : vector<2x64xf32>
    %146 = tpu.matmul %140, %32, %cst_62 {dimension_numbers = #tpu.dot_dimension_numbers<[1], [0], [0], [1], [0, 0, 1, 1], [], []>} : vector<2x64xf32>, vector<64x64xf32>, vector<2x64xf32> -> vector<2x64xf32>
    %147 = arith.addf %145, %146 : vector<2x64xf32>
    %148 = vector.extract_strided_slice %21 {offsets = [6, 0], sizes = [2, 64], strides = [1, 1]} : vector<32x64xf32> to vector<2x64xf32>
    %cst_63 = arith.constant dense<0.000000e+00> : vector<2x64xf32>
    %149 = tpu.matmul %140, %34, %cst_63 {dimension_numbers = #tpu.dot_dimension_numbers<[1], [0], [0], [1], [0, 0, 1, 1], [], []>} : vector<2x64xf32>, vector<64x64xf32>, vector<2x64xf32> -> vector<2x64xf32>
    %150 = arith.addf %148, %149 : vector<2x64xf32>
    %151 = vector.extract_strided_slice %28 {offsets = [6, 0], sizes = [2, 64], strides = [1, 1]} : vector<32x64xf32> to vector<2x64xf32>
    %cst_64 = arith.constant dense<0.000000e+00> : vector<2x64xf32>
    %152 = tpu.matmul %140, %36, %cst_64 {dimension_numbers = #tpu.dot_dimension_numbers<[1], [0], [0], [1], [0, 0, 1, 1], [], []>} : vector<2x64xf32>, vector<64x64xf32>, vector<2x64xf32> -> vector<2x64xf32>
    %153 = arith.addf %151, %152 : vector<2x64xf32>
    %154 = arith.negf %144 : vector<2x64xf32>
    %155 = math.exp %154 : vector<2x64xf32>
    %cst_65 = arith.constant 1.000000e+00 : f32
    %156 = vector.broadcast %cst_65 : f32 to vector<2x64xf32>
    %157 = arith.addf %156, %155 : vector<2x64xf32>
    %158 = arith.divf %156, %157 : vector<2x64xf32>
    %159 = arith.negf %147 : vector<2x64xf32>
    %160 = math.exp %159 : vector<2x64xf32>
    %cst_66 = arith.constant 1.000000e+00 : f32
    %161 = vector.broadcast %cst_66 : f32 to vector<2x64xf32>
    %162 = arith.addf %161, %160 : vector<2x64xf32>
    %163 = arith.divf %161, %162 : vector<2x64xf32>
    %164 = math.tanh %150 : vector<2x64xf32>
    %165 = arith.negf %153 : vector<2x64xf32>
    %166 = math.exp %165 : vector<2x64xf32>
    %cst_67 = arith.constant 1.000000e+00 : f32
    %167 = vector.broadcast %cst_67 : f32 to vector<2x64xf32>
    %168 = arith.addf %167, %166 : vector<2x64xf32>
    %169 = arith.divf %167, %168 : vector<2x64xf32>
    %170 = arith.mulf %163, %138 : vector<2x64xf32>
    %171 = arith.mulf %158, %164 : vector<2x64xf32>
    %172 = arith.addf %170, %171 : vector<2x64xf32>
    %173 = math.tanh %172 : vector<2x64xf32>
    %174 = arith.mulf %169, %173 : vector<2x64xf32>
    %175 = arith.addf %141, %174 : vector<2x64xf32>
    %176 = vector.extract_strided_slice %7 {offsets = [8, 0], sizes = [2, 64], strides = [1, 1]} : vector<32x64xf32> to vector<2x64xf32>
    %cst_68 = arith.constant dense<0.000000e+00> : vector<2x64xf32>
    %177 = tpu.matmul %174, %30, %cst_68 {dimension_numbers = #tpu.dot_dimension_numbers<[1], [0], [0], [1], [0, 0, 1, 1], [], []>} : vector<2x64xf32>, vector<64x64xf32>, vector<2x64xf32> -> vector<2x64xf32>
    %178 = arith.addf %176, %177 : vector<2x64xf32>
    %179 = vector.extract_strided_slice %14 {offsets = [8, 0], sizes = [2, 64], strides = [1, 1]} : vector<32x64xf32> to vector<2x64xf32>
    %cst_69 = arith.constant dense<0.000000e+00> : vector<2x64xf32>
    %180 = tpu.matmul %174, %32, %cst_69 {dimension_numbers = #tpu.dot_dimension_numbers<[1], [0], [0], [1], [0, 0, 1, 1], [], []>} : vector<2x64xf32>, vector<64x64xf32>, vector<2x64xf32> -> vector<2x64xf32>
    %181 = arith.addf %179, %180 : vector<2x64xf32>
    %182 = vector.extract_strided_slice %21 {offsets = [8, 0], sizes = [2, 64], strides = [1, 1]} : vector<32x64xf32> to vector<2x64xf32>
    %cst_70 = arith.constant dense<0.000000e+00> : vector<2x64xf32>
    %183 = tpu.matmul %174, %34, %cst_70 {dimension_numbers = #tpu.dot_dimension_numbers<[1], [0], [0], [1], [0, 0, 1, 1], [], []>} : vector<2x64xf32>, vector<64x64xf32>, vector<2x64xf32> -> vector<2x64xf32>
    %184 = arith.addf %182, %183 : vector<2x64xf32>
    %185 = vector.extract_strided_slice %28 {offsets = [8, 0], sizes = [2, 64], strides = [1, 1]} : vector<32x64xf32> to vector<2x64xf32>
    %cst_71 = arith.constant dense<0.000000e+00> : vector<2x64xf32>
    %186 = tpu.matmul %174, %36, %cst_71 {dimension_numbers = #tpu.dot_dimension_numbers<[1], [0], [0], [1], [0, 0, 1, 1], [], []>} : vector<2x64xf32>, vector<64x64xf32>, vector<2x64xf32> -> vector<2x64xf32>
    %187 = arith.addf %185, %186 : vector<2x64xf32>
    %188 = arith.negf %178 : vector<2x64xf32>
    %189 = math.exp %188 : vector<2x64xf32>
    %cst_72 = arith.constant 1.000000e+00 : f32
    %190 = vector.broadcast %cst_72 : f32 to vector<2x64xf32>
    %191 = arith.addf %190, %189 : vector<2x64xf32>
    %192 = arith.divf %190, %191 : vector<2x64xf32>
    %193 = arith.negf %181 : vector<2x64xf32>
    %194 = math.exp %193 : vector<2x64xf32>
    %cst_73 = arith.constant 1.000000e+00 : f32
    %195 = vector.broadcast %cst_73 : f32 to vector<2x64xf32>
    %196 = arith.addf %195, %194 : vector<2x64xf32>
    %197 = arith.divf %195, %196 : vector<2x64xf32>
    %198 = math.tanh %184 : vector<2x64xf32>
    %199 = arith.negf %187 : vector<2x64xf32>
    %200 = math.exp %199 : vector<2x64xf32>
    %cst_74 = arith.constant 1.000000e+00 : f32
    %201 = vector.broadcast %cst_74 : f32 to vector<2x64xf32>
    %202 = arith.addf %201, %200 : vector<2x64xf32>
    %203 = arith.divf %201, %202 : vector<2x64xf32>
    %204 = arith.mulf %197, %172 : vector<2x64xf32>
    %205 = arith.mulf %192, %198 : vector<2x64xf32>
    %206 = arith.addf %204, %205 : vector<2x64xf32>
    %207 = math.tanh %206 : vector<2x64xf32>
    %208 = arith.mulf %203, %207 : vector<2x64xf32>
    %209 = arith.addf %175, %208 : vector<2x64xf32>
    %210 = vector.extract_strided_slice %7 {offsets = [10, 0], sizes = [2, 64], strides = [1, 1]} : vector<32x64xf32> to vector<2x64xf32>
    %cst_75 = arith.constant dense<0.000000e+00> : vector<2x64xf32>
    %211 = tpu.matmul %208, %30, %cst_75 {dimension_numbers = #tpu.dot_dimension_numbers<[1], [0], [0], [1], [0, 0, 1, 1], [], []>} : vector<2x64xf32>, vector<64x64xf32>, vector<2x64xf32> -> vector<2x64xf32>
    %212 = arith.addf %210, %211 : vector<2x64xf32>
    %213 = vector.extract_strided_slice %14 {offsets = [10, 0], sizes = [2, 64], strides = [1, 1]} : vector<32x64xf32> to vector<2x64xf32>
    %cst_76 = arith.constant dense<0.000000e+00> : vector<2x64xf32>
    %214 = tpu.matmul %208, %32, %cst_76 {dimension_numbers = #tpu.dot_dimension_numbers<[1], [0], [0], [1], [0, 0, 1, 1], [], []>} : vector<2x64xf32>, vector<64x64xf32>, vector<2x64xf32> -> vector<2x64xf32>
    %215 = arith.addf %213, %214 : vector<2x64xf32>
    %216 = vector.extract_strided_slice %21 {offsets = [10, 0], sizes = [2, 64], strides = [1, 1]} : vector<32x64xf32> to vector<2x64xf32>
    %cst_77 = arith.constant dense<0.000000e+00> : vector<2x64xf32>
    %217 = tpu.matmul %208, %34, %cst_77 {dimension_numbers = #tpu.dot_dimension_numbers<[1], [0], [0], [1], [0, 0, 1, 1], [], []>} : vector<2x64xf32>, vector<64x64xf32>, vector<2x64xf32> -> vector<2x64xf32>
    %218 = arith.addf %216, %217 : vector<2x64xf32>
    %219 = vector.extract_strided_slice %28 {offsets = [10, 0], sizes = [2, 64], strides = [1, 1]} : vector<32x64xf32> to vector<2x64xf32>
    %cst_78 = arith.constant dense<0.000000e+00> : vector<2x64xf32>
    %220 = tpu.matmul %208, %36, %cst_78 {dimension_numbers = #tpu.dot_dimension_numbers<[1], [0], [0], [1], [0, 0, 1, 1], [], []>} : vector<2x64xf32>, vector<64x64xf32>, vector<2x64xf32> -> vector<2x64xf32>
    %221 = arith.addf %219, %220 : vector<2x64xf32>
    %222 = arith.negf %212 : vector<2x64xf32>
    %223 = math.exp %222 : vector<2x64xf32>
    %cst_79 = arith.constant 1.000000e+00 : f32
    %224 = vector.broadcast %cst_79 : f32 to vector<2x64xf32>
    %225 = arith.addf %224, %223 : vector<2x64xf32>
    %226 = arith.divf %224, %225 : vector<2x64xf32>
    %227 = arith.negf %215 : vector<2x64xf32>
    %228 = math.exp %227 : vector<2x64xf32>
    %cst_80 = arith.constant 1.000000e+00 : f32
    %229 = vector.broadcast %cst_80 : f32 to vector<2x64xf32>
    %230 = arith.addf %229, %228 : vector<2x64xf32>
    %231 = arith.divf %229, %230 : vector<2x64xf32>
    %232 = math.tanh %218 : vector<2x64xf32>
    %233 = arith.negf %221 : vector<2x64xf32>
    %234 = math.exp %233 : vector<2x64xf32>
    %cst_81 = arith.constant 1.000000e+00 : f32
    %235 = vector.broadcast %cst_81 : f32 to vector<2x64xf32>
    %236 = arith.addf %235, %234 : vector<2x64xf32>
    %237 = arith.divf %235, %236 : vector<2x64xf32>
    %238 = arith.mulf %231, %206 : vector<2x64xf32>
    %239 = arith.mulf %226, %232 : vector<2x64xf32>
    %240 = arith.addf %238, %239 : vector<2x64xf32>
    %241 = math.tanh %240 : vector<2x64xf32>
    %242 = arith.mulf %237, %241 : vector<2x64xf32>
    %243 = arith.addf %209, %242 : vector<2x64xf32>
    %244 = vector.extract_strided_slice %7 {offsets = [12, 0], sizes = [2, 64], strides = [1, 1]} : vector<32x64xf32> to vector<2x64xf32>
    %cst_82 = arith.constant dense<0.000000e+00> : vector<2x64xf32>
    %245 = tpu.matmul %242, %30, %cst_82 {dimension_numbers = #tpu.dot_dimension_numbers<[1], [0], [0], [1], [0, 0, 1, 1], [], []>} : vector<2x64xf32>, vector<64x64xf32>, vector<2x64xf32> -> vector<2x64xf32>
    %246 = arith.addf %244, %245 : vector<2x64xf32>
    %247 = vector.extract_strided_slice %14 {offsets = [12, 0], sizes = [2, 64], strides = [1, 1]} : vector<32x64xf32> to vector<2x64xf32>
    %cst_83 = arith.constant dense<0.000000e+00> : vector<2x64xf32>
    %248 = tpu.matmul %242, %32, %cst_83 {dimension_numbers = #tpu.dot_dimension_numbers<[1], [0], [0], [1], [0, 0, 1, 1], [], []>} : vector<2x64xf32>, vector<64x64xf32>, vector<2x64xf32> -> vector<2x64xf32>
    %249 = arith.addf %247, %248 : vector<2x64xf32>
    %250 = vector.extract_strided_slice %21 {offsets = [12, 0], sizes = [2, 64], strides = [1, 1]} : vector<32x64xf32> to vector<2x64xf32>
    %cst_84 = arith.constant dense<0.000000e+00> : vector<2x64xf32>
    %251 = tpu.matmul %242, %34, %cst_84 {dimension_numbers = #tpu.dot_dimension_numbers<[1], [0], [0], [1], [0, 0, 1, 1], [], []>} : vector<2x64xf32>, vector<64x64xf32>, vector<2x64xf32> -> vector<2x64xf32>
    %252 = arith.addf %250, %251 : vector<2x64xf32>
    %253 = vector.extract_strided_slice %28 {offsets = [12, 0], sizes = [2, 64], strides = [1, 1]} : vector<32x64xf32> to vector<2x64xf32>
    %cst_85 = arith.constant dense<0.000000e+00> : vector<2x64xf32>
    %254 = tpu.matmul %242, %36, %cst_85 {dimension_numbers = #tpu.dot_dimension_numbers<[1], [0], [0], [1], [0, 0, 1, 1], [], []>} : vector<2x64xf32>, vector<64x64xf32>, vector<2x64xf32> -> vector<2x64xf32>
    %255 = arith.addf %253, %254 : vector<2x64xf32>
    %256 = arith.negf %246 : vector<2x64xf32>
    %257 = math.exp %256 : vector<2x64xf32>
    %cst_86 = arith.constant 1.000000e+00 : f32
    %258 = vector.broadcast %cst_86 : f32 to vector<2x64xf32>
    %259 = arith.addf %258, %257 : vector<2x64xf32>
    %260 = arith.divf %258, %259 : vector<2x64xf32>
    %261 = arith.negf %249 : vector<2x64xf32>
    %262 = math.exp %261 : vector<2x64xf32>
    %cst_87 = arith.constant 1.000000e+00 : f32
    %263 = vector.broadcast %cst_87 : f32 to vector<2x64xf32>
    %264 = arith.addf %263, %262 : vector<2x64xf32>
    %265 = arith.divf %263, %264 : vector<2x64xf32>
    %266 = math.tanh %252 : vector<2x64xf32>
    %267 = arith.negf %255 : vector<2x64xf32>
    %268 = math.exp %267 : vector<2x64xf32>
    %cst_88 = arith.constant 1.000000e+00 : f32
    %269 = vector.broadcast %cst_88 : f32 to vector<2x64xf32>
    %270 = arith.addf %269, %268 : vector<2x64xf32>
    %271 = arith.divf %269, %270 : vector<2x64xf32>
    %272 = arith.mulf %265, %240 : vector<2x64xf32>
    %273 = arith.mulf %260, %266 : vector<2x64xf32>
    %274 = arith.addf %272, %273 : vector<2x64xf32>
    %275 = math.tanh %274 : vector<2x64xf32>
    %276 = arith.mulf %271, %275 : vector<2x64xf32>
    %277 = arith.addf %243, %276 : vector<2x64xf32>
    %278 = vector.extract_strided_slice %7 {offsets = [14, 0], sizes = [2, 64], strides = [1, 1]} : vector<32x64xf32> to vector<2x64xf32>
    %cst_89 = arith.constant dense<0.000000e+00> : vector<2x64xf32>
    %279 = tpu.matmul %276, %30, %cst_89 {dimension_numbers = #tpu.dot_dimension_numbers<[1], [0], [0], [1], [0, 0, 1, 1], [], []>} : vector<2x64xf32>, vector<64x64xf32>, vector<2x64xf32> -> vector<2x64xf32>
    %280 = arith.addf %278, %279 : vector<2x64xf32>
    %281 = vector.extract_strided_slice %14 {offsets = [14, 0], sizes = [2, 64], strides = [1, 1]} : vector<32x64xf32> to vector<2x64xf32>
    %cst_90 = arith.constant dense<0.000000e+00> : vector<2x64xf32>
    %282 = tpu.matmul %276, %32, %cst_90 {dimension_numbers = #tpu.dot_dimension_numbers<[1], [0], [0], [1], [0, 0, 1, 1], [], []>} : vector<2x64xf32>, vector<64x64xf32>, vector<2x64xf32> -> vector<2x64xf32>
    %283 = arith.addf %281, %282 : vector<2x64xf32>
    %284 = vector.extract_strided_slice %21 {offsets = [14, 0], sizes = [2, 64], strides = [1, 1]} : vector<32x64xf32> to vector<2x64xf32>
    %cst_91 = arith.constant dense<0.000000e+00> : vector<2x64xf32>
    %285 = tpu.matmul %276, %34, %cst_91 {dimension_numbers = #tpu.dot_dimension_numbers<[1], [0], [0], [1], [0, 0, 1, 1], [], []>} : vector<2x64xf32>, vector<64x64xf32>, vector<2x64xf32> -> vector<2x64xf32>
    %286 = arith.addf %284, %285 : vector<2x64xf32>
    %287 = vector.extract_strided_slice %28 {offsets = [14, 0], sizes = [2, 64], strides = [1, 1]} : vector<32x64xf32> to vector<2x64xf32>
    %cst_92 = arith.constant dense<0.000000e+00> : vector<2x64xf32>
    %288 = tpu.matmul %276, %36, %cst_92 {dimension_numbers = #tpu.dot_dimension_numbers<[1], [0], [0], [1], [0, 0, 1, 1], [], []>} : vector<2x64xf32>, vector<64x64xf32>, vector<2x64xf32> -> vector<2x64xf32>
    %289 = arith.addf %287, %288 : vector<2x64xf32>
    %290 = arith.negf %280 : vector<2x64xf32>
    %291 = math.exp %290 : vector<2x64xf32>
    %cst_93 = arith.constant 1.000000e+00 : f32
    %292 = vector.broadcast %cst_93 : f32 to vector<2x64xf32>
    %293 = arith.addf %292, %291 : vector<2x64xf32>
    %294 = arith.divf %292, %293 : vector<2x64xf32>
    %295 = arith.negf %283 : vector<2x64xf32>
    %296 = math.exp %295 : vector<2x64xf32>
    %cst_94 = arith.constant 1.000000e+00 : f32
    %297 = vector.broadcast %cst_94 : f32 to vector<2x64xf32>
    %298 = arith.addf %297, %296 : vector<2x64xf32>
    %299 = arith.divf %297, %298 : vector<2x64xf32>
    %300 = math.tanh %286 : vector<2x64xf32>
    %301 = arith.negf %289 : vector<2x64xf32>
    %302 = math.exp %301 : vector<2x64xf32>
    %cst_95 = arith.constant 1.000000e+00 : f32
    %303 = vector.broadcast %cst_95 : f32 to vector<2x64xf32>
    %304 = arith.addf %303, %302 : vector<2x64xf32>
    %305 = arith.divf %303, %304 : vector<2x64xf32>
    %306 = arith.mulf %299, %274 : vector<2x64xf32>
    %307 = arith.mulf %294, %300 : vector<2x64xf32>
    %308 = arith.addf %306, %307 : vector<2x64xf32>
    %309 = math.tanh %308 : vector<2x64xf32>
    %310 = arith.mulf %305, %309 : vector<2x64xf32>
    %311 = arith.addf %277, %310 : vector<2x64xf32>
    %312 = vector.extract_strided_slice %7 {offsets = [16, 0], sizes = [2, 64], strides = [1, 1]} : vector<32x64xf32> to vector<2x64xf32>
    %cst_96 = arith.constant dense<0.000000e+00> : vector<2x64xf32>
    %313 = tpu.matmul %310, %30, %cst_96 {dimension_numbers = #tpu.dot_dimension_numbers<[1], [0], [0], [1], [0, 0, 1, 1], [], []>} : vector<2x64xf32>, vector<64x64xf32>, vector<2x64xf32> -> vector<2x64xf32>
    %314 = arith.addf %312, %313 : vector<2x64xf32>
    %315 = vector.extract_strided_slice %14 {offsets = [16, 0], sizes = [2, 64], strides = [1, 1]} : vector<32x64xf32> to vector<2x64xf32>
    %cst_97 = arith.constant dense<0.000000e+00> : vector<2x64xf32>
    %316 = tpu.matmul %310, %32, %cst_97 {dimension_numbers = #tpu.dot_dimension_numbers<[1], [0], [0], [1], [0, 0, 1, 1], [], []>} : vector<2x64xf32>, vector<64x64xf32>, vector<2x64xf32> -> vector<2x64xf32>
    %317 = arith.addf %315, %316 : vector<2x64xf32>
    %318 = vector.extract_strided_slice %21 {offsets = [16, 0], sizes = [2, 64], strides = [1, 1]} : vector<32x64xf32> to vector<2x64xf32>
    %cst_98 = arith.constant dense<0.000000e+00> : vector<2x64xf32>
    %319 = tpu.matmul %310, %34, %cst_98 {dimension_numbers = #tpu.dot_dimension_numbers<[1], [0], [0], [1], [0, 0, 1, 1], [], []>} : vector<2x64xf32>, vector<64x64xf32>, vector<2x64xf32> -> vector<2x64xf32>
    %320 = arith.addf %318, %319 : vector<2x64xf32>
    %321 = vector.extract_strided_slice %28 {offsets = [16, 0], sizes = [2, 64], strides = [1, 1]} : vector<32x64xf32> to vector<2x64xf32>
    %cst_99 = arith.constant dense<0.000000e+00> : vector<2x64xf32>
    %322 = tpu.matmul %310, %36, %cst_99 {dimension_numbers = #tpu.dot_dimension_numbers<[1], [0], [0], [1], [0, 0, 1, 1], [], []>} : vector<2x64xf32>, vector<64x64xf32>, vector<2x64xf32> -> vector<2x64xf32>
    %323 = arith.addf %321, %322 : vector<2x64xf32>
    %324 = arith.negf %314 : vector<2x64xf32>
    %325 = math.exp %324 : vector<2x64xf32>
    %cst_100 = arith.constant 1.000000e+00 : f32
    %326 = vector.broadcast %cst_100 : f32 to vector<2x64xf32>
    %327 = arith.addf %326, %325 : vector<2x64xf32>
    %328 = arith.divf %326, %327 : vector<2x64xf32>
    %329 = arith.negf %317 : vector<2x64xf32>
    %330 = math.exp %329 : vector<2x64xf32>
    %cst_101 = arith.constant 1.000000e+00 : f32
    %331 = vector.broadcast %cst_101 : f32 to vector<2x64xf32>
    %332 = arith.addf %331, %330 : vector<2x64xf32>
    %333 = arith.divf %331, %332 : vector<2x64xf32>
    %334 = math.tanh %320 : vector<2x64xf32>
    %335 = arith.negf %323 : vector<2x64xf32>
    %336 = math.exp %335 : vector<2x64xf32>
    %cst_102 = arith.constant 1.000000e+00 : f32
    %337 = vector.broadcast %cst_102 : f32 to vector<2x64xf32>
    %338 = arith.addf %337, %336 : vector<2x64xf32>
    %339 = arith.divf %337, %338 : vector<2x64xf32>
    %340 = arith.mulf %333, %308 : vector<2x64xf32>
    %341 = arith.mulf %328, %334 : vector<2x64xf32>
    %342 = arith.addf %340, %341 : vector<2x64xf32>
    %343 = math.tanh %342 : vector<2x64xf32>
    %344 = arith.mulf %339, %343 : vector<2x64xf32>
    %345 = arith.addf %311, %344 : vector<2x64xf32>
    %346 = vector.extract_strided_slice %7 {offsets = [18, 0], sizes = [2, 64], strides = [1, 1]} : vector<32x64xf32> to vector<2x64xf32>
    %cst_103 = arith.constant dense<0.000000e+00> : vector<2x64xf32>
    %347 = tpu.matmul %344, %30, %cst_103 {dimension_numbers = #tpu.dot_dimension_numbers<[1], [0], [0], [1], [0, 0, 1, 1], [], []>} : vector<2x64xf32>, vector<64x64xf32>, vector<2x64xf32> -> vector<2x64xf32>
    %348 = arith.addf %346, %347 : vector<2x64xf32>
    %349 = vector.extract_strided_slice %14 {offsets = [18, 0], sizes = [2, 64], strides = [1, 1]} : vector<32x64xf32> to vector<2x64xf32>
    %cst_104 = arith.constant dense<0.000000e+00> : vector<2x64xf32>
    %350 = tpu.matmul %344, %32, %cst_104 {dimension_numbers = #tpu.dot_dimension_numbers<[1], [0], [0], [1], [0, 0, 1, 1], [], []>} : vector<2x64xf32>, vector<64x64xf32>, vector<2x64xf32> -> vector<2x64xf32>
    %351 = arith.addf %349, %350 : vector<2x64xf32>
    %352 = vector.extract_strided_slice %21 {offsets = [18, 0], sizes = [2, 64], strides = [1, 1]} : vector<32x64xf32> to vector<2x64xf32>
    %cst_105 = arith.constant dense<0.000000e+00> : vector<2x64xf32>
    %353 = tpu.matmul %344, %34, %cst_105 {dimension_numbers = #tpu.dot_dimension_numbers<[1], [0], [0], [1], [0, 0, 1, 1], [], []>} : vector<2x64xf32>, vector<64x64xf32>, vector<2x64xf32> -> vector<2x64xf32>
    %354 = arith.addf %352, %353 : vector<2x64xf32>
    %355 = vector.extract_strided_slice %28 {offsets = [18, 0], sizes = [2, 64], strides = [1, 1]} : vector<32x64xf32> to vector<2x64xf32>
    %cst_106 = arith.constant dense<0.000000e+00> : vector<2x64xf32>
    %356 = tpu.matmul %344, %36, %cst_106 {dimension_numbers = #tpu.dot_dimension_numbers<[1], [0], [0], [1], [0, 0, 1, 1], [], []>} : vector<2x64xf32>, vector<64x64xf32>, vector<2x64xf32> -> vector<2x64xf32>
    %357 = arith.addf %355, %356 : vector<2x64xf32>
    %358 = arith.negf %348 : vector<2x64xf32>
    %359 = math.exp %358 : vector<2x64xf32>
    %cst_107 = arith.constant 1.000000e+00 : f32
    %360 = vector.broadcast %cst_107 : f32 to vector<2x64xf32>
    %361 = arith.addf %360, %359 : vector<2x64xf32>
    %362 = arith.divf %360, %361 : vector<2x64xf32>
    %363 = arith.negf %351 : vector<2x64xf32>
    %364 = math.exp %363 : vector<2x64xf32>
    %cst_108 = arith.constant 1.000000e+00 : f32
    %365 = vector.broadcast %cst_108 : f32 to vector<2x64xf32>
    %366 = arith.addf %365, %364 : vector<2x64xf32>
    %367 = arith.divf %365, %366 : vector<2x64xf32>
    %368 = math.tanh %354 : vector<2x64xf32>
    %369 = arith.negf %357 : vector<2x64xf32>
    %370 = math.exp %369 : vector<2x64xf32>
    %cst_109 = arith.constant 1.000000e+00 : f32
    %371 = vector.broadcast %cst_109 : f32 to vector<2x64xf32>
    %372 = arith.addf %371, %370 : vector<2x64xf32>
    %373 = arith.divf %371, %372 : vector<2x64xf32>
    %374 = arith.mulf %367, %342 : vector<2x64xf32>
    %375 = arith.mulf %362, %368 : vector<2x64xf32>
    %376 = arith.addf %374, %375 : vector<2x64xf32>
    %377 = math.tanh %376 : vector<2x64xf32>
    %378 = arith.mulf %373, %377 : vector<2x64xf32>
    %379 = arith.addf %345, %378 : vector<2x64xf32>
    %380 = vector.extract_strided_slice %7 {offsets = [20, 0], sizes = [2, 64], strides = [1, 1]} : vector<32x64xf32> to vector<2x64xf32>
    %cst_110 = arith.constant dense<0.000000e+00> : vector<2x64xf32>
    %381 = tpu.matmul %378, %30, %cst_110 {dimension_numbers = #tpu.dot_dimension_numbers<[1], [0], [0], [1], [0, 0, 1, 1], [], []>} : vector<2x64xf32>, vector<64x64xf32>, vector<2x64xf32> -> vector<2x64xf32>
    %382 = arith.addf %380, %381 : vector<2x64xf32>
    %383 = vector.extract_strided_slice %14 {offsets = [20, 0], sizes = [2, 64], strides = [1, 1]} : vector<32x64xf32> to vector<2x64xf32>
    %cst_111 = arith.constant dense<0.000000e+00> : vector<2x64xf32>
    %384 = tpu.matmul %378, %32, %cst_111 {dimension_numbers = #tpu.dot_dimension_numbers<[1], [0], [0], [1], [0, 0, 1, 1], [], []>} : vector<2x64xf32>, vector<64x64xf32>, vector<2x64xf32> -> vector<2x64xf32>
    %385 = arith.addf %383, %384 : vector<2x64xf32>
    %386 = vector.extract_strided_slice %21 {offsets = [20, 0], sizes = [2, 64], strides = [1, 1]} : vector<32x64xf32> to vector<2x64xf32>
    %cst_112 = arith.constant dense<0.000000e+00> : vector<2x64xf32>
    %387 = tpu.matmul %378, %34, %cst_112 {dimension_numbers = #tpu.dot_dimension_numbers<[1], [0], [0], [1], [0, 0, 1, 1], [], []>} : vector<2x64xf32>, vector<64x64xf32>, vector<2x64xf32> -> vector<2x64xf32>
    %388 = arith.addf %386, %387 : vector<2x64xf32>
    %389 = vector.extract_strided_slice %28 {offsets = [20, 0], sizes = [2, 64], strides = [1, 1]} : vector<32x64xf32> to vector<2x64xf32>
    %cst_113 = arith.constant dense<0.000000e+00> : vector<2x64xf32>
    %390 = tpu.matmul %378, %36, %cst_113 {dimension_numbers = #tpu.dot_dimension_numbers<[1], [0], [0], [1], [0, 0, 1, 1], [], []>} : vector<2x64xf32>, vector<64x64xf32>, vector<2x64xf32> -> vector<2x64xf32>
    %391 = arith.addf %389, %390 : vector<2x64xf32>
    %392 = arith.negf %382 : vector<2x64xf32>
    %393 = math.exp %392 : vector<2x64xf32>
    %cst_114 = arith.constant 1.000000e+00 : f32
    %394 = vector.broadcast %cst_114 : f32 to vector<2x64xf32>
    %395 = arith.addf %394, %393 : vector<2x64xf32>
    %396 = arith.divf %394, %395 : vector<2x64xf32>
    %397 = arith.negf %385 : vector<2x64xf32>
    %398 = math.exp %397 : vector<2x64xf32>
    %cst_115 = arith.constant 1.000000e+00 : f32
    %399 = vector.broadcast %cst_115 : f32 to vector<2x64xf32>
    %400 = arith.addf %399, %398 : vector<2x64xf32>
    %401 = arith.divf %399, %400 : vector<2x64xf32>
    %402 = math.tanh %388 : vector<2x64xf32>
    %403 = arith.negf %391 : vector<2x64xf32>
    %404 = math.exp %403 : vector<2x64xf32>
    %cst_116 = arith.constant 1.000000e+00 : f32
    %405 = vector.broadcast %cst_116 : f32 to vector<2x64xf32>
    %406 = arith.addf %405, %404 : vector<2x64xf32>
    %407 = arith.divf %405, %406 : vector<2x64xf32>
    %408 = arith.mulf %401, %376 : vector<2x64xf32>
    %409 = arith.mulf %396, %402 : vector<2x64xf32>
    %410 = arith.addf %408, %409 : vector<2x64xf32>
    %411 = math.tanh %410 : vector<2x64xf32>
    %412 = arith.mulf %407, %411 : vector<2x64xf32>
    %413 = arith.addf %379, %412 : vector<2x64xf32>
    %414 = vector.extract_strided_slice %7 {offsets = [22, 0], sizes = [2, 64], strides = [1, 1]} : vector<32x64xf32> to vector<2x64xf32>
    %cst_117 = arith.constant dense<0.000000e+00> : vector<2x64xf32>
    %415 = tpu.matmul %412, %30, %cst_117 {dimension_numbers = #tpu.dot_dimension_numbers<[1], [0], [0], [1], [0, 0, 1, 1], [], []>} : vector<2x64xf32>, vector<64x64xf32>, vector<2x64xf32> -> vector<2x64xf32>
    %416 = arith.addf %414, %415 : vector<2x64xf32>
    %417 = vector.extract_strided_slice %14 {offsets = [22, 0], sizes = [2, 64], strides = [1, 1]} : vector<32x64xf32> to vector<2x64xf32>
    %cst_118 = arith.constant dense<0.000000e+00> : vector<2x64xf32>
    %418 = tpu.matmul %412, %32, %cst_118 {dimension_numbers = #tpu.dot_dimension_numbers<[1], [0], [0], [1], [0, 0, 1, 1], [], []>} : vector<2x64xf32>, vector<64x64xf32>, vector<2x64xf32> -> vector<2x64xf32>
    %419 = arith.addf %417, %418 : vector<2x64xf32>
    %420 = vector.extract_strided_slice %21 {offsets = [22, 0], sizes = [2, 64], strides = [1, 1]} : vector<32x64xf32> to vector<2x64xf32>
    %cst_119 = arith.constant dense<0.000000e+00> : vector<2x64xf32>
    %421 = tpu.matmul %412, %34, %cst_119 {dimension_numbers = #tpu.dot_dimension_numbers<[1], [0], [0], [1], [0, 0, 1, 1], [], []>} : vector<2x64xf32>, vector<64x64xf32>, vector<2x64xf32> -> vector<2x64xf32>
    %422 = arith.addf %420, %421 : vector<2x64xf32>
    %423 = vector.extract_strided_slice %28 {offsets = [22, 0], sizes = [2, 64], strides = [1, 1]} : vector<32x64xf32> to vector<2x64xf32>
    %cst_120 = arith.constant dense<0.000000e+00> : vector<2x64xf32>
    %424 = tpu.matmul %412, %36, %cst_120 {dimension_numbers = #tpu.dot_dimension_numbers<[1], [0], [0], [1], [0, 0, 1, 1], [], []>} : vector<2x64xf32>, vector<64x64xf32>, vector<2x64xf32> -> vector<2x64xf32>
    %425 = arith.addf %423, %424 : vector<2x64xf32>
    %426 = arith.negf %416 : vector<2x64xf32>
    %427 = math.exp %426 : vector<2x64xf32>
    %cst_121 = arith.constant 1.000000e+00 : f32
    %428 = vector.broadcast %cst_121 : f32 to vector<2x64xf32>
    %429 = arith.addf %428, %427 : vector<2x64xf32>
    %430 = arith.divf %428, %429 : vector<2x64xf32>
    %431 = arith.negf %419 : vector<2x64xf32>
    %432 = math.exp %431 : vector<2x64xf32>
    %cst_122 = arith.constant 1.000000e+00 : f32
    %433 = vector.broadcast %cst_122 : f32 to vector<2x64xf32>
    %434 = arith.addf %433, %432 : vector<2x64xf32>
    %435 = arith.divf %433, %434 : vector<2x64xf32>
    %436 = math.tanh %422 : vector<2x64xf32>
    %437 = arith.negf %425 : vector<2x64xf32>
    %438 = math.exp %437 : vector<2x64xf32>
    %cst_123 = arith.constant 1.000000e+00 : f32
    %439 = vector.broadcast %cst_123 : f32 to vector<2x64xf32>
    %440 = arith.addf %439, %438 : vector<2x64xf32>
    %441 = arith.divf %439, %440 : vector<2x64xf32>
    %442 = arith.mulf %435, %410 : vector<2x64xf32>
    %443 = arith.mulf %430, %436 : vector<2x64xf32>
    %444 = arith.addf %442, %443 : vector<2x64xf32>
    %445 = math.tanh %444 : vector<2x64xf32>
    %446 = arith.mulf %441, %445 : vector<2x64xf32>
    %447 = arith.addf %413, %446 : vector<2x64xf32>
    %448 = vector.extract_strided_slice %7 {offsets = [24, 0], sizes = [2, 64], strides = [1, 1]} : vector<32x64xf32> to vector<2x64xf32>
    %cst_124 = arith.constant dense<0.000000e+00> : vector<2x64xf32>
    %449 = tpu.matmul %446, %30, %cst_124 {dimension_numbers = #tpu.dot_dimension_numbers<[1], [0], [0], [1], [0, 0, 1, 1], [], []>} : vector<2x64xf32>, vector<64x64xf32>, vector<2x64xf32> -> vector<2x64xf32>
    %450 = arith.addf %448, %449 : vector<2x64xf32>
    %451 = vector.extract_strided_slice %14 {offsets = [24, 0], sizes = [2, 64], strides = [1, 1]} : vector<32x64xf32> to vector<2x64xf32>
    %cst_125 = arith.constant dense<0.000000e+00> : vector<2x64xf32>
    %452 = tpu.matmul %446, %32, %cst_125 {dimension_numbers = #tpu.dot_dimension_numbers<[1], [0], [0], [1], [0, 0, 1, 1], [], []>} : vector<2x64xf32>, vector<64x64xf32>, vector<2x64xf32> -> vector<2x64xf32>
    %453 = arith.addf %451, %452 : vector<2x64xf32>
    %454 = vector.extract_strided_slice %21 {offsets = [24, 0], sizes = [2, 64], strides = [1, 1]} : vector<32x64xf32> to vector<2x64xf32>
    %cst_126 = arith.constant dense<0.000000e+00> : vector<2x64xf32>
    %455 = tpu.matmul %446, %34, %cst_126 {dimension_numbers = #tpu.dot_dimension_numbers<[1], [0], [0], [1], [0, 0, 1, 1], [], []>} : vector<2x64xf32>, vector<64x64xf32>, vector<2x64xf32> -> vector<2x64xf32>
    %456 = arith.addf %454, %455 : vector<2x64xf32>
    %457 = vector.extract_strided_slice %28 {offsets = [24, 0], sizes = [2, 64], strides = [1, 1]} : vector<32x64xf32> to vector<2x64xf32>
    %cst_127 = arith.constant dense<0.000000e+00> : vector<2x64xf32>
    %458 = tpu.matmul %446, %36, %cst_127 {dimension_numbers = #tpu.dot_dimension_numbers<[1], [0], [0], [1], [0, 0, 1, 1], [], []>} : vector<2x64xf32>, vector<64x64xf32>, vector<2x64xf32> -> vector<2x64xf32>
    %459 = arith.addf %457, %458 : vector<2x64xf32>
    %460 = arith.negf %450 : vector<2x64xf32>
    %461 = math.exp %460 : vector<2x64xf32>
    %cst_128 = arith.constant 1.000000e+00 : f32
    %462 = vector.broadcast %cst_128 : f32 to vector<2x64xf32>
    %463 = arith.addf %462, %461 : vector<2x64xf32>
    %464 = arith.divf %462, %463 : vector<2x64xf32>
    %465 = arith.negf %453 : vector<2x64xf32>
    %466 = math.exp %465 : vector<2x64xf32>
    %cst_129 = arith.constant 1.000000e+00 : f32
    %467 = vector.broadcast %cst_129 : f32 to vector<2x64xf32>
    %468 = arith.addf %467, %466 : vector<2x64xf32>
    %469 = arith.divf %467, %468 : vector<2x64xf32>
    %470 = math.tanh %456 : vector<2x64xf32>
    %471 = arith.negf %459 : vector<2x64xf32>
    %472 = math.exp %471 : vector<2x64xf32>
    %cst_130 = arith.constant 1.000000e+00 : f32
    %473 = vector.broadcast %cst_130 : f32 to vector<2x64xf32>
    %474 = arith.addf %473, %472 : vector<2x64xf32>
    %475 = arith.divf %473, %474 : vector<2x64xf32>
    %476 = arith.mulf %469, %444 : vector<2x64xf32>
    %477 = arith.mulf %464, %470 : vector<2x64xf32>
    %478 = arith.addf %476, %477 : vector<2x64xf32>
    %479 = math.tanh %478 : vector<2x64xf32>
    %480 = arith.mulf %475, %479 : vector<2x64xf32>
    %481 = arith.addf %447, %480 : vector<2x64xf32>
    %482 = vector.extract_strided_slice %7 {offsets = [26, 0], sizes = [2, 64], strides = [1, 1]} : vector<32x64xf32> to vector<2x64xf32>
    %cst_131 = arith.constant dense<0.000000e+00> : vector<2x64xf32>
    %483 = tpu.matmul %480, %30, %cst_131 {dimension_numbers = #tpu.dot_dimension_numbers<[1], [0], [0], [1], [0, 0, 1, 1], [], []>} : vector<2x64xf32>, vector<64x64xf32>, vector<2x64xf32> -> vector<2x64xf32>
    %484 = arith.addf %482, %483 : vector<2x64xf32>
    %485 = vector.extract_strided_slice %14 {offsets = [26, 0], sizes = [2, 64], strides = [1, 1]} : vector<32x64xf32> to vector<2x64xf32>
    %cst_132 = arith.constant dense<0.000000e+00> : vector<2x64xf32>
    %486 = tpu.matmul %480, %32, %cst_132 {dimension_numbers = #tpu.dot_dimension_numbers<[1], [0], [0], [1], [0, 0, 1, 1], [], []>} : vector<2x64xf32>, vector<64x64xf32>, vector<2x64xf32> -> vector<2x64xf32>
    %487 = arith.addf %485, %486 : vector<2x64xf32>
    %488 = vector.extract_strided_slice %21 {offsets = [26, 0], sizes = [2, 64], strides = [1, 1]} : vector<32x64xf32> to vector<2x64xf32>
    %cst_133 = arith.constant dense<0.000000e+00> : vector<2x64xf32>
    %489 = tpu.matmul %480, %34, %cst_133 {dimension_numbers = #tpu.dot_dimension_numbers<[1], [0], [0], [1], [0, 0, 1, 1], [], []>} : vector<2x64xf32>, vector<64x64xf32>, vector<2x64xf32> -> vector<2x64xf32>
    %490 = arith.addf %488, %489 : vector<2x64xf32>
    %491 = vector.extract_strided_slice %28 {offsets = [26, 0], sizes = [2, 64], strides = [1, 1]} : vector<32x64xf32> to vector<2x64xf32>
    %cst_134 = arith.constant dense<0.000000e+00> : vector<2x64xf32>
    %492 = tpu.matmul %480, %36, %cst_134 {dimension_numbers = #tpu.dot_dimension_numbers<[1], [0], [0], [1], [0, 0, 1, 1], [], []>} : vector<2x64xf32>, vector<64x64xf32>, vector<2x64xf32> -> vector<2x64xf32>
    %493 = arith.addf %491, %492 : vector<2x64xf32>
    %494 = arith.negf %484 : vector<2x64xf32>
    %495 = math.exp %494 : vector<2x64xf32>
    %cst_135 = arith.constant 1.000000e+00 : f32
    %496 = vector.broadcast %cst_135 : f32 to vector<2x64xf32>
    %497 = arith.addf %496, %495 : vector<2x64xf32>
    %498 = arith.divf %496, %497 : vector<2x64xf32>
    %499 = arith.negf %487 : vector<2x64xf32>
    %500 = math.exp %499 : vector<2x64xf32>
    %cst_136 = arith.constant 1.000000e+00 : f32
    %501 = vector.broadcast %cst_136 : f32 to vector<2x64xf32>
    %502 = arith.addf %501, %500 : vector<2x64xf32>
    %503 = arith.divf %501, %502 : vector<2x64xf32>
    %504 = math.tanh %490 : vector<2x64xf32>
    %505 = arith.negf %493 : vector<2x64xf32>
    %506 = math.exp %505 : vector<2x64xf32>
    %cst_137 = arith.constant 1.000000e+00 : f32
    %507 = vector.broadcast %cst_137 : f32 to vector<2x64xf32>
    %508 = arith.addf %507, %506 : vector<2x64xf32>
    %509 = arith.divf %507, %508 : vector<2x64xf32>
    %510 = arith.mulf %503, %478 : vector<2x64xf32>
    %511 = arith.mulf %498, %504 : vector<2x64xf32>
    %512 = arith.addf %510, %511 : vector<2x64xf32>
    %513 = math.tanh %512 : vector<2x64xf32>
    %514 = arith.mulf %509, %513 : vector<2x64xf32>
    %515 = arith.addf %481, %514 : vector<2x64xf32>
    %516 = vector.extract_strided_slice %7 {offsets = [28, 0], sizes = [2, 64], strides = [1, 1]} : vector<32x64xf32> to vector<2x64xf32>
    %cst_138 = arith.constant dense<0.000000e+00> : vector<2x64xf32>
    %517 = tpu.matmul %514, %30, %cst_138 {dimension_numbers = #tpu.dot_dimension_numbers<[1], [0], [0], [1], [0, 0, 1, 1], [], []>} : vector<2x64xf32>, vector<64x64xf32>, vector<2x64xf32> -> vector<2x64xf32>
    %518 = arith.addf %516, %517 : vector<2x64xf32>
    %519 = vector.extract_strided_slice %14 {offsets = [28, 0], sizes = [2, 64], strides = [1, 1]} : vector<32x64xf32> to vector<2x64xf32>
    %cst_139 = arith.constant dense<0.000000e+00> : vector<2x64xf32>
    %520 = tpu.matmul %514, %32, %cst_139 {dimension_numbers = #tpu.dot_dimension_numbers<[1], [0], [0], [1], [0, 0, 1, 1], [], []>} : vector<2x64xf32>, vector<64x64xf32>, vector<2x64xf32> -> vector<2x64xf32>
    %521 = arith.addf %519, %520 : vector<2x64xf32>
    %522 = vector.extract_strided_slice %21 {offsets = [28, 0], sizes = [2, 64], strides = [1, 1]} : vector<32x64xf32> to vector<2x64xf32>
    %cst_140 = arith.constant dense<0.000000e+00> : vector<2x64xf32>
    %523 = tpu.matmul %514, %34, %cst_140 {dimension_numbers = #tpu.dot_dimension_numbers<[1], [0], [0], [1], [0, 0, 1, 1], [], []>} : vector<2x64xf32>, vector<64x64xf32>, vector<2x64xf32> -> vector<2x64xf32>
    %524 = arith.addf %522, %523 : vector<2x64xf32>
    %525 = vector.extract_strided_slice %28 {offsets = [28, 0], sizes = [2, 64], strides = [1, 1]} : vector<32x64xf32> to vector<2x64xf32>
    %cst_141 = arith.constant dense<0.000000e+00> : vector<2x64xf32>
    %526 = tpu.matmul %514, %36, %cst_141 {dimension_numbers = #tpu.dot_dimension_numbers<[1], [0], [0], [1], [0, 0, 1, 1], [], []>} : vector<2x64xf32>, vector<64x64xf32>, vector<2x64xf32> -> vector<2x64xf32>
    %527 = arith.addf %525, %526 : vector<2x64xf32>
    %528 = arith.negf %518 : vector<2x64xf32>
    %529 = math.exp %528 : vector<2x64xf32>
    %cst_142 = arith.constant 1.000000e+00 : f32
    %530 = vector.broadcast %cst_142 : f32 to vector<2x64xf32>
    %531 = arith.addf %530, %529 : vector<2x64xf32>
    %532 = arith.divf %530, %531 : vector<2x64xf32>
    %533 = arith.negf %521 : vector<2x64xf32>
    %534 = math.exp %533 : vector<2x64xf32>
    %cst_143 = arith.constant 1.000000e+00 : f32
    %535 = vector.broadcast %cst_143 : f32 to vector<2x64xf32>
    %536 = arith.addf %535, %534 : vector<2x64xf32>
    %537 = arith.divf %535, %536 : vector<2x64xf32>
    %538 = math.tanh %524 : vector<2x64xf32>
    %539 = arith.negf %527 : vector<2x64xf32>
    %540 = math.exp %539 : vector<2x64xf32>
    %cst_144 = arith.constant 1.000000e+00 : f32
    %541 = vector.broadcast %cst_144 : f32 to vector<2x64xf32>
    %542 = arith.addf %541, %540 : vector<2x64xf32>
    %543 = arith.divf %541, %542 : vector<2x64xf32>
    %544 = arith.mulf %537, %512 : vector<2x64xf32>
    %545 = arith.mulf %532, %538 : vector<2x64xf32>
    %546 = arith.addf %544, %545 : vector<2x64xf32>
    %547 = math.tanh %546 : vector<2x64xf32>
    %548 = arith.mulf %543, %547 : vector<2x64xf32>
    %549 = arith.addf %515, %548 : vector<2x64xf32>
    %550 = vector.extract_strided_slice %7 {offsets = [30, 0], sizes = [2, 64], strides = [1, 1]} : vector<32x64xf32> to vector<2x64xf32>
    %cst_145 = arith.constant dense<0.000000e+00> : vector<2x64xf32>
    %551 = tpu.matmul %548, %30, %cst_145 {dimension_numbers = #tpu.dot_dimension_numbers<[1], [0], [0], [1], [0, 0, 1, 1], [], []>} : vector<2x64xf32>, vector<64x64xf32>, vector<2x64xf32> -> vector<2x64xf32>
    %552 = arith.addf %550, %551 : vector<2x64xf32>
    %553 = vector.extract_strided_slice %14 {offsets = [30, 0], sizes = [2, 64], strides = [1, 1]} : vector<32x64xf32> to vector<2x64xf32>
    %cst_146 = arith.constant dense<0.000000e+00> : vector<2x64xf32>
    %554 = tpu.matmul %548, %32, %cst_146 {dimension_numbers = #tpu.dot_dimension_numbers<[1], [0], [0], [1], [0, 0, 1, 1], [], []>} : vector<2x64xf32>, vector<64x64xf32>, vector<2x64xf32> -> vector<2x64xf32>
    %555 = arith.addf %553, %554 : vector<2x64xf32>
    %556 = vector.extract_strided_slice %21 {offsets = [30, 0], sizes = [2, 64], strides = [1, 1]} : vector<32x64xf32> to vector<2x64xf32>
    %cst_147 = arith.constant dense<0.000000e+00> : vector<2x64xf32>
    %557 = tpu.matmul %548, %34, %cst_147 {dimension_numbers = #tpu.dot_dimension_numbers<[1], [0], [0], [1], [0, 0, 1, 1], [], []>} : vector<2x64xf32>, vector<64x64xf32>, vector<2x64xf32> -> vector<2x64xf32>
    %558 = arith.addf %556, %557 : vector<2x64xf32>
    %559 = vector.extract_strided_slice %28 {offsets = [30, 0], sizes = [2, 64], strides = [1, 1]} : vector<32x64xf32> to vector<2x64xf32>
    %cst_148 = arith.constant dense<0.000000e+00> : vector<2x64xf32>
    %560 = tpu.matmul %548, %36, %cst_148 {dimension_numbers = #tpu.dot_dimension_numbers<[1], [0], [0], [1], [0, 0, 1, 1], [], []>} : vector<2x64xf32>, vector<64x64xf32>, vector<2x64xf32> -> vector<2x64xf32>
    %561 = arith.addf %559, %560 : vector<2x64xf32>
    %562 = arith.negf %552 : vector<2x64xf32>
    %563 = math.exp %562 : vector<2x64xf32>
    %cst_149 = arith.constant 1.000000e+00 : f32
    %564 = vector.broadcast %cst_149 : f32 to vector<2x64xf32>
    %565 = arith.addf %564, %563 : vector<2x64xf32>
    %566 = arith.divf %564, %565 : vector<2x64xf32>
    %567 = arith.negf %555 : vector<2x64xf32>
    %568 = math.exp %567 : vector<2x64xf32>
    %cst_150 = arith.constant 1.000000e+00 : f32
    %569 = vector.broadcast %cst_150 : f32 to vector<2x64xf32>
    %570 = arith.addf %569, %568 : vector<2x64xf32>
    %571 = arith.divf %569, %570 : vector<2x64xf32>
    %572 = math.tanh %558 : vector<2x64xf32>
    %573 = arith.negf %561 : vector<2x64xf32>
    %574 = math.exp %573 : vector<2x64xf32>
    %cst_151 = arith.constant 1.000000e+00 : f32
    %575 = vector.broadcast %cst_151 : f32 to vector<2x64xf32>
    %576 = arith.addf %575, %574 : vector<2x64xf32>
    %577 = arith.divf %575, %576 : vector<2x64xf32>
    %578 = arith.mulf %571, %546 : vector<2x64xf32>
    %579 = arith.mulf %566, %572 : vector<2x64xf32>
    %580 = arith.addf %578, %579 : vector<2x64xf32>
    %581 = math.tanh %580 : vector<2x64xf32>
    %582 = arith.mulf %577, %581 : vector<2x64xf32>
    %583 = arith.addf %549, %582 : vector<2x64xf32>
    %cst_152 = arith.constant 1.250000e-01 : f32
    %584 = vector.broadcast %cst_152 : f32 to vector<2x64xf32>
    %585 = arith.mulf %311, %584 : vector<2x64xf32>
    %c0_153 = arith.constant 0 : index
    %c0_154 = arith.constant 0 : index
    %586 = vector.load %arg5[%c0_153, %c0_154] : memref<64x8xf32, #tpu.memory_space<vmem>>, vector<64x8xf32>
    %cst_155 = arith.constant dense<0.000000e+00> : vector<2x8xf32>
    %587 = tpu.matmul %585, %586, %cst_155 {dimension_numbers = #tpu.dot_dimension_numbers<[1], [0], [0], [1], [0, 0, 1, 1], [], []>} : vector<2x64xf32>, vector<64x8xf32>, vector<2x8xf32> -> vector<2x8xf32>
    %c0_156 = arith.constant 0 : index
    %c0_157 = arith.constant 0 : index
    %588 = vector.load %arg6[%c0_156, %c0_157] : memref<1x8xf32, #tpu.memory_space<vmem>>, vector<1x8xf32>
    %589 = vector.broadcast %588 : vector<1x8xf32> to vector<2x8xf32>
    %590 = arith.addf %587, %589 : vector<2x8xf32>
    %cst_158 = arith.constant 6.250000e-02 : f32
    %591 = vector.broadcast %cst_158 : f32 to vector<2x64xf32>
    %592 = arith.mulf %583, %591 : vector<2x64xf32>
    %c0_159 = arith.constant 0 : index
    %c0_160 = arith.constant 0 : index
    %593 = vector.load %arg5[%c0_159, %c0_160] : memref<64x8xf32, #tpu.memory_space<vmem>>, vector<64x8xf32>
    %cst_161 = arith.constant dense<0.000000e+00> : vector<2x8xf32>
    %594 = tpu.matmul %592, %593, %cst_161 {dimension_numbers = #tpu.dot_dimension_numbers<[1], [0], [0], [1], [0, 0, 1, 1], [], []>} : vector<2x64xf32>, vector<64x8xf32>, vector<2x8xf32> -> vector<2x8xf32>
    %c0_162 = arith.constant 0 : index
    %c0_163 = arith.constant 0 : index
    %595 = vector.load %arg6[%c0_162, %c0_163] : memref<1x8xf32, #tpu.memory_space<vmem>>, vector<1x8xf32>
    %596 = vector.broadcast %595 : vector<1x8xf32> to vector<2x8xf32>
    %597 = arith.addf %594, %596 : vector<2x8xf32>
    %c0_164 = arith.constant 0 : index
    %c0_165 = arith.constant 0 : index
    %598 = vector.load %arg7[%c0_164, %c0_165] : memref<8x128xf32, #tpu.memory_space<vmem>>, vector<8x128xf32>
    %cst_166 = arith.constant dense<0.000000e+00> : vector<2x128xf32>
    %599 = tpu.matmul %590, %598, %cst_166 {dimension_numbers = #tpu.dot_dimension_numbers<[1], [0], [0], [1], [0, 0, 1, 1], [], []>} : vector<2x8xf32>, vector<8x128xf32>, vector<2x128xf32> -> vector<2x128xf32>
    %c0_167 = arith.constant 0 : index
    %c0_168 = arith.constant 0 : index
    %600 = vector.load %arg8[%c0_167, %c0_168] : memref<1x128xf32, #tpu.memory_space<vmem>>, vector<1x128xf32>
    %601 = vector.broadcast %600 : vector<1x128xf32> to vector<2x128xf32>
    %602 = arith.addf %599, %601 : vector<2x128xf32>
    %cst_169 = arith.constant dense<0.000000e+00> : vector<128xf32>
    %603 = vector.multi_reduction <add>, %602, %cst_169 [0] : vector<2x128xf32> to vector<128xf32>
    %604 = vector.shape_cast %603 : vector<128xf32> to vector<1x128xf32>
    %cst_170 = arith.constant 2.000000e+00 : f32
    %605 = vector.broadcast %cst_170 : f32 to vector<1x128xf32>
    %606 = arith.divf %604, %605 : vector<1x128xf32>
    %607 = vector.broadcast %606 : vector<1x128xf32> to vector<2x128xf32>
    %608 = arith.subf %602, %607 : vector<2x128xf32>
    %609 = vector.broadcast %606 : vector<1x128xf32> to vector<2x128xf32>
    %610 = arith.subf %602, %609 : vector<2x128xf32>
    %611 = arith.mulf %608, %610 : vector<2x128xf32>
    %cst_171 = arith.constant dense<0.000000e+00> : vector<128xf32>
    %612 = vector.multi_reduction <add>, %611, %cst_171 [0] : vector<2x128xf32> to vector<128xf32>
    %613 = vector.shape_cast %612 : vector<128xf32> to vector<1x128xf32>
    %cst_172 = arith.constant 2.000000e+00 : f32
    %614 = vector.broadcast %cst_172 : f32 to vector<1x128xf32>
    %615 = arith.divf %613, %614 : vector<1x128xf32>
    %616 = vector.broadcast %606 : vector<1x128xf32> to vector<2x128xf32>
    %617 = arith.subf %602, %616 : vector<2x128xf32>
    %cst_173 = arith.constant 9.99999974E-6 : f32
    %618 = vector.broadcast %cst_173 : f32 to vector<1x128xf32>
    %619 = arith.addf %615, %618 : vector<1x128xf32>
    %620 = math.rsqrt %619 : vector<1x128xf32>
    %621 = vector.broadcast %620 : vector<1x128xf32> to vector<2x128xf32>
    %622 = arith.mulf %617, %621 : vector<2x128xf32>
    %c0_174 = arith.constant 0 : index
    %c0_175 = arith.constant 0 : index
    %623 = vector.load %arg9[%c0_174, %c0_175] : memref<1x128xf32, #tpu.memory_space<vmem>>, vector<1x128xf32>
    %624 = vector.broadcast %623 : vector<1x128xf32> to vector<2x128xf32>
    %625 = arith.mulf %622, %624 : vector<2x128xf32>
    %c0_176 = arith.constant 0 : index
    %c0_177 = arith.constant 0 : index
    %626 = vector.load %arg10[%c0_176, %c0_177] : memref<1x128xf32, #tpu.memory_space<vmem>>, vector<1x128xf32>
    %627 = vector.broadcast %626 : vector<1x128xf32> to vector<2x128xf32>
    %628 = arith.addf %625, %627 : vector<2x128xf32>
    %cst_178 = arith.constant 0.000000e+00 : f32
    %629 = vector.broadcast %cst_178 : f32 to vector<2x128xf32>
    %630 = arith.maximumf %628, %629 : vector<2x128xf32>
    %c0_179 = arith.constant 0 : index
    %c0_180 = arith.constant 0 : index
    %631 = vector.load %arg11[%c0_179, %c0_180] : memref<128x32xf32, #tpu.memory_space<vmem>>, vector<128x32xf32>
    %cst_181 = arith.constant dense<0.000000e+00> : vector<2x32xf32>
    %632 = tpu.matmul %630, %631, %cst_181 {dimension_numbers = #tpu.dot_dimension_numbers<[1], [0], [0], [1], [0, 0, 1, 1], [], []>} : vector<2x128xf32>, vector<128x32xf32>, vector<2x32xf32> -> vector<2x32xf32>
    %c0_182 = arith.constant 0 : index
    %c0_183 = arith.constant 0 : index
    %633 = vector.load %arg12[%c0_182, %c0_183] : memref<1x32xf32, #tpu.memory_space<vmem>>, vector<1x32xf32>
    %634 = vector.broadcast %633 : vector<1x32xf32> to vector<2x32xf32>
    %635 = arith.addf %632, %634 : vector<2x32xf32>
    %636 = vector.extract_strided_slice %635 {offsets = [0, 0], sizes = [2, 16], strides = [1, 1]} : vector<2x32xf32> to vector<2x16xf32>
    %637 = vector.extract_strided_slice %635 {offsets = [0, 16], sizes = [2, 16], strides = [1, 1]} : vector<2x32xf32> to vector<2x16xf32>
    %c0_184 = arith.constant 0 : index
    %c0_185 = arith.constant 0 : index
    %638 = vector.load %arg7[%c0_184, %c0_185] : memref<8x128xf32, #tpu.memory_space<vmem>>, vector<8x128xf32>
    %cst_186 = arith.constant dense<0.000000e+00> : vector<2x128xf32>
    %639 = tpu.matmul %597, %638, %cst_186 {dimension_numbers = #tpu.dot_dimension_numbers<[1], [0], [0], [1], [0, 0, 1, 1], [], []>} : vector<2x8xf32>, vector<8x128xf32>, vector<2x128xf32> -> vector<2x128xf32>
    %c0_187 = arith.constant 0 : index
    %c0_188 = arith.constant 0 : index
    %640 = vector.load %arg8[%c0_187, %c0_188] : memref<1x128xf32, #tpu.memory_space<vmem>>, vector<1x128xf32>
    %641 = vector.broadcast %640 : vector<1x128xf32> to vector<2x128xf32>
    %642 = arith.addf %639, %641 : vector<2x128xf32>
    %cst_189 = arith.constant dense<0.000000e+00> : vector<128xf32>
    %643 = vector.multi_reduction <add>, %642, %cst_189 [0] : vector<2x128xf32> to vector<128xf32>
    %644 = vector.shape_cast %643 : vector<128xf32> to vector<1x128xf32>
    %cst_190 = arith.constant 2.000000e+00 : f32
    %645 = vector.broadcast %cst_190 : f32 to vector<1x128xf32>
    %646 = arith.divf %644, %645 : vector<1x128xf32>
    %647 = vector.broadcast %646 : vector<1x128xf32> to vector<2x128xf32>
    %648 = arith.subf %642, %647 : vector<2x128xf32>
    %649 = vector.broadcast %646 : vector<1x128xf32> to vector<2x128xf32>
    %650 = arith.subf %642, %649 : vector<2x128xf32>
    %651 = arith.mulf %648, %650 : vector<2x128xf32>
    %cst_191 = arith.constant dense<0.000000e+00> : vector<128xf32>
    %652 = vector.multi_reduction <add>, %651, %cst_191 [0] : vector<2x128xf32> to vector<128xf32>
    %653 = vector.shape_cast %652 : vector<128xf32> to vector<1x128xf32>
    %cst_192 = arith.constant 2.000000e+00 : f32
    %654 = vector.broadcast %cst_192 : f32 to vector<1x128xf32>
    %655 = arith.divf %653, %654 : vector<1x128xf32>
    %656 = vector.broadcast %646 : vector<1x128xf32> to vector<2x128xf32>
    %657 = arith.subf %642, %656 : vector<2x128xf32>
    %cst_193 = arith.constant 9.99999974E-6 : f32
    %658 = vector.broadcast %cst_193 : f32 to vector<1x128xf32>
    %659 = arith.addf %655, %658 : vector<1x128xf32>
    %660 = math.rsqrt %659 : vector<1x128xf32>
    %661 = vector.broadcast %660 : vector<1x128xf32> to vector<2x128xf32>
    %662 = arith.mulf %657, %661 : vector<2x128xf32>
    %c0_194 = arith.constant 0 : index
    %c0_195 = arith.constant 0 : index
    %663 = vector.load %arg9[%c0_194, %c0_195] : memref<1x128xf32, #tpu.memory_space<vmem>>, vector<1x128xf32>
    %664 = vector.broadcast %663 : vector<1x128xf32> to vector<2x128xf32>
    %665 = arith.mulf %662, %664 : vector<2x128xf32>
    %c0_196 = arith.constant 0 : index
    %c0_197 = arith.constant 0 : index
    %666 = vector.load %arg10[%c0_196, %c0_197] : memref<1x128xf32, #tpu.memory_space<vmem>>, vector<1x128xf32>
    %667 = vector.broadcast %666 : vector<1x128xf32> to vector<2x128xf32>
    %668 = arith.addf %665, %667 : vector<2x128xf32>
    %cst_198 = arith.constant 0.000000e+00 : f32
    %669 = vector.broadcast %cst_198 : f32 to vector<2x128xf32>
    %670 = arith.maximumf %668, %669 : vector<2x128xf32>
    %c0_199 = arith.constant 0 : index
    %c0_200 = arith.constant 0 : index
    %671 = vector.load %arg11[%c0_199, %c0_200] : memref<128x32xf32, #tpu.memory_space<vmem>>, vector<128x32xf32>
    %cst_201 = arith.constant dense<0.000000e+00> : vector<2x32xf32>
    %672 = tpu.matmul %670, %671, %cst_201 {dimension_numbers = #tpu.dot_dimension_numbers<[1], [0], [0], [1], [0, 0, 1, 1], [], []>} : vector<2x128xf32>, vector<128x32xf32>, vector<2x32xf32> -> vector<2x32xf32>
    %c0_202 = arith.constant 0 : index
    %c0_203 = arith.constant 0 : index
    %673 = vector.load %arg12[%c0_202, %c0_203] : memref<1x32xf32, #tpu.memory_space<vmem>>, vector<1x32xf32>
    %674 = vector.broadcast %673 : vector<1x32xf32> to vector<2x32xf32>
    %675 = arith.addf %672, %674 : vector<2x32xf32>
    %676 = vector.extract_strided_slice %675 {offsets = [0, 0], sizes = [2, 16], strides = [1, 1]} : vector<2x32xf32> to vector<2x16xf32>
    %677 = vector.extract_strided_slice %675 {offsets = [0, 16], sizes = [2, 16], strides = [1, 1]} : vector<2x32xf32> to vector<2x16xf32>
    %cst_204 = arith.constant 5.000000e-01 : f32
    %678 = vector.broadcast %cst_204 : f32 to vector<2x16xf32>
    %679 = arith.mulf %678, %637 : vector<2x16xf32>
    %680 = math.exp %679 : vector<2x16xf32>
    %cst_205 = arith.constant 5.000000e-01 : f32
    %681 = vector.broadcast %cst_205 : f32 to vector<2x16xf32>
    %682 = arith.mulf %681, %677 : vector<2x16xf32>
    %683 = math.exp %682 : vector<2x16xf32>
    %c0_206 = arith.constant 0 : index
    %c0_207 = arith.constant 0 : index
    %684 = vector.load %arg13[%c0_206, %c0_207] : memref<2x16xf32, #tpu.memory_space<vmem>>, vector<2x16xf32>
    %685 = arith.mulf %683, %684 : vector<2x16xf32>
    %686 = arith.addf %676, %685 : vector<2x16xf32>
    %c0_208 = arith.constant 0 : index
    %c0_209 = arith.constant 0 : index
    %687 = vector.load %arg14[%c0_208, %c0_209] : memref<2x16xf32, #tpu.memory_space<vmem>>, vector<2x16xf32>
    tpu.vector_store %arg14[%c0_208, %c0_209], %686 {strides = array<i32>} : memref<2x16xf32, #tpu.memory_space<vmem>>, vector<2x16xf32>,
    %688 = math.log %680 : vector<2x16xf32>
    %689 = math.log %683 : vector<2x16xf32>
    %690 = arith.subf %688, %689 : vector<2x16xf32>
    %691 = arith.mulf %683, %683 : vector<2x16xf32>
    %692 = arith.subf %676, %636 : vector<2x16xf32>
    %693 = arith.subf %676, %636 : vector<2x16xf32>
    %694 = arith.mulf %692, %693 : vector<2x16xf32>
    %695 = arith.addf %691, %694 : vector<2x16xf32>
    %cst_210 = arith.constant 2.000000e+00 : f32
    %696 = vector.broadcast %cst_210 : f32 to vector<2x16xf32>
    %697 = arith.mulf %696, %680 : vector<2x16xf32>
    %698 = arith.mulf %697, %680 : vector<2x16xf32>
    %699 = arith.divf %695, %698 : vector<2x16xf32>
    %700 = arith.addf %690, %699 : vector<2x16xf32>
    %cst_211 = arith.constant 5.000000e-01 : f32
    %701 = vector.broadcast %cst_211 : f32 to vector<2x16xf32>
    %702 = arith.subf %700, %701 : vector<2x16xf32>
    %cst_212 = arith.constant dense<0.000000e+00> : vector<2xf32>
    %703 = vector.multi_reduction <add>, %702, %cst_212 [1] : vector<2x16xf32> to vector<2xf32>
    %704 = vector.shape_cast %703 : vector<2xf32> to vector<2x1xf32>
    %cst_213 = arith.constant dense<0.000000e+00> : vector<1xf32>
    %705 = vector.multi_reduction <add>, %704, %cst_213 [0] : vector<2x1xf32> to vector<1xf32>
    %706 = vector.shape_cast %705 : vector<1xf32> to vector<1x1xf32>
    %cst_214 = arith.constant 5.000000e-01 : f32
    %707 = vector.broadcast %cst_214 : f32 to vector<1x1xf32>
    %708 = arith.mulf %706, %707 : vector<1x1xf32>
    %c0_215 = arith.constant 0 : index
    %c0_216 = arith.constant 0 : index
    %709 = vector.load %arg15[%c0_215, %c0_216] : memref<1x1xf32, #tpu.memory_space<vmem>>, vector<1x1xf32>
    tpu.vector_store %arg15[%c0_215, %c0_216], %708 {strides = array<i32>} : memref<1x1xf32, #tpu.memory_space<vmem>>, vector<1x1xf32>,
    return
  }
  func.func @transform_0(%arg0: i32) -> (i32, i32) {
    %c0_i32 = arith.constant 0 : i32
    %c0_i32_0 = arith.constant 0 : i32
    %c0_i32_1 = arith.constant 0 : i32
    return %c0_i32, %c0_i32_0 : i32, i32
  }
  func.func @transform_1(%arg0: i32) -> (i32, i32, i32) {
    %c0_i32 = arith.constant 0 : i32
    %c0_i32_0 = arith.constant 0 : i32
    %c0_i32_1 = arith.constant 0 : i32
    %c0_i32_2 = arith.constant 0 : i32
    return %c0_i32, %c0_i32_0, %c0_i32_1 : i32, i32, i32
  }
  func.func @transform_2(%arg0: i32) -> (i32, i32, i32) {
    %c0_i32 = arith.constant 0 : i32
    %c0_i32_0 = arith.constant 0 : i32
    %c0_i32_1 = arith.constant 0 : i32
    %c0_i32_2 = arith.constant 0 : i32
    return %c0_i32, %c0_i32_0, %c0_i32_1 : i32, i32, i32
  }
  func.func @transform_3(%arg0: i32) -> (i32, i32, i32) {
    %c0_i32 = arith.constant 0 : i32
    %c0_i32_0 = arith.constant 0 : i32
    %c0_i32_1 = arith.constant 0 : i32
    %c0_i32_2 = arith.constant 0 : i32
    return %c0_i32, %c0_i32_0, %c0_i32_1 : i32, i32, i32
  }
  func.func @transform_4(%arg0: i32) -> (i32, i32) {
    %c0_i32 = arith.constant 0 : i32
    %c0_i32_0 = arith.constant 0 : i32
    %c0_i32_1 = arith.constant 0 : i32
    return %c0_i32, %c0_i32_0 : i32, i32
  }
  func.func @transform_5(%arg0: i32) -> (i32, i32) {
    %c0_i32 = arith.constant 0 : i32
    %c0_i32_0 = arith.constant 0 : i32
    %c0_i32_1 = arith.constant 0 : i32
    return %c0_i32, %c0_i32_0 : i32, i32
  }
  func.func @transform_6(%arg0: i32) -> (i32, i32) {
    %c0_i32 = arith.constant 0 : i32
    %c0_i32_0 = arith.constant 0 : i32
    %c0_i32_1 = arith.constant 0 : i32
    return %c0_i32, %c0_i32_0 : i32, i32
  }
  func.func @transform_7(%arg0: i32) -> (i32, i32) {
    %c0_i32 = arith.constant 0 : i32
    %c0_i32_0 = arith.constant 0 : i32
    %c0_i32_1 = arith.constant 0 : i32
    return %c0_i32, %c0_i32_0 : i32, i32
  }
  func.func @transform_8(%arg0: i32) -> (i32, i32) {
    %c0_i32 = arith.constant 0 : i32
    %c0_i32_0 = arith.constant 0 : i32
    %c0_i32_1 = arith.constant 0 : i32
    return %c0_i32, %c0_i32_0 : i32, i32
  }
  func.func @transform_9(%arg0: i32) -> (i32, i32) {
    %c0_i32 = arith.constant 0 : i32
    %c0_i32_0 = arith.constant 0 : i32
    %c0_i32_1 = arith.constant 0 : i32
    return %c0_i32, %c0_i32_0 : i32, i32
  }
  func.func @transform_10(%arg0: i32) -> (i32, i32) {
    %c0_i32 = arith.constant 0 : i32
    %c0_i32_0 = arith.constant 0 : i32
    %c0_i32_1 = arith.constant 0 : i32
    return %c0_i32, %c0_i32_0 : i32, i32
  }
  func.func @transform_11(%arg0: i32) -> (i32, i32) {
    %c0_i32 = arith.constant 0 : i32
    %c0_i32_0 = arith.constant 0 : i32
    %c0_i32_1 = arith.constant 0 : i32
    return %c0_i32, %c0_i32_0 : i32, i32
  }
  func.func @transform_12(%arg0: i32) -> (i32, i32) {
    %c0_i32 = arith.constant 0 : i32
    %c0_i32_0 = arith.constant 0 : i32
    %c0_i32_1 = arith.constant 0 : i32
    return %c0_i32, %c0_i32_0 : i32, i32
  }
  func.func @transform_13(%arg0: i32) -> (i32, i32) {
    %c0_i32 = arith.constant 0 : i32
    %c0_i32_0 = arith.constant 0 : i32
    %c0_i32_1 = arith.constant 0 : i32
    return %c0_i32, %c0_i32_0 : i32, i32
  }
  func.func @transform_14(%arg0: i32) -> (i32, i32) {
    %c0_i32 = arith.constant 0 : i32
    %c0_i32_0 = arith.constant 0 : i32
    %c0_i32_1 = arith.constant 0 : i32
    return %c0_i32, %c0_i32_0 : i32, i32
  }
}

module attributes {stable_mosaic.version = 11 : i64} {
  func.func @kernel(%arg0: i32, %arg1: memref<16x45xf32, #tpu.memory_space<vmem>>, %arg2: memref<16x1xf32, #tpu.memory_space<vmem>>, %arg3: memref<2x16xf32, #tpu.memory_space<vmem>>, %arg4: memref<4x45x64xf32, #tpu.memory_space<vmem>>, %arg5: memref<4x16x64xf32, #tpu.memory_space<vmem>>, %arg6: memref<4x1x64xf32, #tpu.memory_space<vmem>>, %arg7: memref<4x64x64xf32, #tpu.memory_space<vmem>>, %arg8: memref<64x2xf32, #tpu.memory_space<vmem>>, %arg9: memref<1x2xf32, #tpu.memory_space<vmem>>, %arg10: memref<1x1xf32, #tpu.memory_space<vmem>>, %arg11: memref<16x64xf32, #tpu.memory_space<vmem>>) attributes {dimension_semantics = [#tpu.dimension_semantics<arbitrary>], iteration_bounds = array<i64: 1>, scalar_prefetch = 0 : i64, scratch_operands = 1 : i64, tpu.core_type = #tpu.core_type<tc>, window_params = [{pipeline_mode = #tpu.pipeline_mode<synchronous>, transform_indices = @transform_0, window_bounds = array<i64: 16, 45>}, {pipeline_mode = #tpu.pipeline_mode<synchronous>, transform_indices = @transform_1, window_bounds = array<i64: 16, 1>}, {pipeline_mode = #tpu.pipeline_mode<synchronous>, transform_indices = @transform_2, window_bounds = array<i64: 2, 16>}, {pipeline_mode = #tpu.pipeline_mode<synchronous>, transform_indices = @transform_3, window_bounds = array<i64: 4, 45, 64>}, {pipeline_mode = #tpu.pipeline_mode<synchronous>, transform_indices = @transform_4, window_bounds = array<i64: 4, 16, 64>}, {pipeline_mode = #tpu.pipeline_mode<synchronous>, transform_indices = @transform_5, window_bounds = array<i64: 4, 1, 64>}, {pipeline_mode = #tpu.pipeline_mode<synchronous>, transform_indices = @transform_6, window_bounds = array<i64: 4, 64, 64>}, {pipeline_mode = #tpu.pipeline_mode<synchronous>, transform_indices = @transform_7, window_bounds = array<i64: 64, 2>}, {pipeline_mode = #tpu.pipeline_mode<synchronous>, transform_indices = @transform_8, window_bounds = array<i64: 1, 2>}, {pipeline_mode = #tpu.pipeline_mode<synchronous>, transform_indices = @transform_9, window_bounds = array<i64: 1, 1>}]} {
    %c0 = arith.constant 0 : index
    %c0_0 = arith.constant 0 : index
    %0 = vector.load %arg1[%c0, %c0_0] : memref<16x45xf32, #tpu.memory_space<vmem>>, vector<16x45xf32>
    %c0_1 = arith.constant 0 : index
    %c0_2 = arith.constant 0 : index
    %1 = vector.load %arg3[%c0_1, %c0_2] : memref<2x16xf32, #tpu.memory_space<vmem>>, vector<2x16xf32>
    %c0_3 = arith.constant 0 : index
    %c0_4 = arith.constant 0 : index
    %c0_5 = arith.constant 0 : index
    %2 = vector.load %arg4[%c0_3, %c0_4, %c0_5] : memref<4x45x64xf32, #tpu.memory_space<vmem>>, vector<1x45x64xf32>
    %3 = vector.shape_cast %2 : vector<1x45x64xf32> to vector<45x64xf32>
    %cst = arith.constant dense<0.000000e+00> : vector<16x64xf32>
    %4 = tpu.matmul %0, %3, %cst {dimension_numbers = #tpu.dot_dimension_numbers<[1], [0], [0], [1], [0, 0, 1, 1], [], []>} : vector<16x45xf32>, vector<45x64xf32>, vector<16x64xf32> -> vector<16x64xf32>
    %c1 = arith.constant 1 : index
    %c0_6 = arith.constant 0 : index
    %c0_7 = arith.constant 0 : index
    %5 = vector.load %arg4[%c1, %c0_6, %c0_7] : memref<4x45x64xf32, #tpu.memory_space<vmem>>, vector<1x45x64xf32>
    %6 = vector.shape_cast %5 : vector<1x45x64xf32> to vector<45x64xf32>
    %cst_8 = arith.constant dense<0.000000e+00> : vector<16x64xf32>
    %7 = tpu.matmul %0, %6, %cst_8 {dimension_numbers = #tpu.dot_dimension_numbers<[1], [0], [0], [1], [0, 0, 1, 1], [], []>} : vector<16x45xf32>, vector<45x64xf32>, vector<16x64xf32> -> vector<16x64xf32>
    %c2 = arith.constant 2 : index
    %c0_9 = arith.constant 0 : index
    %c0_10 = arith.constant 0 : index
    %8 = vector.load %arg4[%c2, %c0_9, %c0_10] : memref<4x45x64xf32, #tpu.memory_space<vmem>>, vector<1x45x64xf32>
    %9 = vector.shape_cast %8 : vector<1x45x64xf32> to vector<45x64xf32>
    %cst_11 = arith.constant dense<0.000000e+00> : vector<16x64xf32>
    %10 = tpu.matmul %0, %9, %cst_11 {dimension_numbers = #tpu.dot_dimension_numbers<[1], [0], [0], [1], [0, 0, 1, 1], [], []>} : vector<16x45xf32>, vector<45x64xf32>, vector<16x64xf32> -> vector<16x64xf32>
    %c3 = arith.constant 3 : index
    %c0_12 = arith.constant 0 : index
    %c0_13 = arith.constant 0 : index
    %11 = vector.load %arg4[%c3, %c0_12, %c0_13] : memref<4x45x64xf32, #tpu.memory_space<vmem>>, vector<1x45x64xf32>
    %12 = vector.shape_cast %11 : vector<1x45x64xf32> to vector<45x64xf32>
    %cst_14 = arith.constant dense<0.000000e+00> : vector<16x64xf32>
    %13 = tpu.matmul %0, %12, %cst_14 {dimension_numbers = #tpu.dot_dimension_numbers<[1], [0], [0], [1], [0, 0, 1, 1], [], []>} : vector<16x45xf32>, vector<45x64xf32>, vector<16x64xf32> -> vector<16x64xf32>
    %c0_15 = arith.constant 0 : index
    %c0_16 = arith.constant 0 : index
    %c0_17 = arith.constant 0 : index
    %14 = vector.load %arg5[%c0_15, %c0_16, %c0_17] : memref<4x16x64xf32, #tpu.memory_space<vmem>>, vector<1x16x64xf32>
    %15 = vector.shape_cast %14 : vector<1x16x64xf32> to vector<16x64xf32>
    %cst_18 = arith.constant dense<0.000000e+00> : vector<2x64xf32>
    %16 = tpu.matmul %1, %15, %cst_18 {dimension_numbers = #tpu.dot_dimension_numbers<[1], [0], [0], [1], [0, 0, 1, 1], [], []>} : vector<2x16xf32>, vector<16x64xf32>, vector<2x64xf32> -> vector<2x64xf32>
    %c0_19 = arith.constant 0 : index
    %c0_20 = arith.constant 0 : index
    %c0_21 = arith.constant 0 : index
    %17 = vector.load %arg6[%c0_19, %c0_20, %c0_21] : memref<4x1x64xf32, #tpu.memory_space<vmem>>, vector<1x1x64xf32>
    %18 = vector.shape_cast %17 : vector<1x1x64xf32> to vector<1x64xf32>
    %19 = vector.broadcast %18 : vector<1x64xf32> to vector<2x64xf32>
    %20 = arith.addf %16, %19 : vector<2x64xf32>
    %c1_22 = arith.constant 1 : index
    %c0_23 = arith.constant 0 : index
    %c0_24 = arith.constant 0 : index
    %21 = vector.load %arg5[%c1_22, %c0_23, %c0_24] : memref<4x16x64xf32, #tpu.memory_space<vmem>>, vector<1x16x64xf32>
    %22 = vector.shape_cast %21 : vector<1x16x64xf32> to vector<16x64xf32>
    %cst_25 = arith.constant dense<0.000000e+00> : vector<2x64xf32>
    %23 = tpu.matmul %1, %22, %cst_25 {dimension_numbers = #tpu.dot_dimension_numbers<[1], [0], [0], [1], [0, 0, 1, 1], [], []>} : vector<2x16xf32>, vector<16x64xf32>, vector<2x64xf32> -> vector<2x64xf32>
    %c1_26 = arith.constant 1 : index
    %c0_27 = arith.constant 0 : index
    %c0_28 = arith.constant 0 : index
    %24 = vector.load %arg6[%c1_26, %c0_27, %c0_28] : memref<4x1x64xf32, #tpu.memory_space<vmem>>, vector<1x1x64xf32>
    %25 = vector.shape_cast %24 : vector<1x1x64xf32> to vector<1x64xf32>
    %26 = vector.broadcast %25 : vector<1x64xf32> to vector<2x64xf32>
    %27 = arith.addf %23, %26 : vector<2x64xf32>
    %c2_29 = arith.constant 2 : index
    %c0_30 = arith.constant 0 : index
    %c0_31 = arith.constant 0 : index
    %28 = vector.load %arg5[%c2_29, %c0_30, %c0_31] : memref<4x16x64xf32, #tpu.memory_space<vmem>>, vector<1x16x64xf32>
    %29 = vector.shape_cast %28 : vector<1x16x64xf32> to vector<16x64xf32>
    %cst_32 = arith.constant dense<0.000000e+00> : vector<2x64xf32>
    %30 = tpu.matmul %1, %29, %cst_32 {dimension_numbers = #tpu.dot_dimension_numbers<[1], [0], [0], [1], [0, 0, 1, 1], [], []>} : vector<2x16xf32>, vector<16x64xf32>, vector<2x64xf32> -> vector<2x64xf32>
    %c2_33 = arith.constant 2 : index
    %c0_34 = arith.constant 0 : index
    %c0_35 = arith.constant 0 : index
    %31 = vector.load %arg6[%c2_33, %c0_34, %c0_35] : memref<4x1x64xf32, #tpu.memory_space<vmem>>, vector<1x1x64xf32>
    %32 = vector.shape_cast %31 : vector<1x1x64xf32> to vector<1x64xf32>
    %33 = vector.broadcast %32 : vector<1x64xf32> to vector<2x64xf32>
    %34 = arith.addf %30, %33 : vector<2x64xf32>
    %c3_36 = arith.constant 3 : index
    %c0_37 = arith.constant 0 : index
    %c0_38 = arith.constant 0 : index
    %35 = vector.load %arg5[%c3_36, %c0_37, %c0_38] : memref<4x16x64xf32, #tpu.memory_space<vmem>>, vector<1x16x64xf32>
    %36 = vector.shape_cast %35 : vector<1x16x64xf32> to vector<16x64xf32>
    %cst_39 = arith.constant dense<0.000000e+00> : vector<2x64xf32>
    %37 = tpu.matmul %1, %36, %cst_39 {dimension_numbers = #tpu.dot_dimension_numbers<[1], [0], [0], [1], [0, 0, 1, 1], [], []>} : vector<2x16xf32>, vector<16x64xf32>, vector<2x64xf32> -> vector<2x64xf32>
    %c3_40 = arith.constant 3 : index
    %c0_41 = arith.constant 0 : index
    %c0_42 = arith.constant 0 : index
    %38 = vector.load %arg6[%c3_40, %c0_41, %c0_42] : memref<4x1x64xf32, #tpu.memory_space<vmem>>, vector<1x1x64xf32>
    %39 = vector.shape_cast %38 : vector<1x1x64xf32> to vector<1x64xf32>
    %40 = vector.broadcast %39 : vector<1x64xf32> to vector<2x64xf32>
    %41 = arith.addf %37, %40 : vector<2x64xf32>
    %c0_43 = arith.constant 0 : index
    %c0_44 = arith.constant 0 : index
    %c0_45 = arith.constant 0 : index
    %42 = vector.load %arg7[%c0_43, %c0_44, %c0_45] : memref<4x64x64xf32, #tpu.memory_space<vmem>>, vector<1x64x64xf32>
    %43 = vector.shape_cast %42 : vector<1x64x64xf32> to vector<64x64xf32>
    %c1_46 = arith.constant 1 : index
    %c0_47 = arith.constant 0 : index
    %c0_48 = arith.constant 0 : index
    %44 = vector.load %arg7[%c1_46, %c0_47, %c0_48] : memref<4x64x64xf32, #tpu.memory_space<vmem>>, vector<1x64x64xf32>
    %45 = vector.shape_cast %44 : vector<1x64x64xf32> to vector<64x64xf32>
    %c2_49 = arith.constant 2 : index
    %c0_50 = arith.constant 0 : index
    %c0_51 = arith.constant 0 : index
    %46 = vector.load %arg7[%c2_49, %c0_50, %c0_51] : memref<4x64x64xf32, #tpu.memory_space<vmem>>, vector<1x64x64xf32>
    %47 = vector.shape_cast %46 : vector<1x64x64xf32> to vector<64x64xf32>
    %c3_52 = arith.constant 3 : index
    %c0_53 = arith.constant 0 : index
    %c0_54 = arith.constant 0 : index
    %48 = vector.load %arg7[%c3_52, %c0_53, %c0_54] : memref<4x64x64xf32, #tpu.memory_space<vmem>>, vector<1x64x64xf32>
    %49 = vector.shape_cast %48 : vector<1x64x64xf32> to vector<64x64xf32>
    %cst_55 = arith.constant 0.000000e+00 : f32
    %50 = vector.broadcast %cst_55 : f32 to vector<2x64xf32>
    %cst_56 = arith.constant 0.000000e+00 : f32
    %51 = vector.broadcast %cst_56 : f32 to vector<2x64xf32>
    %52 = vector.extract_strided_slice %4 {offsets = [0, 0], sizes = [2, 64], strides = [1, 1]} : vector<16x64xf32> to vector<2x64xf32>
    %53 = arith.addf %52, %20 : vector<2x64xf32>
    %cst_57 = arith.constant dense<0.000000e+00> : vector<2x64xf32>
    %54 = tpu.matmul %50, %43, %cst_57 {dimension_numbers = #tpu.dot_dimension_numbers<[1], [0], [0], [1], [0, 0, 1, 1], [], []>} : vector<2x64xf32>, vector<64x64xf32>, vector<2x64xf32> -> vector<2x64xf32>
    %55 = arith.addf %53, %54 : vector<2x64xf32>
    %56 = vector.extract_strided_slice %7 {offsets = [0, 0], sizes = [2, 64], strides = [1, 1]} : vector<16x64xf32> to vector<2x64xf32>
    %57 = arith.addf %56, %27 : vector<2x64xf32>
    %cst_58 = arith.constant dense<0.000000e+00> : vector<2x64xf32>
    %58 = tpu.matmul %50, %45, %cst_58 {dimension_numbers = #tpu.dot_dimension_numbers<[1], [0], [0], [1], [0, 0, 1, 1], [], []>} : vector<2x64xf32>, vector<64x64xf32>, vector<2x64xf32> -> vector<2x64xf32>
    %59 = arith.addf %57, %58 : vector<2x64xf32>
    %60 = vector.extract_strided_slice %10 {offsets = [0, 0], sizes = [2, 64], strides = [1, 1]} : vector<16x64xf32> to vector<2x64xf32>
    %61 = arith.addf %60, %34 : vector<2x64xf32>
    %cst_59 = arith.constant dense<0.000000e+00> : vector<2x64xf32>
    %62 = tpu.matmul %50, %47, %cst_59 {dimension_numbers = #tpu.dot_dimension_numbers<[1], [0], [0], [1], [0, 0, 1, 1], [], []>} : vector<2x64xf32>, vector<64x64xf32>, vector<2x64xf32> -> vector<2x64xf32>
    %63 = arith.addf %61, %62 : vector<2x64xf32>
    %64 = vector.extract_strided_slice %13 {offsets = [0, 0], sizes = [2, 64], strides = [1, 1]} : vector<16x64xf32> to vector<2x64xf32>
    %65 = arith.addf %64, %41 : vector<2x64xf32>
    %cst_60 = arith.constant dense<0.000000e+00> : vector<2x64xf32>
    %66 = tpu.matmul %50, %49, %cst_60 {dimension_numbers = #tpu.dot_dimension_numbers<[1], [0], [0], [1], [0, 0, 1, 1], [], []>} : vector<2x64xf32>, vector<64x64xf32>, vector<2x64xf32> -> vector<2x64xf32>
    %67 = arith.addf %65, %66 : vector<2x64xf32>
    %68 = arith.negf %55 : vector<2x64xf32>
    %69 = math.exp %68 : vector<2x64xf32>
    %cst_61 = arith.constant 1.000000e+00 : f32
    %70 = vector.broadcast %cst_61 : f32 to vector<2x64xf32>
    %71 = arith.addf %70, %69 : vector<2x64xf32>
    %72 = arith.divf %70, %71 : vector<2x64xf32>
    %73 = arith.negf %59 : vector<2x64xf32>
    %74 = math.exp %73 : vector<2x64xf32>
    %cst_62 = arith.constant 1.000000e+00 : f32
    %75 = vector.broadcast %cst_62 : f32 to vector<2x64xf32>
    %76 = arith.addf %75, %74 : vector<2x64xf32>
    %77 = arith.divf %75, %76 : vector<2x64xf32>
    %78 = math.tanh %63 : vector<2x64xf32>
    %79 = arith.negf %67 : vector<2x64xf32>
    %80 = math.exp %79 : vector<2x64xf32>
    %cst_63 = arith.constant 1.000000e+00 : f32
    %81 = vector.broadcast %cst_63 : f32 to vector<2x64xf32>
    %82 = arith.addf %81, %80 : vector<2x64xf32>
    %83 = arith.divf %81, %82 : vector<2x64xf32>
    %84 = arith.mulf %77, %51 : vector<2x64xf32>
    %85 = arith.mulf %72, %78 : vector<2x64xf32>
    %86 = arith.addf %84, %85 : vector<2x64xf32>
    %87 = math.tanh %86 : vector<2x64xf32>
    %88 = arith.mulf %83, %87 : vector<2x64xf32>
    %c0_64 = arith.constant 0 : index
    %c0_65 = arith.constant 0 : index
    %89 = vector.load %arg11[%c0_64, %c0_65] : memref<16x64xf32, #tpu.memory_space<vmem>>, vector<2x64xf32>
    tpu.vector_store %arg11[%c0_64, %c0_65], %88 {strides = array<i32>} : memref<16x64xf32, #tpu.memory_space<vmem>>, vector<2x64xf32>,
    %90 = vector.extract_strided_slice %4 {offsets = [2, 0], sizes = [2, 64], strides = [1, 1]} : vector<16x64xf32> to vector<2x64xf32>
    %91 = arith.addf %90, %20 : vector<2x64xf32>
    %cst_66 = arith.constant dense<0.000000e+00> : vector<2x64xf32>
    %92 = tpu.matmul %88, %43, %cst_66 {dimension_numbers = #tpu.dot_dimension_numbers<[1], [0], [0], [1], [0, 0, 1, 1], [], []>} : vector<2x64xf32>, vector<64x64xf32>, vector<2x64xf32> -> vector<2x64xf32>
    %93 = arith.addf %91, %92 : vector<2x64xf32>
    %94 = vector.extract_strided_slice %7 {offsets = [2, 0], sizes = [2, 64], strides = [1, 1]} : vector<16x64xf32> to vector<2x64xf32>
    %95 = arith.addf %94, %27 : vector<2x64xf32>
    %cst_67 = arith.constant dense<0.000000e+00> : vector<2x64xf32>
    %96 = tpu.matmul %88, %45, %cst_67 {dimension_numbers = #tpu.dot_dimension_numbers<[1], [0], [0], [1], [0, 0, 1, 1], [], []>} : vector<2x64xf32>, vector<64x64xf32>, vector<2x64xf32> -> vector<2x64xf32>
    %97 = arith.addf %95, %96 : vector<2x64xf32>
    %98 = vector.extract_strided_slice %10 {offsets = [2, 0], sizes = [2, 64], strides = [1, 1]} : vector<16x64xf32> to vector<2x64xf32>
    %99 = arith.addf %98, %34 : vector<2x64xf32>
    %cst_68 = arith.constant dense<0.000000e+00> : vector<2x64xf32>
    %100 = tpu.matmul %88, %47, %cst_68 {dimension_numbers = #tpu.dot_dimension_numbers<[1], [0], [0], [1], [0, 0, 1, 1], [], []>} : vector<2x64xf32>, vector<64x64xf32>, vector<2x64xf32> -> vector<2x64xf32>
    %101 = arith.addf %99, %100 : vector<2x64xf32>
    %102 = vector.extract_strided_slice %13 {offsets = [2, 0], sizes = [2, 64], strides = [1, 1]} : vector<16x64xf32> to vector<2x64xf32>
    %103 = arith.addf %102, %41 : vector<2x64xf32>
    %cst_69 = arith.constant dense<0.000000e+00> : vector<2x64xf32>
    %104 = tpu.matmul %88, %49, %cst_69 {dimension_numbers = #tpu.dot_dimension_numbers<[1], [0], [0], [1], [0, 0, 1, 1], [], []>} : vector<2x64xf32>, vector<64x64xf32>, vector<2x64xf32> -> vector<2x64xf32>
    %105 = arith.addf %103, %104 : vector<2x64xf32>
    %106 = arith.negf %93 : vector<2x64xf32>
    %107 = math.exp %106 : vector<2x64xf32>
    %cst_70 = arith.constant 1.000000e+00 : f32
    %108 = vector.broadcast %cst_70 : f32 to vector<2x64xf32>
    %109 = arith.addf %108, %107 : vector<2x64xf32>
    %110 = arith.divf %108, %109 : vector<2x64xf32>
    %111 = arith.negf %97 : vector<2x64xf32>
    %112 = math.exp %111 : vector<2x64xf32>
    %cst_71 = arith.constant 1.000000e+00 : f32
    %113 = vector.broadcast %cst_71 : f32 to vector<2x64xf32>
    %114 = arith.addf %113, %112 : vector<2x64xf32>
    %115 = arith.divf %113, %114 : vector<2x64xf32>
    %116 = math.tanh %101 : vector<2x64xf32>
    %117 = arith.negf %105 : vector<2x64xf32>
    %118 = math.exp %117 : vector<2x64xf32>
    %cst_72 = arith.constant 1.000000e+00 : f32
    %119 = vector.broadcast %cst_72 : f32 to vector<2x64xf32>
    %120 = arith.addf %119, %118 : vector<2x64xf32>
    %121 = arith.divf %119, %120 : vector<2x64xf32>
    %122 = arith.mulf %115, %86 : vector<2x64xf32>
    %123 = arith.mulf %110, %116 : vector<2x64xf32>
    %124 = arith.addf %122, %123 : vector<2x64xf32>
    %125 = math.tanh %124 : vector<2x64xf32>
    %126 = arith.mulf %121, %125 : vector<2x64xf32>
    %c2_73 = arith.constant 2 : index
    %c0_74 = arith.constant 0 : index
    %127 = vector.load %arg11[%c2_73, %c0_74] : memref<16x64xf32, #tpu.memory_space<vmem>>, vector<2x64xf32>
    tpu.vector_store %arg11[%c2_73, %c0_74], %126 {strides = array<i32>} : memref<16x64xf32, #tpu.memory_space<vmem>>, vector<2x64xf32>,
    %128 = vector.extract_strided_slice %4 {offsets = [4, 0], sizes = [2, 64], strides = [1, 1]} : vector<16x64xf32> to vector<2x64xf32>
    %129 = arith.addf %128, %20 : vector<2x64xf32>
    %cst_75 = arith.constant dense<0.000000e+00> : vector<2x64xf32>
    %130 = tpu.matmul %126, %43, %cst_75 {dimension_numbers = #tpu.dot_dimension_numbers<[1], [0], [0], [1], [0, 0, 1, 1], [], []>} : vector<2x64xf32>, vector<64x64xf32>, vector<2x64xf32> -> vector<2x64xf32>
    %131 = arith.addf %129, %130 : vector<2x64xf32>
    %132 = vector.extract_strided_slice %7 {offsets = [4, 0], sizes = [2, 64], strides = [1, 1]} : vector<16x64xf32> to vector<2x64xf32>
    %133 = arith.addf %132, %27 : vector<2x64xf32>
    %cst_76 = arith.constant dense<0.000000e+00> : vector<2x64xf32>
    %134 = tpu.matmul %126, %45, %cst_76 {dimension_numbers = #tpu.dot_dimension_numbers<[1], [0], [0], [1], [0, 0, 1, 1], [], []>} : vector<2x64xf32>, vector<64x64xf32>, vector<2x64xf32> -> vector<2x64xf32>
    %135 = arith.addf %133, %134 : vector<2x64xf32>
    %136 = vector.extract_strided_slice %10 {offsets = [4, 0], sizes = [2, 64], strides = [1, 1]} : vector<16x64xf32> to vector<2x64xf32>
    %137 = arith.addf %136, %34 : vector<2x64xf32>
    %cst_77 = arith.constant dense<0.000000e+00> : vector<2x64xf32>
    %138 = tpu.matmul %126, %47, %cst_77 {dimension_numbers = #tpu.dot_dimension_numbers<[1], [0], [0], [1], [0, 0, 1, 1], [], []>} : vector<2x64xf32>, vector<64x64xf32>, vector<2x64xf32> -> vector<2x64xf32>
    %139 = arith.addf %137, %138 : vector<2x64xf32>
    %140 = vector.extract_strided_slice %13 {offsets = [4, 0], sizes = [2, 64], strides = [1, 1]} : vector<16x64xf32> to vector<2x64xf32>
    %141 = arith.addf %140, %41 : vector<2x64xf32>
    %cst_78 = arith.constant dense<0.000000e+00> : vector<2x64xf32>
    %142 = tpu.matmul %126, %49, %cst_78 {dimension_numbers = #tpu.dot_dimension_numbers<[1], [0], [0], [1], [0, 0, 1, 1], [], []>} : vector<2x64xf32>, vector<64x64xf32>, vector<2x64xf32> -> vector<2x64xf32>
    %143 = arith.addf %141, %142 : vector<2x64xf32>
    %144 = arith.negf %131 : vector<2x64xf32>
    %145 = math.exp %144 : vector<2x64xf32>
    %cst_79 = arith.constant 1.000000e+00 : f32
    %146 = vector.broadcast %cst_79 : f32 to vector<2x64xf32>
    %147 = arith.addf %146, %145 : vector<2x64xf32>
    %148 = arith.divf %146, %147 : vector<2x64xf32>
    %149 = arith.negf %135 : vector<2x64xf32>
    %150 = math.exp %149 : vector<2x64xf32>
    %cst_80 = arith.constant 1.000000e+00 : f32
    %151 = vector.broadcast %cst_80 : f32 to vector<2x64xf32>
    %152 = arith.addf %151, %150 : vector<2x64xf32>
    %153 = arith.divf %151, %152 : vector<2x64xf32>
    %154 = math.tanh %139 : vector<2x64xf32>
    %155 = arith.negf %143 : vector<2x64xf32>
    %156 = math.exp %155 : vector<2x64xf32>
    %cst_81 = arith.constant 1.000000e+00 : f32
    %157 = vector.broadcast %cst_81 : f32 to vector<2x64xf32>
    %158 = arith.addf %157, %156 : vector<2x64xf32>
    %159 = arith.divf %157, %158 : vector<2x64xf32>
    %160 = arith.mulf %153, %124 : vector<2x64xf32>
    %161 = arith.mulf %148, %154 : vector<2x64xf32>
    %162 = arith.addf %160, %161 : vector<2x64xf32>
    %163 = math.tanh %162 : vector<2x64xf32>
    %164 = arith.mulf %159, %163 : vector<2x64xf32>
    %c4 = arith.constant 4 : index
    %c0_82 = arith.constant 0 : index
    %165 = vector.load %arg11[%c4, %c0_82] : memref<16x64xf32, #tpu.memory_space<vmem>>, vector<2x64xf32>
    tpu.vector_store %arg11[%c4, %c0_82], %164 {strides = array<i32>} : memref<16x64xf32, #tpu.memory_space<vmem>>, vector<2x64xf32>,
    %166 = vector.extract_strided_slice %4 {offsets = [6, 0], sizes = [2, 64], strides = [1, 1]} : vector<16x64xf32> to vector<2x64xf32>
    %167 = arith.addf %166, %20 : vector<2x64xf32>
    %cst_83 = arith.constant dense<0.000000e+00> : vector<2x64xf32>
    %168 = tpu.matmul %164, %43, %cst_83 {dimension_numbers = #tpu.dot_dimension_numbers<[1], [0], [0], [1], [0, 0, 1, 1], [], []>} : vector<2x64xf32>, vector<64x64xf32>, vector<2x64xf32> -> vector<2x64xf32>
    %169 = arith.addf %167, %168 : vector<2x64xf32>
    %170 = vector.extract_strided_slice %7 {offsets = [6, 0], sizes = [2, 64], strides = [1, 1]} : vector<16x64xf32> to vector<2x64xf32>
    %171 = arith.addf %170, %27 : vector<2x64xf32>
    %cst_84 = arith.constant dense<0.000000e+00> : vector<2x64xf32>
    %172 = tpu.matmul %164, %45, %cst_84 {dimension_numbers = #tpu.dot_dimension_numbers<[1], [0], [0], [1], [0, 0, 1, 1], [], []>} : vector<2x64xf32>, vector<64x64xf32>, vector<2x64xf32> -> vector<2x64xf32>
    %173 = arith.addf %171, %172 : vector<2x64xf32>
    %174 = vector.extract_strided_slice %10 {offsets = [6, 0], sizes = [2, 64], strides = [1, 1]} : vector<16x64xf32> to vector<2x64xf32>
    %175 = arith.addf %174, %34 : vector<2x64xf32>
    %cst_85 = arith.constant dense<0.000000e+00> : vector<2x64xf32>
    %176 = tpu.matmul %164, %47, %cst_85 {dimension_numbers = #tpu.dot_dimension_numbers<[1], [0], [0], [1], [0, 0, 1, 1], [], []>} : vector<2x64xf32>, vector<64x64xf32>, vector<2x64xf32> -> vector<2x64xf32>
    %177 = arith.addf %175, %176 : vector<2x64xf32>
    %178 = vector.extract_strided_slice %13 {offsets = [6, 0], sizes = [2, 64], strides = [1, 1]} : vector<16x64xf32> to vector<2x64xf32>
    %179 = arith.addf %178, %41 : vector<2x64xf32>
    %cst_86 = arith.constant dense<0.000000e+00> : vector<2x64xf32>
    %180 = tpu.matmul %164, %49, %cst_86 {dimension_numbers = #tpu.dot_dimension_numbers<[1], [0], [0], [1], [0, 0, 1, 1], [], []>} : vector<2x64xf32>, vector<64x64xf32>, vector<2x64xf32> -> vector<2x64xf32>
    %181 = arith.addf %179, %180 : vector<2x64xf32>
    %182 = arith.negf %169 : vector<2x64xf32>
    %183 = math.exp %182 : vector<2x64xf32>
    %cst_87 = arith.constant 1.000000e+00 : f32
    %184 = vector.broadcast %cst_87 : f32 to vector<2x64xf32>
    %185 = arith.addf %184, %183 : vector<2x64xf32>
    %186 = arith.divf %184, %185 : vector<2x64xf32>
    %187 = arith.negf %173 : vector<2x64xf32>
    %188 = math.exp %187 : vector<2x64xf32>
    %cst_88 = arith.constant 1.000000e+00 : f32
    %189 = vector.broadcast %cst_88 : f32 to vector<2x64xf32>
    %190 = arith.addf %189, %188 : vector<2x64xf32>
    %191 = arith.divf %189, %190 : vector<2x64xf32>
    %192 = math.tanh %177 : vector<2x64xf32>
    %193 = arith.negf %181 : vector<2x64xf32>
    %194 = math.exp %193 : vector<2x64xf32>
    %cst_89 = arith.constant 1.000000e+00 : f32
    %195 = vector.broadcast %cst_89 : f32 to vector<2x64xf32>
    %196 = arith.addf %195, %194 : vector<2x64xf32>
    %197 = arith.divf %195, %196 : vector<2x64xf32>
    %198 = arith.mulf %191, %162 : vector<2x64xf32>
    %199 = arith.mulf %186, %192 : vector<2x64xf32>
    %200 = arith.addf %198, %199 : vector<2x64xf32>
    %201 = math.tanh %200 : vector<2x64xf32>
    %202 = arith.mulf %197, %201 : vector<2x64xf32>
    %c6 = arith.constant 6 : index
    %c0_90 = arith.constant 0 : index
    %203 = vector.load %arg11[%c6, %c0_90] : memref<16x64xf32, #tpu.memory_space<vmem>>, vector<2x64xf32>
    tpu.vector_store %arg11[%c6, %c0_90], %202 {strides = array<i32>} : memref<16x64xf32, #tpu.memory_space<vmem>>, vector<2x64xf32>,
    %204 = vector.extract_strided_slice %4 {offsets = [8, 0], sizes = [2, 64], strides = [1, 1]} : vector<16x64xf32> to vector<2x64xf32>
    %205 = arith.addf %204, %20 : vector<2x64xf32>
    %cst_91 = arith.constant dense<0.000000e+00> : vector<2x64xf32>
    %206 = tpu.matmul %202, %43, %cst_91 {dimension_numbers = #tpu.dot_dimension_numbers<[1], [0], [0], [1], [0, 0, 1, 1], [], []>} : vector<2x64xf32>, vector<64x64xf32>, vector<2x64xf32> -> vector<2x64xf32>
    %207 = arith.addf %205, %206 : vector<2x64xf32>
    %208 = vector.extract_strided_slice %7 {offsets = [8, 0], sizes = [2, 64], strides = [1, 1]} : vector<16x64xf32> to vector<2x64xf32>
    %209 = arith.addf %208, %27 : vector<2x64xf32>
    %cst_92 = arith.constant dense<0.000000e+00> : vector<2x64xf32>
    %210 = tpu.matmul %202, %45, %cst_92 {dimension_numbers = #tpu.dot_dimension_numbers<[1], [0], [0], [1], [0, 0, 1, 1], [], []>} : vector<2x64xf32>, vector<64x64xf32>, vector<2x64xf32> -> vector<2x64xf32>
    %211 = arith.addf %209, %210 : vector<2x64xf32>
    %212 = vector.extract_strided_slice %10 {offsets = [8, 0], sizes = [2, 64], strides = [1, 1]} : vector<16x64xf32> to vector<2x64xf32>
    %213 = arith.addf %212, %34 : vector<2x64xf32>
    %cst_93 = arith.constant dense<0.000000e+00> : vector<2x64xf32>
    %214 = tpu.matmul %202, %47, %cst_93 {dimension_numbers = #tpu.dot_dimension_numbers<[1], [0], [0], [1], [0, 0, 1, 1], [], []>} : vector<2x64xf32>, vector<64x64xf32>, vector<2x64xf32> -> vector<2x64xf32>
    %215 = arith.addf %213, %214 : vector<2x64xf32>
    %216 = vector.extract_strided_slice %13 {offsets = [8, 0], sizes = [2, 64], strides = [1, 1]} : vector<16x64xf32> to vector<2x64xf32>
    %217 = arith.addf %216, %41 : vector<2x64xf32>
    %cst_94 = arith.constant dense<0.000000e+00> : vector<2x64xf32>
    %218 = tpu.matmul %202, %49, %cst_94 {dimension_numbers = #tpu.dot_dimension_numbers<[1], [0], [0], [1], [0, 0, 1, 1], [], []>} : vector<2x64xf32>, vector<64x64xf32>, vector<2x64xf32> -> vector<2x64xf32>
    %219 = arith.addf %217, %218 : vector<2x64xf32>
    %220 = arith.negf %207 : vector<2x64xf32>
    %221 = math.exp %220 : vector<2x64xf32>
    %cst_95 = arith.constant 1.000000e+00 : f32
    %222 = vector.broadcast %cst_95 : f32 to vector<2x64xf32>
    %223 = arith.addf %222, %221 : vector<2x64xf32>
    %224 = arith.divf %222, %223 : vector<2x64xf32>
    %225 = arith.negf %211 : vector<2x64xf32>
    %226 = math.exp %225 : vector<2x64xf32>
    %cst_96 = arith.constant 1.000000e+00 : f32
    %227 = vector.broadcast %cst_96 : f32 to vector<2x64xf32>
    %228 = arith.addf %227, %226 : vector<2x64xf32>
    %229 = arith.divf %227, %228 : vector<2x64xf32>
    %230 = math.tanh %215 : vector<2x64xf32>
    %231 = arith.negf %219 : vector<2x64xf32>
    %232 = math.exp %231 : vector<2x64xf32>
    %cst_97 = arith.constant 1.000000e+00 : f32
    %233 = vector.broadcast %cst_97 : f32 to vector<2x64xf32>
    %234 = arith.addf %233, %232 : vector<2x64xf32>
    %235 = arith.divf %233, %234 : vector<2x64xf32>
    %236 = arith.mulf %229, %200 : vector<2x64xf32>
    %237 = arith.mulf %224, %230 : vector<2x64xf32>
    %238 = arith.addf %236, %237 : vector<2x64xf32>
    %239 = math.tanh %238 : vector<2x64xf32>
    %240 = arith.mulf %235, %239 : vector<2x64xf32>
    %c8 = arith.constant 8 : index
    %c0_98 = arith.constant 0 : index
    %241 = vector.load %arg11[%c8, %c0_98] : memref<16x64xf32, #tpu.memory_space<vmem>>, vector<2x64xf32>
    tpu.vector_store %arg11[%c8, %c0_98], %240 {strides = array<i32>} : memref<16x64xf32, #tpu.memory_space<vmem>>, vector<2x64xf32>,
    %242 = vector.extract_strided_slice %4 {offsets = [10, 0], sizes = [2, 64], strides = [1, 1]} : vector<16x64xf32> to vector<2x64xf32>
    %243 = arith.addf %242, %20 : vector<2x64xf32>
    %cst_99 = arith.constant dense<0.000000e+00> : vector<2x64xf32>
    %244 = tpu.matmul %240, %43, %cst_99 {dimension_numbers = #tpu.dot_dimension_numbers<[1], [0], [0], [1], [0, 0, 1, 1], [], []>} : vector<2x64xf32>, vector<64x64xf32>, vector<2x64xf32> -> vector<2x64xf32>
    %245 = arith.addf %243, %244 : vector<2x64xf32>
    %246 = vector.extract_strided_slice %7 {offsets = [10, 0], sizes = [2, 64], strides = [1, 1]} : vector<16x64xf32> to vector<2x64xf32>
    %247 = arith.addf %246, %27 : vector<2x64xf32>
    %cst_100 = arith.constant dense<0.000000e+00> : vector<2x64xf32>
    %248 = tpu.matmul %240, %45, %cst_100 {dimension_numbers = #tpu.dot_dimension_numbers<[1], [0], [0], [1], [0, 0, 1, 1], [], []>} : vector<2x64xf32>, vector<64x64xf32>, vector<2x64xf32> -> vector<2x64xf32>
    %249 = arith.addf %247, %248 : vector<2x64xf32>
    %250 = vector.extract_strided_slice %10 {offsets = [10, 0], sizes = [2, 64], strides = [1, 1]} : vector<16x64xf32> to vector<2x64xf32>
    %251 = arith.addf %250, %34 : vector<2x64xf32>
    %cst_101 = arith.constant dense<0.000000e+00> : vector<2x64xf32>
    %252 = tpu.matmul %240, %47, %cst_101 {dimension_numbers = #tpu.dot_dimension_numbers<[1], [0], [0], [1], [0, 0, 1, 1], [], []>} : vector<2x64xf32>, vector<64x64xf32>, vector<2x64xf32> -> vector<2x64xf32>
    %253 = arith.addf %251, %252 : vector<2x64xf32>
    %254 = vector.extract_strided_slice %13 {offsets = [10, 0], sizes = [2, 64], strides = [1, 1]} : vector<16x64xf32> to vector<2x64xf32>
    %255 = arith.addf %254, %41 : vector<2x64xf32>
    %cst_102 = arith.constant dense<0.000000e+00> : vector<2x64xf32>
    %256 = tpu.matmul %240, %49, %cst_102 {dimension_numbers = #tpu.dot_dimension_numbers<[1], [0], [0], [1], [0, 0, 1, 1], [], []>} : vector<2x64xf32>, vector<64x64xf32>, vector<2x64xf32> -> vector<2x64xf32>
    %257 = arith.addf %255, %256 : vector<2x64xf32>
    %258 = arith.negf %245 : vector<2x64xf32>
    %259 = math.exp %258 : vector<2x64xf32>
    %cst_103 = arith.constant 1.000000e+00 : f32
    %260 = vector.broadcast %cst_103 : f32 to vector<2x64xf32>
    %261 = arith.addf %260, %259 : vector<2x64xf32>
    %262 = arith.divf %260, %261 : vector<2x64xf32>
    %263 = arith.negf %249 : vector<2x64xf32>
    %264 = math.exp %263 : vector<2x64xf32>
    %cst_104 = arith.constant 1.000000e+00 : f32
    %265 = vector.broadcast %cst_104 : f32 to vector<2x64xf32>
    %266 = arith.addf %265, %264 : vector<2x64xf32>
    %267 = arith.divf %265, %266 : vector<2x64xf32>
    %268 = math.tanh %253 : vector<2x64xf32>
    %269 = arith.negf %257 : vector<2x64xf32>
    %270 = math.exp %269 : vector<2x64xf32>
    %cst_105 = arith.constant 1.000000e+00 : f32
    %271 = vector.broadcast %cst_105 : f32 to vector<2x64xf32>
    %272 = arith.addf %271, %270 : vector<2x64xf32>
    %273 = arith.divf %271, %272 : vector<2x64xf32>
    %274 = arith.mulf %267, %238 : vector<2x64xf32>
    %275 = arith.mulf %262, %268 : vector<2x64xf32>
    %276 = arith.addf %274, %275 : vector<2x64xf32>
    %277 = math.tanh %276 : vector<2x64xf32>
    %278 = arith.mulf %273, %277 : vector<2x64xf32>
    %c10 = arith.constant 10 : index
    %c0_106 = arith.constant 0 : index
    %279 = vector.load %arg11[%c10, %c0_106] : memref<16x64xf32, #tpu.memory_space<vmem>>, vector<2x64xf32>
    tpu.vector_store %arg11[%c10, %c0_106], %278 {strides = array<i32>} : memref<16x64xf32, #tpu.memory_space<vmem>>, vector<2x64xf32>,
    %280 = vector.extract_strided_slice %4 {offsets = [12, 0], sizes = [2, 64], strides = [1, 1]} : vector<16x64xf32> to vector<2x64xf32>
    %281 = arith.addf %280, %20 : vector<2x64xf32>
    %cst_107 = arith.constant dense<0.000000e+00> : vector<2x64xf32>
    %282 = tpu.matmul %278, %43, %cst_107 {dimension_numbers = #tpu.dot_dimension_numbers<[1], [0], [0], [1], [0, 0, 1, 1], [], []>} : vector<2x64xf32>, vector<64x64xf32>, vector<2x64xf32> -> vector<2x64xf32>
    %283 = arith.addf %281, %282 : vector<2x64xf32>
    %284 = vector.extract_strided_slice %7 {offsets = [12, 0], sizes = [2, 64], strides = [1, 1]} : vector<16x64xf32> to vector<2x64xf32>
    %285 = arith.addf %284, %27 : vector<2x64xf32>
    %cst_108 = arith.constant dense<0.000000e+00> : vector<2x64xf32>
    %286 = tpu.matmul %278, %45, %cst_108 {dimension_numbers = #tpu.dot_dimension_numbers<[1], [0], [0], [1], [0, 0, 1, 1], [], []>} : vector<2x64xf32>, vector<64x64xf32>, vector<2x64xf32> -> vector<2x64xf32>
    %287 = arith.addf %285, %286 : vector<2x64xf32>
    %288 = vector.extract_strided_slice %10 {offsets = [12, 0], sizes = [2, 64], strides = [1, 1]} : vector<16x64xf32> to vector<2x64xf32>
    %289 = arith.addf %288, %34 : vector<2x64xf32>
    %cst_109 = arith.constant dense<0.000000e+00> : vector<2x64xf32>
    %290 = tpu.matmul %278, %47, %cst_109 {dimension_numbers = #tpu.dot_dimension_numbers<[1], [0], [0], [1], [0, 0, 1, 1], [], []>} : vector<2x64xf32>, vector<64x64xf32>, vector<2x64xf32> -> vector<2x64xf32>
    %291 = arith.addf %289, %290 : vector<2x64xf32>
    %292 = vector.extract_strided_slice %13 {offsets = [12, 0], sizes = [2, 64], strides = [1, 1]} : vector<16x64xf32> to vector<2x64xf32>
    %293 = arith.addf %292, %41 : vector<2x64xf32>
    %cst_110 = arith.constant dense<0.000000e+00> : vector<2x64xf32>
    %294 = tpu.matmul %278, %49, %cst_110 {dimension_numbers = #tpu.dot_dimension_numbers<[1], [0], [0], [1], [0, 0, 1, 1], [], []>} : vector<2x64xf32>, vector<64x64xf32>, vector<2x64xf32> -> vector<2x64xf32>
    %295 = arith.addf %293, %294 : vector<2x64xf32>
    %296 = arith.negf %283 : vector<2x64xf32>
    %297 = math.exp %296 : vector<2x64xf32>
    %cst_111 = arith.constant 1.000000e+00 : f32
    %298 = vector.broadcast %cst_111 : f32 to vector<2x64xf32>
    %299 = arith.addf %298, %297 : vector<2x64xf32>
    %300 = arith.divf %298, %299 : vector<2x64xf32>
    %301 = arith.negf %287 : vector<2x64xf32>
    %302 = math.exp %301 : vector<2x64xf32>
    %cst_112 = arith.constant 1.000000e+00 : f32
    %303 = vector.broadcast %cst_112 : f32 to vector<2x64xf32>
    %304 = arith.addf %303, %302 : vector<2x64xf32>
    %305 = arith.divf %303, %304 : vector<2x64xf32>
    %306 = math.tanh %291 : vector<2x64xf32>
    %307 = arith.negf %295 : vector<2x64xf32>
    %308 = math.exp %307 : vector<2x64xf32>
    %cst_113 = arith.constant 1.000000e+00 : f32
    %309 = vector.broadcast %cst_113 : f32 to vector<2x64xf32>
    %310 = arith.addf %309, %308 : vector<2x64xf32>
    %311 = arith.divf %309, %310 : vector<2x64xf32>
    %312 = arith.mulf %305, %276 : vector<2x64xf32>
    %313 = arith.mulf %300, %306 : vector<2x64xf32>
    %314 = arith.addf %312, %313 : vector<2x64xf32>
    %315 = math.tanh %314 : vector<2x64xf32>
    %316 = arith.mulf %311, %315 : vector<2x64xf32>
    %c12 = arith.constant 12 : index
    %c0_114 = arith.constant 0 : index
    %317 = vector.load %arg11[%c12, %c0_114] : memref<16x64xf32, #tpu.memory_space<vmem>>, vector<2x64xf32>
    tpu.vector_store %arg11[%c12, %c0_114], %316 {strides = array<i32>} : memref<16x64xf32, #tpu.memory_space<vmem>>, vector<2x64xf32>,
    %318 = vector.extract_strided_slice %4 {offsets = [14, 0], sizes = [2, 64], strides = [1, 1]} : vector<16x64xf32> to vector<2x64xf32>
    %319 = arith.addf %318, %20 : vector<2x64xf32>
    %cst_115 = arith.constant dense<0.000000e+00> : vector<2x64xf32>
    %320 = tpu.matmul %316, %43, %cst_115 {dimension_numbers = #tpu.dot_dimension_numbers<[1], [0], [0], [1], [0, 0, 1, 1], [], []>} : vector<2x64xf32>, vector<64x64xf32>, vector<2x64xf32> -> vector<2x64xf32>
    %321 = arith.addf %319, %320 : vector<2x64xf32>
    %322 = vector.extract_strided_slice %7 {offsets = [14, 0], sizes = [2, 64], strides = [1, 1]} : vector<16x64xf32> to vector<2x64xf32>
    %323 = arith.addf %322, %27 : vector<2x64xf32>
    %cst_116 = arith.constant dense<0.000000e+00> : vector<2x64xf32>
    %324 = tpu.matmul %316, %45, %cst_116 {dimension_numbers = #tpu.dot_dimension_numbers<[1], [0], [0], [1], [0, 0, 1, 1], [], []>} : vector<2x64xf32>, vector<64x64xf32>, vector<2x64xf32> -> vector<2x64xf32>
    %325 = arith.addf %323, %324 : vector<2x64xf32>
    %326 = vector.extract_strided_slice %10 {offsets = [14, 0], sizes = [2, 64], strides = [1, 1]} : vector<16x64xf32> to vector<2x64xf32>
    %327 = arith.addf %326, %34 : vector<2x64xf32>
    %cst_117 = arith.constant dense<0.000000e+00> : vector<2x64xf32>
    %328 = tpu.matmul %316, %47, %cst_117 {dimension_numbers = #tpu.dot_dimension_numbers<[1], [0], [0], [1], [0, 0, 1, 1], [], []>} : vector<2x64xf32>, vector<64x64xf32>, vector<2x64xf32> -> vector<2x64xf32>
    %329 = arith.addf %327, %328 : vector<2x64xf32>
    %330 = vector.extract_strided_slice %13 {offsets = [14, 0], sizes = [2, 64], strides = [1, 1]} : vector<16x64xf32> to vector<2x64xf32>
    %331 = arith.addf %330, %41 : vector<2x64xf32>
    %cst_118 = arith.constant dense<0.000000e+00> : vector<2x64xf32>
    %332 = tpu.matmul %316, %49, %cst_118 {dimension_numbers = #tpu.dot_dimension_numbers<[1], [0], [0], [1], [0, 0, 1, 1], [], []>} : vector<2x64xf32>, vector<64x64xf32>, vector<2x64xf32> -> vector<2x64xf32>
    %333 = arith.addf %331, %332 : vector<2x64xf32>
    %334 = arith.negf %321 : vector<2x64xf32>
    %335 = math.exp %334 : vector<2x64xf32>
    %cst_119 = arith.constant 1.000000e+00 : f32
    %336 = vector.broadcast %cst_119 : f32 to vector<2x64xf32>
    %337 = arith.addf %336, %335 : vector<2x64xf32>
    %338 = arith.divf %336, %337 : vector<2x64xf32>
    %339 = arith.negf %325 : vector<2x64xf32>
    %340 = math.exp %339 : vector<2x64xf32>
    %cst_120 = arith.constant 1.000000e+00 : f32
    %341 = vector.broadcast %cst_120 : f32 to vector<2x64xf32>
    %342 = arith.addf %341, %340 : vector<2x64xf32>
    %343 = arith.divf %341, %342 : vector<2x64xf32>
    %344 = math.tanh %329 : vector<2x64xf32>
    %345 = arith.negf %333 : vector<2x64xf32>
    %346 = math.exp %345 : vector<2x64xf32>
    %cst_121 = arith.constant 1.000000e+00 : f32
    %347 = vector.broadcast %cst_121 : f32 to vector<2x64xf32>
    %348 = arith.addf %347, %346 : vector<2x64xf32>
    %349 = arith.divf %347, %348 : vector<2x64xf32>
    %350 = arith.mulf %343, %314 : vector<2x64xf32>
    %351 = arith.mulf %338, %344 : vector<2x64xf32>
    %352 = arith.addf %350, %351 : vector<2x64xf32>
    %353 = math.tanh %352 : vector<2x64xf32>
    %354 = arith.mulf %349, %353 : vector<2x64xf32>
    %c14 = arith.constant 14 : index
    %c0_122 = arith.constant 0 : index
    %355 = vector.load %arg11[%c14, %c0_122] : memref<16x64xf32, #tpu.memory_space<vmem>>, vector<2x64xf32>
    tpu.vector_store %arg11[%c14, %c0_122], %354 {strides = array<i32>} : memref<16x64xf32, #tpu.memory_space<vmem>>, vector<2x64xf32>,
    %c0_123 = arith.constant 0 : index
    %c0_124 = arith.constant 0 : index
    %356 = vector.load %arg11[%c0_123, %c0_124] : memref<16x64xf32, #tpu.memory_space<vmem>>, vector<16x64xf32>
    %c0_125 = arith.constant 0 : index
    %c0_126 = arith.constant 0 : index
    %357 = vector.load %arg8[%c0_125, %c0_126] : memref<64x2xf32, #tpu.memory_space<vmem>>, vector<64x2xf32>
    %cst_127 = arith.constant dense<0.000000e+00> : vector<16x2xf32>
    %358 = tpu.matmul %356, %357, %cst_127 {dimension_numbers = #tpu.dot_dimension_numbers<[1], [0], [0], [1], [0, 0, 1, 1], [], []>} : vector<16x64xf32>, vector<64x2xf32>, vector<16x2xf32> -> vector<16x2xf32>
    %c0_128 = arith.constant 0 : index
    %c0_129 = arith.constant 0 : index
    %359 = vector.load %arg9[%c0_128, %c0_129] : memref<1x2xf32, #tpu.memory_space<vmem>>, vector<1x2xf32>
    %360 = vector.broadcast %359 : vector<1x2xf32> to vector<16x2xf32>
    %361 = arith.addf %358, %360 : vector<16x2xf32>
    %362 = vector.extract_strided_slice %361 {offsets = [0, 0], sizes = [16, 1], strides = [1, 1]} : vector<16x2xf32> to vector<16x1xf32>
    %363 = vector.extract_strided_slice %361 {offsets = [0, 1], sizes = [16, 1], strides = [1, 1]} : vector<16x2xf32> to vector<16x1xf32>
    %cst_130 = arith.constant 5.000000e-01 : f32
    %364 = vector.broadcast %cst_130 : f32 to vector<16x1xf32>
    %365 = arith.mulf %364, %363 : vector<16x1xf32>
    %366 = math.exp %365 : vector<16x1xf32>
    %c0_131 = arith.constant 0 : index
    %c0_132 = arith.constant 0 : index
    %367 = vector.load %arg2[%c0_131, %c0_132] : memref<16x1xf32, #tpu.memory_space<vmem>>, vector<16x1xf32>
    %368 = arith.subf %367, %362 : vector<16x1xf32>
    %369 = arith.divf %368, %366 : vector<16x1xf32>
    %cst_133 = arith.constant -5.000000e-01 : f32
    %370 = vector.broadcast %cst_133 : f32 to vector<16x1xf32>
    %371 = arith.mulf %370, %369 : vector<16x1xf32>
    %372 = arith.mulf %371, %369 : vector<16x1xf32>
    %373 = math.log %366 : vector<16x1xf32>
    %374 = arith.subf %372, %373 : vector<16x1xf32>
    %cst_134 = arith.constant -0.918938517 : f32
    %375 = vector.broadcast %cst_134 : f32 to vector<16x1xf32>
    %376 = arith.addf %374, %375 : vector<16x1xf32>
    %cst_135 = arith.constant dense<0.000000e+00> : vector<16xf32>
    %377 = vector.multi_reduction <add>, %376, %cst_135 [1] : vector<16x1xf32> to vector<16xf32>
    %378 = vector.shape_cast %377 : vector<16xf32> to vector<16x1xf32>
    %cst_136 = arith.constant dense<0.000000e+00> : vector<1xf32>
    %379 = vector.multi_reduction <add>, %378, %cst_136 [0] : vector<16x1xf32> to vector<1xf32>
    %380 = vector.shape_cast %379 : vector<1xf32> to vector<1x1xf32>
    %cst_137 = arith.constant 0.000000e+00 : f32
    %381 = vector.broadcast %cst_137 : f32 to vector<1x1xf32>
    %382 = arith.subf %381, %380 : vector<1x1xf32>
    %cst_138 = arith.constant 6.250000e-02 : f32
    %383 = vector.broadcast %cst_138 : f32 to vector<1x1xf32>
    %384 = arith.mulf %382, %383 : vector<1x1xf32>
    %c0_139 = arith.constant 0 : index
    %c0_140 = arith.constant 0 : index
    %385 = vector.load %arg10[%c0_139, %c0_140] : memref<1x1xf32, #tpu.memory_space<vmem>>, vector<1x1xf32>
    tpu.vector_store %arg10[%c0_139, %c0_140], %384 {strides = array<i32>} : memref<1x1xf32, #tpu.memory_space<vmem>>, vector<1x1xf32>,
    return
  }
  func.func @transform_0(%arg0: i32) -> (i32, i32) {
    %c0_i32 = arith.constant 0 : i32
    %c0_i32_0 = arith.constant 0 : i32
    %c0_i32_1 = arith.constant 0 : i32
    return %c0_i32, %c0_i32_0 : i32, i32
  }
  func.func @transform_1(%arg0: i32) -> (i32, i32) {
    %c0_i32 = arith.constant 0 : i32
    %c0_i32_0 = arith.constant 0 : i32
    %c0_i32_1 = arith.constant 0 : i32
    return %c0_i32, %c0_i32_0 : i32, i32
  }
  func.func @transform_2(%arg0: i32) -> (i32, i32) {
    %c0_i32 = arith.constant 0 : i32
    %c0_i32_0 = arith.constant 0 : i32
    %c0_i32_1 = arith.constant 0 : i32
    return %c0_i32, %c0_i32_0 : i32, i32
  }
  func.func @transform_3(%arg0: i32) -> (i32, i32, i32) {
    %c0_i32 = arith.constant 0 : i32
    %c0_i32_0 = arith.constant 0 : i32
    %c0_i32_1 = arith.constant 0 : i32
    %c0_i32_2 = arith.constant 0 : i32
    return %c0_i32, %c0_i32_0, %c0_i32_1 : i32, i32, i32
  }
  func.func @transform_4(%arg0: i32) -> (i32, i32, i32) {
    %c0_i32 = arith.constant 0 : i32
    %c0_i32_0 = arith.constant 0 : i32
    %c0_i32_1 = arith.constant 0 : i32
    %c0_i32_2 = arith.constant 0 : i32
    return %c0_i32, %c0_i32_0, %c0_i32_1 : i32, i32, i32
  }
  func.func @transform_5(%arg0: i32) -> (i32, i32, i32) {
    %c0_i32 = arith.constant 0 : i32
    %c0_i32_0 = arith.constant 0 : i32
    %c0_i32_1 = arith.constant 0 : i32
    %c0_i32_2 = arith.constant 0 : i32
    return %c0_i32, %c0_i32_0, %c0_i32_1 : i32, i32, i32
  }
  func.func @transform_6(%arg0: i32) -> (i32, i32, i32) {
    %c0_i32 = arith.constant 0 : i32
    %c0_i32_0 = arith.constant 0 : i32
    %c0_i32_1 = arith.constant 0 : i32
    %c0_i32_2 = arith.constant 0 : i32
    return %c0_i32, %c0_i32_0, %c0_i32_1 : i32, i32, i32
  }
  func.func @transform_7(%arg0: i32) -> (i32, i32) {
    %c0_i32 = arith.constant 0 : i32
    %c0_i32_0 = arith.constant 0 : i32
    %c0_i32_1 = arith.constant 0 : i32
    return %c0_i32, %c0_i32_0 : i32, i32
  }
  func.func @transform_8(%arg0: i32) -> (i32, i32) {
    %c0_i32 = arith.constant 0 : i32
    %c0_i32_0 = arith.constant 0 : i32
    %c0_i32_1 = arith.constant 0 : i32
    return %c0_i32, %c0_i32_0 : i32, i32
  }
  func.func @transform_9(%arg0: i32) -> (i32, i32) {
    %c0_i32 = arith.constant 0 : i32
    %c0_i32_0 = arith.constant 0 : i32
    %c0_i32_1 = arith.constant 0 : i32
    return %c0_i32, %c0_i32_0 : i32, i32
  }
}

</mosaic_0001>

<bundles_post_ra>
// kernel: neural_process_forward_train.3
= control target key start
LH: loop header
LB: loop body
LE: loop exit
PB: predicated region body
PF: predicated region fallthrough
CT: control target
= control target key end

     0   :  { %vm49_vm0 = vcmask 1044480   ;;  %vm42_vm1 = vcmask 367616   ;;  %s3155_s0 = inlined_call_operand.vmem [shape: f32[16,45], index: 0, kind: input, shape index: {}]   ;;  %s3156_s1 = inlined_call_operand.vmem [shape: f32[16,1], index: 1, kind: input, shape index: {}]   ;;  %s3157_s2 = inlined_call_operand.vmem [shape: f32[2,16], index: 2, kind: input, shape index: {}]   ;;  %s3158_s3 = inlined_call_operand.vmem [shape: f32[4,45,64], index: 3, kind: input, shape index: {}]   ;;  %s3159_s4 = inlined_call_operand.vmem [shape: f32[4,16,64], index: 4, kind: input, shape index: {}]   ;;  %s3160_s5 = inlined_call_operand.vmem [shape: f32[4,1,64], index: 5, kind: input, shape index: {}]   ;;  %s3161_s6 = inlined_call_operand.vmem [shape: f32[4,64,64], index: 6, kind: input, shape index: {}]   ;;  %s3162_s7 = inlined_call_operand.vmem [shape: f32[64,2], index: 7, kind: input, shape index: {}]   ;;  %s3163_s8 = inlined_call_operand.vmem [shape: f32[1,2], index: 8, kind: input, shape index: {}]   ;;  %s3164_s9 = inlined_call_operand.hbm [shape: f32[1,1], index: 9, kind: output, shape index: {}]  }
   0x1   :  { %v1846_v0 = vld [vmem:[%s3158_s3 + $0x58] sm:$0x1f]  ;;  %v1845_v2 = vld [vmem:[%s3158_s3 + $0x50] sm:$0xff]  ;;  %v1855_v3 = vld [vmem:[%s3158_s3 + $0x88] sm:$0x1f] }
   0x2   :  { %v1864_v1 = vld [vmem:[%s3158_s3 + $0xb8] sm:$0x1f]  ;;  %1847 = vmatpush.msk.msra.mxu1 %vm49_vm0, %v1846_v0  ;;  %v1863_v4 = vld [vmem:[%s3158_s3 + $0xb0] sm:$0xff]  ;;  %v1854_v5 = vld [vmem:[%s3158_s3 + $0x80] sm:$0xff]  ;;  %1856 = vmatpush.msk.msra.mxu2 %vm49_vm0, %v1855_v3 }
   0x3   :  { %1865 = vmatpush.msk.msra.mxu3 %vm49_vm0, %v1864_v1  ;;  %v41_v6 = vld [vmem:[%s3158_s3 + $0x28] sm:$0x1f]  ;;  %v1853_v9 = vld [vmem:[%s3158_s3 + $0x78] sm:$0xff]  ;;  %v40_v10 = vld [vmem:[%s3158_s3 + $0x20] sm:$0xff] }
   0x4   :  { %v1844_v7 = vld [vmem:[%s3158_s3 + $0x48] sm:$0xff]  ;;  %97 = vmatpush.msra.mxu1 %v1845_v2  ;;  %130 = vmatpush.msra.mxu2 %v1854_v5  ;;  %v1843_v11 = vld [vmem:[%s3158_s3 + $0x40] sm:$0xff]  ;;  %v1852_v13 = vld [vmem:[%s3158_s3 + $0x70] sm:$0xff] }
   0x5   :  { %v1862_v8 = vld [vmem:[%s3158_s3 + $0xa8] sm:$0xff]  ;;  %163 = vmatpush.msra.mxu3 %v1863_v4  ;;  %1838 = vmatpush.msk.msra.mxu0 %vm49_vm0, %v41_v6  ;;  %v1861_v12 = vld [vmem:[%s3158_s3 + $0xa0] sm:$0xff]  ;;  %v39_v14 = vld [vmem:[%s3158_s3 + $0x18] sm:$0xff] }
   0x6   :  { %98 = vmatpush.msra.mxu1 %v1844_v7  ;;  %131 = vmatpush.msra.mxu2 %v1853_v9  ;;  %v1842_v15 = vld [vmem:[%s3158_s3 + $0x38] sm:$0xff]  ;;  %v1851_v17 = vld [vmem:[%s3158_s3 + $0x68] sm:$0xff]  ;;  %v38_v18 = vld [vmem:[%s3158_s3 + $0x10] sm:$0xff] }
   0x7   :  { %164 = vmatpush.msra.mxu3 %v1862_v8  ;;  %64 = vmatpush.msra.mxu0 %v40_v10  ;;  %v1860_v16 = vld [vmem:[%s3158_s3 + $0x98] sm:$0xff]  ;;  %v1841_v19 = vld [vmem:[%s3158_s3 + $0x30] sm:$0xff]  ;;  %v33_v21 = vld [vmem:[%s3155_s0] sm:$0xff] }
   0x8   :  { %99 = vmatpush.msra.mxu1 %v1843_v11  ;;  %132 = vmatpush.msra.mxu2 %v1852_v13  ;;  %v1859_v20 = vld [vmem:[%s3158_s3 + $0x90] sm:$0xff]  ;;  %v1850_v22 = vld [vmem:[%s3158_s3 + $0x60] sm:$0xff]  ;;  %v176_v23 = vld [vmem:[%s3159_s4 + $0x8] sm:$0xff] }
   0x9   :  { %165 = vmatpush.msra.mxu3 %v1861_v12  ;;  %65 = vmatpush.msra.mxu0 %v39_v14  ;;  %v37_v24 = vld [vmem:[%s3158_s3 + $0x8] sm:$0xff]  ;;  %v1878_v25 = vld [vmem:[%s3159_s4 + $0x38] sm:$0xff]  ;;  %v36_v27 = vld [vmem:[%s3158_s3] sm:$0xff] }
   0xa   :  { %100 = vmatpush.msra.mxu1 %v1842_v15  ;;  %133 = vmatpush.msra.mxu2 %v1851_v17  ;;  %v1874_v26 = vld [vmem:[%s3159_s4 + $0x28] sm:$0xff]  ;;  %v175_v28 = vld [vmem:[%s3159_s4] sm:$0xff]  ;;  %v1877_v29 = vld [vmem:[%s3159_s4 + $0x30] sm:$0xff] }
   0xb   :  { %166 = vmatpush.msra.mxu3 %v1860_v16  ;;  %66 = vmatpush.msra.mxu0 %v38_v18  ;;  %v2318_v30 = vld [vmem:[%s3161_s6 + $0x38] sm:$0xff]  ;;  %v1873_v31 = vld [vmem:[%s3159_s4 + $0x20] sm:$0xff]  ;;  %v2337_v34 = vld [vmem:[%s3161_s6 + $0x30] sm:$0xff] }
   0xc   :  { %101 = vmatpush.msra.mxu1 %v1841_v19  ;;  %134 = vmatpush.msra.mxu2 %v1850_v22  ;;  %v2326_v32 = vld [vmem:[%s3161_s6 + $0xf8] sm:$0xff]  ;;  %v34_v35 = vld [vmem:[%s3155_s0 + $0x8] sm:$0xff]  ;;  %v2346_v36 = vld [vmem:[%s3161_s6 + $0xb0] sm:$0xff] }
   0xd   :  { %167 = vmatpush.msra.mxu3 %v1859_v20  ;;  %1848 = vmatmul.msk.f32.vlgmr.msra.gmra.mxu1 %vm42_vm1, %v33_v21  ;;  %v2331_v33 = vld [vmem:[%s3161_s6 + $0xb8] sm:$0xff]  ;;  %v2351_v37 = vld [vmem:[%s3161_s6 + $0x28] sm:$0xff]  ;;  %v2360_v38 = vld [vmem:[%s3161_s6 + $0x20] sm:$0xff] }
   0xe   :  { %1866 = vmatmul.msk.f32.vlgmr.msra.gmra.mxu3 %vm42_vm1, %v33_v21  ;;  %199 = vmatpush.msrb.mxu1 %v176_v23  ;;  %v2365_v39 = vld [vmem:[%s3161_s6 + $0xf0] sm:$0xff]  ;;  %v1870_v40 = vld [vmem:[%s3159_s4 + $0x18] sm:$0xff]  ;;  %v2380_v42 = vld [vmem:[%s3161_s6 + $0xe8] sm:$0xff] }
   0xf   :  { %67 = vmatpush.msra.mxu0 %v37_v24  ;;  %1857 = vmatmul.msk.f32.vlgmr.msra.gmra.mxu2 %vm42_vm1, %v33_v21  ;;  %v2375_v41 = vld [vmem:[%s3161_s6 + $0x18] sm:$0xff]  ;;  %v2385_v43 = vld [vmem:[%s3161_s6 + $0xa8] sm:$0xff]  ;;  %v1869_v44 = vld [vmem:[%s3159_s4 + $0x10] sm:$0xff] }
  0x10   :  { %283 = vmatpush.msrb.mxu3 %v1878_v25  ;;  %255 = vmatpush.msrb.mxu2 %v1874_v26  ;;  %v2398_v45 = vld [vmem:[%s3161_s6 + $0xe0] sm:$0xff] }
  0x11   :  { %68 = vmatpush.msra.mxu0 %v36_v27  ;;  %200 = vmatpush.msrb.mxu1 %v175_v28  ;;  %v2403_v46 = vld [vmem:[%s3161_s6 + $0xa0] sm:$0xff] }
  0x12   :  { %1839 = vmatmul.msk.f32.vlgmr.msra.gmra.mxu0 %vm42_vm1, %v33_v21  ;;  %284 = vmatpush.msrb.mxu3 %v1877_v29 }
  0x13   :  { %337 = vmatpush.msrb.mxu0 %v2318_v30  ;;  %256 = vmatpush.msrb.mxu2 %v1873_v31 }
  0x14   :  { %403 = vmatpush.msra.mxu3 %v2326_v32  ;;  %227 = vmatpush.msra.mxu1 %v1870_v40 }
  0x15   :  { %381 = vmatpush.msra.mxu2 %v2331_v33  ;;  %338 = vmatpush.msrb.mxu0 %v2337_v34 }
  0x16   :  { %1849 = vmatmul.msk.f32.gmra.mxu1 %vm42_vm1, %v34_v35  ;;  %1867 = vmatmul.msk.f32.gmra.mxu3 %vm42_vm1, %v34_v35 }
  0x17   :  { %382 = vmatpush.msra.mxu2 %v2346_v36  ;;  %339 = vmatpush.msrb.mxu0 %v2351_v37 }
  0x18   :  { %1858 = vmatmul.msk.f32.gmra.mxu2 %vm42_vm1, %v34_v35  ;;  %404 = vmatpush.msra.mxu3 %v2365_v39 }
  0x19   :  { %340 = vmatpush.msrb.mxu0 %v2360_v38  ;;  %383 = vmatpush.msra.mxu2 %v2385_v43 }
  0x1a   :  { %14 = vsyncpa [#allocation4], 0  ;;  %1840 = vmatmul.msk.f32.gmra.mxu0 %vm42_vm1, %v34_v35  ;;  %405 = vmatpush.msra.mxu3 %v2380_v42  ;;  %v2410_v47 = vld [vmem:[%s3161_s6 + $0x10] sm:$0xff]  ;;  %v35_v48 = vld [vmem:[%s3157_s2] sm:$0x3]  ;;  %vm181_vm2 = vcmask 130048  }
  0x1b   :  { %341 = vmatpush.msrb.mxu0 %v2375_v41  ;;  %228 = vmatpush.msra.mxu1 %v1869_v44  ;;  %v2419_v49 = vld [vmem:[%s3161_s6 + $0x78] sm:$0xff]  ;;  %v2426_v50 = vld [vmem:[%s3161_s6 + $0x8] sm:$0xff]  ;;  %v2445_v53 = vld [vmem:[%s3161_s6] sm:$0xff]  ;;  %v2165_v59 = vmov 0.0   ;;  %vm325_vm15 = vcmask 523264   ;;  %vm479_vm0 = vcmask 517120  }
  0x1c   :  { %406 = vmatpush.msra.mxu3 %v2398_v45  ;;  %384 = vmatpush.msra.mxu2 %v2403_v46  ;;  %v2433_v51 = vld [vmem:[%s3161_s6 + $0xd8] sm:$0xff]  ;;  %v2450_v54 = vld [vmem:[%s3161_s6 + $0x70] sm:$0xff]  ;;  %v2469_v57 = vld [vmem:[%s3161_s6 + $0x68] sm:$0xff]  ;;  %s1829_s0 = sshll.u32 %s3164_s9, 4  ;;  %s1830_s0 = int_to_ptr.hbm [resolvable:$true] %s1829_s0 }
  0x1d   :  { %342 = vmatpush.msrb.mxu0 %v2410_v47  ;;  %v2438_v52 = vld [vmem:[%s3161_s6 + $0x98] sm:$0xff]  ;;  %v2457_v55 = vld [vmem:[%s3161_s6 + $0xd0] sm:$0xff]  ;;  %v2476_v58 = vld [vmem:[%s3161_s6 + $0xc8] sm:$0xff] }
  0x1e   :  { %1868 = vmatmul.msk.f32.vlgmr.msrb.gmra.mxu1 %vm181_vm2, %v35_v48  ;;  %1880 = vmatmul.msk.f32.vlgmr.msrb.gmra.mxu3 %vm181_vm2, %v35_v48  ;;  %v2464_v56 = vld [vmem:[%s3161_s6 + $0x90] sm:$0xff]  ;;  %v2482_v60 = vld [vmem:[%s3161_s6 + $0x88] sm:$0xff]  ;;  %v2487_v61 = vld [vmem:[%s3161_s6 + $0x60] sm:$0xff] }
  0x1f   :  { %359 = vmatpush.msrb.mxu1 %v2419_v49  ;;  %343 = vmatpush.msrb.mxu0 %v2426_v50  ;;  %v2494_v62 = vld [vmem:[%s3161_s6 + $0xc0] sm:$0xff]  ;;  %v2508_v0 = vld [vmem:[%s3161_s6 + $0x58] sm:$0xff]  ;;  %v2516_v1 = vld [vmem:[%s3161_s6 + $0x50] sm:$0xff] }
  0x20   :  { %1876 = vmatmul.msk.f32.vlgmr.msrb.gmra.mxu2 %vm181_vm2, %v35_v48  ;;  %407 = vmatpush.msra.mxu3 %v2433_v51  ;;  %v2500_v63 = vld [vmem:[%s3161_s6 + $0x80] sm:$0xff]  ;;  %v2522_v2 = vld [vmem:[%s3161_s6 + $0x48] sm:$0xff] }
  0x21   :  { %385 = vmatpush.msra.mxu2 %v2438_v52  ;;  %344 = vmatpush.msrb.mxu0 %v2445_v53  ;;  %v2531_v3 = vld [vmem:[%s3161_s6 + $0x40] sm:$0xff] }
  0x22   :  { %360 = vmatpush.msrb.mxu1 %v2450_v54  ;;  %408 = vmatpush.msra.mxu3 %v2457_v55  ;;  %v1962_v10 = vld [vmem:[%s3160_s5] ss:$0 sm:$0xff]  ;;  %v1963_v19 = vld [vmem:[%s3160_s5 + $0x3] ss:$0 sm:$0xff]  ;;  %v1964_v22 = vld [vmem:[%s3160_s5 + $0x2] ss:$0 sm:$0xff] }
  0x23   :  { %345 = vmatmul.f32.vlgmr.msrb.gmra.mxu0 %v2165_v59  ;;  %386 = vmatpush.msra.mxu2 %v2464_v56  ;;  %v1965_v28 = vld [vmem:[%s3160_s5 + $0x1] ss:$0 sm:$0xff] }
  0x24   :  { %361 = vmatpush.msrb.mxu1 %v2469_v57  ;;  %409 = vmatpush.msra.mxu3 %v2476_v58 }
  0x25   :  { %496 = vmatpush.msra.mxu0 %v2318_v30  ;;  %387 = vmatpush.msra.mxu2 %v2482_v60 }
  0x26   :  { %362 = vmatpush.msrb.mxu1 %v2487_v61  ;;  %410 = vmatpush.msra.mxu3 %v2494_v62 }
  0x27   :  { %1872 = vmatmul.msk.f32.vlgmr.msra.gmra.mxu1 %vm181_vm2, %v35_v48  ;;  %388 = vmatpush.msra.mxu2 %v2500_v63 }
  0x28   :  { %411 = vmatmul.f32.vlgmr.msra.gmra.mxu3 %v2165_v59  ;;  %363 = vmatpush.msrb.mxu1 %v2508_v0 }
  0x29   :  { %389 = vmatmul.f32.vlgmr.msra.gmra.mxu2 %v2165_v59  ;;  %580 = vmatpush.msrb.mxu3 %v2326_v32 }
  0x2a   :  { %552 = vmatpush.msrb.mxu2 %v2331_v33  ;;  %364 = vmatpush.msrb.mxu1 %v2516_v1 }
  0x2b   :  { %497 = vmatpush.msra.mxu0 %v2337_v34  ;;  %581 = vmatpush.msrb.mxu3 %v2365_v39 }
  0x2c   :  { %553 = vmatpush.msrb.mxu2 %v2346_v36  ;;  %365 = vmatpush.msrb.mxu1 %v2522_v2 }
  0x2d   :  { %498 = vmatpush.msra.mxu0 %v2351_v37  ;;  %582 = vmatpush.msrb.mxu3 %v2380_v42 }
  0x2e   :  { %554 = vmatpush.msrb.mxu2 %v2385_v43  ;;  %366 = vmatpush.msrb.mxu1 %v2531_v3 }
  0x2f   :  { %499 = vmatpush.msra.mxu0 %v2360_v38  ;;  %367 = vmatmul.f32.vlgmr.msrb.gmra.mxu1 %v2165_v59 }
  0x30   :  { %555 = vmatpush.msrb.mxu2 %v2403_v46  ;;  %524 = vmatpush.msra.mxu1 %v2419_v49 }
  0x31   :  { %583 = vmatpush.msrb.mxu3 %v2398_v45  ;;  %500 = vmatpush.msra.mxu0 %v2375_v41 }
  0x32   :  { %556 = vmatpush.msrb.mxu2 %v2438_v52  ;;  %525 = vmatpush.msra.mxu1 %v2450_v54 }
  0x33   :  { %584 = vmatpush.msrb.mxu3 %v2433_v51  ;;  %501 = vmatpush.msra.mxu0 %v2410_v47 }
  0x34   :  { %557 = vmatpush.msrb.mxu2 %v2464_v56  ;;  %526 = vmatpush.msra.mxu1 %v2469_v57 }
  0x35   :  { %585 = vmatpush.msrb.mxu3 %v2457_v55  ;;  %502 = vmatpush.msra.mxu0 %v2426_v50 }
  0x36   :  { %558 = vmatpush.msrb.mxu2 %v2482_v60  ;;  %527 = vmatpush.msra.mxu1 %v2487_v61 }
  0x37   :  { %586 = vmatpush.msrb.mxu3 %v2476_v58  ;;  %503 = vmatpush.msra.mxu0 %v2445_v53 }
  0x38   :  { %559 = vmatpush.msrb.mxu2 %v2500_v63  ;;  %528 = vmatpush.msra.mxu1 %v2508_v0 }
  0x39   :  { %587 = vmatpush.msrb.mxu3 %v2494_v62  ;;  %679 = vmatpush.msrb.mxu0 %v2318_v30 }
  0x3a   :  { %733 = vmatpush.msra.mxu2 %v2331_v33  ;;  %529 = vmatpush.msra.mxu1 %v2516_v1 }
  0x3b   :  { %760 = vmatpush.msra.mxu3 %v2326_v32  ;;  %680 = vmatpush.msrb.mxu0 %v2337_v34 }
  0x3c   :  { %734 = vmatpush.msra.mxu2 %v2346_v36  ;;  %530 = vmatpush.msra.mxu1 %v2522_v2 }
  0x3d   :  { %761 = vmatpush.msra.mxu3 %v2365_v39  ;;  %681 = vmatpush.msrb.mxu0 %v2351_v37 }
  0x3e   :  { %735 = vmatpush.msra.mxu2 %v2385_v43  ;;  %531 = vmatpush.msra.mxu1 %v2531_v3 }
  0x3f   :  { %762 = vmatpush.msra.mxu3 %v2380_v42  ;;  %682 = vmatpush.msrb.mxu0 %v2360_v38 }
  0x40   :  { %706 = vmatpush.msrb.mxu1 %v2419_v49  ;;  %736 = vmatpush.msra.mxu2 %v2403_v46 }
  0x41   :  { %763 = vmatpush.msra.mxu3 %v2398_v45  ;;  %683 = vmatpush.msrb.mxu0 %v2375_v41 }
  0x42   :  { %707 = vmatpush.msrb.mxu1 %v2450_v54  ;;  %737 = vmatpush.msra.mxu2 %v2438_v52 }
  0x43   :  { %764 = vmatpush.msra.mxu3 %v2433_v51  ;;  %684 = vmatpush.msrb.mxu0 %v2410_v47 }
  0x44   :  { %708 = vmatpush.msrb.mxu1 %v2469_v57  ;;  %738 = vmatpush.msra.mxu2 %v2464_v56 }
  0x45   :  { %765 = vmatpush.msra.mxu3 %v2457_v55  ;;  %685 = vmatpush.msrb.mxu0 %v2426_v50 }
  0x46   :  { %709 = vmatpush.msrb.mxu1 %v2487_v61  ;;  %739 = vmatpush.msra.mxu2 %v2482_v60 }
  0x47   :  { %766 = vmatpush.msra.mxu3 %v2476_v58  ;;  %686 = vmatpush.msrb.mxu0 %v2445_v53 }
  0x48   :  { %710 = vmatpush.msrb.mxu1 %v2508_v0  ;;  %740 = vmatpush.msra.mxu2 %v2500_v63 }
  0x49   :  { %767 = vmatpush.msra.mxu3 %v2494_v62 }
  0x4a   :  { %711 = vmatpush.msrb.mxu1 %v2516_v1 }
  0x4c   :  { %712 = vmatpush.msrb.mxu1 %v2522_v2 }
  0x4e   :  { %713 = vmatpush.msrb.mxu1 %v2531_v3 }
  0x8a   :  { %v2595_v4 = vpop.f32.mrf.mxu1 }
  0x8f   :  { %v70_v5 = vpop.f32.mrf.mxu0 }
  0x91   :  { %v169_v6 = vpop.f32.mrf.mxu3 }
  0x92   :  { %v2597_v7 = vpop.f32.mrf.mxu2 }
  0x93   :  { %v2599_v8 = vpop.f32.mrf.mxu1 }
  0x97   :  { %v73_v9 = vpop.f32.mrf.mxu0 }
  0x99   :  { %v2604_v11 = vpop.f32.mrf.mxu3 }
  0x9b   :  { %v2606_v12 = vpop.f32.mrf.mxu2  ;;  %v202_v13 = vpop.f32.mrf.mxu1 }
  0x9c   :  { %v203_v14 = vadd.f32 %v1962_v10, %v202_v13 }
  0x9e   :  { %v324_v15 = vadd.f32 %v203_v14, %v70_v5  ;;  %v482_v16 = vrot.slane %v203_v14, 6  ;;  %v664_v17 = vrot.slane %v203_v14, 4  ;;  %v844_v18 = vrot.slane %v203_v14, 2 }
  0x9f   :  { %v2611_v20 = vadd.f32 %v203_v14, %v73_v9 }
  0xa0   :  { %v346_v21 = vpop.f32.mrf.mxu0  ;;  %v2616_v23 = vadd.f32 %v482_v16, %v70_v5  ;;  %v2618_v24 = vadd.f32 %v664_v17, %v70_v5  ;;  %v2620_v25 = vadd.f32 %v844_v18, %v70_v5  ;;  %v2622_v26 = vadd.f32 %v482_v16, %v73_v9 }
  0xa1   :  { %3165 = vst [vmem:[#allocation6_spill] sm:$0xff] %v2611_v20  ;;  %v349_v27 = vadd.f32 %v346_v21, %v324_v15  ;;  %v2627_v29 = vadd.f32 %v664_v17, %v73_v9  ;;  %v2629_v31 = vadd.f32 %v844_v18, %v73_v9  ;;  %v286_v35 = vpop.f32.mrf.mxu3 }
  0xa2   :  { %3166 = vst [vmem:[#allocation7_spill] sm:$0xff] %v2618_v24  ;;  %v287_v44 = vadd.f32 %v1963_v19, %v286_v35 }
  0xa3   :  { %3167 = vst [vmem:[#allocation8_spill] sm:$0xff] %v2620_v25  ;;  %v1905_v40 = vmul.f32 -1.442695, %v349_v27  ;;  %v258_v48 = vpop.f32.mrf.mxu2 }
  0xa4   :  { %3168 = vst [vmem:[#allocation9_spill] sm:$0xff] %v2622_v26  ;;  %v259_v59 = vadd.f32 %v1964_v22, %v258_v48  ;;  %v230_v10 = vpop.f32.mrf.mxu1  ;;  %v569_v13 = vrot.slane %v287_v44, 6  ;;  %v749_v15 = vrot.slane %v287_v44, 4  ;;  %v394_v21 = vadd.f32 %v287_v44, %v169_v6 }
  0xa5   :  { %3169 = vst [vmem:[#allocation10_spill] sm:$0xff] %v2627_v29  ;;  %1967 = vpow2.f32 %v1905_v40  ;;  %v231_v5 = vadd.f32 %v1965_v28, %v230_v10  ;;  %v929_v40 = vrot.slane %v287_v44, 2  ;;  %v2657_v29 = vadd.f32 %v287_v44, %v2604_v11 }
  0xa6   :  { %3170 = vst [vmem:[#allocation11_spill] sm:$0xff] %v2629_v31  ;;  %v541_v14 = vrot.slane %v259_v59, 6  ;;  %v722_v16 = vrot.slane %v259_v59, 4  ;;  %v2631_v20 = vadd.f32 %v569_v13, %v169_v6  ;;  %v2639_v19 = vadd.f32 %v749_v15, %v169_v6 }
  0xa7   :  { %v513_v26 = vrot.slane %v231_v5, 6  ;;  %v695_v17 = vrot.slane %v231_v5, 4  ;;  %v875_v22 = vrot.slane %v231_v5, 2  ;;  %v902_v35 = vrot.slane %v259_v59, 2  ;;  %3179 = vst [vmem:[#allocation20_spill] sm:$0xff] %v2657_v29 }
  0xa8   :  { %3171 = vst [vmem:[#allocation12_spill] sm:$0xff] %v2631_v20  ;;  %v2634_v9 = vadd.f32 %v541_v14, %v2597_v7  ;;  %v2637_v18 = vadd.f32 %v722_v16, %v2597_v7  ;;  %v2651_v10 = vadd.f32 %v231_v5, %v2599_v8  ;;  %v2654_v31 = vadd.f32 %v259_v59, %v2606_v12 }
  0xa9   :  { %3174 = vst [vmem:[#allocation15_spill] sm:$0xff] %v2639_v19  ;;  %v2642_v27 = vadd.f32 %v513_v26, %v2595_v4  ;;  %v2645_v28 = vadd.f32 %v695_v17, %v2595_v4  ;;  %v2648_v48 = vadd.f32 %v875_v22, %v2595_v4  ;;  %v2660_v19 = vadd.f32 %v902_v35, %v2597_v7 }
  0xaa   :  { %3172 = vst [vmem:[#allocation13_spill] sm:$0xff] %v2634_v9  ;;  %v2665_v24 = vadd.f32 %v513_v26, %v2599_v8  ;;  %v2674_v44 = vadd.f32 %v695_v17, %v2599_v8  ;;  %v350_v29 = vadd.f32 %v231_v5, %v2595_v4  ;;  %v2681_v26 = vadd.f32 %v749_v15, %v2604_v11 }
  0xab   :  { %3173 = vst [vmem:[#allocation14_spill] sm:$0xff] %v2637_v18  ;;  %v1968_v25 = vpop.eup %1967  ;;  %v412_v18 = vpop.f32.mrf.mxu3  ;;  %v2690_v17 = vadd.f32 %v929_v40, %v2604_v11 }
  0xac   :  { %3175 = vst [vmem:[#allocation16_spill] sm:$0xff] %v2645_v28  ;;  %v2662_v28 = vadd.f32 %v929_v40, %v169_v6  ;;  %v415_v9 = vadd.f32 %v412_v18, %v394_v21  ;;  %v368_v20 = vpop.f32.mrf.mxu1  ;;  %v2678_v6 = vadd.f32 %v722_v16, %v2606_v12 }
  0xad   :  { %3176 = vst [vmem:[#allocation17_spill] sm:$0xff] %v2648_v48  ;;  %v2668_v48 = vadd.f32 %v541_v14, %v2606_v12  ;;  %v2684_v14 = vadd.f32 %v875_v22, %v2599_v8  ;;  %v371_v21 = vadd.f32 %v368_v20, %v350_v29  ;;  %v372_v20 = vadd.f32 %v259_v59, %v2597_v7  ;;  %v390_v29 = vpop.f32.mrf.mxu2 }
  0xae   :  { %3177 = vst [vmem:[#allocation18_spill] sm:$0xff] %v2651_v10  ;;  %v419_v10 = vadd.f32 1.0, %v1968_v25  ;;  %v1907_v25 = vmul.f32 -1.442695, %v415_v9 }
  0xaf   :  { %3178 = vst [vmem:[#allocation19_spill] sm:$0xff] %v2654_v31  ;;  %v2671_v31 = vadd.f32 %v569_v13, %v2604_v11  ;;  %v2687_v13 = vadd.f32 %v902_v35, %v2606_v12  ;;  %v1906_v4 = vmul.f32 -1.442695, %v371_v21  ;;  %v393_v35 = vadd.f32 %v390_v29, %v372_v20 }
  0xb0   :  { %3180 = vst [vmem:[#allocation21_spill] sm:$0xff] %v2668_v48  ;;  %1969 = vrcp.f32 %v419_v10  ;;  %v431_v21 = vand.u32 2147483648, %v419_v10  ;;  %vm425_vm4 = vweird.f32 %v419_v10 }
  0xb1   :  { %3181 = vst [vmem:[#allocation22_spill] sm:$0xff] %v2674_v44  ;;  %1971 = vpow2.f32 %v1907_v25 }
  0xb2   :  { %3182 = vst [vmem:[#allocation23_spill] sm:$0xff] %v2678_v6  ;;  %1973 = vpow2.f32 %v1906_v4  ;;  %v429_v4 = vand.u32 2147483647, %v419_v10 }
  0xb3   :  { %3183 = vst [vmem:[#allocation24_spill] sm:$0xff] %v2681_v26 }
  0xb4   :  { %3184 = vst [vmem:[#allocation25_spill] sm:$0xff] %v2684_v14  ;;  %vm430_vm7 = vcmp.eq.f32.partialorder %v429_v4, 8.507059e+37 }
  0xb5   :  { %3185 = vst [vmem:[#allocation26_spill] sm:$0xff] %v2687_v13 }
  0xb6   :  { %3186 = vst [vmem:[#allocation27_spill] sm:$0xff] %v2690_v17  ;;  %v1970_v5 = vpop.eup %1969 }
  0xb7   :  { %v1972_v16 = vpop.eup %1971  ;;  %v421_v18 = vmul.f32 %v1970_v5, %v419_v10  ;;  %vm426_vm3 = vweird.f32 %v1970_v5 }
  0xb8   :  { %v458_v15 = vadd.f32 1.0, %v1972_v16  ;;  %v1974_v6 = vpop.eup %1973  ;;  %vm427_vm5 = vmor %vm425_vm4, %vm426_vm3 }
  0xb9   :  { %v438_v26 = vadd.f32 1.0, %v1974_v6  ;;  %v422_v8 = vsub.f32 1.0, %v421_v18 }
  0xba   :  { %1975 = vrcp.f32 %v458_v15  ;;  %vm464_vm12 = vweird.f32 %v458_v15 }
  0xbb   :  { %1977 = vrcp.f32 %v438_v26  ;;  %v423_v9 = vmul.f32 %v1970_v5, %v422_v8  ;;  %v450_v6 = vand.u32 2147483648, %v438_v26  ;;  %v448_v7 = vand.u32 2147483647, %v438_v26 }
  0xbc   :  { %1979 = vtanh.f32 %v393_v35  ;;  %v432_v8 = vor.u32 1.1754944e-38, %v431_v21  ;;  %vm444_vm8 = vweird.f32 %v438_v26 }
  0xbd   :  { %v424_v11 = vadd.f32 %v1970_v5, %v423_v9  ;;  %v451_v29 = vor.u32 1.1754944e-38, %v450_v6  ;;  %vm449_vm10 = vcmp.eq.f32.partialorder %v448_v7, 8.507059e+37 }
  0xbf   :  { %v428_v18 = vsel %vm427_vm5, %v1970_v5, %v424_v11  ;;  %v470_v11 = vand.u32 2147483648, %v458_v15 }
  0xc0   :  { %v1976_v12 = vpop.eup %1975  ;;  %v433_v20 = vsel %vm430_vm7, %v432_v8, %v428_v18  ;;  %v3187_v8 = vld [vmem:[#allocation12_spill] sm:$0xff] }
  0xc1   :  { %v1978_v22 = vpop.eup %1977  ;;  %v460_v25 = vmul.f32 %v1976_v12, %v458_v15  ;;  %vm465_vm11 = vweird.f32 %v1976_v12 }
  0xc2   :  { %v440_v40 = vmul.f32 %v1978_v22, %v438_v26  ;;  %vm445_vm6 = vweird.f32 %v1978_v22  ;;  %v1980_v14 = vpop.eup %1979  ;;  %vm466_vm13 = vmor %vm464_vm12, %vm465_vm11 }
  0xc3   :  { %v461_v59 = vsub.f32 1.0, %v460_v25  ;;  %vm446_vm9 = vmor %vm444_vm8, %vm445_vm6  ;;  %v475_v44 = vmul.f32 %v1980_v14, %v433_v20  ;;  %v471_v25 = vor.u32 1.1754944e-38, %v470_v11 }
  0xc4   :  { %v441_v16 = vsub.f32 1.0, %v440_v40 }
  0xc5   :  { %v462_v10 = vmul.f32 %v1976_v12, %v461_v59 }
  0xc6   :  { %v442_v13 = vmul.f32 %v1978_v22, %v441_v16 }
  0xc7   :  { %v463_v5 = vadd.f32 %v1976_v12, %v462_v10 }
  0xc8   :  { %v443_v17 = vadd.f32 %v1978_v22, %v442_v13  ;;  %v468_v13 = vand.u32 2147483647, %v458_v15 }
  0xc9   :  { %v467_v26 = vsel %vm466_vm13, %v1976_v12, %v463_v5  ;;  %vm662_vm13 = vcmask 519170  }
  0xca   :  { %v447_v9 = vsel %vm446_vm9, %v1978_v22, %v443_v17  ;;  %vm469_vm14 = vcmp.eq.f32.partialorder %v468_v13, 8.507059e+37 }
  0xcb   :  { %v452_v40 = vsel %vm449_vm10, %v451_v29, %v447_v9  ;;  %v472_v22 = vsel %vm469_vm14, %v471_v25, %v467_v26  ;;  %v3188_v26 = vld [vmem:[#allocation13_spill] sm:$0xff] }
  0xcc   :  { %v474_v35 = vmul.f32 0.0, %v452_v40 }
  0xce   :  { %v2693_v48 = vadd.f32 %v475_v44, %v474_v35 }
  0xd0   :  { %1981 = vtanh.f32 %v2693_v48 }
  0xd6   :  { %v1982_v17 = vpop.eup %1981 }
  0xd7   :  { %v478_v21 = vmul.f32 %v1982_v17, %v472_v22 }
  0xd9   :  { %480 = vst.msk [vmem:[#allocation2] sm:$0x3] %vm479_vm0, %v478_v21  ;;  %1908 = vmatmul.msk.f32.vlgmr.msra.gmra.mxu0 %vm325_vm15, %v478_v21  ;;  %1909 = vmatmul.msk.f32.vlgmr.msra.gmra.mxu1 %vm325_vm15, %v478_v21 }
  0xda   :  { %1910 = vmatmul.msk.f32.vlgmr.msrb.gmra.mxu2 %vm325_vm15, %v478_v21  ;;  %1911 = vmatmul.msk.f32.vlgmr.msrb.gmra.mxu3 %vm325_vm15, %v478_v21 }
  0xdb   :  { %859 = vmatpush.msra.mxu0 %v2318_v30  ;;  %886 = vmatpush.msra.mxu1 %v2419_v49 }
  0xdc   :  { %913 = vmatpush.msrb.mxu2 %v2331_v33  ;;  %940 = vmatpush.msrb.mxu3 %v2326_v32 }
  0xdd   :  { %860 = vmatpush.msra.mxu0 %v2337_v34  ;;  %887 = vmatpush.msra.mxu1 %v2450_v54 }
  0xde   :  { %914 = vmatpush.msrb.mxu2 %v2346_v36  ;;  %941 = vmatpush.msrb.mxu3 %v2365_v39 }
  0xdf   :  { %861 = vmatpush.msra.mxu0 %v2351_v37  ;;  %888 = vmatpush.msra.mxu1 %v2469_v57 }
  0xe0   :  { %915 = vmatpush.msrb.mxu2 %v2385_v43  ;;  %942 = vmatpush.msrb.mxu3 %v2380_v42 }
  0xe1   :  { %862 = vmatpush.msra.mxu0 %v2360_v38  ;;  %889 = vmatpush.msra.mxu1 %v2487_v61 }
  0xe2   :  { %916 = vmatpush.msrb.mxu2 %v2403_v46  ;;  %943 = vmatpush.msrb.mxu3 %v2398_v45 }
  0xe3   :  { %863 = vmatpush.msra.mxu0 %v2375_v41  ;;  %890 = vmatpush.msra.mxu1 %v2508_v0 }
  0xe4   :  { %917 = vmatpush.msrb.mxu2 %v2438_v52  ;;  %944 = vmatpush.msrb.mxu3 %v2433_v51 }
  0xe5   :  { %864 = vmatpush.msra.mxu0 %v2410_v47  ;;  %891 = vmatpush.msra.mxu1 %v2516_v1 }
  0xe6   :  { %918 = vmatpush.msrb.mxu2 %v2464_v56  ;;  %945 = vmatpush.msrb.mxu3 %v2457_v55 }
  0xe7   :  { %865 = vmatpush.msra.mxu0 %v2426_v50  ;;  %892 = vmatpush.msra.mxu1 %v2522_v2 }
  0xe8   :  { %919 = vmatpush.msrb.mxu2 %v2482_v60  ;;  %946 = vmatpush.msrb.mxu3 %v2476_v58 }
  0xe9   :  { %866 = vmatpush.msra.mxu0 %v2445_v53  ;;  %893 = vmatpush.msra.mxu1 %v2531_v3 }
  0xea   :  { %920 = vmatpush.msrb.mxu2 %v2500_v63  ;;  %947 = vmatpush.msrb.mxu3 %v2494_v62 }
 0x156   :  { %v505_v44 = vpop.f32.mrf.mxu0  ;;  %v533_v14 = vpop.f32.mrf.mxu1 }
 0x157   :  { %v509_v15 = vrot.slane %v505_v44, 6  ;;  %v537_v12 = vrot.slane %v533_v14, 6 }
 0x159   :  { %v511_v4 = vadd.f32 %v509_v15, %v2616_v23  ;;  %v539_v16 = vadd.f32 %v537_v12, %v2642_v27 }
 0x15b   :  { %v1912_v6 = vmul.f32 -1.442695, %v511_v4  ;;  %v1913_v18 = vmul.f32 -1.442695, %v539_v16 }
 0x15d   :  { %1983 = vpow2.f32 %v1912_v6  ;;  %v589_v7 = vpop.f32.mrf.mxu3  ;;  %v561_v5 = vpop.f32.mrf.mxu2 }
 0x15e   :  { %1985 = vpow2.f32 %v1913_v18  ;;  %v593_v59 = vrot.slane %v589_v7, 6  ;;  %v565_v23 = vrot.slane %v561_v5, 6  ;;  %v655_v5 = vrot.slane %v2693_v48, 6 }
 0x160   :  { %v595_v20 = vadd.f32 %v593_v59, %v3187_v8  ;;  %v567_v25 = vadd.f32 %v565_v23, %v3188_v26 }
 0x162   :  { %v1914_v29 = vmul.f32 -1.442695, %v595_v20 }
 0x163   :  { %v1984_v9 = vpop.eup %1983 }
 0x164   :  { %v1986_v10 = vpop.eup %1985  ;;  %v599_v40 = vadd.f32 1.0, %v1984_v9  ;;  %1987 = vpow2.f32 %v1914_v29 }
 0x165   :  { %v618_v35 = vadd.f32 1.0, %v1986_v10 }
 0x166   :  { %1989 = vrcp.f32 %v599_v40  ;;  %v611_v15 = vand.u32 2147483648, %v599_v40  ;;  %v609_v16 = vand.u32 2147483647, %v599_v40  ;;  %vm605_vm3 = vweird.f32 %v599_v40 }
 0x167   :  { %1991 = vrcp.f32 %v618_v35  ;;  %v630_v12 = vand.u32 2147483648, %v618_v35  ;;  %v628_v18 = vand.u32 2147483647, %v618_v35  ;;  %vm624_vm4 = vweird.f32 %v618_v35 }
 0x168   :  { %v612_v8 = vor.u32 1.1754944e-38, %v611_v15  ;;  %vm610_vm7 = vcmp.eq.f32.partialorder %v609_v16, 8.507059e+37 }
 0x169   :  { %v631_v9 = vor.u32 1.1754944e-38, %v630_v12  ;;  %vm629_vm8 = vcmp.eq.f32.partialorder %v628_v18, 8.507059e+37 }
 0x16a   :  { %v1988_v11 = vpop.eup %1987 }
 0x16b   :  { %v638_v27 = vadd.f32 1.0, %v1988_v11 }
 0x16c   :  { %v1990_v13 = vpop.eup %1989 }
 0x16d   :  { %v1992_v17 = vpop.eup %1991  ;;  %v601_v22 = vmul.f32 %v1990_v13, %v599_v40  ;;  %1993 = vrcp.f32 %v638_v27  ;;  %vm606_vm1 = vweird.f32 %v1990_v13  ;;  %v650_v15 = vand.u32 2147483648, %v638_v27 }
 0x16e   :  { %v620_v21 = vmul.f32 %v1992_v17, %v618_v35  ;;  %1995 = vtanh.f32 %v567_v25  ;;  %vm625_vm2 = vweird.f32 %v1992_v17  ;;  %vm607_vm5 = vmor %vm605_vm3, %vm606_vm1  ;;  %vm644_vm10 = vweird.f32 %v638_v27 }
 0x16f   :  { %v602_v44 = vsub.f32 1.0, %v601_v22  ;;  %vm626_vm6 = vmor %vm624_vm4, %vm625_vm2  ;;  %v651_v12 = vor.u32 1.1754944e-38, %v650_v15 }
 0x170   :  { %v621_v14 = vsub.f32 1.0, %v620_v21 }
 0x171   :  { %v603_v4 = vmul.f32 %v1990_v13, %v602_v44 }
 0x172   :  { %v622_v6 = vmul.f32 %v1992_v17, %v621_v14 }
 0x173   :  { %v1994_v7 = vpop.eup %1993  ;;  %v604_v59 = vadd.f32 %v1990_v13, %v603_v4 }
 0x174   :  { %v623_v20 = vadd.f32 %v1992_v17, %v622_v6  ;;  %v640_v29 = vmul.f32 %v1994_v7, %v638_v27  ;;  %v1996_v23 = vpop.eup %1995  ;;  %vm645_vm9 = vweird.f32 %v1994_v7 }
 0x175   :  { %v608_v10 = vsel %vm607_vm5, %v1990_v13, %v604_v59  ;;  %v648_v13 = vand.u32 2147483647, %v638_v27  ;;  %vm646_vm11 = vmor %vm644_vm10, %vm645_vm9 }
 0x176   :  { %v613_v11 = vsel %vm610_vm7, %v612_v8, %v608_v10  ;;  %v627_v26 = vsel %vm626_vm6, %v1992_v17, %v623_v20  ;;  %v641_v25 = vsub.f32 1.0, %v640_v29 }
 0x177   :  { %v632_v22 = vsel %vm629_vm8, %v631_v9, %v627_v26  ;;  %v658_v21 = vmul.f32 %v1996_v23, %v613_v11  ;;  %vm649_vm12 = vcmp.eq.f32.partialorder %v648_v13, 8.507059e+37  ;;  %v3192_v23 = vld [vmem:[#allocation14_spill] sm:$0xff] }
 0x178   :  { %v657_v44 = vmul.f32 %v655_v5, %v632_v22  ;;  %v642_v40 = vmul.f32 %v1994_v7, %v641_v25 }
 0x17a   :  { %v2738_v35 = vadd.f32 %v658_v21, %v657_v44  ;;  %v643_v14 = vadd.f32 %v1994_v7, %v642_v40 }
 0x17c   :  { %1997 = vtanh.f32 %v2738_v35  ;;  %v647_v48 = vsel %vm646_vm11, %v1994_v7, %v643_v14 }
 0x17d   :  { %v652_v4 = vsel %vm649_vm12, %v651_v12, %v647_v48  ;;  %vm842_vm12 = vcmask 521220  }
 0x182   :  { %v1998_v17 = vpop.eup %1997 }
 0x183   :  { %v661_v16 = vmul.f32 %v1998_v17, %v652_v4 }
 0x185   :  { %663 = vst.msk [vmem:[#allocation2] sm:$0xc] %vm662_vm13, %v661_v16  ;;  %v668_v6 = vrot.slane %v661_v16, 2 }
 0x187   :  { %1915 = vmatmul.msk.f32.vlgmr.msrb.gmra.mxu0 %vm325_vm15, %v668_v6  ;;  %1916 = vmatmul.msk.f32.vlgmr.msrb.gmra.mxu1 %vm325_vm15, %v668_v6 }
 0x188   :  { %1917 = vmatmul.msk.f32.vlgmr.msra.gmra.mxu2 %vm325_vm15, %v668_v6  ;;  %1918 = vmatmul.msk.f32.vlgmr.msra.gmra.mxu3 %vm325_vm15, %v668_v6 }
 0x189   :  { %1037 = vmatpush.msrb.mxu0 %v2318_v30  ;;  %1059 = vmatpush.msrb.mxu1 %v2419_v49 }
 0x18a   :  { %1081 = vmatpush.msra.mxu2 %v2331_v33  ;;  %1103 = vmatpush.msra.mxu3 %v2326_v32 }
 0x18b   :  { %1038 = vmatpush.msrb.mxu0 %v2337_v34  ;;  %1060 = vmatpush.msrb.mxu1 %v2450_v54 }
 0x18c   :  { %1082 = vmatpush.msra.mxu2 %v2346_v36  ;;  %1104 = vmatpush.msra.mxu3 %v2365_v39  ;;  %v3189_v36 = vld [vmem:[#allocation7_spill] sm:$0xff] }
 0x18d   :  { %1039 = vmatpush.msrb.mxu0 %v2351_v37  ;;  %1061 = vmatpush.msrb.mxu1 %v2469_v57 }
 0x18e   :  { %1083 = vmatpush.msra.mxu2 %v2385_v43  ;;  %1105 = vmatpush.msra.mxu3 %v2380_v42 }
 0x18f   :  { %1040 = vmatpush.msrb.mxu0 %v2360_v38  ;;  %1062 = vmatpush.msrb.mxu1 %v2487_v61  ;;  %v3190_v38 = vld [vmem:[#allocation16_spill] sm:$0xff] }
 0x190   :  { %1084 = vmatpush.msra.mxu2 %v2403_v46  ;;  %1106 = vmatpush.msra.mxu3 %v2398_v45  ;;  %v3191_v46 = vld [vmem:[#allocation15_spill] sm:$0xff] }
 0x191   :  { %1041 = vmatpush.msrb.mxu0 %v2375_v41  ;;  %1063 = vmatpush.msrb.mxu1 %v2508_v0 }
 0x192   :  { %1085 = vmatpush.msra.mxu2 %v2438_v52  ;;  %1107 = vmatpush.msra.mxu3 %v2433_v51 }
 0x193   :  { %1042 = vmatpush.msrb.mxu0 %v2410_v47  ;;  %1064 = vmatpush.msrb.mxu1 %v2516_v1 }
 0x194   :  { %1086 = vmatpush.msra.mxu2 %v2464_v56  ;;  %1108 = vmatpush.msra.mxu3 %v2457_v55 }
 0x195   :  { %1043 = vmatpush.msrb.mxu0 %v2426_v50  ;;  %1065 = vmatpush.msrb.mxu1 %v2522_v2 }
 0x196   :  { %1087 = vmatpush.msra.mxu2 %v2482_v60  ;;  %1109 = vmatpush.msra.mxu3 %v2476_v58 }
 0x197   :  { %1044 = vmatpush.msrb.mxu0 %v2445_v53  ;;  %1066 = vmatpush.msrb.mxu1 %v2531_v3 }
 0x198   :  { %1088 = vmatpush.msra.mxu2 %v2500_v63  ;;  %1110 = vmatpush.msra.mxu3 %v2494_v62 }
 0x204   :  { %v688_v30 = vpop.f32.mrf.mxu0  ;;  %v715_v32 = vpop.f32.mrf.mxu1 }
 0x205   :  { %v692_v33 = vrot.slane %v688_v30, 4  ;;  %v719_v34 = vrot.slane %v715_v32, 4  ;;  %v835_v32 = vrot.slane %v2738_v35, 6 }
 0x207   :  { %v694_v37 = vadd.f32 %v692_v33, %v3189_v36  ;;  %v721_v39 = vadd.f32 %v719_v34, %v3190_v38 }
 0x209   :  { %v1919_v41 = vmul.f32 -1.442695, %v694_v37  ;;  %v1920_v42 = vmul.f32 -1.442695, %v721_v39 }
 0x20b   :  { %1999 = vpow2.f32 %v1919_v41  ;;  %v769_v43 = vpop.f32.mrf.mxu3  ;;  %v742_v20 = vpop.f32.mrf.mxu2 }
 0x20c   :  { %2001 = vpow2.f32 %v1920_v42  ;;  %v773_v45 = vrot.slane %v769_v43, 4  ;;  %v746_v29 = vrot.slane %v742_v20, 4 }
 0x20e   :  { %v775_v47 = vadd.f32 %v773_v45, %v3191_v46  ;;  %v748_v11 = vadd.f32 %v746_v29, %v3192_v23  ;;  %v2813_v23 = vld [vmem:[%s3161_s6 + $0x30] sm:$0xff] }
 0x210   :  { %v1921_v27 = vmul.f32 -1.442695, %v775_v47 }
 0x211   :  { %v2000_v18 = vpop.eup %1999 }
 0x212   :  { %v2002_v7 = vpop.eup %2001  ;;  %v779_v59 = vadd.f32 1.0, %v2000_v18  ;;  %2003 = vpow2.f32 %v1921_v27 }
 0x213   :  { %v798_v8 = vadd.f32 1.0, %v2002_v7 }
 0x214   :  { %2005 = vrcp.f32 %v779_v59  ;;  %v791_v40 = vand.u32 2147483648, %v779_v59  ;;  %v789_v13 = vand.u32 2147483647, %v779_v59  ;;  %vm785_vm2 = vweird.f32 %v779_v59 }
 0x215   :  { %2007 = vrcp.f32 %v798_v8  ;;  %v810_v14 = vand.u32 2147483648, %v798_v8  ;;  %v808_v12 = vand.u32 2147483647, %v798_v8  ;;  %vm804_vm3 = vweird.f32 %v798_v8 }
 0x216   :  { %v792_v16 = vor.u32 1.1754944e-38, %v791_v40  ;;  %vm790_vm6 = vcmp.eq.f32.partialorder %v789_v13, 8.507059e+37 }
 0x217   :  { %v811_v33 = vor.u32 1.1754944e-38, %v810_v14  ;;  %vm809_vm7 = vcmp.eq.f32.partialorder %v808_v12, 8.507059e+37 }
 0x218   :  { %v2004_v9 = vpop.eup %2003 }
 0x219   :  { %v818_v10 = vadd.f32 1.0, %v2004_v9  ;;  %v2794_v9 = vld [vmem:[%s3161_s6 + $0x38] sm:$0xff] }
 0x21a   :  { %v2006_v5 = vpop.eup %2005 }
 0x21b   :  { %v2008_v26 = vpop.eup %2007  ;;  %v781_v25 = vmul.f32 %v2006_v5, %v779_v59  ;;  %2009 = vrcp.f32 %v818_v10  ;;  %vm786_vm14 = vweird.f32 %v2006_v5  ;;  %v830_v35 = vand.u32 2147483648, %v818_v10 }
 0x21c   :  { %v800_v22 = vmul.f32 %v2008_v26, %v798_v8  ;;  %2011 = vtanh.f32 %v748_v11  ;;  %vm805_vm1 = vweird.f32 %v2008_v26  ;;  %vm787_vm4 = vmor %vm785_vm2, %vm786_vm14  ;;  %vm824_vm9 = vweird.f32 %v818_v10  ;;  %v2826_v11 = vld [vmem:[%s3161_s6 + $0xf0] sm:$0xff] }
 0x21d   :  { %v782_v21 = vsub.f32 1.0, %v781_v25  ;;  %vm806_vm5 = vmor %vm804_vm3, %vm805_vm1  ;;  %v828_v27 = vand.u32 2147483647, %v818_v10  ;;  %v831_v7 = vor.u32 1.1754944e-38, %v830_v35  ;;  %v2845_v25 = vld [vmem:[%s3161_s6 + $0xe8] sm:$0xff] }
 0x21e   :  { %v801_v44 = vsub.f32 1.0, %v800_v22  ;;  %v2851_v22 = vld [vmem:[%s3161_s6 + $0x20] sm:$0xff] }
 0x21f   :  { %v783_v15 = vmul.f32 %v2006_v5, %v782_v21  ;;  %vm829_vm11 = vcmp.eq.f32.partialorder %v828_v27, 8.507059e+37  ;;  %v2864_v21 = vld [vmem:[%s3161_s6 + $0xe0] sm:$0xff] }
 0x220   :  { %v802_v48 = vmul.f32 %v2008_v26, %v801_v44  ;;  %v2870_v44 = vld [vmem:[%s3161_s6 + $0x18] sm:$0xff] }
 0x221   :  { %v2010_v17 = vpop.eup %2009  ;;  %v784_v4 = vadd.f32 %v2006_v5, %v783_v15 }
 0x222   :  { %v803_v6 = vadd.f32 %v2008_v26, %v802_v48  ;;  %v820_v30 = vmul.f32 %v2010_v17, %v818_v10  ;;  %v2012_v36 = vpop.eup %2011  ;;  %vm825_vm8 = vweird.f32 %v2010_v17  ;;  %v2801_v10 = vld [vmem:[%s3161_s6 + $0xb8] sm:$0xff] }
 0x223   :  { %v788_v34 = vsel %vm787_vm4, %v2006_v5, %v784_v4  ;;  %vm826_vm10 = vmor %vm824_vm9, %vm825_vm8  ;;  %v2807_v5 = vld [vmem:[%s3161_s6 + $0xf8] sm:$0xff] }
 0x224   :  { %v793_v37 = vsel %vm790_vm6, %v792_v16, %v788_v34  ;;  %v807_v38 = vsel %vm806_vm5, %v2008_v26, %v803_v6  ;;  %v821_v39 = vsub.f32 1.0, %v820_v30  ;;  %v2832_v26 = vld [vmem:[%s3161_s6 + $0x28] sm:$0xff] }
 0x225   :  { %v812_v41 = vsel %vm809_vm7, %v811_v33, %v807_v38  ;;  %v838_v42 = vmul.f32 %v2012_v36, %v793_v37 }
 0x226   :  { %v837_v43 = vmul.f32 %v835_v32, %v812_v41  ;;  %v822_v45 = vmul.f32 %v2010_v17, %v821_v39 }
 0x228   :  { %v2783_v46 = vadd.f32 %v838_v42, %v837_v43  ;;  %v823_v47 = vadd.f32 %v2010_v17, %v822_v45 }
 0x22a   :  { %2013 = vtanh.f32 %v2783_v46  ;;  %v827_v18 = vsel %vm826_vm10, %v2010_v17, %v823_v47  ;;  %v1015_v27 = vrot.slane %v2783_v46, 6 }
 0x22b   :  { %v832_v8 = vsel %vm829_vm11, %v831_v7, %v827_v18 }
 0x230   :  { %v2014_v59 = vpop.eup %2013 }
 0x231   :  { %v841_v20 = vmul.f32 %v2014_v59, %v832_v8 }
 0x233   :  { %843 = vst.msk [vmem:[#allocation2] sm:$0x30] %vm842_vm12, %v841_v20  ;;  %v848_v29 = vrot.slane %v841_v20, 4 }
 0x235   :  { %1922 = vmatmul.msk.f32.vlgmr.msra.gmra.mxu0 %vm325_vm15, %v848_v29  ;;  %1923 = vmatmul.msk.f32.vlgmr.msra.gmra.mxu1 %vm325_vm15, %v848_v29 }
 0x236   :  { %1924 = vmatmul.msk.f32.vlgmr.msrb.gmra.mxu2 %vm325_vm15, %v848_v29  ;;  %1925 = vmatmul.msk.f32.vlgmr.msrb.gmra.mxu3 %vm325_vm15, %v848_v29 }
 0x237   :  { %1195 = vmatpush.msra.mxu0 %v2794_v9  ;;  %1220 = vmatpush.msra.mxu1 %v2419_v49  ;;  %v2820_v49 = vld [vmem:[%s3161_s6 + $0xb0] sm:$0xff] }
 0x238   :  { %1245 = vmatpush.msrb.mxu2 %v2801_v10  ;;  %1270 = vmatpush.msrb.mxu3 %v2807_v5 }
 0x239   :  { %1196 = vmatpush.msra.mxu0 %v2813_v23  ;;  %1221 = vmatpush.msra.mxu1 %v2450_v54  ;;  %v2839_v54 = vld [vmem:[%s3161_s6 + $0xa8] sm:$0xff] }
 0x23a   :  { %1246 = vmatpush.msrb.mxu2 %v2820_v49  ;;  %1271 = vmatpush.msrb.mxu3 %v2826_v11 }
 0x23b   :  { %1197 = vmatpush.msra.mxu0 %v2832_v26  ;;  %1222 = vmatpush.msra.mxu1 %v2469_v57  ;;  %v2858_v57 = vld [vmem:[%s3161_s6 + $0xa0] sm:$0xff] }
 0x23c   :  { %1247 = vmatpush.msrb.mxu2 %v2839_v54  ;;  %1272 = vmatpush.msrb.mxu3 %v2845_v25 }
 0x23d   :  { %1198 = vmatpush.msra.mxu0 %v2851_v22  ;;  %1223 = vmatpush.msra.mxu1 %v2487_v61  ;;  %v2879_v61 = vld [vmem:[%s3161_s6 + $0x10] sm:$0xff] }
 0x23e   :  { %1248 = vmatpush.msrb.mxu2 %v2858_v57  ;;  %1273 = vmatpush.msrb.mxu3 %v2864_v21 }
 0x23f   :  { %1199 = vmatpush.msra.mxu0 %v2870_v44  ;;  %1224 = vmatpush.msra.mxu1 %v2508_v0  ;;  %v3193_v0 = vld [vmem:[#allocation8_spill] sm:$0xff] }
 0x240   :  { %1249 = vmatpush.msrb.mxu2 %v2438_v52  ;;  %1274 = vmatpush.msrb.mxu3 %v2433_v51 }
 0x241   :  { %1200 = vmatpush.msra.mxu0 %v2879_v61  ;;  %1225 = vmatpush.msra.mxu1 %v2516_v1  ;;  %v3194_v1 = vld [vmem:[#allocation17_spill] sm:$0xff] }
 0x242   :  { %1250 = vmatpush.msrb.mxu2 %v2464_v56  ;;  %1275 = vmatpush.msrb.mxu3 %v2457_v55 }
 0x243   :  { %1201 = vmatpush.msra.mxu0 %v2426_v50  ;;  %1226 = vmatpush.msra.mxu1 %v2522_v2 }
 0x244   :  { %1251 = vmatpush.msrb.mxu2 %v2482_v60  ;;  %1276 = vmatpush.msrb.mxu3 %v2476_v58 }
 0x245   :  { %1202 = vmatpush.msra.mxu0 %v2445_v53  ;;  %1227 = vmatpush.msra.mxu1 %v2531_v3 }
 0x246   :  { %1252 = vmatpush.msrb.mxu2 %v2500_v63  ;;  %1277 = vmatpush.msrb.mxu3 %v2494_v62 }
 0x2b2   :  { %v868_v51 = vpop.f32.mrf.mxu0  ;;  %v895_v52 = vpop.f32.mrf.mxu1 }
 0x2b3   :  { %v872_v56 = vrot.slane %v868_v51, 2  ;;  %v899_v55 = vrot.slane %v895_v52, 2 }
 0x2b5   :  { %v874_v50 = vadd.f32 %v872_v56, %v3193_v0  ;;  %v901_v2 = vadd.f32 %v899_v55, %v3194_v1 }
 0x2b7   :  { %v1926_v40 = vmul.f32 -1.442695, %v874_v50  ;;  %v1927_v60 = vmul.f32 -1.442695, %v901_v2 }
 0x2b9   :  { %2015 = vpow2.f32 %v1926_v40  ;;  %v949_v58 = vpop.f32.mrf.mxu3  ;;  %v922_v48 = vpop.f32.mrf.mxu2 }
 0x2ba   :  { %2017 = vpow2.f32 %v1927_v60  ;;  %v953_v53 = vrot.slane %v949_v58, 2  ;;  %v926_v12 = vrot.slane %v922_v48, 2  ;;  %v2952_v48 = vld [vmem:[%s3161_s6 + $0x98] sm:$0xff] }
 0x2bc   :  { %v955_v3 = vadd.f32 %v953_v53, %v2662_v28  ;;  %v928_v6 = vadd.f32 %v926_v12, %v2660_v19  ;;  %v2958_v12 = vld [vmem:[%s3161_s6 + $0xd8] sm:$0xff] }
 0x2be   :  { %v1928_v14 = vmul.f32 -1.442695, %v955_v3 }
 0x2bf   :  { %v2016_v63 = vpop.eup %2015 }
 0x2c0   :  { %v2018_v15 = vpop.eup %2017  ;;  %v959_v62 = vadd.f32 1.0, %v2016_v63  ;;  %2019 = vpow2.f32 %v1928_v14  ;;  %v2910_v14 = vld [vmem:[%s3161_s6 + $0x78] sm:$0xff]  ;;  %v2919_v63 = vld [vmem:[%s3161_s6 + $0x70] sm:$0xff] }
 0x2c1   :  { %v978_v13 = vadd.f32 1.0, %v2018_v15  ;;  %v2928_v15 = vld [vmem:[%s3161_s6 + $0x68] sm:$0xff] }
 0x2c2   :  { %2021 = vrcp.f32 %v959_v62  ;;  %v971_v36 = vand.u32 2147483648, %v959_v62  ;;  %v969_v39 = vand.u32 2147483647, %v959_v62  ;;  %vm965_vm2 = vweird.f32 %v959_v62 }
 0x2c3   :  { %2023 = vrcp.f32 %v978_v13  ;;  %v990_v37 = vand.u32 2147483648, %v978_v13  ;;  %v988_v42 = vand.u32 2147483647, %v978_v13  ;;  %vm984_vm3 = vweird.f32 %v978_v13 }
 0x2c4   :  { %v972_v19 = vor.u32 1.1754944e-38, %v971_v36  ;;  %vm970_vm6 = vcmp.eq.f32.partialorder %v969_v39, 8.507059e+37  ;;  %v3019_v36 = vld [vmem:[%s3161_s6 + $0x80] sm:$0xff] }
 0x2c5   :  { %v991_v18 = vor.u32 1.1754944e-38, %v990_v37  ;;  %vm989_vm7 = vcmp.eq.f32.partialorder %v988_v42, 8.507059e+37  ;;  %v3025_v37 = vld [vmem:[%s3161_s6 + $0xc0] sm:$0xff] }
 0x2c6   :  { %v2020_v17 = vpop.eup %2019 }
 0x2c7   :  { %v998_v4 = vadd.f32 1.0, %v2020_v17  ;;  %v2965_v17 = vld [vmem:[%s3161_s6 + $0x50] sm:$0xff] }
 0x2c8   :  { %v2022_v16 = vpop.eup %2021 }
 0x2c9   :  { %v2024_v30 = vpop.eup %2023  ;;  %v961_v32 = vmul.f32 %v2022_v16, %v959_v62  ;;  %2025 = vrcp.f32 %v998_v4  ;;  %vm966_vm14 = vweird.f32 %v2022_v16  ;;  %v1010_v46 = vand.u32 2147483648, %v998_v4  ;;  %v2937_v62 = vld [vmem:[%s3161_s6 + $0x60] sm:$0xff] }
 0x2ca   :  { %v980_v33 = vmul.f32 %v2024_v30, %v978_v13  ;;  %2027 = vtanh.f32 %v928_v6  ;;  %vm985_vm1 = vweird.f32 %v2024_v30  ;;  %vm967_vm4 = vmor %vm965_vm2, %vm966_vm14  ;;  %vm1004_vm9 = vweird.f32 %v998_v4  ;;  %v2946_v13 = vld [vmem:[%s3161_s6 + $0x58] sm:$0xff]  ;;  %v2983_v6 = vld [vmem:[%s3161_s6 + $0x8] sm:$0xff] }
 0x2cb   :  { %v962_v28 = vsub.f32 1.0, %v961_v32  ;;  %vm986_vm5 = vmor %vm984_vm3, %vm985_vm1  ;;  %v1008_v1 = vand.u32 2147483647, %v998_v4  ;;  %v1011_v40 = vor.u32 1.1754944e-38, %v1010_v46  ;;  %vm1022_vm14 = vcmask 523270   ;;  %v2995_v32 = vld [vmem:[%s3161_s6 + $0x88] sm:$0xff] }
 0x2cc   :  { %v981_v34 = vsub.f32 1.0, %v980_v33  ;;  %v3001_v33 = vld [vmem:[%s3161_s6 + $0xc8] sm:$0xff] }
 0x2cd   :  { %v963_v38 = vmul.f32 %v2022_v16, %v962_v28  ;;  %vm1009_vm11 = vcmp.eq.f32.partialorder %v1008_v1, 8.507059e+37  ;;  %v3007_v28 = vld [vmem:[%s3161_s6] sm:$0xff] }
 0x2ce   :  { %v982_v41 = vmul.f32 %v2024_v30, %v981_v34  ;;  %v3013_v34 = vld [vmem:[%s3161_s6 + $0x40] sm:$0xff] }
 0x2cf   :  { %v2026_v43 = vpop.eup %2025  ;;  %v964_v45 = vadd.f32 %v2022_v16, %v963_v38 }
 0x2d0   :  { %v983_v47 = vadd.f32 %v2024_v30, %v982_v41  ;;  %v1000_v35 = vmul.f32 %v2026_v43, %v998_v4  ;;  %v2028_v59 = vpop.eup %2027  ;;  %vm1005_vm8 = vweird.f32 %v2026_v43  ;;  %v2971_v4 = vld [vmem:[%s3161_s6 + $0x90] sm:$0xff] }
 0x2d1   :  { %v968_v7 = vsel %vm967_vm4, %v2022_v16, %v964_v45  ;;  %vm1006_vm10 = vmor %vm1004_vm9, %vm1005_vm8  ;;  %v2977_v16 = vld [vmem:[%s3161_s6 + $0xd0] sm:$0xff] }
 0x2d2   :  { %v973_v8 = vsel %vm970_vm6, %v972_v19, %v968_v7  ;;  %v987_v20 = vsel %vm986_vm5, %v2024_v30, %v983_v47  ;;  %v1001_v29 = vsub.f32 1.0, %v1000_v35  ;;  %v2989_v30 = vld [vmem:[%s3161_s6 + $0x48] sm:$0xff]  ;;  %v3195_v41 = vld [vmem:[#allocation6_spill] sm:$0xff] }
 0x2d3   :  { %v992_v51 = vsel %vm989_vm7, %v991_v18, %v987_v20  ;;  %v1018_v52 = vmul.f32 %v2028_v59, %v973_v8 }
 0x2d4   :  { %v1017_v56 = vmul.f32 %v1015_v27, %v992_v51  ;;  %v1002_v55 = vmul.f32 %v2026_v43, %v1001_v29  ;;  %v3197_v27 = vld [vmem:[#allocation20_spill] sm:$0xff] }
 0x2d6   :  { %v2898_v0 = vadd.f32 %v1018_v52, %v1017_v56  ;;  %v1003_v50 = vadd.f32 %v2026_v43, %v1002_v55 }
 0x2d8   :  { %2029 = vtanh.f32 %v2898_v0  ;;  %v1007_v2 = vsel %vm1006_vm10, %v2026_v43, %v1003_v50  ;;  %v3196_v43 = vld [vmem:[#allocation18_spill] sm:$0xff]  ;;  %v3198_v50 = vld [vmem:[#allocation19_spill] sm:$0xff] }
 0x2d9   :  { %v1012_v58 = vsel %vm1009_vm11, %v1011_v40, %v1007_v2 }
 0x2de   :  { %v2030_v60 = vpop.eup %2029 }
 0x2df   :  { %v1021_v53 = vmul.f32 %v2030_v60, %v1012_v58 }
 0x2e1   :  { %1023 = vst.msk [vmem:[#allocation2] sm:$0xc0] %vm1022_vm14, %v1021_v53  ;;  %v1026_v3 = vrot.slane %v1021_v53, 6 }
 0x2e3   :  { %1929 = vmatmul.msk.f32.vlgmr.msrb.gmra.mxu0 %vm325_vm15, %v1026_v3  ;;  %1930 = vmatmul.msk.f32.vlgmr.msrb.gmra.mxu1 %vm325_vm15, %v1026_v3 }
 0x2e4   :  { %1931 = vmatmul.msk.f32.vlgmr.msra.gmra.mxu2 %vm325_vm15, %v1026_v3  ;;  %1932 = vmatmul.msk.f32.vlgmr.msra.gmra.mxu3 %vm325_vm15, %v1026_v3 }
 0x2e5   :  { %1366 = vmatpush.msrb.mxu0 %v2794_v9  ;;  %1391 = vmatpush.msrb.mxu1 %v2910_v14 }
 0x2e6   :  { %1416 = vmatpush.msra.mxu2 %v2801_v10  ;;  %1441 = vmatpush.msra.mxu3 %v2807_v5 }
 0x2e7   :  { %1367 = vmatpush.msrb.mxu0 %v2813_v23  ;;  %1392 = vmatpush.msrb.mxu1 %v2919_v63 }
 0x2e8   :  { %1417 = vmatpush.msra.mxu2 %v2820_v49  ;;  %1442 = vmatpush.msra.mxu3 %v2826_v11 }
 0x2e9   :  { %1368 = vmatpush.msrb.mxu0 %v2832_v26  ;;  %1393 = vmatpush.msrb.mxu1 %v2928_v15 }
 0x2ea   :  { %1418 = vmatpush.msra.mxu2 %v2839_v54  ;;  %1443 = vmatpush.msra.mxu3 %v2845_v25 }
 0x2eb   :  { %1369 = vmatpush.msrb.mxu0 %v2851_v22  ;;  %1394 = vmatpush.msrb.mxu1 %v2937_v62 }
 0x2ec   :  { %1419 = vmatpush.msra.mxu2 %v2858_v57  ;;  %1444 = vmatpush.msra.mxu3 %v2864_v21 }
 0x2ed   :  { %1370 = vmatpush.msrb.mxu0 %v2870_v44  ;;  %1395 = vmatpush.msrb.mxu1 %v2946_v13 }
 0x2ee   :  { %1420 = vmatpush.msra.mxu2 %v2952_v48  ;;  %1445 = vmatpush.msra.mxu3 %v2958_v12 }
 0x2ef   :  { %1371 = vmatpush.msrb.mxu0 %v2879_v61  ;;  %1396 = vmatpush.msrb.mxu1 %v2965_v17 }
 0x2f0   :  { %1421 = vmatpush.msra.mxu2 %v2971_v4  ;;  %1446 = vmatpush.msra.mxu3 %v2977_v16 }
 0x2f1   :  { %1372 = vmatpush.msrb.mxu0 %v2983_v6  ;;  %1397 = vmatpush.msrb.mxu1 %v2989_v30 }
 0x2f2   :  { %1422 = vmatpush.msra.mxu2 %v2995_v32  ;;  %1447 = vmatpush.msra.mxu3 %v3001_v33 }
 0x2f3   :  { %1373 = vmatpush.msrb.mxu0 %v3007_v28  ;;  %1398 = vmatpush.msrb.mxu1 %v3013_v34 }
 0x2f4   :  { %1423 = vmatpush.msra.mxu2 %v3019_v36  ;;  %1448 = vmatpush.msra.mxu3 %v3025_v37 }
 0x360   :  { %v1046_v38 = vpop.f32.mrf.mxu0  ;;  %v1068_v39 = vpop.f32.mrf.mxu1 }
 0x361   :  { %v1049_v42 = vadd.f32 %v1046_v38, %v3195_v41  ;;  %v1071_v45 = vadd.f32 %v1068_v39, %v3196_v43 }
 0x363   :  { %v1933_v19 = vmul.f32 -1.442695, %v1049_v42  ;;  %v1934_v47 = vmul.f32 -1.442695, %v1071_v45 }
 0x365   :  { %2031 = vpow2.f32 %v1933_v19 }
 0x366   :  { %2033 = vpow2.f32 %v1934_v47 }
 0x367   :  { %v1112_v35 = vpop.f32.mrf.mxu3  ;;  %v1090_v51 = vpop.f32.mrf.mxu2 }
 0x368   :  { %v1115_v18 = vadd.f32 %v1112_v35, %v3197_v27  ;;  %v1093_v46 = vadd.f32 %v1090_v51, %v3198_v50 }
 0x36a   :  { %v1935_v7 = vmul.f32 -1.442695, %v1115_v18 }
 0x36b   :  { %v2032_v59 = vpop.eup %2031 }
 0x36c   :  { %v2034_v8 = vpop.eup %2033  ;;  %v1119_v20 = vadd.f32 1.0, %v2032_v59  ;;  %2035 = vpow2.f32 %v1935_v7  ;;  %v1175_v7 = vrot.slane %v2898_v0, 6 }
 0x36d   :  { %v1138_v29 = vadd.f32 1.0, %v2034_v8 }
 0x36e   :  { %2037 = vrcp.f32 %v1119_v20  ;;  %v1131_v53 = vand.u32 2147483648, %v1119_v20  ;;  %v1129_v39 = vand.u32 2147483647, %v1119_v20  ;;  %vm1125_vm3 = vweird.f32 %v1119_v20 }
 0x36f   :  { %2039 = vrcp.f32 %v1138_v29  ;;  %v1150_v3 = vand.u32 2147483648, %v1138_v29  ;;  %v1148_v42 = vand.u32 2147483647, %v1138_v29  ;;  %vm1144_vm4 = vweird.f32 %v1138_v29 }
 0x370   :  { %v1132_v19 = vor.u32 1.1754944e-38, %v1131_v53  ;;  %vm1130_vm7 = vcmp.eq.f32.partialorder %v1129_v39, 8.507059e+37 }
 0x371   :  { %v1151_v27 = vor.u32 1.1754944e-38, %v1150_v3  ;;  %vm1149_vm8 = vcmp.eq.f32.partialorder %v1148_v42, 8.507059e+37 }
 0x372   :  { %v2036_v52 = vpop.eup %2035 }
 0x373   :  { %v1158_v56 = vadd.f32 1.0, %v2036_v52 }
 0x374   :  { %v2038_v55 = vpop.eup %2037 }
 0x375   :  { %v2040_v1 = vpop.eup %2039  ;;  %v1121_v2 = vmul.f32 %v2038_v55, %v1119_v20  ;;  %2041 = vrcp.f32 %v1158_v56  ;;  %vm1126_vm1 = vweird.f32 %v2038_v55  ;;  %vm1164_vm10 = vweird.f32 %v1158_v56 }
 0x376   :  { %v1140_v40 = vmul.f32 %v2040_v1, %v1138_v29  ;;  %2043 = vtanh.f32 %v1093_v46  ;;  %vm1145_vm2 = vweird.f32 %v2040_v1  ;;  %vm1127_vm5 = vmor %vm1125_vm3, %vm1126_vm1 }
 0x377   :  { %v1122_v60 = vsub.f32 1.0, %v1121_v2  ;;  %vm1146_vm6 = vmor %vm1144_vm4, %vm1145_vm2 }
 0x378   :  { %v1141_v58 = vsub.f32 1.0, %v1140_v40 }
 0x379   :  { %v1123_v38 = vmul.f32 %v2038_v55, %v1122_v60  ;;  %v1170_v60 = vand.u32 2147483648, %v1158_v56 }
 0x37a   :  { %v1142_v41 = vmul.f32 %v2040_v1, %v1141_v58 }
 0x37b   :  { %v2042_v43 = vpop.eup %2041  ;;  %v1124_v45 = vadd.f32 %v2038_v55, %v1123_v38  ;;  %v1171_v58 = vor.u32 1.1754944e-38, %v1170_v60 }
 0x37c   :  { %v1143_v47 = vadd.f32 %v2040_v1, %v1142_v41  ;;  %v1160_v35 = vmul.f32 %v2042_v43, %v1158_v56  ;;  %v2044_v59 = vpop.eup %2043  ;;  %vm1165_vm9 = vweird.f32 %v2042_v43 }
 0x37d   :  { %v1128_v18 = vsel %vm1127_vm5, %v2038_v55, %v1124_v45  ;;  %v1168_v55 = vand.u32 2147483647, %v1158_v56  ;;  %vm1166_vm11 = vmor %vm1164_vm10, %vm1165_vm9 }
 0x37e   :  { %v1133_v8 = vsel %vm1130_vm7, %v1132_v19, %v1128_v18  ;;  %v1147_v51 = vsel %vm1146_vm6, %v2040_v1, %v1143_v47  ;;  %v1161_v52 = vsub.f32 1.0, %v1160_v35 }
 0x37f   :  { %v1152_v50 = vsel %vm1149_vm8, %v1151_v27, %v1147_v51  ;;  %v1178_v46 = vmul.f32 %v2044_v59, %v1133_v8  ;;  %vm1169_vm1 = vcmp.eq.f32.partialorder %v1168_v55, 8.507059e+37 }
 0x380   :  { %v1177_v2 = vmul.f32 %v1175_v7, %v1152_v50  ;;  %v1162_v20 = vmul.f32 %v2042_v43, %v1161_v52 }
 0x382   :  { %v3033_v29 = vadd.f32 %v1178_v46, %v1177_v2  ;;  %v1163_v40 = vadd.f32 %v2042_v43, %v1162_v20 }
 0x384   :  { %2045 = vtanh.f32 %v3033_v29  ;;  %v1167_v0 = vsel %vm1166_vm11, %v2042_v43, %v1163_v40  ;;  %v1345_v45 = vrot.slane %v3033_v29, 6 }
 0x385   :  { %v1172_v53 = vsel %vm1169_vm1, %v1171_v58, %v1167_v0 }
 0x38a   :  { %v2046_v1 = vpop.eup %2045 }
 0x38b   :  { %v1181_v3 = vmul.f32 %v2046_v1, %v1172_v53 }
 0x38d   :  { %1182 = vst.msk [vmem:[#allocation2 + $0x8] sm:$0x3] %vm479_vm0, %v1181_v3  ;;  %1936 = vmatmul.msk.f32.vlgmr.msra.gmra.mxu0 %vm325_vm15, %v1181_v3  ;;  %1937 = vmatmul.msk.f32.vlgmr.msra.gmra.mxu1 %vm325_vm15, %v1181_v3 }
 0x38e   :  { %1938 = vmatmul.msk.f32.vlgmr.msrb.gmra.mxu2 %vm325_vm15, %v1181_v3  ;;  %1939 = vmatmul.msk.f32.vlgmr.msrb.gmra.mxu3 %vm325_vm15, %v1181_v3 }
 0x38f   :  { %1537 = vmatpush.msra.mxu0 %v2794_v9  ;;  %1562 = vmatpush.msra.mxu1 %v2910_v14 }
 0x390   :  { %1587 = vmatpush.msrb.mxu2 %v2801_v10  ;;  %1612 = vmatpush.msrb.mxu3 %v2807_v5 }
 0x391   :  { %1538 = vmatpush.msra.mxu0 %v2813_v23  ;;  %1563 = vmatpush.msra.mxu1 %v2919_v63 }
 0x392   :  { %1588 = vmatpush.msrb.mxu2 %v2820_v49  ;;  %1613 = vmatpush.msrb.mxu3 %v2826_v11  ;;  %v3199_v49 = vld [vmem:[#allocation9_spill] sm:$0xff] }
 0x393   :  { %1539 = vmatpush.msra.mxu0 %v2832_v26  ;;  %1564 = vmatpush.msra.mxu1 %v2928_v15 }
 0x394   :  { %1589 = vmatpush.msrb.mxu2 %v2839_v54  ;;  %1614 = vmatpush.msrb.mxu3 %v2845_v25 }
 0x395   :  { %1540 = vmatpush.msra.mxu0 %v2851_v22  ;;  %1565 = vmatpush.msra.mxu1 %v2937_v62 }
 0x396   :  { %1590 = vmatpush.msrb.mxu2 %v2858_v57  ;;  %1615 = vmatpush.msrb.mxu3 %v2864_v21 }
 0x397   :  { %1541 = vmatpush.msra.mxu0 %v2870_v44  ;;  %1566 = vmatpush.msra.mxu1 %v2946_v13 }
 0x398   :  { %1591 = vmatpush.msrb.mxu2 %v2952_v48  ;;  %1616 = vmatpush.msrb.mxu3 %v2958_v12 }
 0x399   :  { %1542 = vmatpush.msra.mxu0 %v2879_v61  ;;  %1567 = vmatpush.msra.mxu1 %v2965_v17  ;;  %v3200_v17 = vld [vmem:[#allocation21_spill] sm:$0xff] }
 0x39a   :  { %1592 = vmatpush.msrb.mxu2 %v2971_v4  ;;  %1617 = vmatpush.msrb.mxu3 %v2977_v16 }
 0x39b   :  { %1543 = vmatpush.msra.mxu0 %v2983_v6  ;;  %1568 = vmatpush.msra.mxu1 %v2989_v30 }
 0x39c   :  { %1593 = vmatpush.msrb.mxu2 %v2995_v32  ;;  %1618 = vmatpush.msrb.mxu3 %v3001_v33 }
 0x39d   :  { %1544 = vmatpush.msra.mxu0 %v3007_v28  ;;  %1569 = vmatpush.msra.mxu1 %v3013_v34 }
 0x39e   :  { %1594 = vmatpush.msrb.mxu2 %v3019_v36  ;;  %1619 = vmatpush.msrb.mxu3 %v3025_v37 }
 0x40a   :  { %v1204_v9 = vpop.f32.mrf.mxu0  ;;  %v1229_v10 = vpop.f32.mrf.mxu1 }
 0x40b   :  { %v1208_v5 = vrot.slane %v1204_v9, 6  ;;  %v1233_v23 = vrot.slane %v1229_v10, 6  ;;  %v3201_v10 = vld [vmem:[#allocation10_spill] sm:$0xff] }
 0x40d   :  { %v1210_v11 = vadd.f32 %v1208_v5, %v3199_v49  ;;  %v1235_v26 = vadd.f32 %v1233_v23, %v2665_v24  ;;  %v3202_v23 = vld [vmem:[#allocation22_spill] sm:$0xff] }
 0x40f   :  { %v1940_v54 = vmul.f32 -1.442695, %v1210_v11  ;;  %v1941_v25 = vmul.f32 -1.442695, %v1235_v26 }
 0x411   :  { %2047 = vpow2.f32 %v1940_v54  ;;  %v1279_v22 = vpop.f32.mrf.mxu3  ;;  %v1254_v62 = vpop.f32.mrf.mxu2  ;;  %v1704_v54 = vld [vmem:[%s3162_s7 + $0x38] sm:$0xff] }
 0x412   :  { %2049 = vpow2.f32 %v1941_v25  ;;  %v1283_v57 = vrot.slane %v1279_v22, 6  ;;  %v1258_v13 = vrot.slane %v1254_v62, 6  ;;  %v1703_v25 = vld [vmem:[%s3162_s7 + $0x30] sm:$0xff] }
 0x414   :  { %v1285_v21 = vadd.f32 %v1283_v57, %v2671_v31  ;;  %v1260_v4 = vadd.f32 %v1258_v13, %v3200_v17  ;;  %v1700_v17 = vld [vmem:[%s3162_s7 + $0x18] sm:$0xff] }
 0x416   :  { %v1942_v44 = vmul.f32 -1.442695, %v1285_v21  ;;  %v1702_v21 = vld [vmem:[%s3162_s7 + $0x28] sm:$0xff] }
 0x417   :  { %v2048_v61 = vpop.eup %2047 }
 0x418   :  { %v2050_v14 = vpop.eup %2049  ;;  %v1289_v63 = vadd.f32 1.0, %v2048_v61  ;;  %2051 = vpow2.f32 %v1942_v44  ;;  %v3203_v44 = vld [vmem:[#allocation24_spill] sm:$0xff] }
 0x419   :  { %v1308_v15 = vadd.f32 1.0, %v2050_v14  ;;  %v1701_v14 = vld [vmem:[%s3162_s7 + $0x20] sm:$0xff] }
 0x41a   :  { %2053 = vrcp.f32 %v1289_v63  ;;  %v1301_v33 = vand.u32 2147483648, %v1289_v63  ;;  %v1299_v36 = vand.u32 2147483647, %v1289_v63  ;;  %vm1295_vm3 = vweird.f32 %v1289_v63 }
 0x41b   :  { %2055 = vrcp.f32 %v1308_v15  ;;  %v1320_v28 = vand.u32 2147483648, %v1308_v15  ;;  %v1318_v56 = vand.u32 2147483647, %v1308_v15  ;;  %vm1314_vm4 = vweird.f32 %v1308_v15 }
 0x41c   :  { %v1302_v41 = vor.u32 1.1754944e-38, %v1301_v33  ;;  %vm1300_vm7 = vcmp.eq.f32.partialorder %v1299_v36, 8.507059e+37 }
 0x41d   :  { %v1321_v19 = vor.u32 1.1754944e-38, %v1320_v28  ;;  %vm1319_vm8 = vcmp.eq.f32.partialorder %v1318_v56, 8.507059e+37  ;;  %v1697_v28 = vld [vmem:[%s3162_s7] sm:$0xff] }
 0x41e   :  { %v2052_v48 = vpop.eup %2051 }
 0x41f   :  { %v1328_v24 = vadd.f32 1.0, %v2052_v48 }
 0x420   :  { %v2054_v12 = vpop.eup %2053 }
 0x421   :  { %v2056_v16 = vpop.eup %2055  ;;  %v1291_v6 = vmul.f32 %v2054_v12, %v1289_v63  ;;  %2057 = vrcp.f32 %v1328_v24  ;;  %vm1296_vm0 = vweird.f32 %v2054_v12  ;;  %v1340_v2 = vand.u32 2147483648, %v1328_v24 }
 0x422   :  { %v1310_v30 = vmul.f32 %v2056_v16, %v1308_v15  ;;  %2059 = vtanh.f32 %v1260_v4  ;;  %vm1315_vm2 = vweird.f32 %v2056_v16  ;;  %vm1297_vm5 = vmor %vm1295_vm3, %vm1296_vm0  ;;  %vm1334_vm10 = vweird.f32 %v1328_v24  ;;  %v1699_v4 = vld [vmem:[%s3162_s7 + $0x10] sm:$0xff] }
 0x423   :  { %v1292_v31 = vsub.f32 1.0, %v1291_v6  ;;  %vm1316_vm6 = vmor %vm1314_vm4, %vm1315_vm2  ;;  %v1338_v20 = vand.u32 2147483647, %v1328_v24  ;;  %v1341_v40 = vor.u32 1.1754944e-38, %v1340_v2  ;;  %v1698_v6 = vld [vmem:[%s3162_s7 + $0x8] sm:$0xff] }
 0x424   :  { %v1311_v32 = vsub.f32 1.0, %v1310_v30 }
 0x425   :  { %v1293_v34 = vmul.f32 %v2054_v12, %v1292_v31  ;;  %vm1339_vm1 = vcmp.eq.f32.partialorder %v1338_v20, 8.507059e+37 }
 0x426   :  { %v1312_v37 = vmul.f32 %v2056_v16, %v1311_v32  ;;  %v3204_v32 = vld [vmem:[#allocation23_spill] sm:$0xff] }
 0x427   :  { %v2058_v38 = vpop.eup %2057  ;;  %v1294_v39 = vadd.f32 %v2054_v12, %v1293_v34 }
 0x428   :  { %v1313_v42 = vadd.f32 %v2056_v16, %v1312_v37  ;;  %v1330_v43 = vmul.f32 %v2058_v38, %v1328_v24  ;;  %v2060_v35 = vpop.eup %2059  ;;  %vm1335_vm9 = vweird.f32 %v2058_v38 }
 0x429   :  { %v1298_v47 = vsel %vm1297_vm5, %v2054_v12, %v1294_v39  ;;  %vm1336_vm11 = vmor %vm1334_vm10, %vm1335_vm9 }
 0x42a   :  { %v1303_v27 = vsel %vm1300_vm7, %v1302_v41, %v1298_v47  ;;  %v1317_v18 = vsel %vm1316_vm6, %v2056_v16, %v1313_v42  ;;  %v1331_v7 = vsub.f32 1.0, %v1330_v43 }
 0x42b   :  { %v1322_v59 = vsel %vm1319_vm8, %v1321_v19, %v1317_v18  ;;  %v1348_v8 = vmul.f32 %v2060_v35, %v1303_v27 }
 0x42c   :  { %v1347_v51 = vmul.f32 %v1345_v45, %v1322_v59  ;;  %v1332_v52 = vmul.f32 %v2058_v38, %v1331_v7 }
 0x42e   :  { %v3078_v50 = vadd.f32 %v1348_v8, %v1347_v51  ;;  %v1333_v46 = vadd.f32 %v2058_v38, %v1332_v52 }
 0x430   :  { %2061 = vtanh.f32 %v3078_v50  ;;  %v1337_v29 = vsel %vm1336_vm11, %v2058_v38, %v1333_v46  ;;  %v1516_v59 = vrot.slane %v3078_v50, 6 }
 0x431   :  { %v1342_v55 = vsel %vm1339_vm1, %v1341_v40, %v1337_v29 }
 0x436   :  { %v2062_v60 = vpop.eup %2061 }
 0x437   :  { %v1351_v0 = vmul.f32 %v2062_v60, %v1342_v55 }
 0x439   :  { %1352 = vst.msk [vmem:[#allocation2 + $0x8] sm:$0xc] %vm662_vm13, %v1351_v0  ;;  %v1355_v58 = vrot.slane %v1351_v0, 2 }
 0x43b   :  { %1943 = vmatmul.msk.f32.vlgmr.msrb.gmra.mxu0 %vm325_vm15, %v1355_v58  ;;  %1944 = vmatmul.msk.f32.vlgmr.msrb.gmra.mxu1 %vm325_vm15, %v1355_v58 }
 0x43c   :  { %1945 = vmatmul.msk.f32.vlgmr.msra.gmra.mxu2 %vm325_vm15, %v1355_v58  ;;  %1946 = vmatmul.msk.f32.vlgmr.msra.gmra.mxu3 %vm325_vm15, %v1355_v58 }
 0x43d   :  { %1723 = vmatpush.msrb.mxu0 %v1704_v54 }
 0x43f   :  { %1724 = vmatpush.msrb.mxu0 %v1703_v25 }
 0x441   :  { %1725 = vmatpush.msrb.mxu0 %v1702_v21  ;;  %v3206_v21 = vld [vmem:[#allocation25_spill] sm:$0xff] }
 0x443   :  { %1726 = vmatpush.msrb.mxu0 %v1701_v14 }
 0x445   :  { %1727 = vmatpush.msrb.mxu0 %v1700_v17 }
 0x447   :  { %1728 = vmatpush.msrb.mxu0 %v1699_v4 }
 0x449   :  { %1729 = vmatpush.msrb.mxu0 %v1698_v6 }
 0x44b   :  { %1730 = vmatpush.msrb.mxu0 %v1697_v28 }
 0x4b8   :  { %v1375_v1 = vpop.f32.mrf.mxu0  ;;  %v1400_v53 = vpop.f32.mrf.mxu1 }
 0x4b9   :  { %v1379_v3 = vrot.slane %v1375_v1, 4  ;;  %v1404_v9 = vrot.slane %v1400_v53, 4 }
 0x4bb   :  { %v1381_v5 = vadd.f32 %v1379_v3, %v3201_v10  ;;  %v1406_v49 = vadd.f32 %v1404_v9, %v3202_v23 }
 0x4bd   :  { %v1947_v11 = vmul.f32 -1.442695, %v1381_v5  ;;  %v1948_v26 = vmul.f32 -1.442695, %v1406_v49  ;;  %v1695_v49 = vld [vmem:[#allocation2] sm:$0xff] }
 0x4bf   :  { %2063 = vpow2.f32 %v1947_v11  ;;  %v1450_v22 = vpop.f32.mrf.mxu3  ;;  %v1425_v24 = vpop.f32.mrf.mxu2 }
 0x4c0   :  { %2065 = vpow2.f32 %v1948_v26  ;;  %v1454_v57 = vrot.slane %v1450_v22, 4  ;;  %v1429_v12 = vrot.slane %v1425_v24, 4  ;;  %v3205_v22 = vld [vmem:[#allocation11_spill] sm:$0xff] }
 0x4c1   :  { %v3207_v24 = vld [vmem:[#allocation27_spill] sm:$0xff] }
 0x4c2   :  { %v1456_v61 = vadd.f32 %v1454_v57, %v3203_v44  ;;  %v1431_v33 = vadd.f32 %v1429_v12, %v3204_v32 }
 0x4c4   :  { %v1949_v63 = vmul.f32 -1.442695, %v1456_v61 }
 0x4c5   :  { %v2064_v15 = vpop.eup %2063 }
 0x4c6   :  { %v2066_v62 = vpop.eup %2065  ;;  %v1460_v13 = vadd.f32 1.0, %v2064_v15  ;;  %2067 = vpow2.f32 %v1949_v63  ;;  %v3129_v63 = vld [vmem:[%s3163_s8] ss:$0 sm:$0xff]  ;;  %s2166_s8 = smov 127  }
 0x4c7   :  { %v1479_v48 = vadd.f32 1.0, %v2066_v62 }
 0x4c8   :  { %2069 = vrcp.f32 %v1460_v13  ;;  %v1472_v39 = vand.u32 2147483648, %v1460_v13  ;;  %v1470_v43 = vand.u32 2147483647, %v1460_v13  ;;  %vm1466_vm2 = vweird.f32 %v1460_v13 }
 0x4c9   :  { %2071 = vrcp.f32 %v1479_v48  ;;  %v1491_v41 = vand.u32 2147483648, %v1479_v48  ;;  %v1489_v19 = vand.u32 2147483647, %v1479_v48  ;;  %vm1485_vm3 = vweird.f32 %v1479_v48 }
 0x4ca   :  { %v1473_v27 = vor.u32 1.1754944e-38, %v1472_v39  ;;  %vm1471_vm6 = vcmp.eq.f32.partialorder %v1470_v43, 8.507059e+37 }
 0x4cb   :  { %v1492_v8 = vor.u32 1.1754944e-38, %v1491_v41  ;;  %vm1490_vm7 = vcmp.eq.f32.partialorder %v1489_v19, 8.507059e+37 }
 0x4cc   :  { %v2068_v16 = vpop.eup %2067 }
 0x4cd   :  { %v1499_v30 = vadd.f32 1.0, %v2068_v16 }
 0x4ce   :  { %v2070_v31 = vpop.eup %2069 }
 0x4cf   :  { %v2072_v34 = vpop.eup %2071  ;;  %v1462_v36 = vmul.f32 %v2070_v31, %v1460_v13  ;;  %2073 = vrcp.f32 %v1499_v30  ;;  %vm1467_vm13 = vweird.f32 %v2070_v31  ;;  %v1511_v50 = vand.u32 2147483648, %v1499_v30 }
 0x4d0   :  { %v1481_v37 = vmul.f32 %v2072_v34, %v1479_v48  ;;  %2075 = vtanh.f32 %v1431_v33  ;;  %vm1486_vm0 = vweird.f32 %v2072_v34  ;;  %vm1468_vm4 = vmor %vm1466_vm2, %vm1467_vm13  ;;  %vm1505_vm9 = vweird.f32 %v1499_v30 }
 0x4d1   :  { %v1463_v56 = vsub.f32 1.0, %v1462_v36  ;;  %vm1487_vm5 = vmor %vm1485_vm3, %vm1486_vm0  ;;  %v1509_v1 = vand.u32 2147483647, %v1499_v30  ;;  %v1512_v3 = vor.u32 1.1754944e-38, %v1511_v50 }
 0x4d2   :  { %v1482_v38 = vsub.f32 1.0, %v1481_v37 }
 0x4d3   :  { %v1464_v42 = vmul.f32 %v2070_v31, %v1463_v56  ;;  %vm1510_vm11 = vcmp.eq.f32.partialorder %v1509_v1, 8.507059e+37 }
 0x4d4   :  { %v1483_v45 = vmul.f32 %v2072_v34, %v1482_v38  ;;  %v3208_v38 = vld [vmem:[#allocation26_spill] sm:$0xff] }
 0x4d5   :  { %v2074_v47 = vpop.eup %2073  ;;  %v1465_v35 = vadd.f32 %v2070_v31, %v1464_v42 }
 0x4d6   :  { %v1484_v18 = vadd.f32 %v2072_v34, %v1483_v45  ;;  %v1501_v7 = vmul.f32 %v2074_v47, %v1499_v30  ;;  %v2076_v52 = vpop.eup %2075  ;;  %vm1506_vm8 = vweird.f32 %v2074_v47 }
 0x4d7   :  { %v1469_v51 = vsel %vm1468_vm4, %v2070_v31, %v1465_v35  ;;  %vm1507_vm10 = vmor %vm1505_vm9, %vm1506_vm8 }
 0x4d8   :  { %v1474_v46 = vsel %vm1471_vm6, %v1473_v27, %v1469_v51  ;;  %v1488_v2 = vsel %vm1487_vm5, %v2072_v34, %v1484_v18  ;;  %v1502_v20 = vsub.f32 1.0, %v1501_v7 }
 0x4d9   :  { %v1493_v29 = vsel %vm1490_vm7, %v1492_v8, %v1488_v2  ;;  %v1519_v40 = vmul.f32 %v2076_v52, %v1474_v46 }
 0x4da   :  { %v1518_v60 = vmul.f32 %v1516_v59, %v1493_v29  ;;  %v1503_v55 = vmul.f32 %v2074_v47, %v1502_v20 }
 0x4dc   :  { %v3115_v0 = vadd.f32 %v1519_v40, %v1518_v60  ;;  %v1504_v58 = vadd.f32 %v2074_v47, %v1503_v55 }
 0x4de   :  { %2077 = vtanh.f32 %v3115_v0  ;;  %v1508_v53 = vsel %vm1507_vm10, %v2074_v47, %v1504_v58  ;;  %v1687_v40 = vrot.slane %v3115_v0, 6 }
 0x4df   :  { %v1513_v10 = vsel %vm1510_vm11, %v1512_v3, %v1508_v53 }
 0x4e4   :  { %v2078_v9 = vpop.eup %2077 }
 0x4e5   :  { %v1522_v5 = vmul.f32 %v2078_v9, %v1513_v10 }
 0x4e7   :  { %1523 = vst.msk [vmem:[#allocation2 + $0x8] sm:$0x30] %vm842_vm12, %v1522_v5  ;;  %v1526_v23 = vrot.slane %v1522_v5, 4 }
 0x4e9   :  { %1950 = vmatmul.msk.f32.vlgmr.msra.gmra.mxu0 %vm325_vm15, %v1526_v23  ;;  %1951 = vmatmul.msk.f32.vlgmr.msra.gmra.mxu1 %vm325_vm15, %v1526_v23 }
 0x4ea   :  { %1952 = vmatmul.msk.f32.vlgmr.msrb.gmra.mxu2 %vm325_vm15, %v1526_v23  ;;  %1953 = vmatmul.msk.f32.vlgmr.msrb.gmra.mxu3 %vm325_vm15, %v1526_v23 }
 0x4f1   :  { %1957 = vmatmul.msk.f32.vlgmr.msrb.gmra.mxu0 %vm325_vm15, %v1695_v49 }
 0x566   :  { %v1546_v11 = vpop.f32.mrf.mxu0  ;;  %v1571_v26 = vpop.f32.mrf.mxu1 }
 0x567   :  { %v1550_v54 = vrot.slane %v1546_v11, 2  ;;  %v1575_v25 = vrot.slane %v1571_v26, 2 }
 0x569   :  { %v1552_v57 = vadd.f32 %v1550_v54, %v3205_v22  ;;  %v1577_v44 = vadd.f32 %v1575_v25, %v3206_v21 }
 0x56b   :  { %v1954_v61 = vmul.f32 -1.442695, %v1552_v57  ;;  %v1955_v14 = vmul.f32 -1.442695, %v1577_v44 }
 0x56d   :  { %2079 = vpow2.f32 %v1954_v61  ;;  %v1621_v15 = vpop.f32.mrf.mxu3  ;;  %v1596_v33 = vpop.f32.mrf.mxu2 }
 0x56e   :  { %2081 = vpow2.f32 %v1955_v14  ;;  %v1625_v62 = vrot.slane %v1621_v15, 2  ;;  %v1732_v13 = vpop.f32.mrf.mxu0  ;;  %v1600_v28 = vrot.slane %v1596_v33, 2 }
 0x56f   :  { %v3132_v48 = vadd.f32 %v3129_v63, %v1732_v13 }
 0x570   :  { %v1627_v12 = vadd.f32 %v1625_v62, %v3207_v24  ;;  %v1602_v39 = vadd.f32 %v1600_v28, %v3208_v38  ;;  %v1744_v28 = vld [vmem:[%s3156_s1] sm:$0xff] }
 0x571   :  { %v1738_v17 = vmul.f32 0.5, %v3132_v48 }
 0x572   :  { %v1956_v4 = vmul.f32 -1.442695, %v1627_v12 }
 0x573   :  { %v2080_v16 = vpop.eup %2079  ;;  %v1740_v6 = vmul.f32 1.442695, %v1738_v17 }
 0x574   :  { %v2082_v30 = vpop.eup %2081  ;;  %v1631_v31 = vadd.f32 1.0, %v2080_v16  ;;  %2083 = vpow2.f32 %v1956_v4 }
 0x575   :  { %v1650_v32 = vadd.f32 1.0, %v2082_v30  ;;  %2085 = vpow2.f32 %v1740_v6 }
 0x576   :  { %2087 = vrcp.f32 %v1631_v31  ;;  %v1643_v47 = vand.u32 2147483648, %v1631_v31  ;;  %v1641_v18 = vand.u32 2147483647, %v1631_v31  ;;  %vm1637_vm13 = vweird.f32 %v1631_v31 }
 0x577   :  { %2089 = vrcp.f32 %v1650_v32  ;;  %v1662_v35 = vand.u32 2147483648, %v1650_v32  ;;  %v1660_v8 = vand.u32 2147483647, %v1650_v32  ;;  %vm1656_vm0 = vweird.f32 %v1650_v32 }
 0x578   :  { %v1644_v2 = vor.u32 1.1754944e-38, %v1643_v47  ;;  %vm1642_vm4 = vcmp.eq.f32.partialorder %v1641_v18, 8.507059e+37  ;;  %v1745_v47 = vld [vmem:[%s3156_s1 + $0x8] sm:$0xff]  ;;  %s2167_s1 = smov [#allocation3]  }
 0x579   :  { %v1663_v60 = vor.u32 1.1754944e-38, %v1662_v35  ;;  %vm1661_vm5 = vcmp.eq.f32.partialorder %v1660_v8, 8.507059e+37  ;;  %s1827_s18 = sshll.u32 %s2167_s1, 4  ;;  %s1828_s18 = int_to_ptr.vmem [resolvable:$true] %s1827_s18 }
 0x57a   :  { %v2084_v34 = vpop.eup %2083 }
 0x57b   :  { %v2086_v36 = vpop.eup %2085  ;;  %v1670_v37 = vadd.f32 1.0, %v2084_v34 }
 0x57c   :  { %v2088_v56 = vpop.eup %2087  ;;  %1750 = vrot.lane.b32.xlu0 %v2086_v36, %s2166_s8  ;;  %2091 = vlog2.f32 %v2086_v36 }
 0x57d   :  { %v2090_v41 = vpop.eup %2089  ;;  %v1633_v42 = vmul.f32 %v2088_v56, %v1631_v31  ;;  %2093 = vrcp.f32 %v1670_v37  ;;  %vm1638_vm12 = vweird.f32 %v2088_v56  ;;  %v1682_v0 = vand.u32 2147483648, %v1670_v37 }
 0x57e   :  { %v1652_v43 = vmul.f32 %v2090_v41, %v1650_v32  ;;  %2095 = vtanh.f32 %v1602_v39  ;;  %vm1657_vm1 = vweird.f32 %v2090_v41  ;;  %vm1639_vm2 = vmor %vm1637_vm13, %vm1638_vm12  ;;  %vm1676_vm7 = vweird.f32 %v1670_v37 }
 0x57f   :  { %v1634_v45 = vsub.f32 1.0, %v1633_v42  ;;  %vm1658_vm3 = vmor %vm1656_vm0, %vm1657_vm1  ;;  %v1680_v11 = vand.u32 2147483647, %v1670_v37  ;;  %v1683_v54 = vor.u32 1.1754944e-38, %v1682_v0 }
 0x580   :  { %v1653_v19 = vsub.f32 1.0, %v1652_v43 }
 0x581   :  { %v1635_v27 = vmul.f32 %v2088_v56, %v1634_v45  ;;  %vm1681_vm9 = vcmp.eq.f32.partialorder %v1680_v11, 8.507059e+37 }
 0x582   :  { %v2092_v7 = vpop.eup %2091  ;;  %v1654_v59 = vmul.f32 %v2090_v41, %v1653_v19 }
 0x583   :  { %v2094_v51 = vpop.eup %2093  ;;  %v1636_v52 = vadd.f32 %v2088_v56, %v1635_v27  ;;  %v1791_v46 = vmul.f32 0.6931472, %v2092_v7 }
 0x584   :  { %v1655_v20 = vadd.f32 %v2090_v41, %v1654_v59  ;;  %v1672_v29 = vmul.f32 %v2094_v51, %v1670_v37  ;;  %v2096_v58 = vpop.eup %2095  ;;  %vm1677_vm6 = vweird.f32 %v2094_v51  ;;  %v1746_v37 = vsub.f32 %v1744_v28, %v3132_v48 }
 0x585   :  { %v1640_v55 = vsel %vm1639_vm2, %v2088_v56, %v1636_v52  ;;  %1796 = vrot.lane.b32.xlu1 %v1791_v46, %s2166_s8  ;;  %vm1678_vm8 = vmor %vm1676_vm7, %vm1677_vm6  ;;  %vm1808_vm2 = vcmask 7168  }
 0x586   :  { %v1645_v50 = vsel %vm1642_vm4, %v1644_v2, %v1640_v55  ;;  %v1659_v1 = vsel %vm1658_vm3, %v2090_v41, %v1655_v20  ;;  %v1673_v53 = vsub.f32 1.0, %v1672_v29  ;;  %vm1820_vm3 = vcmask 0  }
 0x587   :  { %v1664_v3 = vsel %vm1661_vm5, %v1663_v60, %v1659_v1  ;;  %v1690_v9 = vmul.f32 %v2096_v58, %v1645_v50 }
 0x588   :  { %v1689_v10 = vmul.f32 %v1687_v40, %v1664_v3  ;;  %v1674_v5 = vmul.f32 %v2094_v51, %v1673_v53 }
 0x58a   :  { %v1691_v23 = vadd.f32 %v1690_v9, %v1689_v10  ;;  %v1675_v49 = vadd.f32 %v2094_v51, %v1674_v5 }
 0x58c   :  { %2097 = vtanh.f32 %v1691_v23  ;;  %v1679_v26 = vsel %vm1678_vm8, %v2094_v51, %v1675_v49 }
 0x58d   :  { %v1684_v22 = vsel %vm1681_vm9, %v1683_v54, %v1679_v26 }
 0x592   :  { %v2098_v25 = vpop.eup %2097 }
 0x593   :  { %v1693_v57 = vmul.f32 %v2098_v25, %v1684_v22 }
 0x595   :  { %1694 = vst.msk [vmem:[#allocation2 + $0x8] sm:$0xc0] %vm1022_vm14, %v1693_v57 }
 0x59c   :  { %v1696_v21 = vld [vmem:[#allocation2 + $0x8] sm:$0xff] }
 0x59d   :  { %1958 = vmatmul.msk.f32.gmra.mxu0 %vm325_vm15, %v1696_v21 }
 0x5ee   :  { %v1751_v12 = vpop.permute.xlu0 %1750 }
 0x5ef   :  { %vm1761_vm14 = vweird.f32 %v1751_v12  ;;  %v1765_v31 = vand.u32 2147483647, %v1751_v12 }
 0x5f1   :  { %vm1766_vm11 = vcmp.eq.f32.partialorder %v1765_v31, 8.507059e+37 }
 0x5f7   :  { %v1797_v27 = vpop.permute.xlu1 %1796 }
 0x61a   :  { %v1735_v44 = vpop.f32.mrf.mxu0 }
 0x61b   :  { %v1736_v61 = vadd.f32 %v3129_v63, %v1735_v44  ;;  %v1767_v63 = vand.u32 2147483648, %v1751_v12 }
 0x61d   :  { %v1739_v14 = vmul.f32 0.5, %v1736_v61  ;;  %v1768_v34 = vor.u32 1.1754944e-38, %v1767_v63  ;;  %v1747_v48 = vsub.f32 %v1745_v47, %v1736_v61 }
 0x61f   :  { %v1742_v15 = vmul.f32 1.442695, %v1739_v14 }
 0x621   :  { %2099 = vpow2.f32 %v1742_v15 }
 0x627   :  { %v2100_v62 = vpop.eup %2099 }
 0x628   :  { %1752 = vrot.lane.b32.xlu0 %v2100_v62, %s2166_s8  ;;  %2101 = vlog2.f32 %v2100_v62 }
 0x629   :  { %2103 = vrcp.f32 %v1751_v12 }
 0x62e   :  { %v2102_v13 = vpop.eup %2101 }
 0x62f   :  { %v1793_v24 = vmul.f32 0.6931472, %v2102_v13  ;;  %v2104_v17 = vpop.eup %2103 }
 0x630   :  { %v1757_v4 = vmul.f32 %v2104_v17, %v1751_v12  ;;  %vm1762_vm15 = vweird.f32 %v2104_v17 }
 0x631   :  { %1798 = vrot.lane.b32.xlu1 %v1793_v24, %s2166_s8  ;;  %vm1763_vm10 = vmor %vm1761_vm14, %vm1762_vm15 }
 0x632   :  { %v1758_v16 = vsub.f32 1.0, %v1757_v4 }
 0x634   :  { %v1759_v6 = vmul.f32 %v2104_v17, %v1758_v16 }
 0x636   :  { %v1760_v30 = vadd.f32 %v2104_v17, %v1759_v6 }
 0x638   :  { %v1764_v33 = vsel %vm1763_vm10, %v2104_v17, %v1760_v30 }
 0x639   :  { %v1769_v36 = vsel %vm1766_vm11, %v1768_v34, %v1764_v33 }
 0x63a   :  { %v1770_v38 = vmul.f32 %v1769_v36, %v1746_v37 }
 0x63c   :  { %v1786_v43 = vmul.f32 -0.5, %v1770_v38 }
 0x63e   :  { %v1788_v7 = vmul.f32 %v1786_v43, %v1770_v38 }
 0x640   :  { %v1802_v52 = vsub.f32 %v1788_v7, %v1797_v27 }
 0x642   :  { %v1804_v29 = vadd.f32 -0.9189385, %v1802_v52 }
 0x644   :  { %v1809_v55 = vsel %vm1808_vm2, %v1804_v29, 0.0 }
 0x69a   :  { %v1753_v32 = vpop.permute.xlu0 %1752 }
 0x69b   :  { %2105 = vrcp.f32 %v1753_v32  ;;  %v1782_v42 = vand.u32 2147483648, %v1753_v32  ;;  %v1780_v19 = vand.u32 2147483647, %v1753_v32  ;;  %vm1776_vm1 = vweird.f32 %v1753_v32 }
 0x69d   :  { %v1783_v18 = vor.u32 1.1754944e-38, %v1782_v42  ;;  %vm1781_vm0 = vcmp.eq.f32.partialorder %v1780_v19, 8.507059e+37 }
 0x6a1   :  { %v2106_v56 = vpop.eup %2105 }
 0x6a2   :  { %v1772_v39 = vmul.f32 %v2106_v56, %v1753_v32  ;;  %vm1777_vm12 = vweird.f32 %v2106_v56 }
 0x6a3   :  { %vm1778_vm13 = vmor %vm1776_vm1, %vm1777_vm12  ;;  %v1799_v20 = vpop.permute.xlu1 %1798 }
 0x6a4   :  { %v1773_v41 = vsub.f32 1.0, %v1772_v39 }
 0x6a6   :  { %v1774_v45 = vmul.f32 %v2106_v56, %v1773_v41 }
 0x6a8   :  { %v1775_v35 = vadd.f32 %v2106_v56, %v1774_v45 }
 0x6aa   :  { %v1779_v59 = vsel %vm1778_vm13, %v2106_v56, %v1775_v35 }
 0x6ab   :  { %v1784_v8 = vsel %vm1781_vm0, %v1783_v18, %v1779_v59 }
 0x6ac   :  { %v1785_v51 = vmul.f32 %v1784_v8, %v1747_v48 }
 0x6ae   :  { %v1787_v46 = vmul.f32 -0.5, %v1785_v51 }
 0x6b0   :  { %v1789_v2 = vmul.f32 %v1787_v46, %v1785_v51 }
 0x6b2   :  { %v1803_v40 = vsub.f32 %v1789_v2, %v1799_v20 }
 0x6b4   :  { %v1805_v60 = vadd.f32 -0.9189385, %v1803_v40 }
 0x6b6   :  { %v1810_v58 = vsel %vm1808_vm2, %v1805_v60, 0.0 }
 0x6b7   :  { %v1811_v50 = vadd.f32 %v1810_v58, %v1809_v55 }
 0x6b9   :  { %v1812_v1 = vrot.slane %v1811_v50, 4 }
 0x6bb   :  { %v1813_v53 = vadd.f32 %v1812_v1, %v1811_v50 }
 0x6bd   :  { %v1814_v3 = vrot.slane %v1813_v53, 2 }
 0x6bf   :  { %v1815_v9 = vadd.f32 %v1814_v3, %v1813_v53 }
 0x6c1   :  { %v1816_v10 = vrot.slane %v1815_v9, 1 }
 0x6c3   :  { %v1817_v5 = vadd.f32 %v1816_v10, %v1815_v9 }
 0x6c5   :  { %v1818_v23 = vsub.f32 0.0, %v1817_v5 }
 0x6c7   :  { %v1819_v49 = vmul.f32 0.0625, %v1818_v23 }
 0x6c9   :  { %1821 = vst.msk [vmem:[#allocation3] sm:$0x1] %vm1820_vm3, %v1819_v49 }
 0x6ca   :  { %1832 = dma.vmem_to_hbm [thread:$0]  %s1828_s18, 16, %s1830_s0, [#allocation4]  }
 0x6cb   :  { %2163 = dma.done.wait [#allocation4], 16  }
 0x6cc   :  { %2164 = vsyncadd [#allocation4], 4294967280 }
 0x6cd   :  { %1837 = vsyncpa [#allocation4], 1 }

// kernel: neural_process_forward_train.2
= control target key start
LH: loop header
LB: loop body
LE: loop exit
PB: predicated region body
PF: predicated region fallthrough
CT: control target
= control target key end

     0   :  { %vm74_vm0 = vcmask 1045504   ;;  %vm61_vm1 = vcmask 375808   ;;  %s5436_s0 = inlined_call_operand.vmem [shape: f32[32,46], index: 0, kind: input, shape index: {}]   ;;  %s5437_s1 = inlined_call_operand.vmem [shape: f32[4,46,64], index: 1, kind: input, shape index: {}]   ;;  %s5438_s2 = inlined_call_operand.vmem [shape: f32[4,64,64], index: 2, kind: input, shape index: {}]   ;;  %s5439_s3 = inlined_call_operand.vmem [shape: f32[4,1,64], index: 3, kind: input, shape index: {}]   ;;  %s5440_s4 = inlined_call_operand.vmem [shape: f32[64,8], index: 4, kind: input, shape index: {}]   ;;  %s5441_s5 = inlined_call_operand.vmem [shape: f32[1,8], index: 5, kind: input, shape index: {}]   ;;  %s5442_s6 = inlined_call_operand.vmem [shape: f32[8,128], index: 6, kind: input, shape index: {}]   ;;  %s5443_s7 = inlined_call_operand.vmem [shape: f32[1,128], index: 7, kind: input, shape index: {}]   ;;  %s5444_s8 = inlined_call_operand.vmem [shape: f32[1,128], index: 8, kind: input, shape index: {}]   ;;  %s5445_s9 = inlined_call_operand.vmem [shape: f32[1,128], index: 9, kind: input, shape index: {}]   ;;  %s5446_s10 = inlined_call_operand.vmem [shape: f32[128,32], index: 10, kind: input, shape index: {}]   ;;  %s5447_s11 = inlined_call_operand.vmem [shape: f32[1,32], index: 11, kind: input, shape index: {}]   ;;  %s5448_s12 = inlined_call_operand.vmem [shape: f32[2,16], index: 12, kind: input, shape index: {}]   ;;  %s5449_s13 = inlined_call_operand.vmem [shape: f32[2,16], index: 13, kind: output, shape index: {0}]   ;;  %s5450_s14 = inlined_call_operand.hbm [shape: f32[1,1], index: 14, kind: output, shape index: {1}]  }
   0x1   :  { %v56_v0 = vld [vmem:[%s5437_s1 + $0x28] sm:$0x3f]  ;;  %v3281_v1 = vld [vmem:[%s5437_s1 + $0xb8] sm:$0x3f]  ;;  %v55_v2 = vld [vmem:[%s5437_s1 + $0x20] sm:$0xff] }
   0x2   :  { %3425 = vmatpush.msk.msra.mxu1 %vm74_vm0, %v56_v0  ;;  %3283 = vmatpush.msk.msra.mxu3 %vm74_vm0, %v3281_v1  ;;  %v3269_v3 = vld [vmem:[%s5437_s1 + $0x88] sm:$0x3f]  ;;  %v3280_v4 = vld [vmem:[%s5437_s1 + $0xb0] sm:$0xff]  ;;  %v3268_v5 = vld [vmem:[%s5437_s1 + $0x80] sm:$0xff] }
   0x3   :  { %3271 = vmatpush.msk.msra.mxu2 %vm74_vm0, %v3269_v3  ;;  %3247 = vmatpush.msk.msra.mxu0 %vm74_vm0, %v56_v0  ;;  %v54_v6 = vld [vmem:[%s5437_s1 + $0x18] sm:$0xff]  ;;  %v3279_v7 = vld [vmem:[%s5437_s1 + $0xa8] sm:$0xff]  ;;  %v53_v9 = vld [vmem:[%s5437_s1 + $0x10] sm:$0xff] }
   0x4   :  { %3426 = vmatpush.msra.mxu1 %v55_v2  ;;  %221 = vmatpush.msra.mxu3 %v3280_v4  ;;  %v3267_v8 = vld [vmem:[%s5437_s1 + $0x78] sm:$0xff]  ;;  %v3278_v10 = vld [vmem:[%s5437_s1 + $0xa0] sm:$0xff]  ;;  %v3266_v11 = vld [vmem:[%s5437_s1 + $0x70] sm:$0xff] }
   0x5   :  { %177 = vmatpush.msra.mxu2 %v3268_v5  ;;  %89 = vmatpush.msra.mxu0 %v55_v2  ;;  %v52_v12 = vld [vmem:[%s5437_s1 + $0x8] sm:$0xff]  ;;  %v3277_v13 = vld [vmem:[%s5437_s1 + $0x98] sm:$0xff]  ;;  %v51_v15 = vld [vmem:[%s5437_s1] sm:$0xff] }
   0x6   :  { %3427 = vmatpush.msra.mxu1 %v54_v6  ;;  %222 = vmatpush.msra.mxu3 %v3279_v7  ;;  %v3265_v14 = vld [vmem:[%s5437_s1 + $0x68] sm:$0xff]  ;;  %v3276_v16 = vld [vmem:[%s5437_s1 + $0x90] sm:$0xff]  ;;  %v3264_v18 = vld [vmem:[%s5437_s1 + $0x60] sm:$0xff] }
   0x7   :  { %178 = vmatpush.msra.mxu2 %v3267_v8  ;;  %90 = vmatpush.msra.mxu0 %v54_v6  ;;  %v3949_v17 = vld [vmem:[%s5436_s0 + $0x10] sm:$0xff]  ;;  %v3257_v19 = vld [vmem:[%s5437_s1 + $0x58] sm:$0x3f]  ;;  %v3960_v20 = vld [vmem:[%s5436_s0] sm:$0xff] }
   0x8   :  { %3428 = vmatpush.msra.mxu1 %v53_v9  ;;  %223 = vmatpush.msra.mxu3 %v3278_v10  ;;  %v3256_v21 = vld [vmem:[%s5437_s1 + $0x50] sm:$0xff]  ;;  %v3973_v22 = vld [vmem:[%s5438_s2 + $0x38] sm:$0xff]  ;;  %v3255_v24 = vld [vmem:[%s5437_s1 + $0x48] sm:$0xff] }
   0x9   :  { %179 = vmatpush.msra.mxu2 %v3266_v11  ;;  %91 = vmatpush.msra.mxu0 %v53_v9  ;;  %v3978_v23 = vld [vmem:[%s5438_s2 + $0xf8] sm:$0xff]  ;;  %v3995_v26 = vld [vmem:[%s5438_s2 + $0x30] sm:$0xff]  ;;  %v3254_v28 = vld [vmem:[%s5437_s1 + $0x40] sm:$0xff] }
   0xa   :  { %3429 = vmatpush.msra.mxu1 %v52_v12  ;;  %224 = vmatpush.msra.mxu3 %v3277_v13  ;;  %v3988_v25 = vld [vmem:[%s5438_s2 + $0xb8] sm:$0xff]  ;;  %v4000_v27 = vld [vmem:[%s5438_s2 + $0xf0] sm:$0xff]  ;;  %v4015_v30 = vld [vmem:[%s5438_s2 + $0x28] sm:$0xff] }
   0xb   :  { %180 = vmatpush.msra.mxu2 %v3265_v14  ;;  %92 = vmatpush.msra.mxu0 %v52_v12  ;;  %v4010_v29 = vld [vmem:[%s5438_s2 + $0xb0] sm:$0xff]  ;;  %v4020_v31 = vld [vmem:[%s5436_s0 + $0x18] sm:$0xff]  ;;  %v4025_v32 = vld [vmem:[%s5436_s0 + $0x8] sm:$0xff] }
   0xc   :  { %3430 = vmatpush.msra.mxu1 %v51_v15  ;;  %225 = vmatpush.msra.mxu3 %v3276_v16  ;;  %v4032_v33 = vld [vmem:[%s5438_s2 + $0x20] sm:$0xff]  ;;  %v3253_v34 = vld [vmem:[%s5437_s1 + $0x38] sm:$0xff]  ;;  %v3252_v35 = vld [vmem:[%s5437_s1 + $0x30] sm:$0xff] }
   0xd   :  { %3250 = vmatmul.msk.f32.vlgmr.msra.gmra.mxu1 %vm61_vm1, %v3949_v17  ;;  %181 = vmatpush.msra.mxu2 %v3264_v18  ;;  %v4044_v36 = vld [vmem:[%s5438_s2 + $0x18] sm:$0xff]  ;;  %v4058_v38 = vld [vmem:[%s5438_s2 + $0xe8] sm:$0xff]  ;;  %v4075_v40 = vld [vmem:[%s5438_s2 + $0x10] sm:$0xff] }
   0xe   :  { %3259 = vmatpush.msk.msrb.mxu1 %vm74_vm0, %v3257_v19  ;;  %3284 = vmatmul.msk.f32.vlgmr.msra.gmra.mxu3 %vm61_vm1, %v3960_v20  ;;  %v4049_v37 = vld [vmem:[%s5438_s2 + $0x78] sm:$0xff]  ;;  %v4063_v39 = vld [vmem:[%s5438_s2 + $0xa8] sm:$0xff]  ;;  %v4080_v41 = vld [vmem:[%s5438_s2 + $0x70] sm:$0xff] }
   0xf   :  { %93 = vmatpush.msra.mxu0 %v51_v15  ;;  %3272 = vmatmul.msk.f32.vlgmr.msra.gmra.mxu2 %vm61_vm1, %v3960_v20 }
  0x10   :  { %3248 = vmatmul.msk.f32.vlgmr.msra.gmra.mxu0 %vm61_vm1, %v3960_v20  ;;  %133 = vmatpush.msrb.mxu1 %v3256_v21 }
  0x11   :  { %286 = vmatpush.msrb.mxu0 %v3973_v22  ;;  %349 = vmatpush.msrb.mxu3 %v3978_v23 }
  0x12   :  { %134 = vmatpush.msrb.mxu1 %v3255_v24  ;;  %328 = vmatpush.msrb.mxu2 %v3988_v25 }
  0x13   :  { %287 = vmatpush.msrb.mxu0 %v3995_v26  ;;  %350 = vmatpush.msrb.mxu3 %v4000_v27 }
  0x14   :  { %135 = vmatpush.msrb.mxu1 %v3254_v28  ;;  %329 = vmatpush.msrb.mxu2 %v4010_v29 }
  0x15   :  { %288 = vmatpush.msrb.mxu0 %v4015_v30  ;;  %3251 = vmatmul.msk.f32.gmra.mxu1 %vm61_vm1, %v4020_v31 }
  0x16   :  { %3285 = vmatmul.msk.f32.gmra.mxu3 %vm61_vm1, %v4025_v32  ;;  %136 = vmatpush.msrb.mxu1 %v3253_v34 }
  0x17   :  { %3273 = vmatmul.msk.f32.gmra.mxu2 %vm61_vm1, %v4025_v32  ;;  %289 = vmatpush.msrb.mxu0 %v4032_v33 }
  0x18   :  { %3249 = vmatmul.msk.f32.gmra.mxu0 %vm61_vm1, %v4025_v32  ;;  %137 = vmatpush.msrb.mxu1 %v3252_v35 }
  0x19   :  { %20 = vsyncpa [#allocation3], 0  ;;  %290 = vmatpush.msrb.mxu0 %v4044_v36  ;;  %v4087_v42 = vld [vmem:[%s5438_s2 + $0xe0] sm:$0xff]  ;;  %v4097_v44 = vld [vmem:[%s5438_s2 + $0x8] sm:$0xff]  ;;  %351 = vmatpush.msrb.mxu3 %v4058_v38  ;;  %v3811_v51 = vmov 0.0   ;;  %vm274_vm14 = vcmask 523264  }
  0x1a   :  { %307 = vmatpush.msra.mxu1 %v4049_v37  ;;  %v4092_v43 = vld [vmem:[%s5438_s2 + $0xa0] sm:$0xff]  ;;  %330 = vmatpush.msrb.mxu2 %v4063_v39  ;;  %v4106_v45 = vld [vmem:[%s5438_s2 + $0x68] sm:$0xff]  ;;  %v4121_v47 = vld [vmem:[%s5438_s2 + $0xd8] sm:$0xff]  ;;  %s3813_s15 = smov 16   ;;  %s3814_s17 = smov 112  }
  0x1b   :  { %291 = vmatpush.msrb.mxu0 %v4075_v40  ;;  %v4111_v46 = vld [vmem:[%s5438_s2] sm:$0xff]  ;;  %352 = vmatpush.msrb.mxu3 %v4087_v42  ;;  %v4129_v48 = vld [vmem:[%s5438_s2 + $0x98] sm:$0xff]  ;;  %v4142_v50 = vld [vmem:[%s5438_s2 + $0xd0] sm:$0xff] }
  0x1c   :  { %308 = vmatpush.msra.mxu1 %v4080_v41  ;;  %331 = vmatpush.msrb.mxu2 %v4092_v43  ;;  %v4134_v49 = vld [vmem:[%s5438_s2 + $0x60] sm:$0xff]  ;;  %v4149_v52 = vld [vmem:[%s5438_s2 + $0x90] sm:$0xff]  ;;  %v4154_v53 = vld [vmem:[%s5438_s2 + $0x58] sm:$0xff] }
  0x1d   :  { %292 = vmatpush.msrb.mxu0 %v4097_v44  ;;  %3260 = vmatmul.msk.f32.vlgmr.msrb.gmra.mxu1 %vm61_vm1, %v3960_v20  ;;  %v4161_v54 = vld [vmem:[%s5438_s2 + $0xc8] sm:$0xff]  ;;  %v4175_v56 = vld [vmem:[%s5438_s2 + $0x50] sm:$0xff]  ;;  %v4181_v57 = vld [vmem:[%s5438_s2 + $0xc0] sm:$0xff] }
  0x1e   :  { %3286 = vmatmul.msk.f32.gmra.mxu3 %vm61_vm1, %v3949_v17  ;;  %309 = vmatpush.msra.mxu1 %v4106_v45  ;;  %v4167_v55 = vld [vmem:[%s5438_s2 + $0x88] sm:$0xff]  ;;  %v4190_v58 = vld [vmem:[%s5438_s2 + $0x80] sm:$0xff] }
  0x1f   :  { %3274 = vmatmul.msk.f32.gmra.mxu2 %vm61_vm1, %v3949_v17  ;;  %293 = vmatpush.msrb.mxu0 %v4111_v46  ;;  %v4195_v59 = vld [vmem:[%s5438_s2 + $0x48] sm:$0xff]  ;;  %v4206_v60 = vld [vmem:[%s5438_s2 + $0x40] sm:$0xff] }
  0x20   :  { %294 = vmatmul.f32.vlgmr.msrb.gmra.mxu0 %v3811_v51  ;;  %353 = vmatpush.msrb.mxu3 %v4121_v47  ;;  %v3436_v61 = vld [vmem:[%s5439_s3] ss:$0 sm:$0xff]  ;;  %v3437_v7 = vld [vmem:[%s5439_s3 + $0x3] ss:$0 sm:$0xff]  ;;  %v3438_v8 = vld [vmem:[%s5439_s3 + $0x2] ss:$0 sm:$0xff] }
  0x21   :  { %332 = vmatpush.msrb.mxu2 %v4129_v48  ;;  %310 = vmatpush.msra.mxu1 %v4134_v49  ;;  %v3439_v15 = vld [vmem:[%s5439_s3 + $0x1] ss:$0 sm:$0xff] }
  0x22   :  { %354 = vmatpush.msrb.mxu3 %v4142_v50  ;;  %437 = vmatpush.msra.mxu0 %v3973_v22 }
  0x23   :  { %333 = vmatpush.msrb.mxu2 %v4149_v52  ;;  %311 = vmatpush.msra.mxu1 %v4154_v53 }
  0x24   :  { %355 = vmatpush.msrb.mxu3 %v4161_v54  ;;  %438 = vmatpush.msra.mxu0 %v3995_v26 }
  0x25   :  { %3261 = vmatmul.msk.f32.gmra.mxu1 %vm61_vm1, %v4025_v32  ;;  %334 = vmatpush.msrb.mxu2 %v4167_v55 }
  0x26   :  { %3287 = vmatmul.msk.f32.gmra.mxu3 %vm61_vm1, %v4020_v31  ;;  %312 = vmatpush.msra.mxu1 %v4175_v56 }
  0x27   :  { %3275 = vmatmul.msk.f32.gmra.mxu2 %vm61_vm1, %v4020_v31  ;;  %356 = vmatpush.msrb.mxu3 %v4181_v57 }
  0x28   :  { %335 = vmatpush.msrb.mxu2 %v4190_v58  ;;  %313 = vmatpush.msra.mxu1 %v4195_v59 }
  0x29   :  { %509 = vmatpush.msra.mxu3 %v3978_v23  ;;  %439 = vmatpush.msra.mxu0 %v4015_v30 }
  0x2a   :  { %485 = vmatpush.msra.mxu2 %v3988_v25  ;;  %314 = vmatpush.msra.mxu1 %v4206_v60 }
  0x2b   :  { %510 = vmatpush.msra.mxu3 %v4000_v27  ;;  %440 = vmatpush.msra.mxu0 %v4032_v33 }
  0x2c   :  { %461 = vmatpush.msrb.mxu1 %v4049_v37  ;;  %486 = vmatpush.msra.mxu2 %v4010_v29 }
  0x2d   :  { %3262 = vmatmul.msk.f32.gmra.mxu1 %vm61_vm1, %v3949_v17  ;;  %511 = vmatpush.msra.mxu3 %v4058_v38 }
  0x2e   :  { %487 = vmatpush.msra.mxu2 %v4063_v39  ;;  %357 = vmatmul.f32.vlgmr.msrb.gmra.mxu3 %v3811_v51 }
  0x2f   :  { %462 = vmatpush.msrb.mxu1 %v4080_v41  ;;  %336 = vmatmul.f32.vlgmr.msrb.gmra.mxu2 %v3811_v51 }
  0x30   :  { %488 = vmatpush.msra.mxu2 %v4092_v43  ;;  %512 = vmatpush.msra.mxu3 %v4087_v42 }
  0x31   :  { %463 = vmatpush.msrb.mxu1 %v4106_v45  ;;  %441 = vmatpush.msra.mxu0 %v4044_v36 }
  0x32   :  { %489 = vmatpush.msra.mxu2 %v4129_v48  ;;  %513 = vmatpush.msra.mxu3 %v4121_v47 }
  0x33   :  { %464 = vmatpush.msrb.mxu1 %v4134_v49  ;;  %442 = vmatpush.msra.mxu0 %v4075_v40 }
  0x34   :  { %490 = vmatpush.msra.mxu2 %v4149_v52  ;;  %514 = vmatpush.msra.mxu3 %v4142_v50 }
  0x35   :  { %465 = vmatpush.msrb.mxu1 %v4154_v53  ;;  %443 = vmatpush.msra.mxu0 %v4097_v44 }
  0x36   :  { %3263 = vmatmul.msk.f32.gmra.mxu1 %vm61_vm1, %v4020_v31  ;;  %491 = vmatpush.msra.mxu2 %v4167_v55 }
  0x37   :  { %466 = vmatpush.msrb.mxu1 %v4175_v56  ;;  %515 = vmatpush.msra.mxu3 %v4161_v54 }
  0x38   :  { %444 = vmatpush.msra.mxu0 %v4111_v46  ;;  %492 = vmatpush.msra.mxu2 %v4190_v58 }
  0x39   :  { %467 = vmatpush.msrb.mxu1 %v4195_v59  ;;  %516 = vmatpush.msra.mxu3 %v4181_v57 }
  0x3a   :  { %605 = vmatpush.msrb.mxu0 %v3973_v22  ;;  %653 = vmatpush.msrb.mxu2 %v3988_v25 }
  0x3b   :  { %468 = vmatpush.msrb.mxu1 %v4206_v60  ;;  %677 = vmatpush.msrb.mxu3 %v3978_v23 }
  0x3c   :  { %606 = vmatpush.msrb.mxu0 %v3995_v26  ;;  %654 = vmatpush.msrb.mxu2 %v4010_v29 }
  0x3d   :  { %678 = vmatpush.msrb.mxu3 %v4000_v27 }
  0x3e   :  { %315 = vmatmul.f32.vlgmr.msra.gmra.mxu1 %v3811_v51  ;;  %607 = vmatpush.msrb.mxu0 %v4015_v30 }
  0x3f   :  { %629 = vmatpush.msra.mxu1 %v4049_v37  ;;  %655 = vmatpush.msrb.mxu2 %v4063_v39 }
  0x40   :  { %679 = vmatpush.msrb.mxu3 %v4058_v38  ;;  %608 = vmatpush.msrb.mxu0 %v4032_v33 }
  0x41   :  { %630 = vmatpush.msra.mxu1 %v4080_v41  ;;  %656 = vmatpush.msrb.mxu2 %v4092_v43 }
  0x42   :  { %680 = vmatpush.msrb.mxu3 %v4087_v42  ;;  %609 = vmatpush.msrb.mxu0 %v4044_v36 }
  0x43   :  { %631 = vmatpush.msra.mxu1 %v4106_v45  ;;  %657 = vmatpush.msrb.mxu2 %v4129_v48 }
  0x44   :  { %681 = vmatpush.msrb.mxu3 %v4121_v47  ;;  %610 = vmatpush.msrb.mxu0 %v4075_v40 }
  0x45   :  { %632 = vmatpush.msra.mxu1 %v4134_v49  ;;  %658 = vmatpush.msrb.mxu2 %v4149_v52 }
  0x46   :  { %682 = vmatpush.msrb.mxu3 %v4142_v50  ;;  %611 = vmatpush.msrb.mxu0 %v4097_v44 }
  0x47   :  { %633 = vmatpush.msra.mxu1 %v4154_v53  ;;  %659 = vmatpush.msrb.mxu2 %v4167_v55 }
  0x48   :  { %683 = vmatpush.msrb.mxu3 %v4161_v54  ;;  %612 = vmatpush.msrb.mxu0 %v4111_v46 }
  0x49   :  { %634 = vmatpush.msra.mxu1 %v4175_v56  ;;  %660 = vmatpush.msrb.mxu2 %v4190_v58 }
  0x4a   :  { %684 = vmatpush.msrb.mxu3 %v4181_v57 }
  0x4b   :  { %635 = vmatpush.msra.mxu1 %v4195_v59 }
  0x4d   :  { %636 = vmatpush.msra.mxu1 %v4206_v60 }
  0x8a   :  { %v101_v62 = vpop.f32.mrf.mxu1 }
  0x8b   :  { %v4283_v63 = vadd.f32 %v3436_v61, %v101_v62 }
  0x8d   :  { %5462 = vst [vmem:[#allocation5_spill] sm:$0xff] %v4283_v63  ;;  %v95_v0 = vpop.f32.mrf.mxu0 }
  0x8e   :  { %v4299_v14 = vadd.f32 %v3436_v61, %v95_v0 }
  0x91   :  { %v227_v1 = vpop.f32.mrf.mxu3 }
  0x92   :  { %v183_v2 = vpop.f32.mrf.mxu2  ;;  %v104_v3 = vpop.f32.mrf.mxu1  ;;  %v4317_v0 = vadd.f32 %v3437_v7, %v227_v1 }
  0x93   :  { %v4285_v4 = vadd.f32 %v3436_v61, %v104_v3 }
  0x95   :  { %5463 = vst [vmem:[#allocation6_spill] sm:$0xff] %v4285_v4  ;;  %v98_v5 = vpop.f32.mrf.mxu0 }
  0x96   :  { %v4287_v6 = vadd.f32 %v3436_v61, %v98_v5 }
  0x99   :  { %v230_v9 = vpop.f32.mrf.mxu3 }
  0x9a   :  { %v4295_v10 = vadd.f32 %v3437_v7, %v230_v9  ;;  %v186_v11 = vpop.f32.mrf.mxu2  ;;  %v139_v12 = vpop.f32.mrf.mxu1 }
  0x9b   :  { %v4297_v13 = vadd.f32 %v3438_v8, %v186_v11 }
  0x9c   :  { %5464 = vst [vmem:[#allocation7_spill] sm:$0xff] %v4295_v10 }
  0x9d   :  { %5465 = vst [vmem:[#allocation8_spill] sm:$0xff] %v4297_v13  ;;  %v295_v16 = vpop.f32.mrf.mxu0 }
  0x9e   :  { %v298_v28 = vadd.f32 %v295_v16, %v4299_v14 }
  0xa0   :  { %v3312_v31 = vmul.f32 -1.442695, %v298_v28 }
  0xa1   :  { %v233_v17 = vpop.f32.mrf.mxu3 }
  0xa2   :  { %v4304_v18 = vadd.f32 %v3437_v7, %v233_v17  ;;  %v189_v19 = vpop.f32.mrf.mxu2  ;;  %v142_v20 = vpop.f32.mrf.mxu1  ;;  %3445 = vpow2.f32 %v3312_v31 }
  0xa3   :  { %v4306_v21 = vadd.f32 %v3438_v8, %v189_v19  ;;  %v4308_v24 = vadd.f32 %v3439_v15, %v142_v20  ;;  %v4322_v20 = vadd.f32 %v3439_v15, %v139_v12 }
  0xa4   :  { %5466 = vst [vmem:[#allocation9_spill] sm:$0xff] %v4304_v18 }
  0xa5   :  { %5467 = vst [vmem:[#allocation10_spill] sm:$0xff] %v4306_v21 }
  0xa6   :  { %5468 = vst [vmem:[#allocation11_spill] sm:$0xff] %v4308_v24 }
  0xa8   :  { %v3446_v9 = vpop.eup %3445 }
  0xa9   :  { %v236_v32 = vpop.f32.mrf.mxu3  ;;  %v365_v16 = vadd.f32 1.0, %v3446_v9 }
  0xaa   :  { %v4311_v34 = vadd.f32 %v3437_v7, %v236_v32  ;;  %v192_v35 = vpop.f32.mrf.mxu2  ;;  %v145_v51 = vpop.f32.mrf.mxu1 }
  0xab   :  { %v4313_v61 = vadd.f32 %v3438_v8, %v192_v35  ;;  %v4315_v62 = vadd.f32 %v3439_v15, %v145_v51  ;;  %3447 = vrcp.f32 %v365_v16  ;;  %vm371_vm2 = vweird.f32 %v365_v16 }
  0xac   :  { %5469 = vst [vmem:[#allocation12_spill] sm:$0xff] %v4311_v34 }
  0xad   :  { %5470 = vst [vmem:[#allocation13_spill] sm:$0xff] %v4313_v61 }
  0xae   :  { %5471 = vst [vmem:[#allocation14_spill] sm:$0xff] %v4315_v62 }
  0xb1   :  { %v358_v3 = vpop.f32.mrf.mxu3  ;;  %v3448_v31 = vpop.eup %3447 }
  0xb2   :  { %v361_v11 = vadd.f32 %v358_v3, %v4317_v0  ;;  %v367_v7 = vmul.f32 %v3448_v31, %v365_v16  ;;  %v337_v12 = vpop.f32.mrf.mxu2  ;;  %vm372_vm3 = vweird.f32 %v3448_v31 }
  0xb3   :  { %v148_v5 = vpop.f32.mrf.mxu1  ;;  %vm373_vm4 = vmor %vm371_vm2, %vm372_vm3 }
  0xb4   :  { %v4320_v17 = vadd.f32 %v3439_v15, %v148_v5  ;;  %v3314_v19 = vmul.f32 -1.442695, %v361_v11  ;;  %v368_v3 = vsub.f32 1.0, %v367_v7  ;;  %v4325_v5 = vadd.f32 %v3438_v8, %v183_v2 }
  0xb6   :  { %5472 = vst [vmem:[#allocation15_spill] sm:$0xff] %v4320_v17  ;;  %3449 = vpow2.f32 %v3314_v19  ;;  %v369_v15 = vmul.f32 %v3448_v31, %v368_v3  ;;  %v340_v9 = vadd.f32 %v337_v12, %v4325_v5 }
  0xbb   :  { %v316_v28 = vpop.f32.mrf.mxu1 }
  0xbc   :  { %v319_v32 = vadd.f32 %v316_v28, %v4322_v20  ;;  %v3450_v1 = vpop.eup %3449  ;;  %v375_v28 = vand.u32 2147483647, %v365_v16 }
  0xbd   :  { %v404_v51 = vadd.f32 1.0, %v3450_v1 }
  0xbe   :  { %v3313_v35 = vmul.f32 -1.442695, %v319_v32  ;;  %v377_v32 = vand.u32 2147483648, %v365_v16  ;;  %vm376_vm5 = vcmp.eq.f32.partialorder %v375_v28, 8.507059e+37 }
  0xbf   :  { %vm410_vm11 = vweird.f32 %v404_v51 }
  0xc0   :  { %3451 = vpow2.f32 %v3313_v35  ;;  %v370_v35 = vadd.f32 %v3448_v31, %v369_v15  ;;  %v378_v2 = vor.u32 1.1754944e-38, %v377_v32  ;;  %v416_v32 = vand.u32 2147483648, %v404_v51 }
  0xc1   :  { %3453 = vrcp.f32 %v404_v51 }
  0xc2   :  { %v374_v7 = vsel %vm373_vm4, %v3448_v31, %v370_v35  ;;  %v417_v35 = vor.u32 1.1754944e-38, %v416_v32 }
  0xc3   :  { %v379_v62 = vsel %vm376_vm5, %v378_v2, %v374_v7 }
  0xc6   :  { %v3452_v61 = vpop.eup %3451 }
  0xc7   :  { %v384_v34 = vadd.f32 1.0, %v3452_v61  ;;  %v3454_v11 = vpop.eup %3453 }
  0xc8   :  { %v406_v1 = vmul.f32 %v3454_v11, %v404_v51  ;;  %vm411_vm10 = vweird.f32 %v3454_v11 }
  0xc9   :  { %3455 = vrcp.f32 %v384_v34  ;;  %v396_v8 = vand.u32 2147483648, %v384_v34  ;;  %v394_v3 = vand.u32 2147483647, %v384_v34  ;;  %vm390_vm7 = vweird.f32 %v384_v34  ;;  %vm412_vm12 = vmor %vm410_vm11, %vm411_vm10 }
  0xca   :  { %3457 = vtanh.f32 %v340_v9  ;;  %v407_v12 = vsub.f32 1.0, %v406_v1 }
  0xcb   :  { %v397_v16 = vor.u32 1.1754944e-38, %v396_v8  ;;  %vm395_vm9 = vcmp.eq.f32.partialorder %v394_v3, 8.507059e+37 }
  0xcc   :  { %v408_v63 = vmul.f32 %v3454_v11, %v407_v12 }
  0xce   :  { %v409_v31 = vadd.f32 %v3454_v11, %v408_v63 }
  0xcf   :  { %v3456_v19 = vpop.eup %3455 }
  0xd0   :  { %v386_v17 = vmul.f32 %v3456_v19, %v384_v34  ;;  %vm391_vm6 = vweird.f32 %v3456_v19  ;;  %v3458_v18 = vpop.eup %3457  ;;  %v413_v34 = vsel %vm412_vm12, %v3454_v11, %v409_v31 }
  0xd1   :  { %vm392_vm8 = vmor %vm390_vm7, %vm391_vm6  ;;  %v421_v9 = vmul.f32 %v3458_v18, %v379_v62 }
  0xd2   :  { %v387_v61 = vsub.f32 1.0, %v386_v17 }
  0xd4   :  { %v388_v4 = vmul.f32 %v3456_v19, %v387_v61 }
  0xd6   :  { %v389_v21 = vadd.f32 %v3456_v19, %v388_v4  ;;  %v414_v4 = vand.u32 2147483647, %v404_v51 }
  0xd8   :  { %v393_v15 = vsel %vm392_vm8, %v3456_v19, %v389_v21  ;;  %vm415_vm13 = vcmp.eq.f32.partialorder %v414_v4, 8.507059e+37 }
  0xd9   :  { %v398_v13 = vsel %vm395_vm9, %v397_v16, %v393_v15  ;;  %v418_v21 = vsel %vm415_vm13, %v417_v35, %v413_v34 }
  0xda   :  { %v420_v17 = vmul.f32 0.0, %v398_v13 }
  0xdc   :  { %v4328_v28 = vadd.f32 %v421_v9, %v420_v17 }
  0xde   :  { %3459 = vtanh.f32 %v4328_v28 }
  0xe4   :  { %v3460_v1 = vpop.eup %3459 }
  0xe5   :  { %v4331_v19 = vmul.f32 %v3460_v1, %v418_v21 }
  0xe7   :  { %3315 = vmatmul.msk.f32.vlgmr.msra.gmra.mxu0 %vm274_vm14, %v4331_v19  ;;  %3316 = vmatmul.msk.f32.vlgmr.msrb.gmra.mxu1 %vm274_vm14, %v4331_v19 }
  0xe8   :  { %3317 = vmatmul.msk.f32.vlgmr.msra.gmra.mxu2 %vm274_vm14, %v4331_v19  ;;  %3318 = vmatmul.msk.f32.vlgmr.msra.gmra.mxu3 %vm274_vm14, %v4331_v19 }
  0xe9   :  { %773 = vmatpush.msra.mxu0 %v3973_v22  ;;  %797 = vmatpush.msrb.mxu1 %v4049_v37 }
  0xea   :  { %821 = vmatpush.msra.mxu2 %v3988_v25  ;;  %845 = vmatpush.msra.mxu3 %v3978_v23 }
  0xeb   :  { %774 = vmatpush.msra.mxu0 %v3995_v26  ;;  %798 = vmatpush.msrb.mxu1 %v4080_v41 }
  0xec   :  { %822 = vmatpush.msra.mxu2 %v4010_v29  ;;  %846 = vmatpush.msra.mxu3 %v4000_v27 }
  0xed   :  { %775 = vmatpush.msra.mxu0 %v4015_v30  ;;  %799 = vmatpush.msrb.mxu1 %v4106_v45 }
  0xee   :  { %823 = vmatpush.msra.mxu2 %v4063_v39  ;;  %847 = vmatpush.msra.mxu3 %v4058_v38 }
  0xef   :  { %776 = vmatpush.msra.mxu0 %v4032_v33  ;;  %800 = vmatpush.msrb.mxu1 %v4134_v49 }
  0xf0   :  { %824 = vmatpush.msra.mxu2 %v4092_v43  ;;  %848 = vmatpush.msra.mxu3 %v4087_v42 }
  0xf1   :  { %777 = vmatpush.msra.mxu0 %v4044_v36  ;;  %801 = vmatpush.msrb.mxu1 %v4154_v53 }
  0xf2   :  { %825 = vmatpush.msra.mxu2 %v4129_v48  ;;  %849 = vmatpush.msra.mxu3 %v4121_v47 }
  0xf3   :  { %778 = vmatpush.msra.mxu0 %v4075_v40  ;;  %802 = vmatpush.msrb.mxu1 %v4175_v56 }
  0xf4   :  { %826 = vmatpush.msra.mxu2 %v4149_v52  ;;  %850 = vmatpush.msra.mxu3 %v4142_v50 }
  0xf5   :  { %779 = vmatpush.msra.mxu0 %v4097_v44  ;;  %803 = vmatpush.msrb.mxu1 %v4195_v59 }
  0xf6   :  { %827 = vmatpush.msra.mxu2 %v4167_v55  ;;  %851 = vmatpush.msra.mxu3 %v4161_v54 }
  0xf7   :  { %780 = vmatpush.msra.mxu0 %v4111_v46  ;;  %804 = vmatpush.msrb.mxu1 %v4206_v60 }
  0xf8   :  { %828 = vmatpush.msra.mxu2 %v4190_v58  ;;  %852 = vmatpush.msra.mxu3 %v4181_v57 }
 0x164   :  { %v446_v63 = vpop.f32.mrf.mxu0  ;;  %v470_v13 = vpop.f32.mrf.mxu1 }
 0x165   :  { %v450_v18 = vrot.slane %v446_v63, 6  ;;  %v474_v62 = vrot.slane %v470_v13, 6 }
 0x167   :  { %v452_v51 = vadd.f32 %v450_v18, %v4299_v14  ;;  %v476_v11 = vadd.f32 %v474_v62, %v4322_v20 }
 0x169   :  { %v3319_v61 = vmul.f32 -1.442695, %v452_v51  ;;  %v3320_v2 = vmul.f32 -1.442695, %v476_v11 }
 0x16b   :  { %3461 = vpow2.f32 %v3319_v61  ;;  %v518_v8 = vpop.f32.mrf.mxu3  ;;  %v494_v31 = vpop.f32.mrf.mxu2 }
 0x16c   :  { %3463 = vpow2.f32 %v3320_v2  ;;  %v522_v7 = vrot.slane %v518_v8, 6  ;;  %v498_v32 = vrot.slane %v494_v31, 6 }
 0x16e   :  { %v524_v3 = vadd.f32 %v522_v7, %v4317_v0  ;;  %v500_v1 = vadd.f32 %v498_v32, %v4325_v5 }
 0x170   :  { %v3321_v12 = vmul.f32 -1.442695, %v524_v3 }
 0x171   :  { %v3462_v16 = vpop.eup %3461 }
 0x172   :  { %v3464_v15 = vpop.eup %3463  ;;  %v528_v9 = vadd.f32 1.0, %v3462_v16  ;;  %3465 = vpow2.f32 %v3321_v12 }
 0x173   :  { %v547_v17 = vadd.f32 1.0, %v3464_v15 }
 0x174   :  { %3467 = vrcp.f32 %v528_v9  ;;  %v540_v51 = vand.u32 2147483648, %v528_v9  ;;  %v538_v2 = vand.u32 2147483647, %v528_v9  ;;  %vm534_vm1 = vweird.f32 %v528_v9 }
 0x175   :  { %3469 = vrcp.f32 %v547_v17  ;;  %v559_v11 = vand.u32 2147483648, %v547_v17  ;;  %v557_v7 = vand.u32 2147483647, %v547_v17  ;;  %vm553_vm2 = vweird.f32 %v547_v17 }
 0x176   :  { %v541_v16 = vor.u32 1.1754944e-38, %v540_v51  ;;  %vm539_vm5 = vcmp.eq.f32.partialorder %v538_v2, 8.507059e+37 }
 0x177   :  { %v560_v32 = vor.u32 1.1754944e-38, %v559_v11  ;;  %vm558_vm6 = vcmp.eq.f32.partialorder %v557_v7, 8.507059e+37 }
 0x178   :  { %v3466_v4 = vpop.eup %3465 }
 0x179   :  { %v567_v34 = vadd.f32 1.0, %v3466_v4 }
 0x17a   :  { %v3468_v35 = vpop.eup %3467 }
 0x17b   :  { %v3470_v21 = vpop.eup %3469  ;;  %v530_v63 = vmul.f32 %v3468_v35, %v528_v9  ;;  %3471 = vrcp.f32 %v567_v34  ;;  %vm535_vm15 = vweird.f32 %v3468_v35  ;;  %v579_v11 = vand.u32 2147483648, %v567_v34 }
 0x17c   :  { %v549_v13 = vmul.f32 %v3470_v21, %v547_v17  ;;  %3473 = vtanh.f32 %v500_v1  ;;  %vm554_vm0 = vweird.f32 %v3470_v21  ;;  %vm536_vm3 = vmor %vm534_vm1, %vm535_vm15  ;;  %v584_v1 = vrot.slane %v4328_v28, 6 }
 0x17d   :  { %v531_v18 = vsub.f32 1.0, %v530_v63  ;;  %vm555_vm4 = vmor %vm553_vm2, %vm554_vm0  ;;  %vm573_vm8 = vweird.f32 %v567_v34  ;;  %v580_v2 = vor.u32 1.1754944e-38, %v579_v11 }
 0x17e   :  { %v550_v62 = vsub.f32 1.0, %v549_v13 }
 0x17f   :  { %v532_v61 = vmul.f32 %v3468_v35, %v531_v18 }
 0x180   :  { %v551_v8 = vmul.f32 %v3470_v21, %v550_v62 }
 0x181   :  { %v3472_v3 = vpop.eup %3471  ;;  %v533_v12 = vadd.f32 %v3468_v35, %v532_v61 }
 0x182   :  { %v552_v15 = vadd.f32 %v3470_v21, %v551_v8  ;;  %v569_v31 = vmul.f32 %v3472_v3, %v567_v34  ;;  %v3474_v63 = vpop.eup %3473  ;;  %vm574_vm7 = vweird.f32 %v3472_v3 }
 0x183   :  { %v537_v4 = vsel %vm536_vm3, %v3468_v35, %v533_v12  ;;  %v577_v35 = vand.u32 2147483647, %v567_v34  ;;  %vm575_vm9 = vmor %vm573_vm8, %vm574_vm7 }
 0x184   :  { %v542_v13 = vsel %vm539_vm5, %v541_v16, %v537_v4  ;;  %v556_v18 = vsel %vm555_vm4, %v3470_v21, %v552_v15  ;;  %v570_v62 = vsub.f32 1.0, %v569_v31 }
 0x185   :  { %v561_v10 = vsel %vm558_vm6, %v560_v32, %v556_v18  ;;  %v587_v24 = vmul.f32 %v3474_v63, %v542_v13  ;;  %vm578_vm10 = vcmp.eq.f32.partialorder %v577_v35, 8.507059e+37 }
 0x186   :  { %v586_v61 = vmul.f32 %v584_v1, %v561_v10  ;;  %v571_v9 = vmul.f32 %v3472_v3, %v570_v62 }
 0x188   :  { %v4378_v17 = vadd.f32 %v587_v24, %v586_v61  ;;  %v572_v51 = vadd.f32 %v3472_v3, %v571_v9 }
 0x18a   :  { %3475 = vtanh.f32 %v4378_v17  ;;  %v576_v28 = vsel %vm575_vm9, %v3472_v3, %v572_v51 }
 0x18b   :  { %v581_v8 = vsel %vm578_vm10, %v580_v2, %v576_v28 }
 0x190   :  { %v3476_v21 = vpop.eup %3475 }
 0x191   :  { %v590_v7 = vmul.f32 %v3476_v21, %v581_v8 }
 0x193   :  { %v4381_v12 = vrot.slane %v590_v7, 2 }
 0x195   :  { %3322 = vmatmul.msk.f32.vlgmr.msrb.gmra.mxu0 %vm274_vm14, %v4381_v12  ;;  %3323 = vmatmul.msk.f32.vlgmr.msra.gmra.mxu1 %vm274_vm14, %v4381_v12 }
 0x196   :  { %3324 = vmatmul.msk.f32.vlgmr.msrb.gmra.mxu2 %vm274_vm14, %v4381_v12  ;;  %3325 = vmatmul.msk.f32.vlgmr.msrb.gmra.mxu3 %vm274_vm14, %v4381_v12 }
 0x197   :  { %941 = vmatpush.msrb.mxu0 %v3973_v22  ;;  %962 = vmatpush.msra.mxu1 %v4049_v37 }
 0x198   :  { %983 = vmatpush.msrb.mxu2 %v3988_v25  ;;  %1004 = vmatpush.msrb.mxu3 %v3978_v23 }
 0x199   :  { %942 = vmatpush.msrb.mxu0 %v3995_v26  ;;  %963 = vmatpush.msra.mxu1 %v4080_v41 }
 0x19a   :  { %984 = vmatpush.msrb.mxu2 %v4010_v29  ;;  %1005 = vmatpush.msrb.mxu3 %v4000_v27 }
 0x19b   :  { %943 = vmatpush.msrb.mxu0 %v4015_v30  ;;  %964 = vmatpush.msra.mxu1 %v4106_v45 }
 0x19c   :  { %985 = vmatpush.msrb.mxu2 %v4063_v39  ;;  %1006 = vmatpush.msrb.mxu3 %v4058_v38 }
 0x19d   :  { %944 = vmatpush.msrb.mxu0 %v4032_v33  ;;  %965 = vmatpush.msra.mxu1 %v4134_v49 }
 0x19e   :  { %986 = vmatpush.msrb.mxu2 %v4092_v43  ;;  %1007 = vmatpush.msrb.mxu3 %v4087_v42 }
 0x19f   :  { %945 = vmatpush.msrb.mxu0 %v4044_v36  ;;  %966 = vmatpush.msra.mxu1 %v4154_v53 }
 0x1a0   :  { %987 = vmatpush.msrb.mxu2 %v4129_v48  ;;  %1008 = vmatpush.msrb.mxu3 %v4121_v47 }
 0x1a1   :  { %946 = vmatpush.msrb.mxu0 %v4075_v40  ;;  %967 = vmatpush.msra.mxu1 %v4175_v56 }
 0x1a2   :  { %988 = vmatpush.msrb.mxu2 %v4149_v52  ;;  %1009 = vmatpush.msrb.mxu3 %v4142_v50 }
 0x1a3   :  { %947 = vmatpush.msrb.mxu0 %v4097_v44  ;;  %968 = vmatpush.msra.mxu1 %v4195_v59 }
 0x1a4   :  { %989 = vmatpush.msrb.mxu2 %v4167_v55  ;;  %1010 = vmatpush.msrb.mxu3 %v4161_v54 }
 0x1a5   :  { %948 = vmatpush.msrb.mxu0 %v4111_v46  ;;  %969 = vmatpush.msra.mxu1 %v4206_v60 }
 0x1a6   :  { %990 = vmatpush.msrb.mxu2 %v4190_v58  ;;  %1011 = vmatpush.msrb.mxu3 %v4181_v57 }
 0x212   :  { %v614_v22 = vpop.f32.mrf.mxu0  ;;  %v638_v23 = vpop.f32.mrf.mxu1 }
 0x213   :  { %v618_v25 = vrot.slane %v614_v22, 4  ;;  %v642_v27 = vrot.slane %v638_v23, 4 }
 0x215   :  { %v620_v10 = vadd.f32 %v618_v25, %v4299_v14  ;;  %v644_v24 = vadd.f32 %v642_v27, %v4322_v20 }
 0x217   :  { %v3326_v34 = vmul.f32 -1.442695, %v620_v10  ;;  %v3327_v3 = vmul.f32 -1.442695, %v644_v24 }
 0x219   :  { %3477 = vpow2.f32 %v3326_v34  ;;  %v686_v16 = vpop.f32.mrf.mxu3  ;;  %v662_v18 = vpop.f32.mrf.mxu2 }
 0x21a   :  { %3479 = vpow2.f32 %v3327_v3  ;;  %v690_v15 = vrot.slane %v686_v16, 4  ;;  %v666_v62 = vrot.slane %v662_v18, 4 }
 0x21c   :  { %v692_v31 = vadd.f32 %v690_v15, %v4317_v0  ;;  %v668_v11 = vadd.f32 %v666_v62, %v4325_v5 }
 0x21e   :  { %v3328_v32 = vmul.f32 -1.442695, %v692_v31  ;;  %v752_v31 = vrot.slane %v4378_v17, 6 }
 0x21f   :  { %v3478_v4 = vpop.eup %3477 }
 0x220   :  { %v3480_v1 = vpop.eup %3479  ;;  %v696_v63 = vadd.f32 1.0, %v3478_v4  ;;  %3481 = vpow2.f32 %v3328_v32 }
 0x221   :  { %v715_v13 = vadd.f32 1.0, %v3480_v1 }
 0x222   :  { %3483 = vrcp.f32 %v696_v63  ;;  %v708_v7 = vand.u32 2147483648, %v696_v63  ;;  %v706_v25 = vand.u32 2147483647, %v696_v63  ;;  %vm702_vm13 = vweird.f32 %v696_v63 }
 0x223   :  { %3485 = vrcp.f32 %v715_v13  ;;  %v727_v22 = vand.u32 2147483648, %v715_v13  ;;  %v725_v10 = vand.u32 2147483647, %v715_v13  ;;  %vm721_vm15 = vweird.f32 %v715_v13 }
 0x224   :  { %v709_v3 = vor.u32 1.1754944e-38, %v708_v7  ;;  %vm707_vm2 = vcmp.eq.f32.partialorder %v706_v25, 8.507059e+37  ;;  %v594_v25 = vadd.f32 %v4381_v12, %v4331_v19  ;;  %v4449_v19 = vld [vmem:[%s5438_s2 + $0xb8] sm:$0xff] }
 0x225   :  { %v728_v32 = vor.u32 1.1754944e-38, %v727_v22  ;;  %vm726_vm3 = vcmp.eq.f32.partialorder %v725_v10, 8.507059e+37  ;;  %v4455_v12 = vld [vmem:[%s5438_s2 + $0xf8] sm:$0xff] }
 0x226   :  { %v3482_v61 = vpop.eup %3481 }
 0x227   :  { %v735_v9 = vadd.f32 1.0, %v3482_v61 }
 0x228   :  { %v3484_v51 = vpop.eup %3483 }
 0x229   :  { %v3486_v35 = vpop.eup %3485  ;;  %v698_v28 = vmul.f32 %v3484_v51, %v696_v63  ;;  %3487 = vrcp.f32 %v735_v9  ;;  %vm703_vm11 = vweird.f32 %v3484_v51  ;;  %v747_v17 = vand.u32 2147483648, %v735_v9 }
 0x22a   :  { %v717_v2 = vmul.f32 %v3486_v35, %v715_v13  ;;  %3489 = vtanh.f32 %v668_v11  ;;  %vm722_vm12 = vweird.f32 %v3486_v35  ;;  %vm704_vm0 = vmor %vm702_vm13, %vm703_vm11  ;;  %vm741_vm5 = vweird.f32 %v735_v9 }
 0x22b   :  { %v699_v21 = vsub.f32 1.0, %v698_v28  ;;  %vm723_vm1 = vmor %vm721_vm15, %vm722_vm12  ;;  %v748_v7 = vor.u32 1.1754944e-38, %v747_v17 }
 0x22c   :  { %v718_v8 = vsub.f32 1.0, %v717_v2 }
 0x22d   :  { %v700_v23 = vmul.f32 %v3484_v51, %v699_v21 }
 0x22e   :  { %v719_v27 = vmul.f32 %v3486_v35, %v718_v8  ;;  %v745_v8 = vand.u32 2147483647, %v735_v9 }
 0x22f   :  { %v3488_v24 = vpop.eup %3487  ;;  %v701_v34 = vadd.f32 %v3484_v51, %v700_v23 }
 0x230   :  { %v720_v16 = vadd.f32 %v3486_v35, %v719_v27  ;;  %v737_v15 = vmul.f32 %v3488_v24, %v735_v9  ;;  %v3490_v1 = vpop.eup %3489  ;;  %vm742_vm4 = vweird.f32 %v3488_v24  ;;  %vm746_vm7 = vcmp.eq.f32.partialorder %v745_v8, 8.507059e+37  ;;  %v4442_v9 = vld [vmem:[%s5438_s2 + $0x38] sm:$0xff] }
 0x231   :  { %v705_v4 = vsel %vm704_vm0, %v3484_v51, %v701_v34  ;;  %vm743_vm6 = vmor %vm741_vm5, %vm742_vm4 }
 0x232   :  { %v710_v18 = vsel %vm707_vm2, %v709_v3, %v705_v4  ;;  %v724_v62 = vsel %vm723_vm1, %v3486_v35, %v720_v16  ;;  %v738_v61 = vsub.f32 1.0, %v737_v15 }
 0x233   :  { %v729_v11 = vsel %vm726_vm3, %v728_v32, %v724_v62  ;;  %v755_v28 = vmul.f32 %v3490_v1, %v710_v18 }
 0x234   :  { %v754_v2 = vmul.f32 %v752_v31, %v729_v11  ;;  %v739_v63 = vmul.f32 %v3488_v24, %v738_v61 }
 0x236   :  { %v4428_v13 = vadd.f32 %v755_v28, %v754_v2  ;;  %v740_v21 = vadd.f32 %v3488_v24, %v739_v63 }
 0x238   :  { %3491 = vtanh.f32 %v4428_v13  ;;  %v744_v51 = vsel %vm743_vm6, %v3488_v24, %v740_v21  ;;  %v920_v4 = vrot.slane %v4428_v13, 6 }
 0x239   :  { %v749_v22 = vsel %vm746_vm7, %v748_v7, %v744_v51 }
 0x23e   :  { %v3492_v35 = vpop.eup %3491 }
 0x23f   :  { %v758_v23 = vmul.f32 %v3492_v35, %v749_v22 }
 0x241   :  { %v760_v27 = vrot.slane %v758_v23, 4 }
 0x243   :  { %3329 = vmatmul.msk.f32.vlgmr.msra.gmra.mxu0 %vm274_vm14, %v760_v27  ;;  %3330 = vmatmul.msk.f32.vlgmr.msrb.gmra.mxu1 %vm274_vm14, %v760_v27  ;;  %v4435_v10 = vadd.f32 %v760_v27, %v594_v25 }
 0x244   :  { %3331 = vmatmul.msk.f32.vlgmr.msra.gmra.mxu2 %vm274_vm14, %v760_v27  ;;  %3332 = vmatmul.msk.f32.vlgmr.msra.gmra.mxu3 %vm274_vm14, %v760_v27 }
 0x245   :  { %1095 = vmatpush.msra.mxu0 %v4442_v9  ;;  %1119 = vmatpush.msrb.mxu1 %v4049_v37  ;;  %v4464_v37 = vld [vmem:[%s5438_s2 + $0xf0] sm:$0xff] }
 0x246   :  { %1143 = vmatpush.msra.mxu2 %v4449_v19  ;;  %1167 = vmatpush.msra.mxu3 %v4455_v12 }
 0x247   :  { %1096 = vmatpush.msra.mxu0 %v3995_v26  ;;  %1120 = vmatpush.msrb.mxu1 %v4080_v41 }
 0x248   :  { %1144 = vmatpush.msra.mxu2 %v4010_v29  ;;  %1168 = vmatpush.msra.mxu3 %v4464_v37 }
 0x249   :  { %1097 = vmatpush.msra.mxu0 %v4015_v30  ;;  %1121 = vmatpush.msrb.mxu1 %v4106_v45 }
 0x24a   :  { %1145 = vmatpush.msra.mxu2 %v4063_v39  ;;  %1169 = vmatpush.msra.mxu3 %v4058_v38 }
 0x24b   :  { %1098 = vmatpush.msra.mxu0 %v4032_v33  ;;  %1122 = vmatpush.msrb.mxu1 %v4134_v49 }
 0x24c   :  { %1146 = vmatpush.msra.mxu2 %v4092_v43  ;;  %1170 = vmatpush.msra.mxu3 %v4087_v42 }
 0x24d   :  { %1099 = vmatpush.msra.mxu0 %v4044_v36  ;;  %1123 = vmatpush.msrb.mxu1 %v4154_v53 }
 0x24e   :  { %1147 = vmatpush.msra.mxu2 %v4129_v48  ;;  %1171 = vmatpush.msra.mxu3 %v4121_v47 }
 0x24f   :  { %1100 = vmatpush.msra.mxu0 %v4075_v40  ;;  %1124 = vmatpush.msrb.mxu1 %v4175_v56 }
 0x250   :  { %1148 = vmatpush.msra.mxu2 %v4149_v52  ;;  %1172 = vmatpush.msra.mxu3 %v4142_v50 }
 0x251   :  { %1101 = vmatpush.msra.mxu0 %v4097_v44  ;;  %1125 = vmatpush.msrb.mxu1 %v4195_v59 }
 0x252   :  { %1149 = vmatpush.msra.mxu2 %v4167_v55  ;;  %1173 = vmatpush.msra.mxu3 %v4161_v54 }
 0x253   :  { %1102 = vmatpush.msra.mxu0 %v4111_v46  ;;  %1126 = vmatpush.msrb.mxu1 %v4206_v60 }
 0x254   :  { %1150 = vmatpush.msra.mxu2 %v4190_v58  ;;  %1174 = vmatpush.msra.mxu3 %v4181_v57 }
 0x2c0   :  { %v782_v26 = vpop.f32.mrf.mxu0  ;;  %v806_v29 = vpop.f32.mrf.mxu1 }
 0x2c1   :  { %v786_v30 = vrot.slane %v782_v26, 2  ;;  %v810_v33 = vrot.slane %v806_v29, 2 }
 0x2c3   :  { %v788_v36 = vadd.f32 %v786_v30, %v4299_v14  ;;  %v812_v38 = vadd.f32 %v810_v33, %v4322_v20  ;;  %v4510_v30 = vld [vmem:[%s5438_s2 + $0x78] sm:$0xff]  ;;  %v4524_v33 = vld [vmem:[%s5438_s2 + $0x70] sm:$0xff] }
 0x2c5   :  { %v3333_v39 = vmul.f32 -1.442695, %v788_v36  ;;  %v3334_v40 = vmul.f32 -1.442695, %v812_v38  ;;  %v4530_v36 = vld [vmem:[%s5438_s2 + $0xb0] sm:$0xff]  ;;  %v4537_v38 = vld [vmem:[%s5438_s2 + $0x28] sm:$0xff] }
 0x2c7   :  { %3493 = vpow2.f32 %v3333_v39  ;;  %v854_v41 = vpop.f32.mrf.mxu3  ;;  %v830_v49 = vpop.f32.mrf.mxu2  ;;  %v4543_v39 = vld [vmem:[%s5438_s2 + $0x68] sm:$0xff] }
 0x2c8   :  { %3495 = vpow2.f32 %v3334_v40  ;;  %v858_v42 = vrot.slane %v854_v41, 2  ;;  %v834_v50 = vrot.slane %v830_v49, 2  ;;  %v4549_v40 = vld [vmem:[%s5438_s2 + $0xa8] sm:$0xff]  ;;  %v4603_v49 = vld [vmem:[%s5438_s2 + $0xd8] sm:$0xff] }
 0x2c9   :  { %v4555_v41 = vld [vmem:[%s5438_s2 + $0xe8] sm:$0xff] }
 0x2ca   :  { %v860_v43 = vadd.f32 %v858_v42, %v4317_v0  ;;  %v836_v55 = vadd.f32 %v834_v50, %v4325_v5  ;;  %v4561_v42 = vld [vmem:[%s5438_s2 + $0x20] sm:$0xff]  ;;  %v4609_v50 = vld [vmem:[%s5438_s2 + $0x10] sm:$0xff] }
 0x2cc   :  { %v3335_v44 = vmul.f32 -1.442695, %v860_v43  ;;  %v4567_v43 = vld [vmem:[%s5438_s2 + $0x60] sm:$0xff] }
 0x2cd   :  { %v3494_v45 = vpop.eup %3493 }
 0x2ce   :  { %v3496_v46 = vpop.eup %3495  ;;  %v864_v47 = vadd.f32 1.0, %v3494_v45  ;;  %3497 = vpow2.f32 %v3335_v44  ;;  %v4573_v44 = vld [vmem:[%s5438_s2 + $0xa0] sm:$0xff] }
 0x2cf   :  { %v883_v48 = vadd.f32 1.0, %v3496_v46  ;;  %v4579_v45 = vld [vmem:[%s5438_s2 + $0xe0] sm:$0xff]  ;;  %v4585_v46 = vld [vmem:[%s5438_s2 + $0x18] sm:$0xff] }
 0x2d0   :  { %3499 = vrcp.f32 %v864_v47  ;;  %v876_v14 = vand.u32 2147483648, %v864_v47  ;;  %v874_v24 = vand.u32 2147483647, %v864_v47  ;;  %vm870_vm10 = vweird.f32 %v864_v47 }
 0x2d1   :  { %3501 = vrcp.f32 %v883_v48  ;;  %v895_v0 = vand.u32 2147483648, %v883_v48  ;;  %v893_v3 = vand.u32 2147483647, %v883_v48  ;;  %vm889_vm11 = vweird.f32 %v883_v48 }
 0x2d2   :  { %v877_v5 = vor.u32 1.1754944e-38, %v876_v14  ;;  %vm875_vm15 = vcmp.eq.f32.partialorder %v874_v24, 8.507059e+37  ;;  %v4669_v14 = vld [vmem:[%s5438_s2 + $0x80] sm:$0xff] }
 0x2d3   :  { %v896_v1 = vor.u32 1.1754944e-38, %v895_v0  ;;  %vm894_vm0 = vcmp.eq.f32.partialorder %v893_v3, 8.507059e+37  ;;  %v4675_v0 = vld [vmem:[%s5438_s2 + $0xc0] sm:$0xff]  ;;  %v5473_v3 = vld [vmem:[#allocation11_spill] sm:$0xff] }
 0x2d4   :  { %v3498_v52 = vpop.eup %3497 }
 0x2d5   :  { %v903_v53 = vadd.f32 1.0, %v3498_v52  ;;  %v4615_v52 = vld [vmem:[%s5438_s2 + $0x50] sm:$0xff] }
 0x2d6   :  { %v3500_v54 = vpop.eup %3499 }
 0x2d7   :  { %v3502_v56 = vpop.eup %3501  ;;  %v866_v57 = vmul.f32 %v3500_v54, %v864_v47  ;;  %3503 = vrcp.f32 %v903_v53  ;;  %vm871_vm8 = vweird.f32 %v3500_v54  ;;  %v915_v13 = vand.u32 2147483648, %v903_v53  ;;  %v4591_v47 = vld [vmem:[%s5438_s2 + $0x58] sm:$0xff] }
 0x2d8   :  { %v885_v58 = vmul.f32 %v3502_v56, %v883_v48  ;;  %3505 = vtanh.f32 %v836_v55  ;;  %vm890_vm9 = vweird.f32 %v3502_v56  ;;  %vm872_vm12 = vmor %vm870_vm10, %vm871_vm8  ;;  %vm909_vm2 = vweird.f32 %v903_v53  ;;  %v4597_v48 = vld [vmem:[%s5438_s2 + $0x98] sm:$0xff]  ;;  %v4633_v55 = vld [vmem:[%s5438_s2 + $0x8] sm:$0xff] }
 0x2d9   :  { %v867_v59 = vsub.f32 1.0, %v866_v57  ;;  %vm891_vm13 = vmor %vm889_vm11, %vm890_vm9  ;;  %v913_v7 = vand.u32 2147483647, %v903_v53  ;;  %v916_v22 = vor.u32 1.1754944e-38, %v915_v13  ;;  %v4645_v57 = vld [vmem:[%s5438_s2 + $0x88] sm:$0xff] }
 0x2da   :  { %v886_v60 = vsub.f32 1.0, %v885_v58  ;;  %v4651_v58 = vld [vmem:[%s5438_s2 + $0xc8] sm:$0xff] }
 0x2db   :  { %v868_v20 = vmul.f32 %v3500_v54, %v867_v59  ;;  %vm914_vm4 = vcmp.eq.f32.partialorder %v913_v7, 8.507059e+37  ;;  %v4657_v59 = vld [vmem:[%s5438_s2] sm:$0xff] }
 0x2dc   :  { %v887_v34 = vmul.f32 %v3502_v56, %v886_v60  ;;  %v4663_v60 = vld [vmem:[%s5438_s2 + $0x40] sm:$0xff] }
 0x2dd   :  { %v3504_v16 = vpop.eup %3503  ;;  %v869_v15 = vadd.f32 %v3500_v54, %v868_v20 }
 0x2de   :  { %v888_v31 = vadd.f32 %v3502_v56, %v887_v34  ;;  %v905_v32 = vmul.f32 %v3504_v16, %v903_v53  ;;  %v3506_v62 = vpop.eup %3505  ;;  %vm910_vm1 = vweird.f32 %v3504_v16  ;;  %v4621_v53 = vld [vmem:[%s5438_s2 + $0x90] sm:$0xff] }
 0x2df   :  { %v873_v18 = vsel %vm872_vm12, %v3500_v54, %v869_v15  ;;  %vm911_vm3 = vmor %vm909_vm2, %vm910_vm1  ;;  %v4627_v54 = vld [vmem:[%s5438_s2 + $0xd0] sm:$0xff] }
 0x2e0   :  { %v878_v61 = vsel %vm875_vm15, %v877_v5, %v873_v18  ;;  %v892_v11 = vsel %vm891_vm13, %v3502_v56, %v888_v31  ;;  %v906_v28 = vsub.f32 1.0, %v905_v32  ;;  %v4639_v56 = vld [vmem:[%s5438_s2 + $0x48] sm:$0xff]  ;;  %v5474_v32 = vld [vmem:[#allocation7_spill] sm:$0xff] }
 0x2e1   :  { %v897_v2 = vsel %vm894_vm0, %v896_v1, %v892_v11  ;;  %v923_v63 = vmul.f32 %v3506_v62, %v878_v61 }
 0x2e2   :  { %v922_v21 = vmul.f32 %v920_v4, %v897_v2  ;;  %v907_v17 = vmul.f32 %v3504_v16, %v906_v28 }
 0x2e4   :  { %v4496_v8 = vadd.f32 %v923_v63, %v922_v21  ;;  %v908_v51 = vadd.f32 %v3504_v16, %v907_v17  ;;  %v5475_v17 = vld [vmem:[#allocation8_spill] sm:$0xff] }
 0x2e6   :  { %3507 = vtanh.f32 %v4496_v8  ;;  %v912_v35 = vsel %vm911_vm3, %v3504_v16, %v908_v51 }
 0x2e7   :  { %v917_v25 = vsel %vm914_vm4, %v916_v22, %v912_v35 }
 0x2ec   :  { %v3508_v23 = vpop.eup %3507 }
 0x2ed   :  { %v926_v27 = vmul.f32 %v3508_v23, %v917_v25 }
 0x2ef   :  { %v928_v26 = vrot.slane %v926_v27, 6 }
 0x2f1   :  { %3336 = vmatmul.msk.f32.vlgmr.msrb.gmra.mxu0 %vm274_vm14, %v928_v26  ;;  %3337 = vmatmul.msk.f32.vlgmr.msra.gmra.mxu1 %vm274_vm14, %v928_v26  ;;  %v4502_v29 = vadd.f32 %v928_v26, %v4435_v10  ;;  %v4518_v10 = vld [vmem:[%s5438_s2 + $0x30] sm:$0xff] }
 0x2f2   :  { %3338 = vmatmul.msk.f32.vlgmr.msrb.gmra.mxu2 %vm274_vm14, %v928_v26  ;;  %3339 = vmatmul.msk.f32.vlgmr.msrb.gmra.mxu3 %vm274_vm14, %v928_v26 }
 0x2f3   :  { %1263 = vmatpush.msrb.mxu0 %v4442_v9  ;;  %1287 = vmatpush.msra.mxu1 %v4510_v30 }
 0x2f4   :  { %1311 = vmatpush.msrb.mxu2 %v4449_v19  ;;  %1335 = vmatpush.msrb.mxu3 %v4455_v12 }
 0x2f5   :  { %1264 = vmatpush.msrb.mxu0 %v4518_v10  ;;  %1288 = vmatpush.msra.mxu1 %v4524_v33 }
 0x2f6   :  { %1312 = vmatpush.msrb.mxu2 %v4530_v36  ;;  %1336 = vmatpush.msrb.mxu3 %v4464_v37 }
 0x2f7   :  { %1265 = vmatpush.msrb.mxu0 %v4537_v38  ;;  %1289 = vmatpush.msra.mxu1 %v4543_v39 }
 0x2f8   :  { %1313 = vmatpush.msrb.mxu2 %v4549_v40  ;;  %1337 = vmatpush.msrb.mxu3 %v4555_v41 }
 0x2f9   :  { %1266 = vmatpush.msrb.mxu0 %v4561_v42  ;;  %1290 = vmatpush.msra.mxu1 %v4567_v43 }
 0x2fa   :  { %1314 = vmatpush.msrb.mxu2 %v4573_v44  ;;  %1338 = vmatpush.msrb.mxu3 %v4579_v45 }
 0x2fb   :  { %1267 = vmatpush.msrb.mxu0 %v4585_v46  ;;  %1291 = vmatpush.msra.mxu1 %v4591_v47 }
 0x2fc   :  { %1315 = vmatpush.msrb.mxu2 %v4597_v48  ;;  %1339 = vmatpush.msrb.mxu3 %v4603_v49 }
 0x2fd   :  { %1268 = vmatpush.msrb.mxu0 %v4609_v50  ;;  %1292 = vmatpush.msra.mxu1 %v4615_v52 }
 0x2fe   :  { %1316 = vmatpush.msrb.mxu2 %v4621_v53  ;;  %1340 = vmatpush.msrb.mxu3 %v4627_v54 }
 0x2ff   :  { %1269 = vmatpush.msrb.mxu0 %v4633_v55  ;;  %1293 = vmatpush.msra.mxu1 %v4639_v56 }
 0x300   :  { %1317 = vmatpush.msrb.mxu2 %v4645_v57  ;;  %1341 = vmatpush.msrb.mxu3 %v4651_v58 }
 0x301   :  { %1270 = vmatpush.msrb.mxu0 %v4657_v59  ;;  %1294 = vmatpush.msra.mxu1 %v4663_v60 }
 0x302   :  { %1318 = vmatpush.msrb.mxu2 %v4669_v14  ;;  %1342 = vmatpush.msrb.mxu3 %v4675_v0 }
 0x36e   :  { %v950_v20 = vpop.f32.mrf.mxu0  ;;  %v971_v24 = vpop.f32.mrf.mxu1 }
 0x36f   :  { %v953_v34 = vadd.f32 %v950_v20, %v4287_v6  ;;  %v974_v16 = vadd.f32 %v971_v24, %v5473_v3 }
 0x371   :  { %v3340_v15 = vmul.f32 -1.442695, %v953_v34  ;;  %v3341_v5 = vmul.f32 -1.442695, %v974_v16 }
 0x373   :  { %3509 = vpow2.f32 %v3340_v15 }
 0x374   :  { %3511 = vpow2.f32 %v3341_v5 }
 0x375   :  { %v1013_v31 = vpop.f32.mrf.mxu3  ;;  %v992_v28 = vpop.f32.mrf.mxu2 }
 0x376   :  { %v1016_v4 = vadd.f32 %v1013_v31, %v5474_v32  ;;  %v995_v51 = vadd.f32 %v992_v28, %v5475_v17 }
 0x378   :  { %v3342_v1 = vmul.f32 -1.442695, %v1016_v4 }
 0x379   :  { %v3510_v18 = vpop.eup %3509 }
 0x37a   :  { %v3512_v62 = vpop.eup %3511  ;;  %v1020_v61 = vadd.f32 1.0, %v3510_v18  ;;  %3513 = vpow2.f32 %v3342_v1 }
 0x37b   :  { %v1039_v11 = vadd.f32 1.0, %v3512_v62  ;;  %v1076_v62 = vrot.slane %v4496_v8, 6 }
 0x37c   :  { %3515 = vrcp.f32 %v1020_v61  ;;  %v1032_v25 = vand.u32 2147483648, %v1020_v61  ;;  %v1030_v20 = vand.u32 2147483647, %v1020_v61  ;;  %vm1026_vm7 = vweird.f32 %v1020_v61 }
 0x37d   :  { %3517 = vrcp.f32 %v1039_v11  ;;  %v1051_v27 = vand.u32 2147483648, %v1039_v11  ;;  %v1049_v34 = vand.u32 2147483647, %v1039_v11  ;;  %vm1045_vm8 = vweird.f32 %v1039_v11 }
 0x37e   :  { %v1033_v5 = vor.u32 1.1754944e-38, %v1032_v25  ;;  %vm1031_vm11 = vcmp.eq.f32.partialorder %v1030_v20, 8.507059e+37 }
 0x37f   :  { %v1052_v1 = vor.u32 1.1754944e-38, %v1051_v27  ;;  %vm1050_vm12 = vcmp.eq.f32.partialorder %v1049_v34, 8.507059e+37 }
 0x380   :  { %v3514_v2 = vpop.eup %3513 }
 0x381   :  { %v1059_v63 = vadd.f32 1.0, %v3514_v2 }
 0x382   :  { %v3516_v21 = vpop.eup %3515 }
 0x383   :  { %v3518_v13 = vpop.eup %3517  ;;  %v1022_v7 = vmul.f32 %v3516_v21, %v1020_v61  ;;  %3519 = vrcp.f32 %v1059_v63  ;;  %vm1027_vm5 = vweird.f32 %v3516_v21  ;;  %v1071_v27 = vand.u32 2147483648, %v1059_v63 }
 0x384   :  { %v1041_v35 = vmul.f32 %v3518_v13, %v1039_v11  ;;  %3521 = vtanh.f32 %v995_v51  ;;  %vm1046_vm6 = vweird.f32 %v3518_v13  ;;  %vm1028_vm9 = vmor %vm1026_vm7, %vm1027_vm5  ;;  %vm1065_vm15 = vweird.f32 %v1059_v63 }
 0x385   :  { %v1023_v22 = vsub.f32 1.0, %v1022_v7  ;;  %vm1047_vm10 = vmor %vm1045_vm8, %vm1046_vm6 }
 0x386   :  { %v1042_v23 = vsub.f32 1.0, %v1041_v35 }
 0x387   :  { %v1024_v26 = vmul.f32 %v3516_v21, %v1023_v22 }
 0x388   :  { %v1043_v24 = vmul.f32 %v3518_v13, %v1042_v23 }
 0x389   :  { %v3520_v16 = vpop.eup %3519  ;;  %v1025_v15 = vadd.f32 %v3516_v21, %v1024_v26  ;;  %v1072_v26 = vor.u32 1.1754944e-38, %v1071_v27 }
 0x38a   :  { %v1044_v31 = vadd.f32 %v3518_v13, %v1043_v24  ;;  %v1061_v4 = vmul.f32 %v3520_v16, %v1059_v63  ;;  %v3522_v28 = vpop.eup %3521  ;;  %vm1066_vm13 = vweird.f32 %v3520_v16 }
 0x38b   :  { %v1029_v18 = vsel %vm1028_vm9, %v3516_v21, %v1025_v15  ;;  %v1069_v21 = vand.u32 2147483647, %v1059_v63  ;;  %vm1067_vm0 = vmor %vm1065_vm15, %vm1066_vm13 }
 0x38c   :  { %v1034_v2 = vsel %vm1031_vm11, %v1033_v5, %v1029_v18  ;;  %v1048_v51 = vsel %vm1047_vm10, %v3518_v13, %v1044_v31  ;;  %v1062_v7 = vsub.f32 1.0, %v1061_v4 }
 0x38d   :  { %v1053_v35 = vsel %vm1050_vm12, %v1052_v1, %v1048_v51  ;;  %v1079_v22 = vmul.f32 %v3522_v28, %v1034_v2  ;;  %vm1070_vm1 = vcmp.eq.f32.partialorder %v1069_v21, 8.507059e+37 }
 0x38e   :  { %v1078_v23 = vmul.f32 %v1076_v62, %v1053_v35  ;;  %v1063_v61 = vmul.f32 %v3520_v16, %v1062_v7 }
 0x390   :  { %v4683_v11 = vadd.f32 %v1079_v22, %v1078_v23  ;;  %v1064_v25 = vadd.f32 %v3520_v16, %v1063_v61 }
 0x392   :  { %3523 = vtanh.f32 %v4683_v11  ;;  %v1068_v8 = vsel %vm1067_vm0, %v3520_v16, %v1064_v25 }
 0x393   :  { %v1073_v20 = vsel %vm1070_vm1, %v1072_v26, %v1068_v8 }
 0x398   :  { %v3524_v13 = vpop.eup %3523 }
 0x399   :  { %v1082_v24 = vmul.f32 %v3524_v13, %v1073_v20 }
 0x39b   :  { %3343 = vmatmul.msk.f32.vlgmr.msra.gmra.mxu0 %vm274_vm14, %v1082_v24  ;;  %3344 = vmatmul.msk.f32.vlgmr.msrb.gmra.mxu1 %vm274_vm14, %v1082_v24  ;;  %v4689_v34 = vadd.f32 %v1082_v24, %v4502_v29 }
 0x39c   :  { %3345 = vmatmul.msk.f32.vlgmr.msra.gmra.mxu2 %vm274_vm14, %v1082_v24  ;;  %3346 = vmatmul.msk.f32.vlgmr.msra.gmra.mxu3 %vm274_vm14, %v1082_v24 }
 0x39d   :  { %1431 = vmatpush.msra.mxu0 %v4442_v9  ;;  %1455 = vmatpush.msrb.mxu1 %v4510_v30 }
 0x39e   :  { %1479 = vmatpush.msra.mxu2 %v4449_v19  ;;  %1503 = vmatpush.msra.mxu3 %v4455_v12 }
 0x39f   :  { %1432 = vmatpush.msra.mxu0 %v4518_v10  ;;  %1456 = vmatpush.msrb.mxu1 %v4524_v33 }
 0x3a0   :  { %1480 = vmatpush.msra.mxu2 %v4530_v36  ;;  %1504 = vmatpush.msra.mxu3 %v4464_v37 }
 0x3a1   :  { %1433 = vmatpush.msra.mxu0 %v4537_v38  ;;  %1457 = vmatpush.msrb.mxu1 %v4543_v39 }
 0x3a2   :  { %1481 = vmatpush.msra.mxu2 %v4549_v40  ;;  %1505 = vmatpush.msra.mxu3 %v4555_v41 }
 0x3a3   :  { %1434 = vmatpush.msra.mxu0 %v4561_v42  ;;  %1458 = vmatpush.msrb.mxu1 %v4567_v43 }
 0x3a4   :  { %1482 = vmatpush.msra.mxu2 %v4573_v44  ;;  %1506 = vmatpush.msra.mxu3 %v4579_v45 }
 0x3a5   :  { %1435 = vmatpush.msra.mxu0 %v4585_v46  ;;  %1459 = vmatpush.msrb.mxu1 %v4591_v47 }
 0x3a6   :  { %1483 = vmatpush.msra.mxu2 %v4597_v48  ;;  %1507 = vmatpush.msra.mxu3 %v4603_v49 }
 0x3a7   :  { %1436 = vmatpush.msra.mxu0 %v4609_v50  ;;  %1460 = vmatpush.msrb.mxu1 %v4615_v52 }
 0x3a8   :  { %1484 = vmatpush.msra.mxu2 %v4621_v53  ;;  %1508 = vmatpush.msra.mxu3 %v4627_v54 }
 0x3a9   :  { %1437 = vmatpush.msra.mxu0 %v4633_v55  ;;  %1461 = vmatpush.msrb.mxu1 %v4639_v56 }
 0x3aa   :  { %1485 = vmatpush.msra.mxu2 %v4645_v57  ;;  %1509 = vmatpush.msra.mxu3 %v4651_v58 }
 0x3ab   :  { %1438 = vmatpush.msra.mxu0 %v4657_v59  ;;  %1462 = vmatpush.msrb.mxu1 %v4663_v60 }
 0x3ac   :  { %1486 = vmatpush.msra.mxu2 %v4669_v14  ;;  %1510 = vmatpush.msra.mxu3 %v4675_v0 }
 0x418   :  { %v1104_v29 = vpop.f32.mrf.mxu0  ;;  %v1128_v63 = vpop.f32.mrf.mxu1 }
 0x419   :  { %v1108_v16 = vrot.slane %v1104_v29, 6  ;;  %v1132_v15 = vrot.slane %v1128_v63, 6 }
 0x41b   :  { %v1110_v5 = vadd.f32 %v1108_v16, %v4287_v6  ;;  %v1134_v31 = vadd.f32 %v1132_v15, %v5473_v3 }
 0x41d   :  { %v3347_v4 = vmul.f32 -1.442695, %v1110_v5  ;;  %v3348_v1 = vmul.f32 -1.442695, %v1134_v31 }
 0x41f   :  { %3525 = vpow2.f32 %v3347_v4  ;;  %v1176_v18 = vpop.f32.mrf.mxu3  ;;  %v1152_v23 = vpop.f32.mrf.mxu2 }
 0x420   :  { %3527 = vpow2.f32 %v3348_v1  ;;  %v1180_v62 = vrot.slane %v1176_v18, 6  ;;  %v1156_v61 = vrot.slane %v1152_v23, 6 }
 0x422   :  { %v1182_v28 = vadd.f32 %v1180_v62, %v5474_v32  ;;  %v1158_v8 = vadd.f32 %v1156_v61, %v5475_v17 }
 0x424   :  { %v3349_v2 = vmul.f32 -1.442695, %v1182_v28 }
 0x425   :  { %v3526_v51 = vpop.eup %3525 }
 0x426   :  { %v3528_v7 = vpop.eup %3527  ;;  %v1186_v35 = vadd.f32 1.0, %v3526_v51  ;;  %3529 = vpow2.f32 %v3349_v2  ;;  %v1242_v51 = vrot.slane %v4683_v11, 6 }
 0x427   :  { %v1205_v22 = vadd.f32 1.0, %v3528_v7 }
 0x428   :  { %3531 = vrcp.f32 %v1186_v35  ;;  %v1198_v63 = vand.u32 2147483648, %v1186_v35  ;;  %v1196_v5 = vand.u32 2147483647, %v1186_v35  ;;  %vm1192_vm4 = vweird.f32 %v1186_v35 }
 0x429   :  { %3533 = vrcp.f32 %v1205_v22  ;;  %v1217_v16 = vand.u32 2147483648, %v1205_v22  ;;  %v1215_v4 = vand.u32 2147483647, %v1205_v22  ;;  %vm1211_vm5 = vweird.f32 %v1205_v22 }
 0x42a   :  { %v1199_v62 = vor.u32 1.1754944e-38, %v1198_v63  ;;  %vm1197_vm8 = vcmp.eq.f32.partialorder %v1196_v5, 8.507059e+37 }
 0x42b   :  { %v1218_v7 = vor.u32 1.1754944e-38, %v1217_v16  ;;  %vm1216_vm9 = vcmp.eq.f32.partialorder %v1215_v4, 8.507059e+37 }
 0x42c   :  { %v3530_v25 = vpop.eup %3529 }
 0x42d   :  { %v1225_v27 = vadd.f32 1.0, %v3530_v25 }
 0x42e   :  { %v3532_v21 = vpop.eup %3531 }
 0x42f   :  { %v3534_v26 = vpop.eup %3533  ;;  %v1188_v13 = vmul.f32 %v3532_v21, %v1186_v35  ;;  %3535 = vrcp.f32 %v1225_v27  ;;  %vm1193_vm2 = vweird.f32 %v3532_v21  ;;  %v1237_v11 = vand.u32 2147483648, %v1225_v27 }
 0x430   :  { %v1207_v20 = vmul.f32 %v3534_v26, %v1205_v22  ;;  %3537 = vtanh.f32 %v1158_v8  ;;  %vm1212_vm3 = vweird.f32 %v3534_v26  ;;  %vm1194_vm6 = vmor %vm1192_vm4, %vm1193_vm2  ;;  %vm1231_vm11 = vweird.f32 %v1225_v27 }
 0x431   :  { %v1189_v24 = vsub.f32 1.0, %v1188_v13  ;;  %vm1213_vm7 = vmor %vm1211_vm5, %vm1212_vm3  ;;  %v1235_v16 = vand.u32 2147483647, %v1225_v27 }
 0x432   :  { %v1208_v29 = vsub.f32 1.0, %v1207_v20 }
 0x433   :  { %v1190_v15 = vmul.f32 %v3532_v21, %v1189_v24  ;;  %vm1236_vm13 = vcmp.eq.f32.partialorder %v1235_v16, 8.507059e+37 }
 0x434   :  { %v1209_v31 = vmul.f32 %v3534_v26, %v1208_v29 }
 0x435   :  { %v3536_v1 = vpop.eup %3535  ;;  %v1191_v18 = vadd.f32 %v3532_v21, %v1190_v15  ;;  %v1238_v15 = vor.u32 1.1754944e-38, %v1237_v11 }
 0x436   :  { %v1210_v28 = vadd.f32 %v3534_v26, %v1209_v31  ;;  %v1227_v2 = vmul.f32 %v3536_v1, %v1225_v27  ;;  %v3538_v61 = vpop.eup %3537  ;;  %vm1232_vm10 = vweird.f32 %v3536_v1 }
 0x437   :  { %v1195_v23 = vsel %vm1194_vm6, %v3532_v21, %v1191_v18  ;;  %vm1233_vm12 = vmor %vm1231_vm11, %vm1232_vm10 }
 0x438   :  { %v1200_v25 = vsel %vm1197_vm8, %v1199_v62, %v1195_v23  ;;  %v1214_v8 = vsel %vm1213_vm7, %v3534_v26, %v1210_v28  ;;  %v1228_v13 = vsub.f32 1.0, %v1227_v2 }
 0x439   :  { %v1219_v20 = vsel %vm1216_vm9, %v1218_v7, %v1214_v8  ;;  %v1245_v24 = vmul.f32 %v3538_v61, %v1200_v25 }
 0x43a   :  { %v1244_v29 = vmul.f32 %v1242_v51, %v1219_v20  ;;  %v1229_v35 = vmul.f32 %v3536_v1, %v1228_v13 }
 0x43c   :  { %v4730_v22 = vadd.f32 %v1245_v24, %v1244_v29  ;;  %v1230_v63 = vadd.f32 %v3536_v1, %v1229_v35 }
 0x43e   :  { %3539 = vtanh.f32 %v4730_v22  ;;  %v1234_v21 = vsel %vm1233_vm12, %v3536_v1, %v1230_v63 }
 0x43f   :  { %v1239_v5 = vsel %vm1236_vm13, %v1238_v15, %v1234_v21 }
 0x444   :  { %v3540_v26 = vpop.eup %3539 }
 0x445   :  { %v1248_v31 = vmul.f32 %v3540_v26, %v1239_v5 }
 0x447   :  { %v1250_v4 = vrot.slane %v1248_v31, 2 }
 0x449   :  { %3350 = vmatmul.msk.f32.vlgmr.msrb.gmra.mxu0 %vm274_vm14, %v1250_v4  ;;  %3351 = vmatmul.msk.f32.vlgmr.msra.gmra.mxu1 %vm274_vm14, %v1250_v4  ;;  %v4736_v18 = vadd.f32 %v1250_v4, %v4689_v34 }
 0x44a   :  { %3352 = vmatmul.msk.f32.vlgmr.msrb.gmra.mxu2 %vm274_vm14, %v1250_v4  ;;  %3353 = vmatmul.msk.f32.vlgmr.msrb.gmra.mxu3 %vm274_vm14, %v1250_v4 }
 0x44b   :  { %1599 = vmatpush.msrb.mxu0 %v4442_v9  ;;  %1620 = vmatpush.msra.mxu1 %v4510_v30 }
 0x44c   :  { %1641 = vmatpush.msrb.mxu2 %v4449_v19  ;;  %1662 = vmatpush.msrb.mxu3 %v4455_v12 }
 0x44d   :  { %1600 = vmatpush.msrb.mxu0 %v4518_v10  ;;  %1621 = vmatpush.msra.mxu1 %v4524_v33 }
 0x44e   :  { %1642 = vmatpush.msrb.mxu2 %v4530_v36  ;;  %1663 = vmatpush.msrb.mxu3 %v4464_v37 }
 0x44f   :  { %1601 = vmatpush.msrb.mxu0 %v4537_v38  ;;  %1622 = vmatpush.msra.mxu1 %v4543_v39 }
 0x450   :  { %1643 = vmatpush.msrb.mxu2 %v4549_v40  ;;  %1664 = vmatpush.msrb.mxu3 %v4555_v41 }
 0x451   :  { %1602 = vmatpush.msrb.mxu0 %v4561_v42  ;;  %1623 = vmatpush.msra.mxu1 %v4567_v43 }
 0x452   :  { %1644 = vmatpush.msrb.mxu2 %v4573_v44  ;;  %1665 = vmatpush.msrb.mxu3 %v4579_v45 }
 0x453   :  { %1603 = vmatpush.msrb.mxu0 %v4585_v46  ;;  %1624 = vmatpush.msra.mxu1 %v4591_v47 }
 0x454   :  { %1645 = vmatpush.msrb.mxu2 %v4597_v48  ;;  %1666 = vmatpush.msrb.mxu3 %v4603_v49 }
 0x455   :  { %1604 = vmatpush.msrb.mxu0 %v4609_v50  ;;  %1625 = vmatpush.msra.mxu1 %v4615_v52 }
 0x456   :  { %1646 = vmatpush.msrb.mxu2 %v4621_v53  ;;  %1667 = vmatpush.msrb.mxu3 %v4627_v54 }
 0x457   :  { %1605 = vmatpush.msrb.mxu0 %v4633_v55  ;;  %1626 = vmatpush.msra.mxu1 %v4639_v56 }
 0x458   :  { %1647 = vmatpush.msrb.mxu2 %v4645_v57  ;;  %1668 = vmatpush.msrb.mxu3 %v4651_v58 }
 0x459   :  { %1606 = vmatpush.msrb.mxu0 %v4657_v59  ;;  %1627 = vmatpush.msra.mxu1 %v4663_v60 }
 0x45a   :  { %1648 = vmatpush.msrb.mxu2 %v4669_v14  ;;  %1669 = vmatpush.msrb.mxu3 %v4675_v0 }
 0x4c6   :  { %v1272_v34 = vpop.f32.mrf.mxu0  ;;  %v1296_v27 = vpop.f32.mrf.mxu1 }
 0x4c7   :  { %v1276_v1 = vrot.slane %v1272_v34, 4  ;;  %v1300_v62 = vrot.slane %v1296_v27, 4 }
 0x4c9   :  { %v1278_v28 = vadd.f32 %v1276_v1, %v4287_v6  ;;  %v1302_v2 = vadd.f32 %v1300_v62, %v5473_v3 }
 0x4cb   :  { %v3354_v51 = vmul.f32 -1.442695, %v1278_v28  ;;  %v3355_v7 = vmul.f32 -1.442695, %v1302_v2 }
 0x4cd   :  { %3541 = vpow2.f32 %v3354_v51  ;;  %v1344_v23 = vpop.f32.mrf.mxu3  ;;  %v1320_v35 = vpop.f32.mrf.mxu2 }
 0x4ce   :  { %3543 = vpow2.f32 %v3355_v7  ;;  %v1348_v61 = vrot.slane %v1344_v23, 4  ;;  %v1324_v63 = vrot.slane %v1320_v35, 4 }
 0x4d0   :  { %v1350_v25 = vadd.f32 %v1348_v61, %v5474_v32  ;;  %v1326_v15 = vadd.f32 %v1324_v63, %v5475_v17 }
 0x4d2   :  { %v3356_v8 = vmul.f32 -1.442695, %v1350_v25 }
 0x4d3   :  { %v3542_v13 = vpop.eup %3541 }
 0x4d4   :  { %v3544_v20 = vpop.eup %3543  ;;  %v1354_v24 = vadd.f32 1.0, %v3542_v13  ;;  %3545 = vpow2.f32 %v3356_v8  ;;  %v1410_v13 = vrot.slane %v4730_v22, 6 }
 0x4d5   :  { %v1373_v29 = vadd.f32 1.0, %v3544_v20 }
 0x4d6   :  { %3547 = vrcp.f32 %v1354_v24  ;;  %v1366_v27 = vand.u32 2147483648, %v1354_v24  ;;  %v1364_v28 = vand.u32 2147483647, %v1354_v24  ;;  %vm1360_vm1 = vweird.f32 %v1354_v24 }
 0x4d7   :  { %3549 = vrcp.f32 %v1373_v29  ;;  %v1385_v1 = vand.u32 2147483648, %v1373_v29  ;;  %v1383_v51 = vand.u32 2147483647, %v1373_v29  ;;  %vm1379_vm2 = vweird.f32 %v1373_v29 }
 0x4d8   :  { %v1367_v61 = vor.u32 1.1754944e-38, %v1366_v27  ;;  %vm1365_vm5 = vcmp.eq.f32.partialorder %v1364_v28, 8.507059e+37 }
 0x4d9   :  { %v1386_v20 = vor.u32 1.1754944e-38, %v1385_v1  ;;  %vm1384_vm6 = vcmp.eq.f32.partialorder %v1383_v51, 8.507059e+37 }
 0x4da   :  { %v3546_v11 = vpop.eup %3545 }
 0x4db   :  { %v1393_v16 = vadd.f32 1.0, %v3546_v11 }
 0x4dc   :  { %v3548_v21 = vpop.eup %3547 }
 0x4dd   :  { %v3550_v26 = vpop.eup %3549  ;;  %v1356_v5 = vmul.f32 %v3548_v21, %v1354_v24  ;;  %3551 = vrcp.f32 %v1393_v16  ;;  %vm1361_vm15 = vweird.f32 %v3548_v21  ;;  %v1405_v22 = vand.u32 2147483648, %v1393_v16 }
 0x4de   :  { %v1375_v31 = vmul.f32 %v3550_v26, %v1373_v29  ;;  %3553 = vtanh.f32 %v1326_v15  ;;  %vm1380_vm0 = vweird.f32 %v3550_v26  ;;  %vm1362_vm3 = vmor %vm1360_vm1, %vm1361_vm15  ;;  %vm1399_vm8 = vweird.f32 %v1393_v16 }
 0x4df   :  { %v1357_v4 = vsub.f32 1.0, %v1356_v5  ;;  %vm1381_vm4 = vmor %vm1379_vm2, %vm1380_vm0  ;;  %v1403_v1 = vand.u32 2147483647, %v1393_v16 }
 0x4e0   :  { %v1376_v34 = vsub.f32 1.0, %v1375_v31 }
 0x4e1   :  { %v1358_v62 = vmul.f32 %v3548_v21, %v1357_v4  ;;  %vm1404_vm10 = vcmp.eq.f32.partialorder %v1403_v1, 8.507059e+37 }
 0x4e2   :  { %v1377_v2 = vmul.f32 %v3550_v26, %v1376_v34 }
 0x4e3   :  { %v3552_v7 = vpop.eup %3551  ;;  %v1359_v23 = vadd.f32 %v3548_v21, %v1358_v62  ;;  %v1406_v62 = vor.u32 1.1754944e-38, %v1405_v22 }
 0x4e4   :  { %v1378_v25 = vadd.f32 %v3550_v26, %v1377_v2  ;;  %v1395_v8 = vmul.f32 %v3552_v7, %v1393_v16  ;;  %v3554_v63 = vpop.eup %3553  ;;  %vm1400_vm7 = vweird.f32 %v3552_v7 }
 0x4e5   :  { %v1363_v35 = vsel %vm1362_vm3, %v3548_v21, %v1359_v23  ;;  %vm1401_vm9 = vmor %vm1399_vm8, %vm1400_vm7 }
 0x4e6   :  { %v1368_v11 = vsel %vm1365_vm5, %v1367_v61, %v1363_v35  ;;  %v1382_v15 = vsel %vm1381_vm4, %v3550_v26, %v1378_v25  ;;  %v1396_v5 = vsub.f32 1.0, %v1395_v8 }
 0x4e7   :  { %v1387_v31 = vsel %vm1384_vm6, %v1386_v20, %v1382_v15  ;;  %v1413_v4 = vmul.f32 %v3554_v63, %v1368_v11 }
 0x4e8   :  { %v1412_v34 = vmul.f32 %v1410_v13, %v1387_v31  ;;  %v1397_v24 = vmul.f32 %v3552_v7, %v1396_v5 }
 0x4ea   :  { %v4777_v29 = vadd.f32 %v1413_v4, %v1412_v34  ;;  %v1398_v27 = vadd.f32 %v3552_v7, %v1397_v24 }
 0x4ec   :  { %3555 = vtanh.f32 %v4777_v29  ;;  %v1402_v21 = vsel %vm1401_vm9, %v3552_v7, %v1398_v27 }
 0x4ed   :  { %v1407_v28 = vsel %vm1404_vm10, %v1406_v62, %v1402_v21 }
 0x4f2   :  { %v3556_v26 = vpop.eup %3555 }
 0x4f3   :  { %v1416_v2 = vmul.f32 %v3556_v26, %v1407_v28 }
 0x4f5   :  { %v1418_v51 = vrot.slane %v1416_v2, 4 }
 0x4f7   :  { %3357 = vmatmul.msk.f32.vlgmr.msra.gmra.mxu0 %vm274_vm14, %v1418_v51  ;;  %3358 = vmatmul.msk.f32.vlgmr.msrb.gmra.mxu1 %vm274_vm14, %v1418_v51  ;;  %v4783_v23 = vadd.f32 %v1418_v51, %v4736_v18 }
 0x4f8   :  { %3359 = vmatmul.msk.f32.vlgmr.msra.gmra.mxu2 %vm274_vm14, %v1418_v51  ;;  %3360 = vmatmul.msk.f32.vlgmr.msra.gmra.mxu3 %vm274_vm14, %v1418_v51 }
 0x4f9   :  { %1753 = vmatpush.msra.mxu0 %v4442_v9  ;;  %1777 = vmatpush.msrb.mxu1 %v4510_v30 }
 0x4fa   :  { %1801 = vmatpush.msra.mxu2 %v4449_v19  ;;  %1825 = vmatpush.msra.mxu3 %v4455_v12 }
 0x4fb   :  { %1754 = vmatpush.msra.mxu0 %v4518_v10  ;;  %1778 = vmatpush.msrb.mxu1 %v4524_v33 }
 0x4fc   :  { %1802 = vmatpush.msra.mxu2 %v4530_v36  ;;  %1826 = vmatpush.msra.mxu3 %v4464_v37 }
 0x4fd   :  { %1755 = vmatpush.msra.mxu0 %v4537_v38  ;;  %1779 = vmatpush.msrb.mxu1 %v4543_v39 }
 0x4fe   :  { %1803 = vmatpush.msra.mxu2 %v4549_v40  ;;  %1827 = vmatpush.msra.mxu3 %v4555_v41 }
 0x4ff   :  { %1756 = vmatpush.msra.mxu0 %v4561_v42  ;;  %1780 = vmatpush.msrb.mxu1 %v4567_v43 }
 0x500   :  { %1804 = vmatpush.msra.mxu2 %v4573_v44  ;;  %1828 = vmatpush.msra.mxu3 %v4579_v45 }
 0x501   :  { %1757 = vmatpush.msra.mxu0 %v4585_v46  ;;  %1781 = vmatpush.msrb.mxu1 %v4591_v47 }
 0x502   :  { %1805 = vmatpush.msra.mxu2 %v4597_v48  ;;  %1829 = vmatpush.msra.mxu3 %v4603_v49 }
 0x503   :  { %1758 = vmatpush.msra.mxu0 %v4609_v50  ;;  %1782 = vmatpush.msrb.mxu1 %v4615_v52 }
 0x504   :  { %1806 = vmatpush.msra.mxu2 %v4621_v53  ;;  %1830 = vmatpush.msra.mxu3 %v4627_v54 }
 0x505   :  { %1759 = vmatpush.msra.mxu0 %v4633_v55  ;;  %1783 = vmatpush.msrb.mxu1 %v4639_v56 }
 0x506   :  { %1807 = vmatpush.msra.mxu2 %v4645_v57  ;;  %1831 = vmatpush.msra.mxu3 %v4651_v58 }
 0x507   :  { %1760 = vmatpush.msra.mxu0 %v4657_v59  ;;  %1784 = vmatpush.msrb.mxu1 %v4663_v60 }
 0x508   :  { %1808 = vmatpush.msra.mxu2 %v4669_v14  ;;  %1832 = vmatpush.msra.mxu3 %v4675_v0 }
 0x574   :  { %v1440_v9 = vpop.f32.mrf.mxu0  ;;  %v1464_v19 = vpop.f32.mrf.mxu1 }
 0x575   :  { %v1444_v12 = vrot.slane %v1440_v9, 2  ;;  %v1468_v37 = vrot.slane %v1464_v19, 2 }
 0x577   :  { %v1446_v18 = vadd.f32 %v1444_v12, %v4287_v6  ;;  %v1470_v16 = vadd.f32 %v1468_v37, %v5473_v3 }
 0x579   :  { %v3361_v7 = vmul.f32 -1.442695, %v1446_v18  ;;  %v3362_v61 = vmul.f32 -1.442695, %v1470_v16  ;;  %v1578_v18 = vrot.slane %v4777_v29, 6 }
 0x57b   :  { %3557 = vpow2.f32 %v3361_v7  ;;  %v1512_v25 = vpop.f32.mrf.mxu3  ;;  %v1488_v5 = vpop.f32.mrf.mxu2 }
 0x57c   :  { %3559 = vpow2.f32 %v3362_v61  ;;  %v1516_v8 = vrot.slane %v1512_v25, 2  ;;  %v1492_v6 = vrot.slane %v1488_v5, 2 }
 0x57e   :  { %v1518_v13 = vadd.f32 %v1516_v8, %v5474_v32  ;;  %v1494_v34 = vadd.f32 %v1492_v6, %v5475_v17 }
 0x580   :  { %v3363_v20 = vmul.f32 -1.442695, %v1518_v13 }
 0x581   :  { %v3558_v35 = vpop.eup %3557 }
 0x582   :  { %v3560_v63 = vpop.eup %3559  ;;  %v1522_v11 = vadd.f32 1.0, %v3558_v35  ;;  %3561 = vpow2.f32 %v3363_v20 }
 0x583   :  { %v1541_v15 = vadd.f32 1.0, %v3560_v63 }
 0x584   :  { %3563 = vrcp.f32 %v1522_v11  ;;  %v1534_v21 = vand.u32 2147483648, %v1522_v11  ;;  %v1532_v28 = vand.u32 2147483647, %v1522_v11  ;;  %vm1528_vm13 = vweird.f32 %v1522_v11 }
 0x585   :  { %3565 = vrcp.f32 %v1541_v15  ;;  %v1553_v62 = vand.u32 2147483648, %v1541_v15  ;;  %v1551_v51 = vand.u32 2147483647, %v1541_v15  ;;  %vm1547_vm15 = vweird.f32 %v1541_v15 }
 0x586   :  { %v1535_v17 = vor.u32 1.1754944e-38, %v1534_v21  ;;  %vm1533_vm2 = vcmp.eq.f32.partialorder %v1532_v28, 8.507059e+37 }
 0x587   :  { %v1554_v16 = vor.u32 1.1754944e-38, %v1553_v62  ;;  %vm1552_vm3 = vcmp.eq.f32.partialorder %v1551_v51, 8.507059e+37 }
 0x588   :  { %v3562_v31 = vpop.eup %3561 }
 0x589   :  { %v1561_v3 = vadd.f32 1.0, %v3562_v31 }
 0x58a   :  { %v3564_v4 = vpop.eup %3563 }
 0x58b   :  { %v3566_v24 = vpop.eup %3565  ;;  %v1524_v27 = vmul.f32 %v3564_v4, %v1522_v11  ;;  %3567 = vrcp.f32 %v1561_v3  ;;  %vm1529_vm11 = vweird.f32 %v3564_v4  ;;  %v1573_v29 = vand.u32 2147483648, %v1561_v3 }
 0x58c   :  { %v1543_v22 = vmul.f32 %v3566_v24, %v1541_v15  ;;  %3569 = vtanh.f32 %v1494_v34  ;;  %vm1548_vm12 = vweird.f32 %v3566_v24  ;;  %vm1530_vm0 = vmor %vm1528_vm13, %vm1529_vm11  ;;  %vm1567_vm5 = vweird.f32 %v1561_v3 }
 0x58d   :  { %v1525_v32 = vsub.f32 1.0, %v1524_v27  ;;  %vm1549_vm1 = vmor %vm1547_vm15, %vm1548_vm12  ;;  %v1571_v6 = vand.u32 2147483647, %v1561_v3 }
 0x58e   :  { %v1544_v1 = vsub.f32 1.0, %v1543_v22 }
 0x58f   :  { %v1526_v26 = vmul.f32 %v3564_v4, %v1525_v32  ;;  %vm1572_vm7 = vcmp.eq.f32.partialorder %v1571_v6, 8.507059e+37 }
 0x590   :  { %v1545_v2 = vmul.f32 %v3566_v24, %v1544_v1  ;;  %v4844_v1 = vld [vmem:[%s5438_s2 + $0xb8] sm:$0xff] }
 0x591   :  { %v3568_v9 = vpop.eup %3567  ;;  %v1527_v19 = vadd.f32 %v3564_v4, %v1526_v26 }
 0x592   :  { %v1546_v12 = vadd.f32 %v3566_v24, %v1545_v2  ;;  %v1563_v37 = vmul.f32 %v3568_v9, %v1561_v3  ;;  %v3570_v61 = vpop.eup %3569  ;;  %vm1568_vm4 = vweird.f32 %v3568_v9  ;;  %v4837_v3 = vld [vmem:[%s5438_s2 + $0x38] sm:$0xff] }
 0x593   :  { %v1531_v7 = vsel %vm1530_vm0, %v3564_v4, %v1527_v19  ;;  %vm1569_vm6 = vmor %vm1567_vm5, %vm1568_vm4  ;;  %v1574_v4 = vor.u32 1.1754944e-38, %v1573_v29 }
 0x594   :  { %v1536_v25 = vsel %vm1533_vm2, %v1535_v17, %v1531_v7  ;;  %v1550_v8 = vsel %vm1549_vm1, %v3566_v24, %v1546_v12  ;;  %v1564_v13 = vsub.f32 1.0, %v1563_v37 }
 0x595   :  { %v1555_v20 = vsel %vm1552_vm3, %v1554_v16, %v1550_v8  ;;  %v1581_v35 = vmul.f32 %v3570_v61, %v1536_v25 }
 0x596   :  { %v1580_v63 = vmul.f32 %v1578_v18, %v1555_v20  ;;  %v1565_v11 = vmul.f32 %v3568_v9, %v1564_v13 }
 0x598   :  { %v4824_v15 = vadd.f32 %v1581_v35, %v1580_v63  ;;  %v1566_v5 = vadd.f32 %v3568_v9, %v1565_v11 }
 0x59a   :  { %3571 = vtanh.f32 %v4824_v15  ;;  %v1570_v31 = vsel %vm1569_vm6, %v3568_v9, %v1566_v5  ;;  %v1734_v7 = vrot.slane %v4824_v15, 6 }
 0x59b   :  { %v1575_v24 = vsel %vm1572_vm7, %v1574_v4, %v1570_v31 }
 0x5a0   :  { %v3572_v34 = vpop.eup %3571 }
 0x5a1   :  { %v1584_v27 = vmul.f32 %v3572_v34, %v1575_v24 }
 0x5a3   :  { %v1586_v22 = vrot.slane %v1584_v27, 6 }
 0x5a5   :  { %3364 = vmatmul.msk.f32.vlgmr.msrb.gmra.mxu0 %vm274_vm14, %v1586_v22  ;;  %3365 = vmatmul.msk.f32.vlgmr.msra.gmra.mxu1 %vm274_vm14, %v1586_v22  ;;  %v4830_v32 = vadd.f32 %v1586_v22, %v4783_v23  ;;  %v4850_v23 = vld [vmem:[%s5438_s2 + $0xf8] sm:$0xff] }
 0x5a6   :  { %3366 = vmatmul.msk.f32.vlgmr.msrb.gmra.mxu2 %vm274_vm14, %v1586_v22  ;;  %3367 = vmatmul.msk.f32.vlgmr.msrb.gmra.mxu3 %vm274_vm14, %v1586_v22  ;;  %v4908_v22 = vld [vmem:[%s5438_s2 + $0x78] sm:$0xff] }
 0x5a7   :  { %1921 = vmatpush.msrb.mxu0 %v4837_v3  ;;  %1945 = vmatpush.msra.mxu1 %v4510_v30  ;;  %v4859_v30 = vld [vmem:[%s5438_s2 + $0xf0] sm:$0xff] }
 0x5a8   :  { %1969 = vmatpush.msrb.mxu2 %v4844_v1  ;;  %1993 = vmatpush.msrb.mxu3 %v4850_v23 }
 0x5a9   :  { %1922 = vmatpush.msrb.mxu0 %v4518_v10  ;;  %1946 = vmatpush.msra.mxu1 %v4524_v33 }
 0x5aa   :  { %1970 = vmatpush.msrb.mxu2 %v4530_v36  ;;  %1994 = vmatpush.msrb.mxu3 %v4859_v30  ;;  %v5476_v36 = vld [vmem:[#allocation5_spill] sm:$0xff] }
 0x5ab   :  { %1923 = vmatpush.msrb.mxu0 %v4537_v38  ;;  %1947 = vmatpush.msra.mxu1 %v4543_v39  ;;  %v5477_v39 = vld [vmem:[#allocation14_spill] sm:$0xff] }
 0x5ac   :  { %1971 = vmatpush.msrb.mxu2 %v4549_v40  ;;  %1995 = vmatpush.msrb.mxu3 %v4555_v41 }
 0x5ad   :  { %1924 = vmatpush.msrb.mxu0 %v4561_v42  ;;  %1948 = vmatpush.msra.mxu1 %v4567_v43 }
 0x5ae   :  { %1972 = vmatpush.msrb.mxu2 %v4573_v44  ;;  %1996 = vmatpush.msrb.mxu3 %v4579_v45  ;;  %v5478_v44 = vld [vmem:[#allocation9_spill] sm:$0xff] }
 0x5af   :  { %1925 = vmatpush.msrb.mxu0 %v4585_v46  ;;  %1949 = vmatpush.msra.mxu1 %v4591_v47 }
 0x5b0   :  { %1973 = vmatpush.msrb.mxu2 %v4597_v48  ;;  %1997 = vmatpush.msrb.mxu3 %v4603_v49 }
 0x5b1   :  { %1926 = vmatpush.msrb.mxu0 %v4609_v50  ;;  %1950 = vmatpush.msra.mxu1 %v4615_v52 }
 0x5b2   :  { %1974 = vmatpush.msrb.mxu2 %v4621_v53  ;;  %1998 = vmatpush.msrb.mxu3 %v4627_v54 }
 0x5b3   :  { %1927 = vmatpush.msrb.mxu0 %v4633_v55  ;;  %1951 = vmatpush.msra.mxu1 %v4639_v56  ;;  %v5479_v56 = vld [vmem:[#allocation10_spill] sm:$0xff] }
 0x5b4   :  { %1975 = vmatpush.msrb.mxu2 %v4645_v57  ;;  %1999 = vmatpush.msrb.mxu3 %v4651_v58 }
 0x5b5   :  { %1928 = vmatpush.msrb.mxu0 %v4657_v59  ;;  %1952 = vmatpush.msra.mxu1 %v4663_v60 }
 0x5b6   :  { %1976 = vmatpush.msrb.mxu2 %v4669_v14  ;;  %2000 = vmatpush.msrb.mxu3 %v4675_v0 }
 0x622   :  { %v1608_v10 = vpop.f32.mrf.mxu0  ;;  %v1629_v33 = vpop.f32.mrf.mxu1 }
 0x623   :  { %v1611_v38 = vadd.f32 %v1608_v10, %v5476_v36  ;;  %v1632_v40 = vadd.f32 %v1629_v33, %v5477_v39  ;;  %v4916_v10 = vld [vmem:[%s5438_s2 + $0x30] sm:$0xff] }
 0x624   :  { %v4922_v33 = vld [vmem:[%s5438_s2 + $0x70] sm:$0xff] }
 0x625   :  { %v3368_v41 = vmul.f32 -1.442695, %v1611_v38  ;;  %v3369_v42 = vmul.f32 -1.442695, %v1632_v40  ;;  %v4928_v38 = vld [vmem:[%s5438_s2 + $0xb0] sm:$0xff]  ;;  %v4935_v40 = vld [vmem:[%s5438_s2 + $0x28] sm:$0xff] }
 0x627   :  { %3573 = vpow2.f32 %v3368_v41  ;;  %v4941_v41 = vld [vmem:[%s5438_s2 + $0x68] sm:$0xff] }
 0x628   :  { %3575 = vpow2.f32 %v3369_v42  ;;  %v4947_v42 = vld [vmem:[%s5438_s2 + $0xa8] sm:$0xff] }
 0x629   :  { %v1671_v43 = vpop.f32.mrf.mxu3  ;;  %v1650_v52 = vpop.f32.mrf.mxu2 }
 0x62a   :  { %v1674_v45 = vadd.f32 %v1671_v43, %v5478_v44  ;;  %v1653_v57 = vadd.f32 %v1650_v52, %v5479_v56  ;;  %v4953_v43 = vld [vmem:[%s5438_s2 + $0xe8] sm:$0xff]  ;;  %v4995_v52 = vld [vmem:[%s5438_s2 + $0x98] sm:$0xff] }
 0x62c   :  { %v3370_v46 = vmul.f32 -1.442695, %v1674_v45  ;;  %v4959_v45 = vld [vmem:[%s5438_s2 + $0x20] sm:$0xff] }
 0x62d   :  { %v3574_v47 = vpop.eup %3573 }
 0x62e   :  { %v3576_v48 = vpop.eup %3575  ;;  %v1678_v49 = vadd.f32 1.0, %v3574_v47  ;;  %3577 = vpow2.f32 %v3370_v46  ;;  %v4965_v46 = vld [vmem:[%s5438_s2 + $0x60] sm:$0xff] }
 0x62f   :  { %v1697_v50 = vadd.f32 1.0, %v3576_v48  ;;  %v4971_v47 = vld [vmem:[%s5438_s2 + $0xa0] sm:$0xff] }
 0x630   :  { %3579 = vrcp.f32 %v1678_v49  ;;  %v1690_v21 = vand.u32 2147483648, %v1678_v49  ;;  %v1688_v28 = vand.u32 2147483647, %v1678_v49  ;;  %vm1684_vm10 = vweird.f32 %v1678_v49  ;;  %v4977_v48 = vld [vmem:[%s5438_s2 + $0xe0] sm:$0xff] }
 0x631   :  { %3581 = vrcp.f32 %v1697_v50  ;;  %v1709_v62 = vand.u32 2147483648, %v1697_v50  ;;  %v1707_v51 = vand.u32 2147483647, %v1697_v50  ;;  %vm1703_vm11 = vweird.f32 %v1697_v50 }
 0x632   :  { %v1691_v17 = vor.u32 1.1754944e-38, %v1690_v21  ;;  %vm1689_vm15 = vcmp.eq.f32.partialorder %v1688_v28, 8.507059e+37  ;;  %v5055_v21 = vld [vmem:[%s5438_s2] sm:$0xff] }
 0x633   :  { %v1710_v18 = vor.u32 1.1754944e-38, %v1709_v62  ;;  %vm1708_vm0 = vcmp.eq.f32.partialorder %v1707_v51, 8.507059e+37  ;;  %v5061_v62 = vld [vmem:[%s5438_s2 + $0x40] sm:$0xff] }
 0x634   :  { %v3578_v53 = vpop.eup %3577  ;;  %v5073_v28 = vld [vmem:[%s5438_s2 + $0xc0] sm:$0xff] }
 0x635   :  { %v1717_v54 = vadd.f32 1.0, %v3578_v53  ;;  %v5001_v53 = vld [vmem:[%s5438_s2 + $0xd8] sm:$0xff] }
 0x636   :  { %v3580_v55 = vpop.eup %3579 }
 0x637   :  { %v3582_v58 = vpop.eup %3581  ;;  %v1680_v59 = vmul.f32 %v3580_v55, %v1678_v49  ;;  %3583 = vrcp.f32 %v1717_v54  ;;  %vm1685_vm8 = vweird.f32 %v3580_v55  ;;  %v1729_v6 = vand.u32 2147483648, %v1717_v54  ;;  %v4983_v49 = vld [vmem:[%s5438_s2 + $0x18] sm:$0xff] }
 0x638   :  { %v1699_v60 = vmul.f32 %v3582_v58, %v1697_v50  ;;  %3585 = vtanh.f32 %v1653_v57  ;;  %vm1704_vm9 = vweird.f32 %v3582_v58  ;;  %vm1686_vm12 = vmor %vm1684_vm10, %vm1685_vm8  ;;  %vm1723_vm2 = vweird.f32 %v1717_v54  ;;  %v4989_v50 = vld [vmem:[%s5438_s2 + $0x58] sm:$0xff]  ;;  %v5019_v57 = vld [vmem:[%s5438_s2 + $0x90] sm:$0xff] }
 0x639   :  { %v1681_v14 = vsub.f32 1.0, %v1680_v59  ;;  %vm1705_vm13 = vmor %vm1703_vm11, %vm1704_vm9  ;;  %v1727_v31 = vand.u32 2147483647, %v1717_v54  ;;  %v1730_v4 = vor.u32 1.1754944e-38, %v1729_v6  ;;  %v5031_v59 = vld [vmem:[%s5438_s2 + $0x8] sm:$0xff] }
 0x63a   :  { %v1700_v0 = vsub.f32 1.0, %v1699_v60  ;;  %v5037_v60 = vld [vmem:[%s5438_s2 + $0x48] sm:$0xff] }
 0x63b   :  { %v1682_v26 = vmul.f32 %v3580_v55, %v1681_v14  ;;  %vm1728_vm4 = vcmp.eq.f32.partialorder %v1727_v31, 8.507059e+37  ;;  %v5043_v14 = vld [vmem:[%s5438_s2 + $0x88] sm:$0xff] }
 0x63c   :  { %v1701_v2 = vmul.f32 %v3582_v58, %v1700_v0  ;;  %v5049_v0 = vld [vmem:[%s5438_s2 + $0xc8] sm:$0xff] }
 0x63d   :  { %v3584_v9 = vpop.eup %3583  ;;  %v1683_v19 = vadd.f32 %v3580_v55, %v1682_v26  ;;  %v5067_v26 = vld [vmem:[%s5438_s2 + $0x80] sm:$0xff] }
 0x63e   :  { %v1702_v12 = vadd.f32 %v3582_v58, %v1701_v2  ;;  %v1719_v37 = vmul.f32 %v3584_v9, %v1717_v54  ;;  %v3586_v61 = vpop.eup %3585  ;;  %vm1724_vm1 = vweird.f32 %v3584_v9  ;;  %v5007_v54 = vld [vmem:[%s5438_s2 + $0x10] sm:$0xff] }
 0x63f   :  { %v1687_v16 = vsel %vm1686_vm12, %v3580_v55, %v1683_v19  ;;  %vm1725_vm3 = vmor %vm1723_vm2, %vm1724_vm1  ;;  %v5013_v55 = vld [vmem:[%s5438_s2 + $0x50] sm:$0xff] }
 0x640   :  { %v1692_v25 = vsel %vm1689_vm15, %v1691_v17, %v1687_v16  ;;  %v1706_v8 = vsel %vm1705_vm13, %v3582_v58, %v1702_v12  ;;  %v1720_v13 = vsub.f32 1.0, %v1719_v37  ;;  %v5025_v58 = vld [vmem:[%s5438_s2 + $0xd0] sm:$0xff] }
 0x641   :  { %v1711_v20 = vsel %vm1708_vm0, %v1710_v18, %v1706_v8  ;;  %v1737_v35 = vmul.f32 %v3586_v61, %v1692_v25 }
 0x642   :  { %v1736_v63 = vmul.f32 %v1734_v7, %v1711_v20  ;;  %v1721_v11 = vmul.f32 %v3584_v9, %v1720_v13 }
 0x644   :  { %v4891_v5 = vadd.f32 %v1737_v35, %v1736_v63  ;;  %v1722_v29 = vadd.f32 %v3584_v9, %v1721_v11 }
 0x646   :  { %3587 = vtanh.f32 %v4891_v5  ;;  %v1726_v15 = vsel %vm1725_vm3, %v3584_v9, %v1722_v29 }
 0x647   :  { %v1731_v24 = vsel %vm1728_vm4, %v1730_v4, %v1726_v15 }
 0x64c   :  { %v3588_v34 = vpop.eup %3587 }
 0x64d   :  { %v4894_v27 = vmul.f32 %v3588_v34, %v1731_v24 }
 0x64f   :  { %3371 = vmatmul.msk.f32.vlgmr.msra.gmra.mxu0 %vm274_vm14, %v4894_v27  ;;  %3372 = vmatmul.msk.f32.vlgmr.msrb.gmra.mxu1 %vm274_vm14, %v4894_v27 }
 0x650   :  { %3373 = vmatmul.msk.f32.vlgmr.msra.gmra.mxu2 %vm274_vm14, %v4894_v27  ;;  %3374 = vmatmul.msk.f32.vlgmr.msra.gmra.mxu3 %vm274_vm14, %v4894_v27 }
 0x651   :  { %2089 = vmatpush.msra.mxu0 %v4837_v3  ;;  %2113 = vmatpush.msrb.mxu1 %v4908_v22 }
 0x652   :  { %2137 = vmatpush.msra.mxu2 %v4844_v1  ;;  %2161 = vmatpush.msra.mxu3 %v4850_v23 }
 0x653   :  { %2090 = vmatpush.msra.mxu0 %v4916_v10  ;;  %2114 = vmatpush.msrb.mxu1 %v4922_v33 }
 0x654   :  { %2138 = vmatpush.msra.mxu2 %v4928_v38  ;;  %2162 = vmatpush.msra.mxu3 %v4859_v30 }
 0x655   :  { %2091 = vmatpush.msra.mxu0 %v4935_v40  ;;  %2115 = vmatpush.msrb.mxu1 %v4941_v41 }
 0x656   :  { %2139 = vmatpush.msra.mxu2 %v4947_v42  ;;  %2163 = vmatpush.msra.mxu3 %v4953_v43 }
 0x657   :  { %2092 = vmatpush.msra.mxu0 %v4959_v45  ;;  %2116 = vmatpush.msrb.mxu1 %v4965_v46 }
 0x658   :  { %2140 = vmatpush.msra.mxu2 %v4971_v47  ;;  %2164 = vmatpush.msra.mxu3 %v4977_v48 }
 0x659   :  { %2093 = vmatpush.msra.mxu0 %v4983_v49  ;;  %2117 = vmatpush.msrb.mxu1 %v4989_v50 }
 0x65a   :  { %2141 = vmatpush.msra.mxu2 %v4995_v52  ;;  %2165 = vmatpush.msra.mxu3 %v5001_v53 }
 0x65b   :  { %2094 = vmatpush.msra.mxu0 %v5007_v54  ;;  %2118 = vmatpush.msrb.mxu1 %v5013_v55 }
 0x65c   :  { %2142 = vmatpush.msra.mxu2 %v5019_v57  ;;  %2166 = vmatpush.msra.mxu3 %v5025_v58 }
 0x65d   :  { %2095 = vmatpush.msra.mxu0 %v5031_v59  ;;  %2119 = vmatpush.msrb.mxu1 %v5037_v60 }
 0x65e   :  { %2143 = vmatpush.msra.mxu2 %v5043_v14  ;;  %2167 = vmatpush.msra.mxu3 %v5049_v0 }
 0x65f   :  { %2096 = vmatpush.msra.mxu0 %v5055_v21  ;;  %2120 = vmatpush.msrb.mxu1 %v5061_v62 }
 0x660   :  { %2144 = vmatpush.msra.mxu2 %v5067_v26  ;;  %2168 = vmatpush.msra.mxu3 %v5073_v28 }
 0x6cc   :  { %v1762_v2 = vpop.f32.mrf.mxu0  ;;  %v1786_v51 = vpop.f32.mrf.mxu1 }
 0x6cd   :  { %v1766_v9 = vrot.slane %v1762_v2, 6  ;;  %v1790_v19 = vrot.slane %v1786_v51, 6 }
 0x6cf   :  { %v1768_v17 = vadd.f32 %v1766_v9, %v5476_v36  ;;  %v1792_v12 = vadd.f32 %v1790_v19, %v5477_v39 }
 0x6d1   :  { %v3375_v37 = vmul.f32 -1.442695, %v1768_v17  ;;  %v3376_v18 = vmul.f32 -1.442695, %v1792_v12 }
 0x6d3   :  { %3589 = vpow2.f32 %v3375_v37  ;;  %v1834_v16 = vpop.f32.mrf.mxu3  ;;  %v1810_v63 = vpop.f32.mrf.mxu2 }
 0x6d4   :  { %3591 = vpow2.f32 %v3376_v18  ;;  %v1838_v7 = vrot.slane %v1834_v16, 6  ;;  %v1814_v11 = vrot.slane %v1810_v63, 6 }
 0x6d6   :  { %v1840_v61 = vadd.f32 %v1838_v7, %v5478_v44  ;;  %v1816_v15 = vadd.f32 %v1814_v11, %v5479_v56 }
 0x6d8   :  { %v3377_v25 = vmul.f32 -1.442695, %v1840_v61 }
 0x6d9   :  { %v3590_v8 = vpop.eup %3589 }
 0x6da   :  { %v3592_v13 = vpop.eup %3591  ;;  %v1844_v20 = vadd.f32 1.0, %v3590_v8  ;;  %3593 = vpow2.f32 %v3377_v25 }
 0x6db   :  { %v1863_v35 = vadd.f32 1.0, %v3592_v13  ;;  %v1900_v13 = vrot.slane %v4891_v5, 6 }
 0x6dc   :  { %3595 = vrcp.f32 %v1844_v20  ;;  %v1856_v9 = vand.u32 2147483648, %v1844_v20  ;;  %v1854_v12 = vand.u32 2147483647, %v1844_v20  ;;  %vm1850_vm7 = vweird.f32 %v1844_v20 }
 0x6dd   :  { %3597 = vrcp.f32 %v1863_v35  ;;  %v1875_v19 = vand.u32 2147483648, %v1863_v35  ;;  %v1873_v18 = vand.u32 2147483647, %v1863_v35  ;;  %vm1869_vm8 = vweird.f32 %v1863_v35 }
 0x6de   :  { %v1857_v61 = vor.u32 1.1754944e-38, %v1856_v9  ;;  %vm1855_vm11 = vcmp.eq.f32.partialorder %v1854_v12, 8.507059e+37 }
 0x6df   :  { %v1876_v63 = vor.u32 1.1754944e-38, %v1875_v19  ;;  %vm1874_vm12 = vcmp.eq.f32.partialorder %v1873_v18, 8.507059e+37 }
 0x6e0   :  { %v3594_v29 = vpop.eup %3593 }
 0x6e1   :  { %v1883_v6 = vadd.f32 1.0, %v3594_v29 }
 0x6e2   :  { %v3596_v31 = vpop.eup %3595 }
 0x6e3   :  { %v3598_v4 = vpop.eup %3597  ;;  %v1846_v34 = vmul.f32 %v3596_v31, %v1844_v20  ;;  %3599 = vrcp.f32 %v1883_v6  ;;  %vm1851_vm5 = vweird.f32 %v3596_v31  ;;  %v1895_v5 = vand.u32 2147483648, %v1883_v6 }
 0x6e4   :  { %v1865_v24 = vmul.f32 %v3598_v4, %v1863_v35  ;;  %3601 = vtanh.f32 %v1816_v15  ;;  %vm1870_vm6 = vweird.f32 %v3598_v4  ;;  %vm1852_vm9 = vmor %vm1850_vm7, %vm1851_vm5  ;;  %vm1889_vm15 = vweird.f32 %v1883_v6 }
 0x6e5   :  { %v1847_v2 = vsub.f32 1.0, %v1846_v34  ;;  %vm1871_vm10 = vmor %vm1869_vm8, %vm1870_vm6  ;;  %v1893_v19 = vand.u32 2147483647, %v1883_v6  ;;  %v1896_v12 = vor.u32 1.1754944e-38, %v1895_v5 }
 0x6e6   :  { %v1866_v51 = vsub.f32 1.0, %v1865_v24 }
 0x6e7   :  { %v1848_v17 = vmul.f32 %v3596_v31, %v1847_v2  ;;  %vm1894_vm1 = vcmp.eq.f32.partialorder %v1893_v19, 8.507059e+37 }
 0x6e8   :  { %v1867_v37 = vmul.f32 %v3598_v4, %v1866_v51 }
 0x6e9   :  { %v3600_v16 = vpop.eup %3599  ;;  %v1849_v7 = vadd.f32 %v3596_v31, %v1848_v17 }
 0x6ea   :  { %v1868_v25 = vadd.f32 %v3598_v4, %v1867_v37  ;;  %v1885_v8 = vmul.f32 %v3600_v16, %v1883_v6  ;;  %v3602_v29 = vpop.eup %3601  ;;  %vm1890_vm13 = vweird.f32 %v3600_v16 }
 0x6eb   :  { %v1853_v11 = vsel %vm1852_vm9, %v3596_v31, %v1849_v7  ;;  %vm1891_vm0 = vmor %vm1889_vm15, %vm1890_vm13 }
 0x6ec   :  { %v1858_v15 = vsel %vm1855_vm11, %v1857_v61, %v1853_v11  ;;  %v1872_v34 = vsel %vm1871_vm10, %v3598_v4, %v1868_v25  ;;  %v1886_v24 = vsub.f32 1.0, %v1885_v8  ;;  %v1741_v61 = vadd.f32 %v4894_v27, %v4830_v32 }
 0x6ed   :  { %v1877_v2 = vsel %vm1874_vm12, %v1876_v63, %v1872_v34  ;;  %v1903_v51 = vmul.f32 %v3602_v29, %v1858_v15 }
 0x6ee   :  { %v1902_v17 = vmul.f32 %v1900_v13, %v1877_v2  ;;  %v1887_v20 = vmul.f32 %v3600_v16, %v1886_v24 }
 0x6f0   :  { %v5081_v35 = vadd.f32 %v1903_v51, %v1902_v17  ;;  %v1888_v9 = vadd.f32 %v3600_v16, %v1887_v20 }
 0x6f2   :  { %3603 = vtanh.f32 %v5081_v35  ;;  %v1892_v31 = vsel %vm1891_vm0, %v3600_v16, %v1888_v9 }
 0x6f3   :  { %v1897_v37 = vsel %vm1894_vm1, %v1896_v12, %v1892_v31 }
 0x6f8   :  { %v3604_v4 = vpop.eup %3603 }
 0x6f9   :  { %v1906_v18 = vmul.f32 %v3604_v4, %v1897_v37 }
 0x6fb   :  { %v1908_v7 = vrot.slane %v1906_v18, 2 }
 0x6fd   :  { %3378 = vmatmul.msk.f32.vlgmr.msrb.gmra.mxu0 %vm274_vm14, %v1908_v7  ;;  %3379 = vmatmul.msk.f32.vlgmr.msra.gmra.mxu1 %vm274_vm14, %v1908_v7  ;;  %v5088_v25 = vadd.f32 %v1908_v7, %v1741_v61 }
 0x6fe   :  { %3380 = vmatmul.msk.f32.vlgmr.msrb.gmra.mxu2 %vm274_vm14, %v1908_v7  ;;  %3381 = vmatmul.msk.f32.vlgmr.msrb.gmra.mxu3 %vm274_vm14, %v1908_v7 }
 0x6ff   :  { %2257 = vmatpush.msrb.mxu0 %v4837_v3  ;;  %2278 = vmatpush.msra.mxu1 %v4908_v22 }
 0x700   :  { %2299 = vmatpush.msrb.mxu2 %v4844_v1  ;;  %2320 = vmatpush.msrb.mxu3 %v4850_v23 }
 0x701   :  { %2258 = vmatpush.msrb.mxu0 %v4916_v10  ;;  %2279 = vmatpush.msra.mxu1 %v4922_v33 }
 0x702   :  { %2300 = vmatpush.msrb.mxu2 %v4928_v38  ;;  %2321 = vmatpush.msrb.mxu3 %v4859_v30 }
 0x703   :  { %2259 = vmatpush.msrb.mxu0 %v4935_v40  ;;  %2280 = vmatpush.msra.mxu1 %v4941_v41 }
 0x704   :  { %2301 = vmatpush.msrb.mxu2 %v4947_v42  ;;  %2322 = vmatpush.msrb.mxu3 %v4953_v43 }
 0x705   :  { %2260 = vmatpush.msrb.mxu0 %v4959_v45  ;;  %2281 = vmatpush.msra.mxu1 %v4965_v46 }
 0x706   :  { %2302 = vmatpush.msrb.mxu2 %v4971_v47  ;;  %2323 = vmatpush.msrb.mxu3 %v4977_v48 }
 0x707   :  { %2261 = vmatpush.msrb.mxu0 %v4983_v49  ;;  %2282 = vmatpush.msra.mxu1 %v4989_v50 }
 0x708   :  { %2303 = vmatpush.msrb.mxu2 %v4995_v52  ;;  %2324 = vmatpush.msrb.mxu3 %v5001_v53 }
 0x709   :  { %2262 = vmatpush.msrb.mxu0 %v5007_v54  ;;  %2283 = vmatpush.msra.mxu1 %v5013_v55 }
 0x70a   :  { %2304 = vmatpush.msrb.mxu2 %v5019_v57  ;;  %2325 = vmatpush.msrb.mxu3 %v5025_v58 }
 0x70b   :  { %2263 = vmatpush.msrb.mxu0 %v5031_v59  ;;  %2284 = vmatpush.msra.mxu1 %v5037_v60 }
 0x70c   :  { %2305 = vmatpush.msrb.mxu2 %v5043_v14  ;;  %2326 = vmatpush.msrb.mxu3 %v5049_v0 }
 0x70d   :  { %2264 = vmatpush.msrb.mxu0 %v5055_v21  ;;  %2285 = vmatpush.msra.mxu1 %v5061_v62 }
 0x70e   :  { %2306 = vmatpush.msrb.mxu2 %v5067_v26  ;;  %2327 = vmatpush.msrb.mxu3 %v5073_v28 }
 0x77a   :  { %v1930_v27 = vpop.f32.mrf.mxu0  ;;  %v1954_v6 = vpop.f32.mrf.mxu1 }
 0x77b   :  { %v1934_v16 = vrot.slane %v1930_v27, 4  ;;  %v1958_v8 = vrot.slane %v1954_v6, 4 }
 0x77d   :  { %v1936_v13 = vadd.f32 %v1934_v16, %v5476_v36  ;;  %v1960_v63 = vadd.f32 %v1958_v8, %v5477_v39 }
 0x77f   :  { %v3382_v11 = vmul.f32 -1.442695, %v1936_v13  ;;  %v3383_v29 = vmul.f32 -1.442695, %v1960_v63 }
 0x781   :  { %3605 = vpow2.f32 %v3382_v11  ;;  %v2002_v15 = vpop.f32.mrf.mxu3  ;;  %v1978_v5 = vpop.f32.mrf.mxu2 }
 0x782   :  { %3607 = vpow2.f32 %v3383_v29  ;;  %v2006_v34 = vrot.slane %v2002_v15, 4  ;;  %v1982_v19 = vrot.slane %v1978_v5, 4 }
 0x784   :  { %v2008_v24 = vadd.f32 %v2006_v34, %v5478_v44  ;;  %v1984_v37 = vadd.f32 %v1982_v19, %v5479_v56 }
 0x786   :  { %v3384_v2 = vmul.f32 -1.442695, %v2008_v24 }
 0x787   :  { %v3606_v51 = vpop.eup %3605 }
 0x788   :  { %v3608_v17 = vpop.eup %3607  ;;  %v2012_v20 = vadd.f32 1.0, %v3606_v51  ;;  %3609 = vpow2.f32 %v3384_v2 }
 0x789   :  { %v2031_v9 = vadd.f32 1.0, %v3608_v17  ;;  %v2068_v17 = vrot.slane %v5081_v35, 6 }
 0x78a   :  { %3611 = vrcp.f32 %v2012_v20  ;;  %v2024_v16 = vand.u32 2147483648, %v2012_v20  ;;  %v2022_v63 = vand.u32 2147483647, %v2012_v20  ;;  %vm2018_vm4 = vweird.f32 %v2012_v20 }
 0x78b   :  { %3613 = vrcp.f32 %v2031_v9  ;;  %v2043_v8 = vand.u32 2147483648, %v2031_v9  ;;  %v2041_v29 = vand.u32 2147483647, %v2031_v9  ;;  %vm2037_vm5 = vweird.f32 %v2031_v9 }
 0x78c   :  { %v2025_v24 = vor.u32 1.1754944e-38, %v2024_v16  ;;  %vm2023_vm8 = vcmp.eq.f32.partialorder %v2022_v63, 8.507059e+37 }
 0x78d   :  { %v2044_v5 = vor.u32 1.1754944e-38, %v2043_v8  ;;  %vm2042_vm9 = vcmp.eq.f32.partialorder %v2041_v29, 8.507059e+37 }
 0x78e   :  { %v3610_v31 = vpop.eup %3609 }
 0x78f   :  { %v2051_v12 = vadd.f32 1.0, %v3610_v31 }
 0x790   :  { %v3612_v4 = vpop.eup %3611 }
 0x791   :  { %v3614_v18 = vpop.eup %3613  ;;  %v2014_v7 = vmul.f32 %v3612_v4, %v2012_v20  ;;  %3615 = vrcp.f32 %v2051_v12  ;;  %vm2019_vm2 = vweird.f32 %v3612_v4  ;;  %v2063_v35 = vand.u32 2147483648, %v2051_v12 }
 0x792   :  { %v2033_v61 = vmul.f32 %v3614_v18, %v2031_v9  ;;  %3617 = vtanh.f32 %v1984_v37  ;;  %vm2038_vm3 = vweird.f32 %v3614_v18  ;;  %vm2020_vm6 = vmor %vm2018_vm4, %vm2019_vm2  ;;  %vm2057_vm11 = vweird.f32 %v2051_v12 }
 0x793   :  { %v2015_v27 = vsub.f32 1.0, %v2014_v7  ;;  %vm2039_vm7 = vmor %vm2037_vm5, %vm2038_vm3  ;;  %v2061_v8 = vand.u32 2147483647, %v2051_v12  ;;  %v2064_v63 = vor.u32 1.1754944e-38, %v2063_v35 }
 0x794   :  { %v2034_v6 = vsub.f32 1.0, %v2033_v61 }
 0x795   :  { %v2016_v13 = vmul.f32 %v3612_v4, %v2015_v27  ;;  %vm2062_vm13 = vcmp.eq.f32.partialorder %v2061_v8, 8.507059e+37 }
 0x796   :  { %v2035_v11 = vmul.f32 %v3614_v18, %v2034_v6 }
 0x797   :  { %v3616_v15 = vpop.eup %3615  ;;  %v2017_v34 = vadd.f32 %v3612_v4, %v2016_v13 }
 0x798   :  { %v2036_v2 = vadd.f32 %v3614_v18, %v2035_v11  ;;  %v2053_v51 = vmul.f32 %v3616_v15, %v2051_v12  ;;  %v3618_v31 = vpop.eup %3617  ;;  %vm2058_vm10 = vweird.f32 %v3616_v15 }
 0x799   :  { %v2021_v19 = vsel %vm2020_vm6, %v3612_v4, %v2017_v34  ;;  %vm2059_vm12 = vmor %vm2057_vm11, %vm2058_vm10 }
 0x79a   :  { %v2026_v37 = vsel %vm2023_vm8, %v2025_v24, %v2021_v19  ;;  %v2040_v7 = vsel %vm2039_vm7, %v3614_v18, %v2036_v2  ;;  %v2054_v61 = vsub.f32 1.0, %v2053_v51 }
 0x79b   :  { %v2045_v27 = vsel %vm2042_vm9, %v2044_v5, %v2040_v7  ;;  %v2071_v6 = vmul.f32 %v3618_v31, %v2026_v37 }
 0x79c   :  { %v2070_v13 = vmul.f32 %v2068_v17, %v2045_v27  ;;  %v2055_v20 = vmul.f32 %v3616_v15, %v2054_v61 }
 0x79e   :  { %v5129_v9 = vadd.f32 %v2071_v6, %v2070_v13  ;;  %v2056_v16 = vadd.f32 %v3616_v15, %v2055_v20 }
 0x7a0   :  { %3619 = vtanh.f32 %v5129_v9  ;;  %v2060_v4 = vsel %vm2059_vm12, %v3616_v15, %v2056_v16 }
 0x7a1   :  { %v2065_v11 = vsel %vm2062_vm13, %v2064_v63, %v2060_v4 }
 0x7a6   :  { %v3620_v18 = vpop.eup %3619 }
 0x7a7   :  { %v2074_v29 = vmul.f32 %v3620_v18, %v2065_v11 }
 0x7a9   :  { %v2076_v34 = vrot.slane %v2074_v29, 4 }
 0x7ab   :  { %3385 = vmatmul.msk.f32.vlgmr.msra.gmra.mxu0 %vm274_vm14, %v2076_v34  ;;  %3386 = vmatmul.msk.f32.vlgmr.msrb.gmra.mxu1 %vm274_vm14, %v2076_v34  ;;  %v5135_v24 = vadd.f32 %v2076_v34, %v5088_v25 }
 0x7ac   :  { %3387 = vmatmul.msk.f32.vlgmr.msra.gmra.mxu2 %vm274_vm14, %v2076_v34  ;;  %3388 = vmatmul.msk.f32.vlgmr.msra.gmra.mxu3 %vm274_vm14, %v2076_v34 }
 0x7ad   :  { %2411 = vmatpush.msra.mxu0 %v4837_v3  ;;  %2435 = vmatpush.msrb.mxu1 %v4908_v22 }
 0x7ae   :  { %2459 = vmatpush.msra.mxu2 %v4844_v1  ;;  %2483 = vmatpush.msra.mxu3 %v4850_v23 }
 0x7af   :  { %2412 = vmatpush.msra.mxu0 %v4916_v10  ;;  %2436 = vmatpush.msrb.mxu1 %v4922_v33 }
 0x7b0   :  { %2460 = vmatpush.msra.mxu2 %v4928_v38  ;;  %2484 = vmatpush.msra.mxu3 %v4859_v30 }
 0x7b1   :  { %2413 = vmatpush.msra.mxu0 %v4935_v40  ;;  %2437 = vmatpush.msrb.mxu1 %v4941_v41 }
 0x7b2   :  { %2461 = vmatpush.msra.mxu2 %v4947_v42  ;;  %2485 = vmatpush.msra.mxu3 %v4953_v43 }
 0x7b3   :  { %2414 = vmatpush.msra.mxu0 %v4959_v45  ;;  %2438 = vmatpush.msrb.mxu1 %v4965_v46 }
 0x7b4   :  { %2462 = vmatpush.msra.mxu2 %v4971_v47  ;;  %2486 = vmatpush.msra.mxu3 %v4977_v48 }
 0x7b5   :  { %2415 = vmatpush.msra.mxu0 %v4983_v49  ;;  %2439 = vmatpush.msrb.mxu1 %v4989_v50 }
 0x7b6   :  { %2463 = vmatpush.msra.mxu2 %v4995_v52  ;;  %2487 = vmatpush.msra.mxu3 %v5001_v53 }
 0x7b7   :  { %2416 = vmatpush.msra.mxu0 %v5007_v54  ;;  %2440 = vmatpush.msrb.mxu1 %v5013_v55 }
 0x7b8   :  { %2464 = vmatpush.msra.mxu2 %v5019_v57  ;;  %2488 = vmatpush.msra.mxu3 %v5025_v58 }
 0x7b9   :  { %2417 = vmatpush.msra.mxu0 %v5031_v59  ;;  %2441 = vmatpush.msrb.mxu1 %v5037_v60 }
 0x7ba   :  { %2465 = vmatpush.msra.mxu2 %v5043_v14  ;;  %2489 = vmatpush.msra.mxu3 %v5049_v0 }
 0x7bb   :  { %2418 = vmatpush.msra.mxu0 %v5055_v21  ;;  %2442 = vmatpush.msrb.mxu1 %v5061_v62 }
 0x7bc   :  { %2466 = vmatpush.msra.mxu2 %v5067_v26  ;;  %2490 = vmatpush.msra.mxu3 %v5073_v28 }
 0x828   :  { %v2098_v25 = vpop.f32.mrf.mxu0  ;;  %v2122_v12 = vpop.f32.mrf.mxu1 }
 0x829   :  { %v2102_v15 = vrot.slane %v2098_v25, 2  ;;  %v2126_v2 = vrot.slane %v2122_v12, 2 }
 0x82b   :  { %v2104_v51 = vadd.f32 %v2102_v15, %v5476_v36  ;;  %v2128_v17 = vadd.f32 %v2126_v2, %v5477_v39 }
 0x82d   :  { %v3389_v5 = vmul.f32 -1.442695, %v2104_v51  ;;  %v3390_v19 = vmul.f32 -1.442695, %v2128_v17 }
 0x82f   :  { %3621 = vpow2.f32 %v3389_v5  ;;  %v2170_v31 = vpop.f32.mrf.mxu3  ;;  %v2146_v16 = vpop.f32.mrf.mxu2 }
 0x830   :  { %3623 = vpow2.f32 %v3390_v19  ;;  %v2174_v37 = vrot.slane %v2170_v31, 2  ;;  %v2150_v36 = vrot.slane %v2146_v16, 2 }
 0x832   :  { %v2176_v7 = vadd.f32 %v2174_v37, %v5478_v44  ;;  %v2152_v4 = vadd.f32 %v2150_v36, %v5479_v56  ;;  %v2236_v37 = vrot.slane %v5129_v9, 6 }
 0x834   :  { %v3391_v61 = vmul.f32 -1.442695, %v2176_v7 }
 0x835   :  { %v3622_v27 = vpop.eup %3621 }
 0x836   :  { %v3624_v6 = vpop.eup %3623  ;;  %v2180_v13 = vadd.f32 1.0, %v3622_v27  ;;  %3625 = vpow2.f32 %v3391_v61 }
 0x837   :  { %v2199_v20 = vadd.f32 1.0, %v3624_v6 }
 0x838   :  { %3627 = vrcp.f32 %v2180_v13  ;;  %v2192_v34 = vand.u32 2147483648, %v2180_v13  ;;  %v2190_v15 = vand.u32 2147483647, %v2180_v13  ;;  %vm2186_vm1 = vweird.f32 %v2180_v13 }
 0x839   :  { %3629 = vrcp.f32 %v2199_v20  ;;  %v2211_v25 = vand.u32 2147483648, %v2199_v20  ;;  %v2209_v51 = vand.u32 2147483647, %v2199_v20  ;;  %vm2205_vm2 = vweird.f32 %v2199_v20 }
 0x83a   :  { %v2193_v56 = vor.u32 1.1754944e-38, %v2192_v34  ;;  %vm2191_vm5 = vcmp.eq.f32.partialorder %v2190_v15, 8.507059e+37 }
 0x83b   :  { %v2212_v7 = vor.u32 1.1754944e-38, %v2211_v25  ;;  %vm2210_vm6 = vcmp.eq.f32.partialorder %v2209_v51, 8.507059e+37 }
 0x83c   :  { %v3626_v35 = vpop.eup %3625 }
 0x83d   :  { %v2219_v39 = vadd.f32 1.0, %v3626_v35 }
 0x83e   :  { %v3628_v8 = vpop.eup %3627 }
 0x83f   :  { %v3630_v63 = vpop.eup %3629  ;;  %v2182_v18 = vmul.f32 %v3628_v8, %v2180_v13  ;;  %3631 = vrcp.f32 %v2219_v39  ;;  %vm2187_vm15 = vweird.f32 %v3628_v8  ;;  %v2231_v9 = vand.u32 2147483648, %v2219_v39 }
 0x840   :  { %v2201_v11 = vmul.f32 %v3630_v63, %v2199_v20  ;;  %3633 = vtanh.f32 %v2152_v4  ;;  %vm2206_vm0 = vweird.f32 %v3630_v63  ;;  %vm2188_vm3 = vmor %vm2186_vm1, %vm2187_vm15  ;;  %vm2225_vm8 = vweird.f32 %v2219_v39 }
 0x841   :  { %v2183_v44 = vsub.f32 1.0, %v2182_v18  ;;  %vm2207_vm4 = vmor %vm2205_vm2, %vm2206_vm0 }
 0x842   :  { %v2202_v29 = vsub.f32 1.0, %v2201_v11 }
 0x843   :  { %v2184_v12 = vmul.f32 %v3628_v8, %v2183_v44  ;;  %v2229_v44 = vand.u32 2147483647, %v2219_v39 }
 0x844   :  { %v2203_v2 = vmul.f32 %v3630_v63, %v2202_v29  ;;  %v2232_v29 = vor.u32 1.1754944e-38, %v2231_v9 }
 0x845   :  { %v3632_v17 = vpop.eup %3631  ;;  %v2185_v5 = vadd.f32 %v3628_v8, %v2184_v12  ;;  %vm2230_vm10 = vcmp.eq.f32.partialorder %v2229_v44, 8.507059e+37 }
 0x846   :  { %v2204_v19 = vadd.f32 %v3630_v63, %v2203_v2  ;;  %v2221_v31 = vmul.f32 %v3632_v17, %v2219_v39  ;;  %v3634_v27 = vpop.eup %3633  ;;  %vm2226_vm7 = vweird.f32 %v3632_v17 }
 0x847   :  { %v2189_v61 = vsel %vm2188_vm3, %v3628_v8, %v2185_v5  ;;  %vm2227_vm9 = vmor %vm2225_vm8, %vm2226_vm7  ;;  %v5482_v5 = vld [vmem:[#allocation12_spill] sm:$0xff] }
 0x848   :  { %v2194_v6 = vsel %vm2191_vm5, %v2193_v56, %v2189_v61  ;;  %v2208_v16 = vsel %vm2207_vm4, %v3630_v63, %v2204_v19  ;;  %v2222_v36 = vsub.f32 1.0, %v2221_v31 }
 0x849   :  { %v2213_v35 = vsel %vm2210_vm6, %v2212_v7, %v2208_v16  ;;  %v2239_v4 = vmul.f32 %v3634_v27, %v2194_v6 }
 0x84a   :  { %v2238_v18 = vmul.f32 %v2236_v37, %v2213_v35  ;;  %v2223_v13 = vmul.f32 %v3632_v17, %v2222_v36  ;;  %v5483_v35 = vld [vmem:[#allocation13_spill] sm:$0xff] }
 0x84c   :  { %v5176_v20 = vadd.f32 %v2239_v4, %v2238_v18  ;;  %v2224_v11 = vadd.f32 %v3632_v17, %v2223_v13 }
 0x84e   :  { %3635 = vtanh.f32 %v5176_v20  ;;  %v2228_v8 = vsel %vm2227_vm9, %v3632_v17, %v2224_v11 }
 0x84f   :  { %v2233_v34 = vsel %vm2230_vm10, %v2232_v29, %v2228_v8 }
 0x854   :  { %v3636_v63 = vpop.eup %3635 }
 0x855   :  { %v2242_v25 = vmul.f32 %v3636_v63, %v2233_v34 }
 0x857   :  { %v2244_v12 = vrot.slane %v2242_v25, 6 }
 0x859   :  { %3392 = vmatmul.msk.f32.vlgmr.msrb.gmra.mxu0 %vm274_vm14, %v2244_v12  ;;  %3393 = vmatmul.msk.f32.vlgmr.msra.gmra.mxu1 %vm274_vm14, %v2244_v12  ;;  %v5182_v15 = vadd.f32 %v2244_v12, %v5135_v24  ;;  %v5481_v24 = vld [vmem:[#allocation15_spill] sm:$0xff] }
 0x85a   :  { %3394 = vmatmul.msk.f32.vlgmr.msrb.gmra.mxu2 %vm274_vm14, %v2244_v12  ;;  %3395 = vmatmul.msk.f32.vlgmr.msrb.gmra.mxu3 %vm274_vm14, %v2244_v12 }
 0x85b   :  { %2579 = vmatpush.msrb.mxu0 %v4837_v3  ;;  %2603 = vmatpush.msra.mxu1 %v4908_v22 }
 0x85c   :  { %2627 = vmatpush.msrb.mxu2 %v4844_v1  ;;  %2651 = vmatpush.msrb.mxu3 %v4850_v23  ;;  %v5480_v23 = vld [vmem:[#allocation6_spill] sm:$0xff] }
 0x85d   :  { %2580 = vmatpush.msrb.mxu0 %v4916_v10  ;;  %2604 = vmatpush.msra.mxu1 %v4922_v33 }
 0x85e   :  { %2628 = vmatpush.msrb.mxu2 %v4928_v38  ;;  %2652 = vmatpush.msrb.mxu3 %v4859_v30 }
 0x85f   :  { %2581 = vmatpush.msrb.mxu0 %v4935_v40  ;;  %2605 = vmatpush.msra.mxu1 %v4941_v41 }
 0x860   :  { %2629 = vmatpush.msrb.mxu2 %v4947_v42  ;;  %2653 = vmatpush.msrb.mxu3 %v4953_v43 }
 0x861   :  { %2582 = vmatpush.msrb.mxu0 %v4959_v45  ;;  %2606 = vmatpush.msra.mxu1 %v4965_v46 }
 0x862   :  { %2630 = vmatpush.msrb.mxu2 %v4971_v47  ;;  %2654 = vmatpush.msrb.mxu3 %v4977_v48 }
 0x863   :  { %2583 = vmatpush.msrb.mxu0 %v4983_v49  ;;  %2607 = vmatpush.msra.mxu1 %v4989_v50 }
 0x864   :  { %2631 = vmatpush.msrb.mxu2 %v4995_v52  ;;  %2655 = vmatpush.msrb.mxu3 %v5001_v53 }
 0x865   :  { %2584 = vmatpush.msrb.mxu0 %v5007_v54  ;;  %2608 = vmatpush.msra.mxu1 %v5013_v55 }
 0x866   :  { %2632 = vmatpush.msrb.mxu2 %v5019_v57  ;;  %2656 = vmatpush.msrb.mxu3 %v5025_v58 }
 0x867   :  { %2585 = vmatpush.msrb.mxu0 %v5031_v59  ;;  %2609 = vmatpush.msra.mxu1 %v5037_v60 }
 0x868   :  { %2633 = vmatpush.msrb.mxu2 %v5043_v14  ;;  %2657 = vmatpush.msrb.mxu3 %v5049_v0 }
 0x869   :  { %2586 = vmatpush.msrb.mxu0 %v5055_v21  ;;  %2610 = vmatpush.msra.mxu1 %v5061_v62 }
 0x86a   :  { %2634 = vmatpush.msrb.mxu2 %v5067_v26  ;;  %2658 = vmatpush.msrb.mxu3 %v5073_v28 }
 0x8d6   :  { %v2266_v3 = vpop.f32.mrf.mxu0  ;;  %v2287_v1 = vpop.f32.mrf.mxu1 }
 0x8d7   :  { %v2269_v30 = vadd.f32 %v2266_v3, %v5480_v23  ;;  %v2290_v39 = vadd.f32 %v2287_v1, %v5481_v24 }
 0x8d9   :  { %v3396_v2 = vmul.f32 -1.442695, %v2269_v30  ;;  %v3397_v51 = vmul.f32 -1.442695, %v2290_v39 }
 0x8db   :  { %3637 = vpow2.f32 %v3396_v2 }
 0x8dc   :  { %3639 = vpow2.f32 %v3397_v51 }
 0x8dd   :  { %v2329_v17 = vpop.f32.mrf.mxu3  ;;  %v2308_v27 = vpop.f32.mrf.mxu2 }
 0x8de   :  { %v2332_v56 = vadd.f32 %v2329_v17, %v5482_v5  ;;  %v2311_v4 = vadd.f32 %v2308_v27, %v5483_v35 }
 0x8e0   :  { %v3398_v19 = vmul.f32 -1.442695, %v2332_v56  ;;  %v2392_v56 = vrot.slane %v5176_v20, 6 }
 0x8e1   :  { %v3638_v31 = vpop.eup %3637 }
 0x8e2   :  { %v3640_v37 = vpop.eup %3639  ;;  %v2336_v7 = vadd.f32 1.0, %v3638_v31  ;;  %3641 = vpow2.f32 %v3398_v19 }
 0x8e3   :  { %v2355_v61 = vadd.f32 1.0, %v3640_v37 }
 0x8e4   :  { %3643 = vrcp.f32 %v2336_v7  ;;  %v2348_v8 = vand.u32 2147483648, %v2336_v7  ;;  %v2346_v34 = vand.u32 2147483647, %v2336_v7  ;;  %vm2342_vm13 = vweird.f32 %v2336_v7 }
 0x8e5   :  { %3645 = vrcp.f32 %v2355_v61  ;;  %v2367_v29 = vand.u32 2147483648, %v2355_v61  ;;  %v2365_v12 = vand.u32 2147483647, %v2355_v61  ;;  %vm2361_vm15 = vweird.f32 %v2355_v61 }
 0x8e6   :  { %v2349_v30 = vor.u32 1.1754944e-38, %v2348_v8  ;;  %vm2347_vm2 = vcmp.eq.f32.partialorder %v2346_v34, 8.507059e+37  ;;  %v3782_v34 = vld [vmem:[%s5438_s2 + $0xb8] sm:$0xff] }
 0x8e7   :  { %v2368_v51 = vor.u32 1.1754944e-38, %v2367_v29  ;;  %vm2366_vm3 = vcmp.eq.f32.partialorder %v2365_v12, 8.507059e+37 }
 0x8e8   :  { %v3642_v6 = vpop.eup %3641 }
 0x8e9   :  { %v2375_v16 = vadd.f32 1.0, %v3642_v6 }
 0x8ea   :  { %v3644_v36 = vpop.eup %3643 }
 0x8eb   :  { %v3646_v18 = vpop.eup %3645  ;;  %v2338_v13 = vmul.f32 %v3644_v36, %v2336_v7  ;;  %3647 = vrcp.f32 %v2375_v16  ;;  %vm2343_vm11 = vweird.f32 %v3644_v36  ;;  %vm2381_vm5 = vweird.f32 %v2375_v16 }
 0x8ec   :  { %v2357_v11 = vmul.f32 %v3646_v18, %v2355_v61  ;;  %3649 = vtanh.f32 %v2311_v4  ;;  %vm2362_vm12 = vweird.f32 %v3646_v18  ;;  %vm2344_vm0 = vmor %vm2342_vm13, %vm2343_vm11 }
 0x8ed   :  { %v2339_v9 = vsub.f32 1.0, %v2338_v13  ;;  %vm2363_vm1 = vmor %vm2361_vm15, %vm2362_vm12 }
 0x8ee   :  { %v2358_v44 = vsub.f32 1.0, %v2357_v11 }
 0x8ef   :  { %v2340_v63 = vmul.f32 %v3644_v36, %v2339_v9  ;;  %v2387_v9 = vand.u32 2147483648, %v2375_v16 }
 0x8f0   :  { %v2359_v25 = vmul.f32 %v3646_v18, %v2358_v44 }
 0x8f1   :  { %v3648_v3 = vpop.eup %3647  ;;  %v2341_v1 = vadd.f32 %v3644_v36, %v2340_v63  ;;  %v2388_v44 = vor.u32 1.1754944e-38, %v2387_v9 }
 0x8f2   :  { %v2360_v39 = vadd.f32 %v3646_v18, %v2359_v25  ;;  %v2377_v2 = vmul.f32 %v3648_v3, %v2375_v16  ;;  %v3650_v19 = vpop.eup %3649  ;;  %vm2382_vm4 = vweird.f32 %v3648_v3 }
 0x8f3   :  { %v2345_v17 = vsel %vm2344_vm0, %v3644_v36, %v2341_v1  ;;  %v2385_v36 = vand.u32 2147483647, %v2375_v16  ;;  %vm2383_vm6 = vmor %vm2381_vm5, %vm2382_vm4  ;;  %v3781_v16 = vld [vmem:[%s5438_s2 + $0x38] sm:$0xff] }
 0x8f4   :  { %v2350_v31 = vsel %vm2347_vm2, %v2349_v30, %v2345_v17  ;;  %v2364_v37 = vsel %vm2363_vm1, %v3646_v18, %v2360_v39  ;;  %v2378_v27 = vsub.f32 1.0, %v2377_v2 }
 0x8f5   :  { %v2369_v6 = vsel %vm2366_vm3, %v2368_v51, %v2364_v37  ;;  %v2395_v4 = vmul.f32 %v3650_v19, %v2350_v31  ;;  %vm2386_vm7 = vcmp.eq.f32.partialorder %v2385_v36, 8.507059e+37 }
 0x8f6   :  { %v2394_v13 = vmul.f32 %v2392_v56, %v2369_v6  ;;  %v2379_v7 = vmul.f32 %v3648_v3, %v2378_v27 }
 0x8f8   :  { %v5223_v61 = vadd.f32 %v2395_v4, %v2394_v13  ;;  %v2380_v11 = vadd.f32 %v3648_v3, %v2379_v7 }
 0x8fa   :  { %3651 = vtanh.f32 %v5223_v61  ;;  %v2384_v20 = vsel %vm2383_vm6, %v3648_v3, %v2380_v11  ;;  %v2558_v31 = vrot.slane %v5223_v61, 6 }
 0x8fb   :  { %v2389_v8 = vsel %vm2386_vm7, %v2388_v44, %v2384_v20 }
 0x900   :  { %v3652_v18 = vpop.eup %3651 }
 0x901   :  { %v2398_v29 = vmul.f32 %v3652_v18, %v2389_v8 }
 0x903   :  { %3399 = vmatmul.msk.f32.vlgmr.msra.gmra.mxu0 %vm274_vm14, %v2398_v29  ;;  %3400 = vmatmul.msk.f32.vlgmr.msrb.gmra.mxu1 %vm274_vm14, %v2398_v29  ;;  %v5229_v63 = vadd.f32 %v2398_v29, %v5182_v15  ;;  %v3783_v15 = vld [vmem:[%s5438_s2 + $0xf8] sm:$0xff] }
 0x904   :  { %3401 = vmatmul.msk.f32.vlgmr.msra.gmra.mxu2 %vm274_vm14, %v2398_v29  ;;  %3402 = vmatmul.msk.f32.vlgmr.msra.gmra.mxu3 %vm274_vm14, %v2398_v29 }
 0x905   :  { %2747 = vmatpush.msra.mxu0 %v3781_v16  ;;  %2771 = vmatpush.msrb.mxu1 %v4908_v22  ;;  %v3784_v22 = vld [vmem:[%s5438_s2 + $0xf0] sm:$0xff] }
 0x906   :  { %2795 = vmatpush.msra.mxu2 %v3782_v34  ;;  %2819 = vmatpush.msra.mxu3 %v3783_v15 }
 0x907   :  { %2748 = vmatpush.msra.mxu0 %v4916_v10  ;;  %2772 = vmatpush.msrb.mxu1 %v4922_v33 }
 0x908   :  { %2796 = vmatpush.msra.mxu2 %v4928_v38  ;;  %2820 = vmatpush.msra.mxu3 %v3784_v22 }
 0x909   :  { %2749 = vmatpush.msra.mxu0 %v4935_v40  ;;  %2773 = vmatpush.msrb.mxu1 %v4941_v41 }
 0x90a   :  { %2797 = vmatpush.msra.mxu2 %v4947_v42  ;;  %2821 = vmatpush.msra.mxu3 %v4953_v43 }
 0x90b   :  { %2750 = vmatpush.msra.mxu0 %v4959_v45  ;;  %2774 = vmatpush.msrb.mxu1 %v4965_v46 }
 0x90c   :  { %2798 = vmatpush.msra.mxu2 %v4971_v47  ;;  %2822 = vmatpush.msra.mxu3 %v4977_v48 }
 0x90d   :  { %2751 = vmatpush.msra.mxu0 %v4983_v49  ;;  %2775 = vmatpush.msrb.mxu1 %v4989_v50 }
 0x90e   :  { %2799 = vmatpush.msra.mxu2 %v4995_v52  ;;  %2823 = vmatpush.msra.mxu3 %v5001_v53 }
 0x90f   :  { %2752 = vmatpush.msra.mxu0 %v5007_v54  ;;  %2776 = vmatpush.msrb.mxu1 %v5013_v55 }
 0x910   :  { %2800 = vmatpush.msra.mxu2 %v5019_v57  ;;  %2824 = vmatpush.msra.mxu3 %v5025_v58 }
 0x911   :  { %2753 = vmatpush.msra.mxu0 %v5031_v59  ;;  %2777 = vmatpush.msrb.mxu1 %v5037_v60 }
 0x912   :  { %2801 = vmatpush.msra.mxu2 %v5043_v14  ;;  %2825 = vmatpush.msra.mxu3 %v5049_v0 }
 0x913   :  { %2754 = vmatpush.msra.mxu0 %v5055_v21  ;;  %2778 = vmatpush.msrb.mxu1 %v5061_v62 }
 0x914   :  { %2802 = vmatpush.msra.mxu2 %v5067_v26  ;;  %2826 = vmatpush.msra.mxu3 %v5073_v28 }
 0x980   :  { %v2420_v10 = vpop.f32.mrf.mxu0  ;;  %v2444_v33 = vpop.f32.mrf.mxu1 }
 0x981   :  { %v2424_v38 = vrot.slane %v2420_v10, 6  ;;  %v2448_v40 = vrot.slane %v2444_v33, 6 }
 0x983   :  { %v2426_v41 = vadd.f32 %v2424_v38, %v5480_v23  ;;  %v2450_v42 = vadd.f32 %v2448_v40, %v5481_v24 }
 0x985   :  { %v3403_v43 = vmul.f32 -1.442695, %v2426_v41  ;;  %v3404_v45 = vmul.f32 -1.442695, %v2450_v42 }
 0x987   :  { %3653 = vpow2.f32 %v3403_v43  ;;  %v2492_v46 = vpop.f32.mrf.mxu3  ;;  %v2468_v55 = vpop.f32.mrf.mxu2 }
 0x988   :  { %3655 = vpow2.f32 %v3404_v45  ;;  %v2496_v47 = vrot.slane %v2492_v46, 6  ;;  %v2472_v57 = vrot.slane %v2468_v55, 6 }
 0x98a   :  { %v2498_v48 = vadd.f32 %v2496_v47, %v5482_v5  ;;  %v2474_v14 = vadd.f32 %v2472_v57, %v5483_v35 }
 0x98c   :  { %v3405_v49 = vmul.f32 -1.442695, %v2498_v48  ;;  %v2913_v48 = vld [vmem:[%s5440_s4 + $0x38] sm:$0xff] }
 0x98d   :  { %v3654_v50 = vpop.eup %3653 }
 0x98e   :  { %v3656_v52 = vpop.eup %3655  ;;  %v2502_v53 = vadd.f32 1.0, %v3654_v50  ;;  %3657 = vpow2.f32 %v3405_v49 }
 0x98f   :  { %v2521_v54 = vadd.f32 1.0, %v3656_v52  ;;  %v2911_v52 = vld [vmem:[%s5440_s4 + $0x28] sm:$0xff] }
 0x990   :  { %3659 = vrcp.f32 %v2502_v53  ;;  %v2514_v25 = vand.u32 2147483648, %v2502_v53  ;;  %v2512_v1 = vand.u32 2147483647, %v2502_v53  ;;  %vm2508_vm10 = vweird.f32 %v2502_v53 }
 0x991   :  { %3661 = vrcp.f32 %v2521_v54  ;;  %v2533_v12 = vand.u32 2147483648, %v2521_v54  ;;  %v2531_v39 = vand.u32 2147483647, %v2521_v54  ;;  %vm2527_vm11 = vweird.f32 %v2521_v54 }
 0x992   :  { %v2515_v17 = vor.u32 1.1754944e-38, %v2514_v25  ;;  %vm2513_vm15 = vcmp.eq.f32.partialorder %v2512_v1, 8.507059e+37  ;;  %v2906_v1 = vld [vmem:[%s5440_s4] sm:$0xff] }
 0x993   :  { %v2534_v37 = vor.u32 1.1754944e-38, %v2533_v12  ;;  %vm2532_vm0 = vcmp.eq.f32.partialorder %v2531_v39, 8.507059e+37 }
 0x994   :  { %v3658_v58 = vpop.eup %3657 }
 0x995   :  { %v2541_v59 = vadd.f32 1.0, %v3658_v58 }
 0x996   :  { %v3660_v60 = vpop.eup %3659 }
 0x997   :  { %v3662_v0 = vpop.eup %3661  ;;  %v2504_v21 = vmul.f32 %v3660_v60, %v2502_v53  ;;  %3663 = vrcp.f32 %v2541_v59  ;;  %vm2509_vm8 = vweird.f32 %v3660_v60  ;;  %v2553_v61 = vand.u32 2147483648, %v2541_v59 }
 0x998   :  { %v2523_v62 = vmul.f32 %v3662_v0, %v2521_v54  ;;  %3665 = vtanh.f32 %v2474_v14  ;;  %vm2528_vm9 = vweird.f32 %v3662_v0  ;;  %vm2510_vm12 = vmor %vm2508_vm10, %vm2509_vm8  ;;  %vm2547_vm2 = vweird.f32 %v2541_v59  ;;  %v2910_v54 = vld [vmem:[%s5440_s4 + $0x20] sm:$0xff] }
 0x999   :  { %v2505_v26 = vsub.f32 1.0, %v2504_v21  ;;  %vm2529_vm13 = vmor %vm2527_vm11, %vm2528_vm9  ;;  %v2551_v8 = vand.u32 2147483647, %v2541_v59  ;;  %v2554_v16 = vor.u32 1.1754944e-38, %v2553_v61  ;;  %v2909_v21 = vld [vmem:[%s5440_s4 + $0x18] sm:$0xff] }
 0x99a   :  { %v2524_v28 = vsub.f32 1.0, %v2523_v62  ;;  %v2908_v62 = vld [vmem:[%s5440_s4 + $0x10] sm:$0xff] }
 0x99b   :  { %v2506_v3 = vmul.f32 %v3660_v60, %v2505_v26  ;;  %vm2552_vm4 = vcmp.eq.f32.partialorder %v2551_v8, 8.507059e+37 }
 0x99c   :  { %v2525_v30 = vmul.f32 %v3662_v0, %v2524_v28  ;;  %v2907_v28 = vld [vmem:[%s5440_s4 + $0x8] sm:$0xff] }
 0x99d   :  { %v3664_v2 = vpop.eup %3663  ;;  %v2507_v51 = vadd.f32 %v3660_v60, %v2506_v3 }
 0x99e   :  { %v2526_v56 = vadd.f32 %v3662_v0, %v2525_v30  ;;  %v2543_v19 = vmul.f32 %v3664_v2, %v2541_v59  ;;  %v3666_v6 = vpop.eup %3665  ;;  %vm2548_vm1 = vweird.f32 %v3664_v2 }
 0x99f   :  { %v2511_v27 = vsel %vm2510_vm12, %v3660_v60, %v2507_v51  ;;  %vm2549_vm3 = vmor %vm2547_vm2, %vm2548_vm1  ;;  %vm2970_vm2 = vcmask 64512  }
 0x9a0   :  { %v2516_v4 = vsel %vm2513_vm15, %v2515_v17, %v2511_v27  ;;  %v2530_v13 = vsel %vm2529_vm13, %v3662_v0, %v2526_v56  ;;  %v2544_v7 = vsub.f32 1.0, %v2543_v19 }
 0x9a1   :  { %v2535_v11 = vsel %vm2532_vm0, %v2534_v37, %v2530_v13  ;;  %v2561_v9 = vmul.f32 %v3666_v6, %v2516_v4 }
 0x9a2   :  { %v2560_v36 = vmul.f32 %v2558_v31, %v2535_v11  ;;  %v2545_v20 = vmul.f32 %v3664_v2, %v2544_v7 }
 0x9a4   :  { %v5278_v44 = vadd.f32 %v2561_v9, %v2560_v36  ;;  %v2546_v18 = vadd.f32 %v3664_v2, %v2545_v20 }
 0x9a6   :  { %3667 = vtanh.f32 %v5278_v44  ;;  %v2550_v29 = vsel %vm2549_vm3, %v3664_v2, %v2546_v18  ;;  %v2726_v36 = vrot.slane %v5278_v44, 6 }
 0x9a7   :  { %v2555_v15 = vsel %vm2552_vm4, %v2554_v16, %v2550_v29 }
 0x9ac   :  { %v3668_v34 = vpop.eup %3667 }
 0x9ad   :  { %v2564_v22 = vmul.f32 %v3668_v34, %v2555_v15 }
 0x9af   :  { %v2566_v10 = vrot.slane %v2564_v22, 2 }
 0x9b1   :  { %3406 = vmatmul.msk.f32.vlgmr.msrb.gmra.mxu0 %vm274_vm14, %v2566_v10  ;;  %3407 = vmatmul.msk.f32.vlgmr.msra.gmra.mxu1 %vm274_vm14, %v2566_v10  ;;  %v5284_v33 = vadd.f32 %v2566_v10, %v5229_v63  ;;  %v2912_v63 = vld [vmem:[%s5440_s4 + $0x30] sm:$0xff]  ;;  %s3236_s4 = sshll.u32 %s5450_s14, 4  ;;  %s3237_s4 = int_to_ptr.hbm [resolvable:$true] %s3236_s4 }
 0x9b2   :  { %3408 = vmatmul.msk.f32.vlgmr.msrb.gmra.mxu2 %vm274_vm14, %v2566_v10  ;;  %3409 = vmatmul.msk.f32.vlgmr.msrb.gmra.mxu3 %vm274_vm14, %v2566_v10 }
 0x9b3   :  { %2929 = vmatpush.msrb.mxu0 %v2913_v48  ;;  %2953 = vmatpush.msra.mxu1 %v2913_v48 }
 0x9b5   :  { %2930 = vmatpush.msrb.mxu0 %v2912_v63  ;;  %2954 = vmatpush.msra.mxu1 %v2912_v63 }
 0x9b7   :  { %2931 = vmatpush.msrb.mxu0 %v2911_v52  ;;  %2955 = vmatpush.msra.mxu1 %v2911_v52 }
 0x9b9   :  { %2932 = vmatpush.msrb.mxu0 %v2910_v54  ;;  %2956 = vmatpush.msra.mxu1 %v2910_v54 }
 0x9bb   :  { %2933 = vmatpush.msrb.mxu0 %v2909_v21  ;;  %2957 = vmatpush.msra.mxu1 %v2909_v21 }
 0x9bd   :  { %2934 = vmatpush.msrb.mxu0 %v2908_v62  ;;  %2958 = vmatpush.msra.mxu1 %v2908_v62 }
 0x9bf   :  { %2935 = vmatpush.msrb.mxu0 %v2907_v28  ;;  %2959 = vmatpush.msra.mxu1 %v2907_v28 }
 0x9c1   :  { %2936 = vmatpush.msrb.mxu0 %v2906_v1  ;;  %2960 = vmatpush.msra.mxu1 %v2906_v1 }
 0xa2e   :  { %v2588_v38 = vpop.f32.mrf.mxu0  ;;  %v2612_v40 = vpop.f32.mrf.mxu1 }
 0xa2f   :  { %v2592_v41 = vrot.slane %v2588_v38, 4  ;;  %v2616_v42 = vrot.slane %v2612_v40, 4 }
 0xa31   :  { %v2594_v43 = vadd.f32 %v2592_v41, %v5480_v23  ;;  %v2618_v45 = vadd.f32 %v2616_v42, %v5481_v24 }
 0xa33   :  { %v3410_v46 = vmul.f32 -1.442695, %v2594_v43  ;;  %v3411_v47 = vmul.f32 -1.442695, %v2618_v45 }
 0xa35   :  { %3669 = vpow2.f32 %v3410_v46  ;;  %v2660_v49 = vpop.f32.mrf.mxu3  ;;  %v2636_v14 = vpop.f32.mrf.mxu2 }
 0xa36   :  { %3671 = vpow2.f32 %v3411_v47  ;;  %v2664_v50 = vrot.slane %v2660_v49, 4  ;;  %v2640_v0 = vrot.slane %v2636_v14, 4  ;;  %v2905_v49 = vmul.f32 0.125, %v4830_v32  ;;  %v5337_v32 = vld [vmem:[%s5441_s5] ss:$0 sm:$0xff] }
 0xa38   :  { %v2666_v53 = vadd.f32 %v2664_v50, %v5482_v5  ;;  %v2642_v3 = vadd.f32 %v2640_v0, %v5483_v35  ;;  %v2965_v50 = vld [vmem:[%s5442_s6] sm:$0xff] }
 0xa39   :  { %2989 = vmatpush.msrb.mxu2 %v2965_v50 }
 0xa3a   :  { %v3412_v55 = vmul.f32 -1.442695, %v2666_v53 }
 0xa3b   :  { %v3670_v57 = vpop.eup %3669 }
 0xa3c   :  { %v3672_v58 = vpop.eup %3671  ;;  %v2670_v59 = vadd.f32 1.0, %v3670_v57  ;;  %3673 = vpow2.f32 %v3412_v55 }
 0xa3d   :  { %v2689_v60 = vadd.f32 1.0, %v3672_v58 }
 0xa3e   :  { %3675 = vrcp.f32 %v2670_v59  ;;  %v2682_v56 = vand.u32 2147483648, %v2670_v59  ;;  %v2680_v37 = vand.u32 2147483647, %v2670_v59  ;;  %vm2676_vm7 = vweird.f32 %v2670_v59 }
 0xa3f   :  { %3677 = vrcp.f32 %v2689_v60  ;;  %v2701_v19 = vand.u32 2147483648, %v2689_v60  ;;  %v2699_v6 = vand.u32 2147483647, %v2689_v60  ;;  %vm2695_vm8 = vweird.f32 %v2689_v60 }
 0xa40   :  { %v2683_v7 = vor.u32 1.1754944e-38, %v2682_v56  ;;  %vm2681_vm11 = vcmp.eq.f32.partialorder %v2680_v37, 8.507059e+37 }
 0xa41   :  { %v2702_v20 = vor.u32 1.1754944e-38, %v2701_v19  ;;  %vm2700_vm12 = vcmp.eq.f32.partialorder %v2699_v6, 8.507059e+37 }
 0xa42   :  { %v3674_v26 = vpop.eup %3673 }
 0xa43   :  { %v2709_v25 = vadd.f32 1.0, %v3674_v26 }
 0xa44   :  { %v3676_v12 = vpop.eup %3675 }
 0xa45   :  { %v3678_v30 = vpop.eup %3677  ;;  %v2672_v39 = vmul.f32 %v3676_v12, %v2670_v59  ;;  %3679 = vrcp.f32 %v2709_v25  ;;  %vm2677_vm5 = vweird.f32 %v3676_v12  ;;  %v2721_v44 = vand.u32 2147483648, %v2709_v25 }
 0xa46   :  { %v2691_v2 = vmul.f32 %v3678_v30, %v2689_v60  ;;  %3681 = vtanh.f32 %v2642_v3  ;;  %vm2696_vm6 = vweird.f32 %v3678_v30  ;;  %vm2678_vm9 = vmor %vm2676_vm7, %vm2677_vm5  ;;  %vm2715_vm15 = vweird.f32 %v2709_v25 }
 0xa47   :  { %v2673_v51 = vsub.f32 1.0, %v2672_v39  ;;  %vm2697_vm10 = vmor %vm2695_vm8, %vm2696_vm6  ;;  %v2719_v41 = vand.u32 2147483647, %v2709_v25  ;;  %v2722_v43 = vor.u32 1.1754944e-38, %v2721_v44 }
 0xa48   :  { %v2692_v17 = vsub.f32 1.0, %v2691_v2 }
 0xa49   :  { %v2674_v31 = vmul.f32 %v3676_v12, %v2673_v51  ;;  %vm2720_vm1 = vcmp.eq.f32.partialorder %v2719_v41, 8.507059e+37 }
 0xa4a   :  { %v2693_v27 = vmul.f32 %v3678_v30, %v2692_v17 }
 0xa4b   :  { %v3680_v4 = vpop.eup %3679  ;;  %v2675_v13 = vadd.f32 %v3676_v12, %v2674_v31 }
 0xa4c   :  { %v2694_v11 = vadd.f32 %v3678_v30, %v2693_v27  ;;  %v2711_v9 = vmul.f32 %v3680_v4, %v2709_v25  ;;  %v3682_v61 = vpop.eup %3681  ;;  %vm2716_vm13 = vweird.f32 %v3680_v4 }
 0xa4d   :  { %v2679_v18 = vsel %vm2678_vm9, %v3676_v12, %v2675_v13  ;;  %vm2717_vm0 = vmor %vm2715_vm15, %vm2716_vm13 }
 0xa4e   :  { %v2684_v8 = vsel %vm2681_vm11, %v2683_v7, %v2679_v18  ;;  %v2698_v29 = vsel %vm2697_vm10, %v3678_v30, %v2694_v11  ;;  %v2712_v16 = vsub.f32 1.0, %v2711_v9 }
 0xa4f   :  { %v2703_v34 = vsel %vm2700_vm12, %v2702_v20, %v2698_v29  ;;  %v2729_v15 = vmul.f32 %v3682_v61, %v2684_v8 }
 0xa50   :  { %v2728_v22 = vmul.f32 %v2726_v36, %v2703_v34  ;;  %v2713_v10 = vmul.f32 %v3680_v4, %v2712_v16 }
 0xa52   :  { %v5317_v38 = vadd.f32 %v2729_v15, %v2728_v22  ;;  %v2714_v40 = vadd.f32 %v3680_v4, %v2713_v10 }
 0xa54   :  { %3683 = vtanh.f32 %v5317_v38  ;;  %v2718_v42 = vsel %vm2717_vm0, %v3680_v4, %v2714_v40  ;;  %v2894_v20 = vrot.slane %v5317_v38, 6  ;;  %vm2994_vm0 = vcmask 1041408  }
 0xa55   :  { %v2723_v46 = vsel %vm2720_vm1, %v2722_v43, %v2718_v42 }
 0xa5a   :  { %v3684_v45 = vpop.eup %3683 }
 0xa5b   :  { %v2732_v47 = vmul.f32 %v3684_v45, %v2723_v46 }
 0xa5d   :  { %v2734_v48 = vrot.slane %v2732_v47, 4 }
 0xa5f   :  { %3413 = vmatmul.msk.f32.vlgmr.msra.gmra.mxu0 %vm274_vm14, %v2734_v48  ;;  %3414 = vmatmul.msk.f32.vlgmr.msrb.gmra.mxu1 %vm274_vm14, %v2734_v48  ;;  %v5323_v63 = vadd.f32 %v2734_v48, %v5284_v33 }
 0xa60   :  { %3415 = vmatmul.msk.f32.vlgmr.msra.gmra.mxu2 %vm274_vm14, %v2734_v48  ;;  %3416 = vmatmul.msk.f32.vlgmr.msra.gmra.mxu3 %vm274_vm14, %v2734_v48 }
 0xa61   :  { %3101 = vmatpush.msra.mxu2 %v2965_v50 }
 0xa67   :  { %3420 = vmatmul.msk.f32.vlgmr.msrb.gmra.mxu0 %vm274_vm14, %v2905_v49 }
 0xadc   :  { %v2756_v52 = vpop.f32.mrf.mxu0  ;;  %v2780_v53 = vpop.f32.mrf.mxu1 }
 0xadd   :  { %v2760_v54 = vrot.slane %v2756_v52, 2  ;;  %v2784_v55 = vrot.slane %v2780_v53, 2  ;;  %v3812_v53 = vmov 2.0  }
 0xadf   :  { %v2762_v33 = vadd.f32 %v2760_v54, %v5480_v23  ;;  %v2786_v57 = vadd.f32 %v2784_v55, %v5481_v24  ;;  %v5349_v55 = vld [vmem:[%s5443_s7] ss:$0 sm:$0xff] }
 0xae1   :  { %v3417_v58 = vmul.f32 -1.442695, %v2762_v33  ;;  %v3418_v59 = vmul.f32 -1.442695, %v2786_v57 }
 0xae3   :  { %3685 = vpow2.f32 %v3417_v58  ;;  %v2828_v60 = vpop.f32.mrf.mxu3  ;;  %v2804_v12 = vpop.f32.mrf.mxu2 }
 0xae4   :  { %3687 = vpow2.f32 %v3418_v59  ;;  %v2832_v14 = vrot.slane %v2828_v60, 2  ;;  %v2938_v0 = vpop.f32.mrf.mxu0  ;;  %v2808_v3 = vrot.slane %v2804_v12, 2  ;;  %v3054_v12 = vld [vmem:[%s5446_s10 + $0x58] sm:$0xff] }
 0xae5   :  { %v2939_v21 = vadd.f32 %v5337_v32, %v2938_v0 }
 0xae6   :  { %v2834_v62 = vadd.f32 %v2832_v14, %v5482_v5  ;;  %v2810_v2 = vadd.f32 %v2808_v3, %v5483_v35 }
 0xae7   :  { %3422 = vmatmul.msk.f32.vlgmr.msrb.gmra.mxu2 %vm2970_vm2, %v2939_v21  ;;  %v3057_v21 = vld [vmem:[%s5446_s10 + $0x70] sm:$0xff] }
 0xae8   :  { %v3419_v23 = vmul.f32 -1.442695, %v2834_v62 }
 0xae9   :  { %v3686_v24 = vpop.eup %3685 }
 0xaea   :  { %v3688_v26 = vpop.eup %3687  ;;  %v2838_v28 = vadd.f32 1.0, %v3686_v24  ;;  %3689 = vpow2.f32 %v3419_v23  ;;  %v3056_v23 = vld [vmem:[%s5446_s10 + $0x68] sm:$0xff] }
 0xaeb   :  { %v2857_v25 = vadd.f32 1.0, %v3688_v26 }
 0xaec   :  { %3691 = vrcp.f32 %v2838_v28  ;;  %v2850_v31 = vand.u32 2147483648, %v2838_v28  ;;  %v2848_v6 = vand.u32 2147483647, %v2838_v28  ;;  %vm2844_vm5 = vweird.f32 %v2838_v28 }
 0xaed   :  { %3693 = vrcp.f32 %v2857_v25  ;;  %v2869_v37 = vand.u32 2147483648, %v2857_v25  ;;  %v2867_v13 = vand.u32 2147483647, %v2857_v25  ;;  %vm2863_vm6 = vweird.f32 %v2857_v25 }
 0xaee   :  { %v2851_v35 = vor.u32 1.1754944e-38, %v2850_v31  ;;  %vm2849_vm9 = vcmp.eq.f32.partialorder %v2848_v6, 8.507059e+37  ;;  %v3049_v31 = vld [vmem:[%s5446_s10 + $0x30] sm:$0xff]  ;;  %v3048_v6 = vld [vmem:[%s5446_s10 + $0x28] sm:$0xff] }
 0xaef   :  { %v2870_v18 = vor.u32 1.1754944e-38, %v2869_v37  ;;  %vm2868_vm10 = vcmp.eq.f32.partialorder %v2867_v13, 8.507059e+37  ;;  %v3047_v13 = vld [vmem:[%s5446_s10 + $0x20] sm:$0xff] }
 0xaf0   :  { %v3690_v1 = vpop.eup %3689 }
 0xaf1   :  { %v2877_v30 = vadd.f32 1.0, %v3690_v1 }
 0xaf2   :  { %v3692_v39 = vpop.eup %3691 }
 0xaf3   :  { %v3694_v51 = vpop.eup %3693  ;;  %v2840_v17 = vmul.f32 %v3692_v39, %v2838_v28  ;;  %3695 = vrcp.f32 %v2877_v30  ;;  %vm2845_vm3 = vweird.f32 %v3692_v39  ;;  %v2889_v42 = vand.u32 2147483648, %v2877_v30  ;;  %v3055_v28 = vld [vmem:[%s5446_s10 + $0x60] sm:$0xff] }
 0xaf4   :  { %v2859_v5 = vmul.f32 %v3694_v51, %v2857_v25  ;;  %3697 = vtanh.f32 %v2810_v2  ;;  %vm2864_vm4 = vweird.f32 %v3694_v51  ;;  %vm2846_vm7 = vmor %vm2844_vm5, %vm2845_vm3  ;;  %vm2883_vm12 = vweird.f32 %v2877_v30  ;;  %v3052_v2 = vld [vmem:[%s5446_s10 + $0x48] sm:$0xff] }
 0xaf5   :  { %v2841_v56 = vsub.f32 1.0, %v2840_v17  ;;  %vm2865_vm8 = vmor %vm2863_vm6, %vm2864_vm4  ;;  %v2887_v38 = vand.u32 2147483647, %v2877_v30  ;;  %v2890_v45 = vor.u32 1.1754944e-38, %v2889_v42  ;;  %v3051_v17 = vld [vmem:[%s5446_s10 + $0x40] sm:$0xff] }
 0xaf6   :  { %v2860_v19 = vsub.f32 1.0, %v2859_v5  ;;  %v3442_v42 = vld [vmem:[%s5444_s8] ss:$0 sm:$0xff] }
 0xaf7   :  { %v2842_v27 = vmul.f32 %v3692_v39, %v2841_v56  ;;  %vm2888_vm15 = vcmp.eq.f32.partialorder %v2887_v38, 8.507059e+37  ;;  %v3050_v56 = vld [vmem:[%s5446_s10 + $0x38] sm:$0xff] }
 0xaf8   :  { %v2861_v4 = vmul.f32 %v3694_v51, %v2860_v19 }
 0xaf9   :  { %v3696_v7 = vpop.eup %3695  ;;  %v2843_v11 = vadd.f32 %v3692_v39, %v2842_v27 }
 0xafa   :  { %v2862_v9 = vadd.f32 %v3694_v51, %v2861_v4  ;;  %v2879_v36 = vmul.f32 %v3696_v7, %v2877_v30  ;;  %v3698_v8 = vpop.eup %3697  ;;  %vm2884_vm11 = vweird.f32 %v3696_v7  ;;  %v3053_v30 = vld [vmem:[%s5446_s10 + $0x50] sm:$0xff] }
 0xafb   :  { %v2847_v61 = vsel %vm2846_vm7, %v3692_v39, %v2843_v11  ;;  %vm2885_vm13 = vmor %vm2883_vm12, %vm2884_vm11  ;;  %v3046_v11 = vld [vmem:[%s5446_s10 + $0x18] sm:$0xff]  ;;  %vm3176_vm7 = vcmask 123904   ;;  %vm3225_vm12 = vcmask 0  }
 0xafc   :  { %v2852_v29 = vsel %vm2849_vm9, %v2851_v35, %v2847_v61  ;;  %v2866_v16 = vsel %vm2865_vm8, %v3694_v51, %v2862_v9  ;;  %v2880_v34 = vsub.f32 1.0, %v2879_v36  ;;  %v3045_v35 = vld [vmem:[%s5446_s10 + $0x10] sm:$0xff]  ;;  %v3044_v36 = vld [vmem:[%s5446_s10 + $0x8] sm:$0xff] }
 0xafd   :  { %v2871_v15 = vsel %vm2868_vm10, %v2870_v18, %v2866_v16  ;;  %v2897_v22 = vmul.f32 %v3698_v8, %v2852_v29  ;;  %v3043_v18 = vld [vmem:[%s5446_s10] sm:$0xff] }
 0xafe   :  { %v2896_v10 = vmul.f32 %v2894_v20, %v2871_v15  ;;  %v2881_v40 = vmul.f32 %v3696_v7, %v2880_v34 }
 0xb00   :  { %v2898_v44 = vadd.f32 %v2897_v22, %v2896_v10  ;;  %v2882_v41 = vadd.f32 %v3696_v7, %v2881_v40 }
 0xb02   :  { %3699 = vtanh.f32 %v2898_v44  ;;  %v2886_v43 = vsel %vm2885_vm13, %v3696_v7, %v2882_v41 }
 0xb03   :  { %v2891_v47 = vsel %vm2888_vm15, %v2890_v45, %v2886_v43  ;;  %3701 = vrcp.f32 %v3812_v53 }
 0xb08   :  { %v3700_v46 = vpop.eup %3699 }
 0xb09   :  { %v2900_v48 = vmul.f32 %v3700_v46, %v2891_v47  ;;  %v3702_v54 = vpop.eup %3701 }
 0xb0a   :  { %v3003_v33 = vmul.f32 2.0, %v3702_v54 }
 0xb0b   :  { %v2902_v49 = vrot.slane %v2900_v48, 6 }
 0xb0c   :  { %v3004_v59 = vsub.f32 1.0, %v3003_v33 }
 0xb0d   :  { %v2904_v50 = vadd.f32 %v2902_v49, %v5323_v63  ;;  %v3058_v63 = vld [vmem:[%s5446_s10 + $0x78] sm:$0xff] }
 0xb0e   :  { %3063 = vmatpush.msrb.mxu3 %v3058_v63  ;;  %3139 = vmatpush.msra.mxu0 %v3058_v63  ;;  %v3005_v0 = vmul.f32 %v3702_v54, %v3004_v59 }
 0xb0f   :  { %v2941_v52 = vmul.f32 0.0625, %v2904_v50 }
 0xb10   :  { %3064 = vmatpush.msrb.mxu3 %v3057_v21  ;;  %3140 = vmatpush.msra.mxu0 %v3057_v21  ;;  %v3006_v26 = vadd.f32 %v3702_v54, %v3005_v0 }
 0xb11   :  { %3421 = vmatmul.msk.f32.vlgmr.msra.gmra.mxu1 %vm274_vm14, %v2941_v52  ;;  %vm3007_vm14 = vweird.f32 %v3702_v54 }
 0xb12   :  { %3065 = vmatpush.msrb.mxu3 %v3056_v23  ;;  %3141 = vmatpush.msra.mxu0 %v3056_v23  ;;  %v5368_v1 = vsel %vm3007_vm14, %v3702_v54, %v3006_v26  ;;  %v3165_v26 = vld [vmem:[%s5448_s12] sm:$0x3] }
 0xb13   :  { %3167 = vrot.lane.b32.xlu1 %v3165_v26, %s3813_s15 }
 0xb14   :  { %3066 = vmatpush.msrb.mxu3 %v3055_v28  ;;  %3142 = vmatpush.msra.mxu0 %v3055_v28 }
 0xb16   :  { %3067 = vmatpush.msrb.mxu3 %v3054_v12  ;;  %3143 = vmatpush.msra.mxu0 %v3054_v12 }
 0xb18   :  { %3068 = vmatpush.msrb.mxu3 %v3053_v30  ;;  %3144 = vmatpush.msra.mxu0 %v3053_v30 }
 0xb1a   :  { %3069 = vmatpush.msrb.mxu3 %v3052_v2  ;;  %3145 = vmatpush.msra.mxu0 %v3052_v2 }
 0xb1c   :  { %3070 = vmatpush.msrb.mxu3 %v3051_v17  ;;  %3146 = vmatpush.msra.mxu0 %v3051_v17 }
 0xb1e   :  { %3071 = vmatpush.msrb.mxu3 %v3050_v56  ;;  %3147 = vmatpush.msra.mxu0 %v3050_v56 }
 0xb20   :  { %3072 = vmatpush.msrb.mxu3 %v3049_v31  ;;  %3148 = vmatpush.msra.mxu0 %v3049_v31 }
 0xb22   :  { %3073 = vmatpush.msrb.mxu3 %v3048_v6  ;;  %3149 = vmatpush.msra.mxu0 %v3048_v6 }
 0xb24   :  { %3074 = vmatpush.msrb.mxu3 %v3047_v13  ;;  %3150 = vmatpush.msra.mxu0 %v3047_v13 }
 0xb26   :  { %3075 = vmatpush.msrb.mxu3 %v3046_v11  ;;  %3151 = vmatpush.msra.mxu0 %v3046_v11 }
 0xb28   :  { %3076 = vmatpush.msrb.mxu3 %v3045_v35  ;;  %3152 = vmatpush.msra.mxu0 %v3045_v35 }
 0xb2a   :  { %3077 = vmatpush.msrb.mxu3 %v3044_v36  ;;  %3153 = vmatpush.msra.mxu0 %v3044_v36 }
 0xb2c   :  { %3078 = vmatpush.msrb.mxu3 %v3043_v18  ;;  %3154 = vmatpush.msra.mxu0 %v3043_v18 }
 0xb6a   :  { %v2991_v57 = vpop.f32.mrf.mxu2 }
 0xb6b   :  { %v2992_v58 = vadd.f32 %v5349_v55, %v2991_v57 }
 0xb6d   :  { %v2995_v60 = vsel %vm2994_vm0, %v2992_v58, 0.0 }
 0xb6e   :  { %v2996_v14 = vrot.slane %v2995_v60, 4 }
 0xb70   :  { %v2997_v62 = vadd.f32 %v2996_v14, %v2995_v60 }
 0xb72   :  { %v2998_v24 = vrot.slane %v2997_v62, 2 }
 0xb74   :  { %v2999_v25 = vadd.f32 %v2998_v24, %v2997_v62 }
 0xb76   :  { %v3000_v3 = vrot.slane %v2999_v25, 1 }
 0xb78   :  { %v3001_v39 = vadd.f32 %v3000_v3, %v2999_v25 }
 0xb7a   :  { %v3009_v51 = vmul.f32 %v5368_v1, %v3001_v39 }
 0xb7c   :  { %v3010_v5 = vsub.f32 %v2992_v58, %v3009_v51 }
 0xb7e   :  { %v3011_v19 = vmul.f32 %v3010_v5, %v3010_v5 }
 0xb80   :  { %v3012_v37 = vsel %vm2994_vm0, %v3011_v19, 0.0 }
 0xb81   :  { %v3013_v27 = vrot.slane %v3012_v37, 4 }
 0xb83   :  { %v3014_v4 = vadd.f32 %v3013_v27, %v3012_v37 }
 0xb85   :  { %v3015_v7 = vrot.slane %v3014_v4, 2 }
 0xb87   :  { %v3016_v9 = vadd.f32 %v3015_v7, %v3014_v4 }
 0xb89   :  { %v3017_v20 = vrot.slane %v3016_v9, 1 }
 0xb8b   :  { %v3018_v61 = vadd.f32 %v3017_v20, %v3016_v9  ;;  %v3168_v9 = vpop.permute.xlu1 %3167 }
 0xb8d   :  { %v3019_v8 = vmul.f32 %v3018_v61, %v5368_v1 }
 0xb8e   :  { %v2962_v29 = vpop.f32.mrf.mxu1 }
 0xb8f   :  { %v3020_v16 = vadd.f32 1e-05, %v3019_v8  ;;  %v2963_v34 = vadd.f32 %v5337_v32, %v2962_v29  ;;  %v3443_v32 = vld [vmem:[%s5445_s9] ss:$0 sm:$0xff] }
 0xb91   :  { %3703 = vrsqrt.f32 %v3020_v16  ;;  %3423 = vmatmul.msk.f32.vlgmr.msra.gmra.mxu2 %vm2970_vm2, %v2963_v34  ;;  %vm3027_vm3 = vweird.f32 %v3020_v16 }
 0xb97   :  { %v3704_v15 = vpop.eup %3703 }
 0xb98   :  { %v3022_v22 = vmul.f32 %v3704_v15, %v3020_v16  ;;  %vm3028_vm1 = vweird.f32 %v3704_v15 }
 0xb99   :  { %vm3029_vm4 = vmor %vm3027_vm3, %vm3028_vm1 }
 0xb9a   :  { %v3023_v10 = vmul.f32 %v3704_v15, %v3022_v22 }
 0xb9c   :  { %v3024_v40 = vmul.f32 0.5, %v3023_v10 }
 0xb9e   :  { %v3025_v44 = vsub.f32 1.5, %v3024_v40 }
 0xba0   :  { %v3026_v41 = vmul.f32 %v3704_v15, %v3025_v44 }
 0xba2   :  { %v3030_v38 = vsel %vm3029_vm4, %v3704_v15, %v3026_v41 }
 0xba3   :  { %v3031_v43 = vmul.f32 %v3030_v38, %v3010_v5 }
 0xba5   :  { %v3036_v45 = vmul.f32 %v3442_v42, %v3031_v43 }
 0xba7   :  { %v3041_v46 = vadd.f32 %v3443_v32, %v3036_v45 }
 0xba9   :  { %v3042_v47 = vmax.f32 %v3041_v46, 0.0 }
 0xbab   :  { %3079 = vmatmul.f32.vlgmr.msrb.gmra.mxu3 %v3042_v47 }
 0xc14   :  { %v3103_v48 = vpop.f32.mrf.mxu2 }
 0xc15   :  { %v3104_v49 = vadd.f32 %v5349_v55, %v3103_v48 }
 0xc17   :  { %v3106_v50 = vsel %vm2994_vm0, %v3104_v49, 0.0 }
 0xc18   :  { %v3107_v52 = vrot.slane %v3106_v50, 4 }
 0xc1a   :  { %v3108_v53 = vadd.f32 %v3107_v52, %v3106_v50 }
 0xc1c   :  { %v3109_v54 = vrot.slane %v3108_v53, 2 }
 0xc1e   :  { %v3110_v33 = vadd.f32 %v3109_v54, %v3108_v53 }
 0xc20   :  { %v3111_v57 = vrot.slane %v3110_v33, 1 }
 0xc22   :  { %v3112_v58 = vadd.f32 %v3111_v57, %v3110_v33 }
 0xc24   :  { %v3113_v59 = vmul.f32 %v3112_v58, %v5368_v1 }
 0xc26   :  { %v3114_v60 = vsub.f32 %v3104_v49, %v3113_v59 }
 0xc28   :  { %v3115_v63 = vmul.f32 %v3114_v60, %v3114_v60 }
 0xc2a   :  { %v3116_v14 = vsel %vm2994_vm0, %v3115_v63, 0.0 }
 0xc2b   :  { %v3117_v0 = vrot.slane %v3116_v14, 4 }
 0xc2d   :  { %v3118_v21 = vadd.f32 %v3117_v0, %v3116_v14 }
 0xc2e   :  { %v3080_v37 = vpop.f32.mrf.mxu3 }
 0xc2f   :  { %v3119_v62 = vrot.slane %v3118_v21, 2 }
 0xc31   :  { %v3120_v23 = vadd.f32 %v3119_v62, %v3118_v21 }
 0xc33   :  { %v3121_v24 = vrot.slane %v3120_v23, 1 }
 0xc35   :  { %v3122_v55 = vadd.f32 %v3121_v24, %v3120_v23 }
 0xc37   :  { %v3123_v28 = vmul.f32 %v3122_v55, %v5368_v1  ;;  %v3444_v1 = vld [vmem:[%s5447_s11] ss:$0 sm:$0xff] }
 0xc38   :  { %v3081_v6 = vadd.f32 %v3444_v1, %v3080_v37 }
 0xc39   :  { %v3124_v25 = vadd.f32 1e-05, %v3123_v28 }
 0xc3a   :  { %v3159_v18 = vmul.f32 0.5, %v3081_v6 }
 0xc3b   :  { %3705 = vrsqrt.f32 %v3124_v25  ;;  %vm3131_vm5 = vweird.f32 %v3124_v25 }
 0xc3c   :  { %v3160_v61 = vmul.f32 1.442695, %v3159_v18 }
 0xc41   :  { %v3706_v12 = vpop.eup %3705 }
 0xc42   :  { %v3126_v3 = vmul.f32 %v3706_v12, %v3124_v25  ;;  %vm3132_vm2 = vweird.f32 %v3706_v12 }
 0xc43   :  { %vm3133_vm6 = vmor %vm3131_vm5, %vm3132_vm2 }
 0xc44   :  { %v3127_v30 = vmul.f32 %v3706_v12, %v3126_v3 }
 0xc46   :  { %v3128_v39 = vmul.f32 0.5, %v3127_v30 }
 0xc48   :  { %v3129_v2 = vsub.f32 1.5, %v3128_v39 }
 0xc4a   :  { %v3130_v51 = vmul.f32 %v3706_v12, %v3129_v2 }
 0xc4c   :  { %v3134_v17 = vsel %vm3133_vm6, %v3706_v12, %v3130_v51 }
 0xc4d   :  { %v3135_v5 = vmul.f32 %v3134_v17, %v3114_v60 }
 0xc4f   :  { %v3136_v56 = vmul.f32 %v3442_v42, %v3135_v5 }
 0xc51   :  { %v3137_v19 = vadd.f32 %v3443_v32, %v3136_v56 }
 0xc53   :  { %v3138_v31 = vmax.f32 %v3137_v19, 0.0 }
 0xc55   :  { %3155 = vmatmul.f32.vlgmr.msra.gmra.mxu0 %v3138_v31 }
 0xcd2   :  { %v3156_v27 = vpop.f32.mrf.mxu0 }
 0xcd3   :  { %v3157_v4 = vadd.f32 %v3444_v1, %v3156_v27 }
 0xcd5   :  { %v3162_v13 = vmul.f32 0.5, %v3157_v4  ;;  %v3184_v7 = vsub.f32 %v3157_v4, %v3081_v6 }
 0xcd7   :  { %v3163_v11 = vmul.f32 1.442695, %v3162_v13  ;;  %v3185_v35 = vmul.f32 %v3184_v7, %v3184_v7 }
 0xcd9   :  { %3707 = vpow2.f32 %v3163_v11  ;;  %3187 = vrot.lane.b32.xlu0 %v3185_v35, %s3813_s15 }
 0xcda   :  { %3709 = vpow2.f32 %v3160_v61 }
 0xcdf   :  { %v3708_v36 = vpop.eup %3707 }
 0xce0   :  { %v3170_v20 = vmul.f32 %v3708_v36, %v3168_v9  ;;  %v3710_v8 = vpop.eup %3709  ;;  %v3183_v46 = vmul.f32 %v3708_v36, %v3708_v36 }
 0xce1   :  { %v3191_v29 = vmul.f32 2.0, %v3710_v8 }
 0xce2   :  { %3172 = vrot.lane.b32.xlu2 %v3170_v20, %s3814_s17 }
 0xce3   :  { %v3192_v16 = vmul.f32 %v3710_v8, %v3191_v29 }
 0xce5   :  { %3711 = vrcp.f32 %v3192_v16  ;;  %v3204_v38 = vand.u32 2147483648, %v3192_v16  ;;  %vm3198_vm9 = vweird.f32 %v3192_v16  ;;  %v3202_v43 = vand.u32 2147483647, %v3192_v16 }
 0xce6   :  { %3713 = vlog2.f32 %v3708_v36 }
 0xce7   :  { %3715 = vlog2.f32 %v3710_v8  ;;  %v3205_v48 = vor.u32 1.1754944e-38, %v3204_v38  ;;  %vm3203_vm11 = vcmp.eq.f32.partialorder %v3202_v43, 8.507059e+37 }
 0xceb   :  { %v3712_v34 = vpop.eup %3711 }
 0xcec   :  { %v3194_v15 = vmul.f32 %v3712_v34, %v3192_v16  ;;  %vm3199_vm8 = vweird.f32 %v3712_v34  ;;  %v3714_v42 = vpop.eup %3713 }
 0xced   :  { %v3716_v32 = vpop.eup %3715  ;;  %vm3200_vm10 = vmor %vm3198_vm9, %vm3199_vm8  ;;  %v3181_v47 = vmul.f32 0.6931472, %v3714_v42 }
 0xcee   :  { %v3195_v40 = vsub.f32 1.0, %v3194_v15  ;;  %v3179_v52 = vmul.f32 0.6931472, %v3716_v32 }
 0xcf0   :  { %v3196_v44 = vmul.f32 %v3712_v34, %v3195_v40  ;;  %v3182_v33 = vsub.f32 %v3179_v52, %v3181_v47 }
 0xcf2   :  { %v3197_v41 = vadd.f32 %v3712_v34, %v3196_v44 }
 0xcf4   :  { %v3201_v45 = vsel %vm3200_vm10, %v3712_v34, %v3197_v41 }
 0xcf5   :  { %v3206_v53 = vsel %vm3203_vm11, %v3205_v48, %v3201_v45 }
 0xd3c   :  { %v3173_v22 = vpop.permute.xlu2 %3172 }
 0xd3d   :  { %v3175_v10 = vadd.f32 %v3173_v22, %v3157_v4 }
 0xd3f   :  { %3177 = vst.msk [vmem:[%s5449_s13] sm:$0x3] %vm3176_vm7, %v3175_v10  ;;  %s3815_s13 = smov [#allocation2]  }
 0xd40   :  { %s3234_s19 = sshll.u32 %s3815_s13, 4  ;;  %s3235_s19 = int_to_ptr.vmem [resolvable:$true] %s3234_s19 }
 0xd4b   :  { %v3188_v49 = vpop.permute.xlu0 %3187 }
 0xd4c   :  { %v3190_v50 = vadd.f32 %v3188_v49, %v3183_v46 }
 0xd4e   :  { %v3207_v54 = vmul.f32 %v3206_v53, %v3190_v50 }
 0xd50   :  { %v3208_v57 = vadd.f32 %v3207_v54, %v3182_v33 }
 0xd52   :  { %v3424_v58 = vadd.f32 -0.5, %v3208_v57 }
 0xd54   :  { %3211 = vrot.lane.b32.xlu0 %v3424_v58, %s3814_s17 }
 0xdc6   :  { %v3212_v59 = vpop.permute.xlu0 %3211 }
 0xdc7   :  { %v3214_v60 = vsel %vm3176_vm7, %v3212_v59, 0.0 }
 0xdc8   :  { %3215 = vadd.xlane.f32.xlu1 %v3214_v60 }
 0xe3b   :  { %v3216_v63 = vpop.xlane.xlu1 %3215 }
 0xe3c   :  { %v3217_v14 = vsel %vm2994_vm0, %v3216_v63, 0.0 }
 0xe3d   :  { %v3218_v0 = vrot.slane %v3217_v14, 4 }
 0xe3f   :  { %v3219_v21 = vadd.f32 %v3218_v0, %v3217_v14 }
 0xe41   :  { %v3220_v62 = vrot.slane %v3219_v21, 2 }
 0xe43   :  { %v3221_v23 = vadd.f32 %v3220_v62, %v3219_v21 }
 0xe45   :  { %v3222_v24 = vrot.slane %v3221_v23, 1 }
 0xe47   :  { %v3223_v55 = vadd.f32 %v3222_v24, %v3221_v23 }
 0xe49   :  { %v3224_v26 = vmul.f32 0.5, %v3223_v55 }
 0xe4b   :  { %3226 = vst.msk [vmem:[#allocation2] sm:$0x1] %vm3225_vm12, %v3224_v26 }
 0xe4c   :  { %3239 = dma.vmem_to_hbm [thread:$0]  %s3235_s19, 16, %s3237_s4, [#allocation3]  }
 0xe4d   :  { %3809 = dma.done.wait [#allocation3], 16  }
 0xe4e   :  { %3810 = vsyncadd [#allocation3], 4294967280 }
 0xe4f   :  { %3246 = vsyncpa [#allocation3], 1 }

</bundles_post_ra>
